<compile_context>
chip_gen: v7x
topology: tpu7x:2x2x1
jax: 0.10.0
libtpu: 0.0.40
codegen_flags: <defaults>
</compile_context>

<pallas_src>
import functools

import jax
import jax.numpy as jnp
import numpy as np
from jax.experimental import pallas as pl
from jax.experimental.pallas import tpu as pltpu

EPS = 1e-5                       # nn.InstanceNorm3d default eps
NF_BVP = [8, 12, 16]
_TAPS = [(dt, dh, dw) for dt in range(3) for dh in range(3) for dw in range(3)]
_NT = (((1,), (1,)), ((), ()))   # dot_general dims:  (C, W) x (B, W) -> (C, B)


# --------------------------------------------------------------------------------------
# Static shape bookkeeping
# --------------------------------------------------------------------------------------
def _shape_config(T, H, W):
    To = T                                            # temporal extent (pad 1, k 3, s 1)
    Ho1, Wo1 = (H - 3) // 2 + 1, (W - 3) // 2 + 1     # block-1 output (stride 2, no pad)
    Ho2, Wo2 = Ho1 - 2, Wo1 - 2                       # block-2 output
    Ho3, Wo3 = Ho2 - 2, Wo2 - 2                       # block-3 output
    assert To >= 1 and Ho3 >= 1 and Wo3 >= 1, "input spatial dims too small"
    L = Ho1 * Wo1                 # per-time-step slab width
    TP = To + 2                   # temporally zero-padded extent
    S = TP * L                    # per-sample slab stride (folded layout)
    Q1 = To * L                                       # block-1 output length
    Q2 = (To - 1) * L + (Ho2 - 1) * Wo1 + Wo2         # "dirty" block-2 output length
    Q3 = (To - 1) * L + (Ho3 - 1) * Wo1 + Wo3         # "dirty" block-3 output length
    pad_tail = 2 * L + 2 * Wo1 + 2                    # largest conv tap offset
    return dict(To=To, Ho1=Ho1, Wo1=Wo1, Ho2=Ho2, Wo2=Wo2, Ho3=Ho3, Wo3=Wo3,
                L=L, TP=TP, S=S, Q1=Q1, Q2=Q2, Q3=Q3, pad_tail=pad_tail)


def _fold_masks(cfg, B):
    """(3, B, B*S) f32 per-(block, sample) valid-output indicators in the folded layout."""
    L, wrow, S = cfg["L"], cfg["Wo1"], cfg["S"]
    s = np.arange(S)
    r = s % L
    # block 1: data occupies segment columns [L, L+Q1) (temporal-pad offset baked in)
    v1 = (s >= L) & (s < L + cfg["Q1"])
    # blocks 2/3: dirty conv output at segment column q; valid iff (t, h, w) in range
    v2 = (s < cfg["Q2"]) & (r // wrow < cfg["Ho2"]) & (r % wrow < cfg["Wo2"])
    v3 = (s < cfg["Q3"]) & (r // wrow < cfg["Ho3"]) & (r % wrow < cfg["Wo3"])

    def fold(v):
        m = np.zeros((B, B * S), np.float32)
        for b in range(B):
            m[b, b * S:(b + 1) * S] = v.astype(np.float32)
        return m

    return np.stack([fold(v1), fold(v2), fold(v3)])


# --------------------------------------------------------------------------------------
# Fused Pallas kernel: 3 x (Conv3d -> Tanh -> InstanceNorm3d), B samples per grid step
# --------------------------------------------------------------------------------------
def _fused_kernel(cfg, B, p1_ref, w1_ref, w2_ref, w3_ref, mt_ref, o_ref, a1_ref, a2_ref):
    f32 = jnp.float32
    L, wrow, S, pad_tail = cfg["L"], cfg["Wo1"], cfg["S"], cfg["pad_tail"]
    Wf = B * S
    inv_n = (1.0 / cfg["Q1"],
             1.0 / (cfg["To"] * cfg["Ho2"] * cfg["Wo2"]),
             1.0 / (cfg["To"] * cfg["Ho3"] * cfg["Wo3"]))

    def bcast(stat, mt):
        # (C, B) per-sample stat -> (C, Wf); zero wherever mt is zero (pad/junk columns).
        out = stat[:, 0:1] * mt[0:1, :]
        for b in range(1, B):
            out = out + stat[:, b:b + 1] * mt[b:b + 1, :]
        return out

    def seg_norm(y, k):
        # Per-(channel, sample) InstanceNorm over valid columns only.  Reductions run on
        # the MXU (review opt 6); broadcast-back through the mask also zeroes every
        # invalid column, re-creating the temporal zero padding of the activation slabs.
        mt = mt_ref[k]                                                        # (B, Wf)
        mu = jax.lax.dot_general(y, mt, _NT, preferred_element_type=f32) * inv_n[k]
        d = y - bcast(mu, mt)
        var = jax.lax.dot_general(d * d, mt, _NT, preferred_element_type=f32) * inv_n[k]
        return d * bcast(jax.lax.rsqrt(var + EPS), mt)

    def conv_taps(w_ref, a_ref, cout):
        # 27 tap-accumulated matmuls (review opt 3); no im2col patch materialization.
        acc = jnp.zeros((cout, Wf), f32)
        for i, (dt, dh, dw) in enumerate(_TAPS):
            off = dt * L + dh * wrow + dw
            acc = acc + jnp.dot(w_ref[i], a_ref[:, off:off + Wf],
                                preferred_element_type=f32)
        return acc

    # Zero the tiny never-written slab borders (front temporal pad of a2, tap-overrun
    # tails).  Done every step (not gated on program_id == 0) so the kernel stays correct
    # if the batch grid axis is split across TensorCores (CORE_PARALLEL on v7x).
    a1_ref[:, Wf:] = jnp.zeros((NF_BVP[0], pad_tail), a1_ref.dtype)
    a2_ref[:, :L] = jnp.zeros((NF_BVP[1], L), a2_ref.dtype)
    a2_ref[:, L + Wf:] = jnp.zeros((NF_BVP[1], pad_tail - L), a2_ref.dtype)

    # ---- Block 1: Conv3d(C->8, k3, s=(1,2,2), p=(1,0,0)) + Tanh + InstanceNorm --------
    # p1 already carries the per-sample temporal-pad offset (zero columns -> tanh(0)=0),
    # so the normalized result is stored with a single lane-dense write.
    y1 = jnp.tanh(jnp.dot(w1_ref[...], p1_ref[...], preferred_element_type=f32))
    a1_ref[:, :Wf] = seg_norm(y1, 0).astype(a1_ref.dtype)

    # ---- Block 2: Conv3d(8->12, k3, s1, p=(1,0,0)) + Tanh + InstanceNorm ---------------
    y2 = seg_norm(jnp.tanh(conv_taps(w2_ref, a1_ref, NF_BVP[1])), 1)
    a2_ref[:, L:L + Wf] = y2.astype(a2_ref.dtype)

    # TODO(synk): nn.Dropout3d(p=0.1) is implemented with inference (identity) semantics.

    # ---- Block 3: Conv3d(12->16, k3, s1, p=(1,0,0)) + Tanh + InstanceNorm --------------
    # Emitted in the lane-dense folded slab layout; the wrapper compacts to NCDHW.
    y3 = seg_norm(jnp.tanh(conv_taps(w3_ref, a2_ref, NF_BVP[2])), 2)
    o_ref[...] = y3.astype(o_ref.dtype)


# --------------------------------------------------------------------------------------
# JAX wrapper glue
# --------------------------------------------------------------------------------------
def _block1_patches(x, Ho1, Wo1):
    # im2col for Conv3d(k=3, stride=(1,2,2), pad=(1,0,0)) on the raw input, in the
    # lane-dense (K, M) layout (M = t*Ho1*Wo1 + h*Wo1 + w), rows tap-major/channel-minor.
    N, C, T, H, W = x.shape
    xp = jnp.pad(x, ((0, 0), (0, 0), (1, 1), (0, 0), (0, 0)))
    taps = [xp[:, :, dt:dt + T, dh:dh + 2 * Ho1:2, dw:dw + 2 * Wo1:2]
            for dt, dh, dw in _TAPS]
    p = jnp.stack(taps, axis=1)                         # (N, 27, C, T, Ho1, Wo1)
    return p.reshape(N, 27 * C, T * Ho1 * Wo1).astype(jnp.bfloat16)


def _pick_fold(n, max_fold=4):
    for b in range(min(n, max_fold), 0, -1):
        if n % b == 0:
            return b
    return 1


def _batch_semantics():
    # Review opt 2: on v7x (2 TensorCores/chip) shard the batch grid axis across cores.
    try:
        if "v7" in jax.devices()[0].device_kind.lower():
            return (pltpu.CORE_PARALLEL,)
    except Exception:
        pass
    return ("parallel",)


def rgb_bvp_feature_extractor(x, params, batch_fold=None):
    """x: (N, C, T, H, W) float32 (NCDHW, as PyTorch); params: 3 Conv3d weights."""
    N, C, T, H, W = x.shape
    cfg = _shape_config(T, H, W)
    L, S, Q1 = cfg["L"], cfg["S"], cfg["Q1"]
    To, Ho1, Wo1, Ho3, Wo3 = cfg["To"], cfg["Ho1"], cfg["Wo1"], cfg["Ho3"], cfg["Wo3"]

    B = batch_fold if batch_fold is not None else _pick_fold(N)
    assert N % B == 0, "batch_fold must divide the batch size"
    G = N // B
    Wf = B * S
    Wslab = Wf + cfg["pad_tail"]
    K1 = 27 * C
    K1p = -(-K1 // 16) * 16         # pad LHS K to a bf16 sublane-tile multiple (81 -> 96)

    # Block-1 patches in the folded lane-dense layout (per-sample stride S, offset L), so
    # the zero columns become the slab's temporal zero padding after tanh(0) = 0.
    p1 = _block1_patches(x, Ho1, Wo1)                                  # (N, K1, Q1)
    p1 = jnp.pad(p1, ((0, 0), (0, K1p - K1), (L, S - L - Q1)))         # (N, K1p, S)
    p1 = p1.reshape(G, B, K1p, S).transpose(0, 2, 1, 3).reshape(G, K1p, Wf)

    w1 = jnp.transpose(params[0], (0, 2, 3, 4, 1)).reshape(NF_BVP[0], K1)
    w1 = jnp.pad(w1, ((0, 0), (0, K1p - K1))).astype(jnp.bfloat16)     # (8, K1p)
    w2 = jnp.transpose(params[1], (2, 3, 4, 0, 1)).reshape(27, NF_BVP[1], NF_BVP[0])
    w3 = jnp.transpose(params[2], (2, 3, 4, 0, 1)).reshape(27, NF_BVP[2], NF_BVP[1])
    w2, w3 = w2.astype(jnp.bfloat16), w3.astype(jnp.bfloat16)
    mvt = jnp.asarray(_fold_masks(cfg, B))                             # (3, B, Wf) f32

    out = pl.pallas_call(
        functools.partial(_fused_kernel, cfg, B),
        out_shape=jax.ShapeDtypeStruct((G, NF_BVP[2], Wf), jnp.float32),
        grid=(G,),
        in_specs=[
            pl.BlockSpec((None, K1p, Wf), lambda g: (g, 0, 0)),            # per-step patches
            pl.BlockSpec((NF_BVP[0], K1p), lambda g: (0, 0)),              # weights / masks
            pl.BlockSpec((27, NF_BVP[1], NF_BVP[0]), lambda g: (0, 0, 0)),  # stay resident
            pl.BlockSpec((27, NF_BVP[2], NF_BVP[1]), lambda g: (0, 0, 0)),  # across steps
            pl.BlockSpec((3, B, Wf), lambda g: (0, 0, 0)),
        ],
        out_specs=pl.BlockSpec((None, NF_BVP[2], Wf), lambda g: (g, 0, 0)),
        scratch_shapes=[
            pltpu.VMEM((NF_BVP[0], Wslab), jnp.bfloat16),   # block-1 activation slab
            pltpu.VMEM((NF_BVP[1], Wslab), jnp.bfloat16),   # block-2 activation slab
        ],
        compiler_params=pltpu.CompilerParams(dimension_semantics=_batch_semantics()),
    )(p1, w1, w2, w3, mvt)

    # Lane-dense dirty output -> NCDHW: reshape + static slice + transpose (pure XLA glue).
    out = out.reshape(G, NF_BVP[2], B, cfg["TP"], Ho1, Wo1)[:, :, :, :To, :Ho3, :Wo3]
    return jnp.transpose(out, (0, 2, 1, 3, 4, 5)).reshape(N, NF_BVP[2], To, Ho3, Wo3)


def init_params(key, in_ch=3):
    """Deterministic Conv3d weights (Kaiming-uniform style bounds), bias=False."""
    shapes = [
        (NF_BVP[0], in_ch,     3, 3, 3),
        (NF_BVP[1], NF_BVP[0], 3, 3, 3),
        (NF_BVP[2], NF_BVP[1], 3, 3, 3),
    ]
    params = []
    for s in shapes:
        key, sub = jax.random.split(key)
        fan_in = s[1] * s[2] * s[3] * s[4]
        bound = 1.0 / (fan_in ** 0.5)
        params.append(jax.random.uniform(sub, s, jnp.float32, -bound, bound))
    return params


if __name__ == "__main__":
    key = jax.random.PRNGKey(0)
    k_x, k_w = jax.random.split(key)

    # Small NCDHW input consistent with the module: (N=2, C=3, T=8, H=16, W=16)
    x = jax.random.normal(k_x, (2, 3, 8, 16, 16), dtype=jnp.float32)
    params = init_params(k_w, in_ch=3)

    fwd = jax.jit(rgb_bvp_feature_extractor)
    out = jax.block_until_ready(fwd(x, params))

    # Expected output shape: (2, 16, 8, 3, 3)
    assert out.shape == (2, NF_BVP[2], 8, 3, 3), out.shape
    assert bool(jnp.all(jnp.isfinite(out)))
    print("KERNEL_OK")
</pallas_src>

<mosaic_0001>
module attributes {stable_mosaic.version = 11 : i64} {
  func.func @_fused_kernel(%arg0: i32, %arg1: memref<1x96x980xbf16, #tpu.memory_space<vmem>>, %arg2: memref<8x96xbf16, #tpu.memory_space<vmem>>, %arg3: memref<27x12x8xbf16, #tpu.memory_space<vmem>>, %arg4: memref<27x16x12xbf16, #tpu.memory_space<vmem>>, %arg5: memref<3x2x980xf32, #tpu.memory_space<vmem>>, %arg6: memref<1x16x980xf32, #tpu.memory_space<vmem>>, %arg7: memref<8x1094xbf16, #tpu.memory_space<vmem>>, %arg8: memref<12x1094xbf16, #tpu.memory_space<vmem>>) attributes {dimension_semantics = [#tpu.dimension_semantics<parallel>], iteration_bounds = array<i64: 1>, scalar_prefetch = 0 : i64, scratch_operands = 2 : i64, tpu.core_type = #tpu.core_type<tc>, window_params = [{transform_indices = @transform_0, window_bounds = array<i64: 1, 96, 980>}, {pipeline_mode = #tpu.pipeline_mode<synchronous>, transform_indices = @transform_1, window_bounds = array<i64: 8, 96>}, {pipeline_mode = #tpu.pipeline_mode<synchronous>, transform_indices = @transform_2, window_bounds = array<i64: 27, 12, 8>}, {pipeline_mode = #tpu.pipeline_mode<synchronous>, transform_indices = @transform_3, window_bounds = array<i64: 27, 16, 12>}, {pipeline_mode = #tpu.pipeline_mode<synchronous>, transform_indices = @transform_4, window_bounds = array<i64: 3, 2, 980>}, {transform_indices = @transform_5, window_bounds = array<i64: 1, 16, 980>}]} {
    %cst = arith.constant 0.000000e+00 : bf16
    %0 = vector.broadcast %cst : bf16 to vector<8x114xbf16>
    %c0 = arith.constant 0 : index
    %c980 = arith.constant 980 : index
    %1 = vector.load %arg7[%c0, %c980] : memref<8x1094xbf16, #tpu.memory_space<vmem>>, vector<8x114xbf16>
    tpu.vector_store %arg7[%c0, %c980], %0 {strides = array<i32>} : memref<8x1094xbf16, #tpu.memory_space<vmem>>, vector<8x114xbf16>,
    %cst_0 = arith.constant 0.000000e+00 : bf16
    %2 = vector.broadcast %cst_0 : bf16 to vector<12x49xbf16>
    %c0_1 = arith.constant 0 : index
    %c0_2 = arith.constant 0 : index
    %3 = vector.load %arg8[%c0_1, %c0_2] : memref<12x1094xbf16, #tpu.memory_space<vmem>>, vector<12x49xbf16>
    tpu.vector_store %arg8[%c0_1, %c0_2], %2 {strides = array<i32>} : memref<12x1094xbf16, #tpu.memory_space<vmem>>, vector<12x49xbf16>,
    %cst_3 = arith.constant 0.000000e+00 : bf16
    %4 = vector.broadcast %cst_3 : bf16 to vector<12x65xbf16>
    %c0_4 = arith.constant 0 : index
    %c1029 = arith.constant 1029 : index
    %5 = vector.load %arg8[%c0_4, %c1029] : memref<12x1094xbf16, #tpu.memory_space<vmem>>, vector<12x65xbf16>
    tpu.vector_store %arg8[%c0_4, %c1029], %4 {strides = array<i32>} : memref<12x1094xbf16, #tpu.memory_space<vmem>>, vector<12x65xbf16>,
    %c0_5 = arith.constant 0 : index
    %c0_6 = arith.constant 0 : index
    %6 = vector.load %arg2[%c0_5, %c0_6] : memref<8x96xbf16, #tpu.memory_space<vmem>>, vector<8x96xbf16>
    %c0_7 = arith.constant 0 : index
    %c0_8 = arith.constant 0 : index
    %c0_9 = arith.constant 0 : index
    %7 = vector.load %arg1[%c0_7, %c0_8, %c0_9] : memref<1x96x980xbf16, #tpu.memory_space<vmem>>, vector<1x96x980xbf16>
    %8 = vector.shape_cast %7 : vector<1x96x980xbf16> to vector<96x980xbf16>
    %cst_10 = arith.constant dense<0.000000e+00> : vector<8x980xf32>
    %9 = tpu.matmul %6, %8, %cst_10 {dimension_numbers = #tpu.dot_dimension_numbers<[1], [0], [0], [1], [0, 0, 1, 1], [], []>} : vector<8x96xbf16>, vector<96x980xbf16>, vector<8x980xf32> -> vector<8x980xf32>
    %10 = math.tanh %9 : vector<8x980xf32>
    %c0_11 = arith.constant 0 : index
    %c0_12 = arith.constant 0 : index
    %c0_13 = arith.constant 0 : index
    %11 = vector.load %arg5[%c0_11, %c0_12, %c0_13] : memref<3x2x980xf32, #tpu.memory_space<vmem>>, vector<1x2x980xf32>
    %12 = vector.shape_cast %11 : vector<1x2x980xf32> to vector<2x980xf32>
    %cst_14 = arith.constant dense<0.000000e+00> : vector<8x2xf32>
    %13 = tpu.matmul %10, %12, %cst_14 {dimension_numbers = #tpu.dot_dimension_numbers<[1], [1], [0], [0], [0, 0, 1, 0], [], []>} : vector<8x980xf32>, vector<2x980xf32>, vector<8x2xf32> -> vector<8x2xf32>
    %cst_15 = arith.constant 0.00255102036 : f32
    %14 = vector.broadcast %cst_15 : f32 to vector<8x2xf32>
    %15 = arith.mulf %13, %14 : vector<8x2xf32>
    %16 = vector.extract_strided_slice %15 {offsets = [0, 0], sizes = [8, 1], strides = [1, 1]} : vector<8x2xf32> to vector<8x1xf32>
    %17 = vector.extract_strided_slice %12 {offsets = [0, 0], sizes = [1, 980], strides = [1, 1]} : vector<2x980xf32> to vector<1x980xf32>
    %18 = vector.broadcast %16 : vector<8x1xf32> to vector<8x980xf32>
    %19 = vector.broadcast %17 : vector<1x980xf32> to vector<8x980xf32>
    %20 = arith.mulf %18, %19 : vector<8x980xf32>
    %21 = vector.extract_strided_slice %15 {offsets = [0, 1], sizes = [8, 1], strides = [1, 1]} : vector<8x2xf32> to vector<8x1xf32>
    %22 = vector.extract_strided_slice %12 {offsets = [1, 0], sizes = [1, 980], strides = [1, 1]} : vector<2x980xf32> to vector<1x980xf32>
    %23 = vector.broadcast %21 : vector<8x1xf32> to vector<8x980xf32>
    %24 = vector.broadcast %22 : vector<1x980xf32> to vector<8x980xf32>
    %25 = arith.mulf %23, %24 : vector<8x980xf32>
    %26 = arith.addf %20, %25 : vector<8x980xf32>
    %27 = arith.subf %10, %26 : vector<8x980xf32>
    %28 = arith.mulf %27, %27 : vector<8x980xf32>
    %cst_16 = arith.constant dense<0.000000e+00> : vector<8x2xf32>
    %29 = tpu.matmul %28, %12, %cst_16 {dimension_numbers = #tpu.dot_dimension_numbers<[1], [1], [0], [0], [0, 0, 1, 0], [], []>} : vector<8x980xf32>, vector<2x980xf32>, vector<8x2xf32> -> vector<8x2xf32>
    %cst_17 = arith.constant 0.00255102036 : f32
    %30 = vector.broadcast %cst_17 : f32 to vector<8x2xf32>
    %31 = arith.mulf %29, %30 : vector<8x2xf32>
    %cst_18 = arith.constant 9.99999974E-6 : f32
    %32 = vector.broadcast %cst_18 : f32 to vector<8x2xf32>
    %33 = arith.addf %31, %32 : vector<8x2xf32>
    %34 = math.rsqrt %33 : vector<8x2xf32>
    %35 = vector.extract_strided_slice %34 {offsets = [0, 0], sizes = [8, 1], strides = [1, 1]} : vector<8x2xf32> to vector<8x1xf32>
    %36 = vector.extract_strided_slice %12 {offsets = [0, 0], sizes = [1, 980], strides = [1, 1]} : vector<2x980xf32> to vector<1x980xf32>
    %37 = vector.broadcast %35 : vector<8x1xf32> to vector<8x980xf32>
    %38 = vector.broadcast %36 : vector<1x980xf32> to vector<8x980xf32>
    %39 = arith.mulf %37, %38 : vector<8x980xf32>
    %40 = vector.extract_strided_slice %34 {offsets = [0, 1], sizes = [8, 1], strides = [1, 1]} : vector<8x2xf32> to vector<8x1xf32>
    %41 = vector.extract_strided_slice %12 {offsets = [1, 0], sizes = [1, 980], strides = [1, 1]} : vector<2x980xf32> to vector<1x980xf32>
    %42 = vector.broadcast %40 : vector<8x1xf32> to vector<8x980xf32>
    %43 = vector.broadcast %41 : vector<1x980xf32> to vector<8x980xf32>
    %44 = arith.mulf %42, %43 : vector<8x980xf32>
    %45 = arith.addf %39, %44 : vector<8x980xf32>
    %46 = arith.mulf %27, %45 : vector<8x980xf32>
    %47 = arith.truncf %46 : vector<8x980xf32> to vector<8x980xbf16>
    %c0_19 = arith.constant 0 : index
    %c0_20 = arith.constant 0 : index
    %48 = vector.load %arg7[%c0_19, %c0_20] : memref<8x1094xbf16, #tpu.memory_space<vmem>>, vector<8x980xbf16>
    tpu.vector_store %arg7[%c0_19, %c0_20], %47 {strides = array<i32>} : memref<8x1094xbf16, #tpu.memory_space<vmem>>, vector<8x980xbf16>,
    %cst_21 = arith.constant 0.000000e+00 : f32
    %49 = vector.broadcast %cst_21 : f32 to vector<12x980xf32>
    %c0_22 = arith.constant 0 : index
    %c0_23 = arith.constant 0 : index
    %c0_24 = arith.constant 0 : index
    %50 = vector.load %arg3[%c0_22, %c0_23, %c0_24] : memref<27x12x8xbf16, #tpu.memory_space<vmem>>, vector<1x12x8xbf16>
    %51 = vector.shape_cast %50 : vector<1x12x8xbf16> to vector<12x8xbf16>
    %c0_25 = arith.constant 0 : index
    %c0_26 = arith.constant 0 : index
    %52 = vector.load %arg7[%c0_25, %c0_26] : memref<8x1094xbf16, #tpu.memory_space<vmem>>, vector<8x980xbf16>
    %cst_27 = arith.constant dense<0.000000e+00> : vector<12x980xf32>
    %53 = tpu.matmul %51, %52, %cst_27 {dimension_numbers = #tpu.dot_dimension_numbers<[1], [0], [0], [1], [0, 0, 1, 1], [], []>} : vector<12x8xbf16>, vector<8x980xbf16>, vector<12x980xf32> -> vector<12x980xf32>
    %54 = arith.addf %49, %53 : vector<12x980xf32>
    %c1 = arith.constant 1 : index
    %c0_28 = arith.constant 0 : index
    %c0_29 = arith.constant 0 : index
    %55 = vector.load %arg3[%c1, %c0_28, %c0_29] : memref<27x12x8xbf16, #tpu.memory_space<vmem>>, vector<1x12x8xbf16>
    %56 = vector.shape_cast %55 : vector<1x12x8xbf16> to vector<12x8xbf16>
    %c0_30 = arith.constant 0 : index
    %c1_31 = arith.constant 1 : index
    %57 = vector.load %arg7[%c0_30, %c1_31] : memref<8x1094xbf16, #tpu.memory_space<vmem>>, vector<8x980xbf16>
    %cst_32 = arith.constant dense<0.000000e+00> : vector<12x980xf32>
    %58 = tpu.matmul %56, %57, %cst_32 {dimension_numbers = #tpu.dot_dimension_numbers<[1], [0], [0], [1], [0, 0, 1, 1], [], []>} : vector<12x8xbf16>, vector<8x980xbf16>, vector<12x980xf32> -> vector<12x980xf32>
    %59 = arith.addf %54, %58 : vector<12x980xf32>
    %c2 = arith.constant 2 : index
    %c0_33 = arith.constant 0 : index
    %c0_34 = arith.constant 0 : index
    %60 = vector.load %arg3[%c2, %c0_33, %c0_34] : memref<27x12x8xbf16, #tpu.memory_space<vmem>>, vector<1x12x8xbf16>
    %61 = vector.shape_cast %60 : vector<1x12x8xbf16> to vector<12x8xbf16>
    %c0_35 = arith.constant 0 : index
    %c2_36 = arith.constant 2 : index
    %62 = vector.load %arg7[%c0_35, %c2_36] : memref<8x1094xbf16, #tpu.memory_space<vmem>>, vector<8x980xbf16>
    %cst_37 = arith.constant dense<0.000000e+00> : vector<12x980xf32>
    %63 = tpu.matmul %61, %62, %cst_37 {dimension_numbers = #tpu.dot_dimension_numbers<[1], [0], [0], [1], [0, 0, 1, 1], [], []>} : vector<12x8xbf16>, vector<8x980xbf16>, vector<12x980xf32> -> vector<12x980xf32>
    %64 = arith.addf %59, %63 : vector<12x980xf32>
    %c3 = arith.constant 3 : index
    %c0_38 = arith.constant 0 : index
    %c0_39 = arith.constant 0 : index
    %65 = vector.load %arg3[%c3, %c0_38, %c0_39] : memref<27x12x8xbf16, #tpu.memory_space<vmem>>, vector<1x12x8xbf16>
    %66 = vector.shape_cast %65 : vector<1x12x8xbf16> to vector<12x8xbf16>
    %c0_40 = arith.constant 0 : index
    %c7 = arith.constant 7 : index
    %67 = vector.load %arg7[%c0_40, %c7] : memref<8x1094xbf16, #tpu.memory_space<vmem>>, vector<8x980xbf16>
    %cst_41 = arith.constant dense<0.000000e+00> : vector<12x980xf32>
    %68 = tpu.matmul %66, %67, %cst_41 {dimension_numbers = #tpu.dot_dimension_numbers<[1], [0], [0], [1], [0, 0, 1, 1], [], []>} : vector<12x8xbf16>, vector<8x980xbf16>, vector<12x980xf32> -> vector<12x980xf32>
    %69 = arith.addf %64, %68 : vector<12x980xf32>
    %c4 = arith.constant 4 : index
    %c0_42 = arith.constant 0 : index
    %c0_43 = arith.constant 0 : index
    %70 = vector.load %arg3[%c4, %c0_42, %c0_43] : memref<27x12x8xbf16, #tpu.memory_space<vmem>>, vector<1x12x8xbf16>
    %71 = vector.shape_cast %70 : vector<1x12x8xbf16> to vector<12x8xbf16>
    %c0_44 = arith.constant 0 : index
    %c8 = arith.constant 8 : index
    %72 = vector.load %arg7[%c0_44, %c8] : memref<8x1094xbf16, #tpu.memory_space<vmem>>, vector<8x980xbf16>
    %cst_45 = arith.constant dense<0.000000e+00> : vector<12x980xf32>
    %73 = tpu.matmul %71, %72, %cst_45 {dimension_numbers = #tpu.dot_dimension_numbers<[1], [0], [0], [1], [0, 0, 1, 1], [], []>} : vector<12x8xbf16>, vector<8x980xbf16>, vector<12x980xf32> -> vector<12x980xf32>
    %74 = arith.addf %69, %73 : vector<12x980xf32>
    %c5 = arith.constant 5 : index
    %c0_46 = arith.constant 0 : index
    %c0_47 = arith.constant 0 : index
    %75 = vector.load %arg3[%c5, %c0_46, %c0_47] : memref<27x12x8xbf16, #tpu.memory_space<vmem>>, vector<1x12x8xbf16>
    %76 = vector.shape_cast %75 : vector<1x12x8xbf16> to vector<12x8xbf16>
    %c0_48 = arith.constant 0 : index
    %c9 = arith.constant 9 : index
    %77 = vector.load %arg7[%c0_48, %c9] : memref<8x1094xbf16, #tpu.memory_space<vmem>>, vector<8x980xbf16>
    %cst_49 = arith.constant dense<0.000000e+00> : vector<12x980xf32>
    %78 = tpu.matmul %76, %77, %cst_49 {dimension_numbers = #tpu.dot_dimension_numbers<[1], [0], [0], [1], [0, 0, 1, 1], [], []>} : vector<12x8xbf16>, vector<8x980xbf16>, vector<12x980xf32> -> vector<12x980xf32>
    %79 = arith.addf %74, %78 : vector<12x980xf32>
    %c6 = arith.constant 6 : index
    %c0_50 = arith.constant 0 : index
    %c0_51 = arith.constant 0 : index
    %80 = vector.load %arg3[%c6, %c0_50, %c0_51] : memref<27x12x8xbf16, #tpu.memory_space<vmem>>, vector<1x12x8xbf16>
    %81 = vector.shape_cast %80 : vector<1x12x8xbf16> to vector<12x8xbf16>
    %c0_52 = arith.constant 0 : index
    %c14 = arith.constant 14 : index
    %82 = vector.load %arg7[%c0_52, %c14] : memref<8x1094xbf16, #tpu.memory_space<vmem>>, vector<8x980xbf16>
    %cst_53 = arith.constant dense<0.000000e+00> : vector<12x980xf32>
    %83 = tpu.matmul %81, %82, %cst_53 {dimension_numbers = #tpu.dot_dimension_numbers<[1], [0], [0], [1], [0, 0, 1, 1], [], []>} : vector<12x8xbf16>, vector<8x980xbf16>, vector<12x980xf32> -> vector<12x980xf32>
    %84 = arith.addf %79, %83 : vector<12x980xf32>
    %c7_54 = arith.constant 7 : index
    %c0_55 = arith.constant 0 : index
    %c0_56 = arith.constant 0 : index
    %85 = vector.load %arg3[%c7_54, %c0_55, %c0_56] : memref<27x12x8xbf16, #tpu.memory_space<vmem>>, vector<1x12x8xbf16>
    %86 = vector.shape_cast %85 : vector<1x12x8xbf16> to vector<12x8xbf16>
    %c0_57 = arith.constant 0 : index
    %c15 = arith.constant 15 : index
    %87 = vector.load %arg7[%c0_57, %c15] : memref<8x1094xbf16, #tpu.memory_space<vmem>>, vector<8x980xbf16>
    %cst_58 = arith.constant dense<0.000000e+00> : vector<12x980xf32>
    %88 = tpu.matmul %86, %87, %cst_58 {dimension_numbers = #tpu.dot_dimension_numbers<[1], [0], [0], [1], [0, 0, 1, 1], [], []>} : vector<12x8xbf16>, vector<8x980xbf16>, vector<12x980xf32> -> vector<12x980xf32>
    %89 = arith.addf %84, %88 : vector<12x980xf32>
    %c8_59 = arith.constant 8 : index
    %c0_60 = arith.constant 0 : index
    %c0_61 = arith.constant 0 : index
    %90 = vector.load %arg3[%c8_59, %c0_60, %c0_61] : memref<27x12x8xbf16, #tpu.memory_space<vmem>>, vector<1x12x8xbf16>
    %91 = vector.shape_cast %90 : vector<1x12x8xbf16> to vector<12x8xbf16>
    %c0_62 = arith.constant 0 : index
    %c16 = arith.constant 16 : index
    %92 = vector.load %arg7[%c0_62, %c16] : memref<8x1094xbf16, #tpu.memory_space<vmem>>, vector<8x980xbf16>
    %cst_63 = arith.constant dense<0.000000e+00> : vector<12x980xf32>
    %93 = tpu.matmul %91, %92, %cst_63 {dimension_numbers = #tpu.dot_dimension_numbers<[1], [0], [0], [1], [0, 0, 1, 1], [], []>} : vector<12x8xbf16>, vector<8x980xbf16>, vector<12x980xf32> -> vector<12x980xf32>
    %94 = arith.addf %89, %93 : vector<12x980xf32>
    %c9_64 = arith.constant 9 : index
    %c0_65 = arith.constant 0 : index
    %c0_66 = arith.constant 0 : index
    %95 = vector.load %arg3[%c9_64, %c0_65, %c0_66] : memref<27x12x8xbf16, #tpu.memory_space<vmem>>, vector<1x12x8xbf16>
    %96 = vector.shape_cast %95 : vector<1x12x8xbf16> to vector<12x8xbf16>
    %c0_67 = arith.constant 0 : index
    %c49 = arith.constant 49 : index
    %97 = vector.load %arg7[%c0_67, %c49] : memref<8x1094xbf16, #tpu.memory_space<vmem>>, vector<8x980xbf16>
    %cst_68 = arith.constant dense<0.000000e+00> : vector<12x980xf32>
    %98 = tpu.matmul %96, %97, %cst_68 {dimension_numbers = #tpu.dot_dimension_numbers<[1], [0], [0], [1], [0, 0, 1, 1], [], []>} : vector<12x8xbf16>, vector<8x980xbf16>, vector<12x980xf32> -> vector<12x980xf32>
    %99 = arith.addf %94, %98 : vector<12x980xf32>
    %c10 = arith.constant 10 : index
    %c0_69 = arith.constant 0 : index
    %c0_70 = arith.constant 0 : index
    %100 = vector.load %arg3[%c10, %c0_69, %c0_70] : memref<27x12x8xbf16, #tpu.memory_space<vmem>>, vector<1x12x8xbf16>
    %101 = vector.shape_cast %100 : vector<1x12x8xbf16> to vector<12x8xbf16>
    %c0_71 = arith.constant 0 : index
    %c50 = arith.constant 50 : index
    %102 = vector.load %arg7[%c0_71, %c50] : memref<8x1094xbf16, #tpu.memory_space<vmem>>, vector<8x980xbf16>
    %cst_72 = arith.constant dense<0.000000e+00> : vector<12x980xf32>
    %103 = tpu.matmul %101, %102, %cst_72 {dimension_numbers = #tpu.dot_dimension_numbers<[1], [0], [0], [1], [0, 0, 1, 1], [], []>} : vector<12x8xbf16>, vector<8x980xbf16>, vector<12x980xf32> -> vector<12x980xf32>
    %104 = arith.addf %99, %103 : vector<12x980xf32>
    %c11 = arith.constant 11 : index
    %c0_73 = arith.constant 0 : index
    %c0_74 = arith.constant 0 : index
    %105 = vector.load %arg3[%c11, %c0_73, %c0_74] : memref<27x12x8xbf16, #tpu.memory_space<vmem>>, vector<1x12x8xbf16>
    %106 = vector.shape_cast %105 : vector<1x12x8xbf16> to vector<12x8xbf16>
    %c0_75 = arith.constant 0 : index
    %c51 = arith.constant 51 : index
    %107 = vector.load %arg7[%c0_75, %c51] : memref<8x1094xbf16, #tpu.memory_space<vmem>>, vector<8x980xbf16>
    %cst_76 = arith.constant dense<0.000000e+00> : vector<12x980xf32>
    %108 = tpu.matmul %106, %107, %cst_76 {dimension_numbers = #tpu.dot_dimension_numbers<[1], [0], [0], [1], [0, 0, 1, 1], [], []>} : vector<12x8xbf16>, vector<8x980xbf16>, vector<12x980xf32> -> vector<12x980xf32>
    %109 = arith.addf %104, %108 : vector<12x980xf32>
    %c12 = arith.constant 12 : index
    %c0_77 = arith.constant 0 : index
    %c0_78 = arith.constant 0 : index
    %110 = vector.load %arg3[%c12, %c0_77, %c0_78] : memref<27x12x8xbf16, #tpu.memory_space<vmem>>, vector<1x12x8xbf16>
    %111 = vector.shape_cast %110 : vector<1x12x8xbf16> to vector<12x8xbf16>
    %c0_79 = arith.constant 0 : index
    %c56 = arith.constant 56 : index
    %112 = vector.load %arg7[%c0_79, %c56] : memref<8x1094xbf16, #tpu.memory_space<vmem>>, vector<8x980xbf16>
    %cst_80 = arith.constant dense<0.000000e+00> : vector<12x980xf32>
    %113 = tpu.matmul %111, %112, %cst_80 {dimension_numbers = #tpu.dot_dimension_numbers<[1], [0], [0], [1], [0, 0, 1, 1], [], []>} : vector<12x8xbf16>, vector<8x980xbf16>, vector<12x980xf32> -> vector<12x980xf32>
    %114 = arith.addf %109, %113 : vector<12x980xf32>
    %c13 = arith.constant 13 : index
    %c0_81 = arith.constant 0 : index
    %c0_82 = arith.constant 0 : index
    %115 = vector.load %arg3[%c13, %c0_81, %c0_82] : memref<27x12x8xbf16, #tpu.memory_space<vmem>>, vector<1x12x8xbf16>
    %116 = vector.shape_cast %115 : vector<1x12x8xbf16> to vector<12x8xbf16>
    %c0_83 = arith.constant 0 : index
    %c57 = arith.constant 57 : index
    %117 = vector.load %arg7[%c0_83, %c57] : memref<8x1094xbf16, #tpu.memory_space<vmem>>, vector<8x980xbf16>
    %cst_84 = arith.constant dense<0.000000e+00> : vector<12x980xf32>
    %118 = tpu.matmul %116, %117, %cst_84 {dimension_numbers = #tpu.dot_dimension_numbers<[1], [0], [0], [1], [0, 0, 1, 1], [], []>} : vector<12x8xbf16>, vector<8x980xbf16>, vector<12x980xf32> -> vector<12x980xf32>
    %119 = arith.addf %114, %118 : vector<12x980xf32>
    %c14_85 = arith.constant 14 : index
    %c0_86 = arith.constant 0 : index
    %c0_87 = arith.constant 0 : index
    %120 = vector.load %arg3[%c14_85, %c0_86, %c0_87] : memref<27x12x8xbf16, #tpu.memory_space<vmem>>, vector<1x12x8xbf16>
    %121 = vector.shape_cast %120 : vector<1x12x8xbf16> to vector<12x8xbf16>
    %c0_88 = arith.constant 0 : index
    %c58 = arith.constant 58 : index
    %122 = vector.load %arg7[%c0_88, %c58] : memref<8x1094xbf16, #tpu.memory_space<vmem>>, vector<8x980xbf16>
    %cst_89 = arith.constant dense<0.000000e+00> : vector<12x980xf32>
    %123 = tpu.matmul %121, %122, %cst_89 {dimension_numbers = #tpu.dot_dimension_numbers<[1], [0], [0], [1], [0, 0, 1, 1], [], []>} : vector<12x8xbf16>, vector<8x980xbf16>, vector<12x980xf32> -> vector<12x980xf32>
    %124 = arith.addf %119, %123 : vector<12x980xf32>
    %c15_90 = arith.constant 15 : index
    %c0_91 = arith.constant 0 : index
    %c0_92 = arith.constant 0 : index
    %125 = vector.load %arg3[%c15_90, %c0_91, %c0_92] : memref<27x12x8xbf16, #tpu.memory_space<vmem>>, vector<1x12x8xbf16>
    %126 = vector.shape_cast %125 : vector<1x12x8xbf16> to vector<12x8xbf16>
    %c0_93 = arith.constant 0 : index
    %c63 = arith.constant 63 : index
    %127 = vector.load %arg7[%c0_93, %c63] : memref<8x1094xbf16, #tpu.memory_space<vmem>>, vector<8x980xbf16>
    %cst_94 = arith.constant dense<0.000000e+00> : vector<12x980xf32>
    %128 = tpu.matmul %126, %127, %cst_94 {dimension_numbers = #tpu.dot_dimension_numbers<[1], [0], [0], [1], [0, 0, 1, 1], [], []>} : vector<12x8xbf16>, vector<8x980xbf16>, vector<12x980xf32> -> vector<12x980xf32>
    %129 = arith.addf %124, %128 : vector<12x980xf32>
    %c16_95 = arith.constant 16 : index
    %c0_96 = arith.constant 0 : index
    %c0_97 = arith.constant 0 : index
    %130 = vector.load %arg3[%c16_95, %c0_96, %c0_97] : memref<27x12x8xbf16, #tpu.memory_space<vmem>>, vector<1x12x8xbf16>
    %131 = vector.shape_cast %130 : vector<1x12x8xbf16> to vector<12x8xbf16>
    %c0_98 = arith.constant 0 : index
    %c64 = arith.constant 64 : index
    %132 = vector.load %arg7[%c0_98, %c64] : memref<8x1094xbf16, #tpu.memory_space<vmem>>, vector<8x980xbf16>
    %cst_99 = arith.constant dense<0.000000e+00> : vector<12x980xf32>
    %133 = tpu.matmul %131, %132, %cst_99 {dimension_numbers = #tpu.dot_dimension_numbers<[1], [0], [0], [1], [0, 0, 1, 1], [], []>} : vector<12x8xbf16>, vector<8x980xbf16>, vector<12x980xf32> -> vector<12x980xf32>
    %134 = arith.addf %129, %133 : vector<12x980xf32>
    %c17 = arith.constant 17 : index
    %c0_100 = arith.constant 0 : index
    %c0_101 = arith.constant 0 : index
    %135 = vector.load %arg3[%c17, %c0_100, %c0_101] : memref<27x12x8xbf16, #tpu.memory_space<vmem>>, vector<1x12x8xbf16>
    %136 = vector.shape_cast %135 : vector<1x12x8xbf16> to vector<12x8xbf16>
    %c0_102 = arith.constant 0 : index
    %c65 = arith.constant 65 : index
    %137 = vector.load %arg7[%c0_102, %c65] : memref<8x1094xbf16, #tpu.memory_space<vmem>>, vector<8x980xbf16>
    %cst_103 = arith.constant dense<0.000000e+00> : vector<12x980xf32>
    %138 = tpu.matmul %136, %137, %cst_103 {dimension_numbers = #tpu.dot_dimension_numbers<[1], [0], [0], [1], [0, 0, 1, 1], [], []>} : vector<12x8xbf16>, vector<8x980xbf16>, vector<12x980xf32> -> vector<12x980xf32>
    %139 = arith.addf %134, %138 : vector<12x980xf32>
    %c18 = arith.constant 18 : index
    %c0_104 = arith.constant 0 : index
    %c0_105 = arith.constant 0 : index
    %140 = vector.load %arg3[%c18, %c0_104, %c0_105] : memref<27x12x8xbf16, #tpu.memory_space<vmem>>, vector<1x12x8xbf16>
    %141 = vector.shape_cast %140 : vector<1x12x8xbf16> to vector<12x8xbf16>
    %c0_106 = arith.constant 0 : index
    %c98 = arith.constant 98 : index
    %142 = vector.load %arg7[%c0_106, %c98] : memref<8x1094xbf16, #tpu.memory_space<vmem>>, vector<8x980xbf16>
    %cst_107 = arith.constant dense<0.000000e+00> : vector<12x980xf32>
    %143 = tpu.matmul %141, %142, %cst_107 {dimension_numbers = #tpu.dot_dimension_numbers<[1], [0], [0], [1], [0, 0, 1, 1], [], []>} : vector<12x8xbf16>, vector<8x980xbf16>, vector<12x980xf32> -> vector<12x980xf32>
    %144 = arith.addf %139, %143 : vector<12x980xf32>
    %c19 = arith.constant 19 : index
    %c0_108 = arith.constant 0 : index
    %c0_109 = arith.constant 0 : index
    %145 = vector.load %arg3[%c19, %c0_108, %c0_109] : memref<27x12x8xbf16, #tpu.memory_space<vmem>>, vector<1x12x8xbf16>
    %146 = vector.shape_cast %145 : vector<1x12x8xbf16> to vector<12x8xbf16>
    %c0_110 = arith.constant 0 : index
    %c99 = arith.constant 99 : index
    %147 = vector.load %arg7[%c0_110, %c99] : memref<8x1094xbf16, #tpu.memory_space<vmem>>, vector<8x980xbf16>
    %cst_111 = arith.constant dense<0.000000e+00> : vector<12x980xf32>
    %148 = tpu.matmul %146, %147, %cst_111 {dimension_numbers = #tpu.dot_dimension_numbers<[1], [0], [0], [1], [0, 0, 1, 1], [], []>} : vector<12x8xbf16>, vector<8x980xbf16>, vector<12x980xf32> -> vector<12x980xf32>
    %149 = arith.addf %144, %148 : vector<12x980xf32>
    %c20 = arith.constant 20 : index
    %c0_112 = arith.constant 0 : index
    %c0_113 = arith.constant 0 : index
    %150 = vector.load %arg3[%c20, %c0_112, %c0_113] : memref<27x12x8xbf16, #tpu.memory_space<vmem>>, vector<1x12x8xbf16>
    %151 = vector.shape_cast %150 : vector<1x12x8xbf16> to vector<12x8xbf16>
    %c0_114 = arith.constant 0 : index
    %c100 = arith.constant 100 : index
    %152 = vector.load %arg7[%c0_114, %c100] : memref<8x1094xbf16, #tpu.memory_space<vmem>>, vector<8x980xbf16>
    %cst_115 = arith.constant dense<0.000000e+00> : vector<12x980xf32>
    %153 = tpu.matmul %151, %152, %cst_115 {dimension_numbers = #tpu.dot_dimension_numbers<[1], [0], [0], [1], [0, 0, 1, 1], [], []>} : vector<12x8xbf16>, vector<8x980xbf16>, vector<12x980xf32> -> vector<12x980xf32>
    %154 = arith.addf %149, %153 : vector<12x980xf32>
    %c21 = arith.constant 21 : index
    %c0_116 = arith.constant 0 : index
    %c0_117 = arith.constant 0 : index
    %155 = vector.load %arg3[%c21, %c0_116, %c0_117] : memref<27x12x8xbf16, #tpu.memory_space<vmem>>, vector<1x12x8xbf16>
    %156 = vector.shape_cast %155 : vector<1x12x8xbf16> to vector<12x8xbf16>
    %c0_118 = arith.constant 0 : index
    %c105 = arith.constant 105 : index
    %157 = vector.load %arg7[%c0_118, %c105] : memref<8x1094xbf16, #tpu.memory_space<vmem>>, vector<8x980xbf16>
    %cst_119 = arith.constant dense<0.000000e+00> : vector<12x980xf32>
    %158 = tpu.matmul %156, %157, %cst_119 {dimension_numbers = #tpu.dot_dimension_numbers<[1], [0], [0], [1], [0, 0, 1, 1], [], []>} : vector<12x8xbf16>, vector<8x980xbf16>, vector<12x980xf32> -> vector<12x980xf32>
    %159 = arith.addf %154, %158 : vector<12x980xf32>
    %c22 = arith.constant 22 : index
    %c0_120 = arith.constant 0 : index
    %c0_121 = arith.constant 0 : index
    %160 = vector.load %arg3[%c22, %c0_120, %c0_121] : memref<27x12x8xbf16, #tpu.memory_space<vmem>>, vector<1x12x8xbf16>
    %161 = vector.shape_cast %160 : vector<1x12x8xbf16> to vector<12x8xbf16>
    %c0_122 = arith.constant 0 : index
    %c106 = arith.constant 106 : index
    %162 = vector.load %arg7[%c0_122, %c106] : memref<8x1094xbf16, #tpu.memory_space<vmem>>, vector<8x980xbf16>
    %cst_123 = arith.constant dense<0.000000e+00> : vector<12x980xf32>
    %163 = tpu.matmul %161, %162, %cst_123 {dimension_numbers = #tpu.dot_dimension_numbers<[1], [0], [0], [1], [0, 0, 1, 1], [], []>} : vector<12x8xbf16>, vector<8x980xbf16>, vector<12x980xf32> -> vector<12x980xf32>
    %164 = arith.addf %159, %163 : vector<12x980xf32>
    %c23 = arith.constant 23 : index
    %c0_124 = arith.constant 0 : index
    %c0_125 = arith.constant 0 : index
    %165 = vector.load %arg3[%c23, %c0_124, %c0_125] : memref<27x12x8xbf16, #tpu.memory_space<vmem>>, vector<1x12x8xbf16>
    %166 = vector.shape_cast %165 : vector<1x12x8xbf16> to vector<12x8xbf16>
    %c0_126 = arith.constant 0 : index
    %c107 = arith.constant 107 : index
    %167 = vector.load %arg7[%c0_126, %c107] : memref<8x1094xbf16, #tpu.memory_space<vmem>>, vector<8x980xbf16>
    %cst_127 = arith.constant dense<0.000000e+00> : vector<12x980xf32>
    %168 = tpu.matmul %166, %167, %cst_127 {dimension_numbers = #tpu.dot_dimension_numbers<[1], [0], [0], [1], [0, 0, 1, 1], [], []>} : vector<12x8xbf16>, vector<8x980xbf16>, vector<12x980xf32> -> vector<12x980xf32>
    %169 = arith.addf %164, %168 : vector<12x980xf32>
    %c24 = arith.constant 24 : index
    %c0_128 = arith.constant 0 : index
    %c0_129 = arith.constant 0 : index
    %170 = vector.load %arg3[%c24, %c0_128, %c0_129] : memref<27x12x8xbf16, #tpu.memory_space<vmem>>, vector<1x12x8xbf16>
    %171 = vector.shape_cast %170 : vector<1x12x8xbf16> to vector<12x8xbf16>
    %c0_130 = arith.constant 0 : index
    %c112 = arith.constant 112 : index
    %172 = vector.load %arg7[%c0_130, %c112] : memref<8x1094xbf16, #tpu.memory_space<vmem>>, vector<8x980xbf16>
    %cst_131 = arith.constant dense<0.000000e+00> : vector<12x980xf32>
    %173 = tpu.matmul %171, %172, %cst_131 {dimension_numbers = #tpu.dot_dimension_numbers<[1], [0], [0], [1], [0, 0, 1, 1], [], []>} : vector<12x8xbf16>, vector<8x980xbf16>, vector<12x980xf32> -> vector<12x980xf32>
    %174 = arith.addf %169, %173 : vector<12x980xf32>
    %c25 = arith.constant 25 : index
    %c0_132 = arith.constant 0 : index
    %c0_133 = arith.constant 0 : index
    %175 = vector.load %arg3[%c25, %c0_132, %c0_133] : memref<27x12x8xbf16, #tpu.memory_space<vmem>>, vector<1x12x8xbf16>
    %176 = vector.shape_cast %175 : vector<1x12x8xbf16> to vector<12x8xbf16>
    %c0_134 = arith.constant 0 : index
    %c113 = arith.constant 113 : index
    %177 = vector.load %arg7[%c0_134, %c113] : memref<8x1094xbf16, #tpu.memory_space<vmem>>, vector<8x980xbf16>
    %cst_135 = arith.constant dense<0.000000e+00> : vector<12x980xf32>
    %178 = tpu.matmul %176, %177, %cst_135 {dimension_numbers = #tpu.dot_dimension_numbers<[1], [0], [0], [1], [0, 0, 1, 1], [], []>} : vector<12x8xbf16>, vector<8x980xbf16>, vector<12x980xf32> -> vector<12x980xf32>
    %179 = arith.addf %174, %178 : vector<12x980xf32>
    %c26 = arith.constant 26 : index
    %c0_136 = arith.constant 0 : index
    %c0_137 = arith.constant 0 : index
    %180 = vector.load %arg3[%c26, %c0_136, %c0_137] : memref<27x12x8xbf16, #tpu.memory_space<vmem>>, vector<1x12x8xbf16>
    %181 = vector.shape_cast %180 : vector<1x12x8xbf16> to vector<12x8xbf16>
    %c0_138 = arith.constant 0 : index
    %c114 = arith.constant 114 : index
    %182 = vector.load %arg7[%c0_138, %c114] : memref<8x1094xbf16, #tpu.memory_space<vmem>>, vector<8x980xbf16>
    %cst_139 = arith.constant dense<0.000000e+00> : vector<12x980xf32>
    %183 = tpu.matmul %181, %182, %cst_139 {dimension_numbers = #tpu.dot_dimension_numbers<[1], [0], [0], [1], [0, 0, 1, 1], [], []>} : vector<12x8xbf16>, vector<8x980xbf16>, vector<12x980xf32> -> vector<12x980xf32>
    %184 = arith.addf %179, %183 : vector<12x980xf32>
    %185 = math.tanh %184 : vector<12x980xf32>
    %c1_140 = arith.constant 1 : index
    %c0_141 = arith.constant 0 : index
    %c0_142 = arith.constant 0 : index
    %186 = vector.load %arg5[%c1_140, %c0_141, %c0_142] : memref<3x2x980xf32, #tpu.memory_space<vmem>>, vector<1x2x980xf32>
    %187 = vector.shape_cast %186 : vector<1x2x980xf32> to vector<2x980xf32>
    %cst_143 = arith.constant dense<0.000000e+00> : vector<12x2xf32>
    %188 = tpu.matmul %185, %187, %cst_143 {dimension_numbers = #tpu.dot_dimension_numbers<[1], [1], [0], [0], [0, 0, 1, 0], [], []>} : vector<12x980xf32>, vector<2x980xf32>, vector<12x2xf32> -> vector<12x2xf32>
    %cst_144 = arith.constant 5.000000e-03 : f32
    %189 = vector.broadcast %cst_144 : f32 to vector<12x2xf32>
    %190 = arith.mulf %188, %189 : vector<12x2xf32>
    %191 = vector.extract_strided_slice %190 {offsets = [0, 0], sizes = [12, 1], strides = [1, 1]} : vector<12x2xf32> to vector<12x1xf32>
    %192 = vector.extract_strided_slice %187 {offsets = [0, 0], sizes = [1, 980], strides = [1, 1]} : vector<2x980xf32> to vector<1x980xf32>
    %193 = vector.broadcast %191 : vector<12x1xf32> to vector<12x980xf32>
    %194 = vector.broadcast %192 : vector<1x980xf32> to vector<12x980xf32>
    %195 = arith.mulf %193, %194 : vector<12x980xf32>
    %196 = vector.extract_strided_slice %190 {offsets = [0, 1], sizes = [12, 1], strides = [1, 1]} : vector<12x2xf32> to vector<12x1xf32>
    %197 = vector.extract_strided_slice %187 {offsets = [1, 0], sizes = [1, 980], strides = [1, 1]} : vector<2x980xf32> to vector<1x980xf32>
    %198 = vector.broadcast %196 : vector<12x1xf32> to vector<12x980xf32>
    %199 = vector.broadcast %197 : vector<1x980xf32> to vector<12x980xf32>
    %200 = arith.mulf %198, %199 : vector<12x980xf32>
    %201 = arith.addf %195, %200 : vector<12x980xf32>
    %202 = arith.subf %185, %201 : vector<12x980xf32>
    %203 = arith.mulf %202, %202 : vector<12x980xf32>
    %cst_145 = arith.constant dense<0.000000e+00> : vector<12x2xf32>
    %204 = tpu.matmul %203, %187, %cst_145 {dimension_numbers = #tpu.dot_dimension_numbers<[1], [1], [0], [0], [0, 0, 1, 0], [], []>} : vector<12x980xf32>, vector<2x980xf32>, vector<12x2xf32> -> vector<12x2xf32>
    %cst_146 = arith.constant 5.000000e-03 : f32
    %205 = vector.broadcast %cst_146 : f32 to vector<12x2xf32>
    %206 = arith.mulf %204, %205 : vector<12x2xf32>
    %cst_147 = arith.constant 9.99999974E-6 : f32
    %207 = vector.broadcast %cst_147 : f32 to vector<12x2xf32>
    %208 = arith.addf %206, %207 : vector<12x2xf32>
    %209 = math.rsqrt %208 : vector<12x2xf32>
    %210 = vector.extract_strided_slice %209 {offsets = [0, 0], sizes = [12, 1], strides = [1, 1]} : vector<12x2xf32> to vector<12x1xf32>
    %211 = vector.extract_strided_slice %187 {offsets = [0, 0], sizes = [1, 980], strides = [1, 1]} : vector<2x980xf32> to vector<1x980xf32>
    %212 = vector.broadcast %210 : vector<12x1xf32> to vector<12x980xf32>
    %213 = vector.broadcast %211 : vector<1x980xf32> to vector<12x980xf32>
    %214 = arith.mulf %212, %213 : vector<12x980xf32>
    %215 = vector.extract_strided_slice %209 {offsets = [0, 1], sizes = [12, 1], strides = [1, 1]} : vector<12x2xf32> to vector<12x1xf32>
    %216 = vector.extract_strided_slice %187 {offsets = [1, 0], sizes = [1, 980], strides = [1, 1]} : vector<2x980xf32> to vector<1x980xf32>
    %217 = vector.broadcast %215 : vector<12x1xf32> to vector<12x980xf32>
    %218 = vector.broadcast %216 : vector<1x980xf32> to vector<12x980xf32>
    %219 = arith.mulf %217, %218 : vector<12x980xf32>
    %220 = arith.addf %214, %219 : vector<12x980xf32>
    %221 = arith.mulf %202, %220 : vector<12x980xf32>
    %222 = arith.truncf %221 : vector<12x980xf32> to vector<12x980xbf16>
    %c0_148 = arith.constant 0 : index
    %c49_149 = arith.constant 49 : index
    %223 = vector.load %arg8[%c0_148, %c49_149] : memref<12x1094xbf16, #tpu.memory_space<vmem>>, vector<12x980xbf16>
    tpu.vector_store %arg8[%c0_148, %c49_149], %222 {strides = array<i32>} : memref<12x1094xbf16, #tpu.memory_space<vmem>>, vector<12x980xbf16>,
    %cst_150 = arith.constant 0.000000e+00 : f32
    %224 = vector.broadcast %cst_150 : f32 to vector<16x980xf32>
    %c0_151 = arith.constant 0 : index
    %c0_152 = arith.constant 0 : index
    %c0_153 = arith.constant 0 : index
    %225 = vector.load %arg4[%c0_151, %c0_152, %c0_153] : memref<27x16x12xbf16, #tpu.memory_space<vmem>>, vector<1x16x12xbf16>
    %226 = vector.shape_cast %225 : vector<1x16x12xbf16> to vector<16x12xbf16>
    %c0_154 = arith.constant 0 : index
    %c0_155 = arith.constant 0 : index
    %227 = vector.load %arg8[%c0_154, %c0_155] : memref<12x1094xbf16, #tpu.memory_space<vmem>>, vector<12x980xbf16>
    %cst_156 = arith.constant dense<0.000000e+00> : vector<16x980xf32>
    %228 = tpu.matmul %226, %227, %cst_156 {dimension_numbers = #tpu.dot_dimension_numbers<[1], [0], [0], [1], [0, 0, 1, 1], [], []>} : vector<16x12xbf16>, vector<12x980xbf16>, vector<16x980xf32> -> vector<16x980xf32>
    %229 = arith.addf %224, %228 : vector<16x980xf32>
    %c1_157 = arith.constant 1 : index
    %c0_158 = arith.constant 0 : index
    %c0_159 = arith.constant 0 : index
    %230 = vector.load %arg4[%c1_157, %c0_158, %c0_159] : memref<27x16x12xbf16, #tpu.memory_space<vmem>>, vector<1x16x12xbf16>
    %231 = vector.shape_cast %230 : vector<1x16x12xbf16> to vector<16x12xbf16>
    %c0_160 = arith.constant 0 : index
    %c1_161 = arith.constant 1 : index
    %232 = vector.load %arg8[%c0_160, %c1_161] : memref<12x1094xbf16, #tpu.memory_space<vmem>>, vector<12x980xbf16>
    %cst_162 = arith.constant dense<0.000000e+00> : vector<16x980xf32>
    %233 = tpu.matmul %231, %232, %cst_162 {dimension_numbers = #tpu.dot_dimension_numbers<[1], [0], [0], [1], [0, 0, 1, 1], [], []>} : vector<16x12xbf16>, vector<12x980xbf16>, vector<16x980xf32> -> vector<16x980xf32>
    %234 = arith.addf %229, %233 : vector<16x980xf32>
    %c2_163 = arith.constant 2 : index
    %c0_164 = arith.constant 0 : index
    %c0_165 = arith.constant 0 : index
    %235 = vector.load %arg4[%c2_163, %c0_164, %c0_165] : memref<27x16x12xbf16, #tpu.memory_space<vmem>>, vector<1x16x12xbf16>
    %236 = vector.shape_cast %235 : vector<1x16x12xbf16> to vector<16x12xbf16>
    %c0_166 = arith.constant 0 : index
    %c2_167 = arith.constant 2 : index
    %237 = vector.load %arg8[%c0_166, %c2_167] : memref<12x1094xbf16, #tpu.memory_space<vmem>>, vector<12x980xbf16>
    %cst_168 = arith.constant dense<0.000000e+00> : vector<16x980xf32>
    %238 = tpu.matmul %236, %237, %cst_168 {dimension_numbers = #tpu.dot_dimension_numbers<[1], [0], [0], [1], [0, 0, 1, 1], [], []>} : vector<16x12xbf16>, vector<12x980xbf16>, vector<16x980xf32> -> vector<16x980xf32>
    %239 = arith.addf %234, %238 : vector<16x980xf32>
    %c3_169 = arith.constant 3 : index
    %c0_170 = arith.constant 0 : index
    %c0_171 = arith.constant 0 : index
    %240 = vector.load %arg4[%c3_169, %c0_170, %c0_171] : memref<27x16x12xbf16, #tpu.memory_space<vmem>>, vector<1x16x12xbf16>
    %241 = vector.shape_cast %240 : vector<1x16x12xbf16> to vector<16x12xbf16>
    %c0_172 = arith.constant 0 : index
    %c7_173 = arith.constant 7 : index
    %242 = vector.load %arg8[%c0_172, %c7_173] : memref<12x1094xbf16, #tpu.memory_space<vmem>>, vector<12x980xbf16>
    %cst_174 = arith.constant dense<0.000000e+00> : vector<16x980xf32>
    %243 = tpu.matmul %241, %242, %cst_174 {dimension_numbers = #tpu.dot_dimension_numbers<[1], [0], [0], [1], [0, 0, 1, 1], [], []>} : vector<16x12xbf16>, vector<12x980xbf16>, vector<16x980xf32> -> vector<16x980xf32>
    %244 = arith.addf %239, %243 : vector<16x980xf32>
    %c4_175 = arith.constant 4 : index
    %c0_176 = arith.constant 0 : index
    %c0_177 = arith.constant 0 : index
    %245 = vector.load %arg4[%c4_175, %c0_176, %c0_177] : memref<27x16x12xbf16, #tpu.memory_space<vmem>>, vector<1x16x12xbf16>
    %246 = vector.shape_cast %245 : vector<1x16x12xbf16> to vector<16x12xbf16>
    %c0_178 = arith.constant 0 : index
    %c8_179 = arith.constant 8 : index
    %247 = vector.load %arg8[%c0_178, %c8_179] : memref<12x1094xbf16, #tpu.memory_space<vmem>>, vector<12x980xbf16>
    %cst_180 = arith.constant dense<0.000000e+00> : vector<16x980xf32>
    %248 = tpu.matmul %246, %247, %cst_180 {dimension_numbers = #tpu.dot_dimension_numbers<[1], [0], [0], [1], [0, 0, 1, 1], [], []>} : vector<16x12xbf16>, vector<12x980xbf16>, vector<16x980xf32> -> vector<16x980xf32>
    %249 = arith.addf %244, %248 : vector<16x980xf32>
    %c5_181 = arith.constant 5 : index
    %c0_182 = arith.constant 0 : index
    %c0_183 = arith.constant 0 : index
    %250 = vector.load %arg4[%c5_181, %c0_182, %c0_183] : memref<27x16x12xbf16, #tpu.memory_space<vmem>>, vector<1x16x12xbf16>
    %251 = vector.shape_cast %250 : vector<1x16x12xbf16> to vector<16x12xbf16>
    %c0_184 = arith.constant 0 : index
    %c9_185 = arith.constant 9 : index
    %252 = vector.load %arg8[%c0_184, %c9_185] : memref<12x1094xbf16, #tpu.memory_space<vmem>>, vector<12x980xbf16>
    %cst_186 = arith.constant dense<0.000000e+00> : vector<16x980xf32>
    %253 = tpu.matmul %251, %252, %cst_186 {dimension_numbers = #tpu.dot_dimension_numbers<[1], [0], [0], [1], [0, 0, 1, 1], [], []>} : vector<16x12xbf16>, vector<12x980xbf16>, vector<16x980xf32> -> vector<16x980xf32>
    %254 = arith.addf %249, %253 : vector<16x980xf32>
    %c6_187 = arith.constant 6 : index
    %c0_188 = arith.constant 0 : index
    %c0_189 = arith.constant 0 : index
    %255 = vector.load %arg4[%c6_187, %c0_188, %c0_189] : memref<27x16x12xbf16, #tpu.memory_space<vmem>>, vector<1x16x12xbf16>
    %256 = vector.shape_cast %255 : vector<1x16x12xbf16> to vector<16x12xbf16>
    %c0_190 = arith.constant 0 : index
    %c14_191 = arith.constant 14 : index
    %257 = vector.load %arg8[%c0_190, %c14_191] : memref<12x1094xbf16, #tpu.memory_space<vmem>>, vector<12x980xbf16>
    %cst_192 = arith.constant dense<0.000000e+00> : vector<16x980xf32>
    %258 = tpu.matmul %256, %257, %cst_192 {dimension_numbers = #tpu.dot_dimension_numbers<[1], [0], [0], [1], [0, 0, 1, 1], [], []>} : vector<16x12xbf16>, vector<12x980xbf16>, vector<16x980xf32> -> vector<16x980xf32>
    %259 = arith.addf %254, %258 : vector<16x980xf32>
    %c7_193 = arith.constant 7 : index
    %c0_194 = arith.constant 0 : index
    %c0_195 = arith.constant 0 : index
    %260 = vector.load %arg4[%c7_193, %c0_194, %c0_195] : memref<27x16x12xbf16, #tpu.memory_space<vmem>>, vector<1x16x12xbf16>
    %261 = vector.shape_cast %260 : vector<1x16x12xbf16> to vector<16x12xbf16>
    %c0_196 = arith.constant 0 : index
    %c15_197 = arith.constant 15 : index
    %262 = vector.load %arg8[%c0_196, %c15_197] : memref<12x1094xbf16, #tpu.memory_space<vmem>>, vector<12x980xbf16>
    %cst_198 = arith.constant dense<0.000000e+00> : vector<16x980xf32>
    %263 = tpu.matmul %261, %262, %cst_198 {dimension_numbers = #tpu.dot_dimension_numbers<[1], [0], [0], [1], [0, 0, 1, 1], [], []>} : vector<16x12xbf16>, vector<12x980xbf16>, vector<16x980xf32> -> vector<16x980xf32>
    %264 = arith.addf %259, %263 : vector<16x980xf32>
    %c8_199 = arith.constant 8 : index
    %c0_200 = arith.constant 0 : index
    %c0_201 = arith.constant 0 : index
    %265 = vector.load %arg4[%c8_199, %c0_200, %c0_201] : memref<27x16x12xbf16, #tpu.memory_space<vmem>>, vector<1x16x12xbf16>
    %266 = vector.shape_cast %265 : vector<1x16x12xbf16> to vector<16x12xbf16>
    %c0_202 = arith.constant 0 : index
    %c16_203 = arith.constant 16 : index
    %267 = vector.load %arg8[%c0_202, %c16_203] : memref<12x1094xbf16, #tpu.memory_space<vmem>>, vector<12x980xbf16>
    %cst_204 = arith.constant dense<0.000000e+00> : vector<16x980xf32>
    %268 = tpu.matmul %266, %267, %cst_204 {dimension_numbers = #tpu.dot_dimension_numbers<[1], [0], [0], [1], [0, 0, 1, 1], [], []>} : vector<16x12xbf16>, vector<12x980xbf16>, vector<16x980xf32> -> vector<16x980xf32>
    %269 = arith.addf %264, %268 : vector<16x980xf32>
    %c9_205 = arith.constant 9 : index
    %c0_206 = arith.constant 0 : index
    %c0_207 = arith.constant 0 : index
    %270 = vector.load %arg4[%c9_205, %c0_206, %c0_207] : memref<27x16x12xbf16, #tpu.memory_space<vmem>>, vector<1x16x12xbf16>
    %271 = vector.shape_cast %270 : vector<1x16x12xbf16> to vector<16x12xbf16>
    %c0_208 = arith.constant 0 : index
    %c49_209 = arith.constant 49 : index
    %272 = vector.load %arg8[%c0_208, %c49_209] : memref<12x1094xbf16, #tpu.memory_space<vmem>>, vector<12x980xbf16>
    %cst_210 = arith.constant dense<0.000000e+00> : vector<16x980xf32>
    %273 = tpu.matmul %271, %272, %cst_210 {dimension_numbers = #tpu.dot_dimension_numbers<[1], [0], [0], [1], [0, 0, 1, 1], [], []>} : vector<16x12xbf16>, vector<12x980xbf16>, vector<16x980xf32> -> vector<16x980xf32>
    %274 = arith.addf %269, %273 : vector<16x980xf32>
    %c10_211 = arith.constant 10 : index
    %c0_212 = arith.constant 0 : index
    %c0_213 = arith.constant 0 : index
    %275 = vector.load %arg4[%c10_211, %c0_212, %c0_213] : memref<27x16x12xbf16, #tpu.memory_space<vmem>>, vector<1x16x12xbf16>
    %276 = vector.shape_cast %275 : vector<1x16x12xbf16> to vector<16x12xbf16>
    %c0_214 = arith.constant 0 : index
    %c50_215 = arith.constant 50 : index
    %277 = vector.load %arg8[%c0_214, %c50_215] : memref<12x1094xbf16, #tpu.memory_space<vmem>>, vector<12x980xbf16>
    %cst_216 = arith.constant dense<0.000000e+00> : vector<16x980xf32>
    %278 = tpu.matmul %276, %277, %cst_216 {dimension_numbers = #tpu.dot_dimension_numbers<[1], [0], [0], [1], [0, 0, 1, 1], [], []>} : vector<16x12xbf16>, vector<12x980xbf16>, vector<16x980xf32> -> vector<16x980xf32>
    %279 = arith.addf %274, %278 : vector<16x980xf32>
    %c11_217 = arith.constant 11 : index
    %c0_218 = arith.constant 0 : index
    %c0_219 = arith.constant 0 : index
    %280 = vector.load %arg4[%c11_217, %c0_218, %c0_219] : memref<27x16x12xbf16, #tpu.memory_space<vmem>>, vector<1x16x12xbf16>
    %281 = vector.shape_cast %280 : vector<1x16x12xbf16> to vector<16x12xbf16>
    %c0_220 = arith.constant 0 : index
    %c51_221 = arith.constant 51 : index
    %282 = vector.load %arg8[%c0_220, %c51_221] : memref<12x1094xbf16, #tpu.memory_space<vmem>>, vector<12x980xbf16>
    %cst_222 = arith.constant dense<0.000000e+00> : vector<16x980xf32>
    %283 = tpu.matmul %281, %282, %cst_222 {dimension_numbers = #tpu.dot_dimension_numbers<[1], [0], [0], [1], [0, 0, 1, 1], [], []>} : vector<16x12xbf16>, vector<12x980xbf16>, vector<16x980xf32> -> vector<16x980xf32>
    %284 = arith.addf %279, %283 : vector<16x980xf32>
    %c12_223 = arith.constant 12 : index
    %c0_224 = arith.constant 0 : index
    %c0_225 = arith.constant 0 : index
    %285 = vector.load %arg4[%c12_223, %c0_224, %c0_225] : memref<27x16x12xbf16, #tpu.memory_space<vmem>>, vector<1x16x12xbf16>
    %286 = vector.shape_cast %285 : vector<1x16x12xbf16> to vector<16x12xbf16>
    %c0_226 = arith.constant 0 : index
    %c56_227 = arith.constant 56 : index
    %287 = vector.load %arg8[%c0_226, %c56_227] : memref<12x1094xbf16, #tpu.memory_space<vmem>>, vector<12x980xbf16>
    %cst_228 = arith.constant dense<0.000000e+00> : vector<16x980xf32>
    %288 = tpu.matmul %286, %287, %cst_228 {dimension_numbers = #tpu.dot_dimension_numbers<[1], [0], [0], [1], [0, 0, 1, 1], [], []>} : vector<16x12xbf16>, vector<12x980xbf16>, vector<16x980xf32> -> vector<16x980xf32>
    %289 = arith.addf %284, %288 : vector<16x980xf32>
    %c13_229 = arith.constant 13 : index
    %c0_230 = arith.constant 0 : index
    %c0_231 = arith.constant 0 : index
    %290 = vector.load %arg4[%c13_229, %c0_230, %c0_231] : memref<27x16x12xbf16, #tpu.memory_space<vmem>>, vector<1x16x12xbf16>
    %291 = vector.shape_cast %290 : vector<1x16x12xbf16> to vector<16x12xbf16>
    %c0_232 = arith.constant 0 : index
    %c57_233 = arith.constant 57 : index
    %292 = vector.load %arg8[%c0_232, %c57_233] : memref<12x1094xbf16, #tpu.memory_space<vmem>>, vector<12x980xbf16>
    %cst_234 = arith.constant dense<0.000000e+00> : vector<16x980xf32>
    %293 = tpu.matmul %291, %292, %cst_234 {dimension_numbers = #tpu.dot_dimension_numbers<[1], [0], [0], [1], [0, 0, 1, 1], [], []>} : vector<16x12xbf16>, vector<12x980xbf16>, vector<16x980xf32> -> vector<16x980xf32>
    %294 = arith.addf %289, %293 : vector<16x980xf32>
    %c14_235 = arith.constant 14 : index
    %c0_236 = arith.constant 0 : index
    %c0_237 = arith.constant 0 : index
    %295 = vector.load %arg4[%c14_235, %c0_236, %c0_237] : memref<27x16x12xbf16, #tpu.memory_space<vmem>>, vector<1x16x12xbf16>
    %296 = vector.shape_cast %295 : vector<1x16x12xbf16> to vector<16x12xbf16>
    %c0_238 = arith.constant 0 : index
    %c58_239 = arith.constant 58 : index
    %297 = vector.load %arg8[%c0_238, %c58_239] : memref<12x1094xbf16, #tpu.memory_space<vmem>>, vector<12x980xbf16>
    %cst_240 = arith.constant dense<0.000000e+00> : vector<16x980xf32>
    %298 = tpu.matmul %296, %297, %cst_240 {dimension_numbers = #tpu.dot_dimension_numbers<[1], [0], [0], [1], [0, 0, 1, 1], [], []>} : vector<16x12xbf16>, vector<12x980xbf16>, vector<16x980xf32> -> vector<16x980xf32>
    %299 = arith.addf %294, %298 : vector<16x980xf32>
    %c15_241 = arith.constant 15 : index
    %c0_242 = arith.constant 0 : index
    %c0_243 = arith.constant 0 : index
    %300 = vector.load %arg4[%c15_241, %c0_242, %c0_243] : memref<27x16x12xbf16, #tpu.memory_space<vmem>>, vector<1x16x12xbf16>
    %301 = vector.shape_cast %300 : vector<1x16x12xbf16> to vector<16x12xbf16>
    %c0_244 = arith.constant 0 : index
    %c63_245 = arith.constant 63 : index
    %302 = vector.load %arg8[%c0_244, %c63_245] : memref<12x1094xbf16, #tpu.memory_space<vmem>>, vector<12x980xbf16>
    %cst_246 = arith.constant dense<0.000000e+00> : vector<16x980xf32>
    %303 = tpu.matmul %301, %302, %cst_246 {dimension_numbers = #tpu.dot_dimension_numbers<[1], [0], [0], [1], [0, 0, 1, 1], [], []>} : vector<16x12xbf16>, vector<12x980xbf16>, vector<16x980xf32> -> vector<16x980xf32>
    %304 = arith.addf %299, %303 : vector<16x980xf32>
    %c16_247 = arith.constant 16 : index
    %c0_248 = arith.constant 0 : index
    %c0_249 = arith.constant 0 : index
    %305 = vector.load %arg4[%c16_247, %c0_248, %c0_249] : memref<27x16x12xbf16, #tpu.memory_space<vmem>>, vector<1x16x12xbf16>
    %306 = vector.shape_cast %305 : vector<1x16x12xbf16> to vector<16x12xbf16>
    %c0_250 = arith.constant 0 : index
    %c64_251 = arith.constant 64 : index
    %307 = vector.load %arg8[%c0_250, %c64_251] : memref<12x1094xbf16, #tpu.memory_space<vmem>>, vector<12x980xbf16>
    %cst_252 = arith.constant dense<0.000000e+00> : vector<16x980xf32>
    %308 = tpu.matmul %306, %307, %cst_252 {dimension_numbers = #tpu.dot_dimension_numbers<[1], [0], [0], [1], [0, 0, 1, 1], [], []>} : vector<16x12xbf16>, vector<12x980xbf16>, vector<16x980xf32> -> vector<16x980xf32>
    %309 = arith.addf %304, %308 : vector<16x980xf32>
    %c17_253 = arith.constant 17 : index
    %c0_254 = arith.constant 0 : index
    %c0_255 = arith.constant 0 : index
    %310 = vector.load %arg4[%c17_253, %c0_254, %c0_255] : memref<27x16x12xbf16, #tpu.memory_space<vmem>>, vector<1x16x12xbf16>
    %311 = vector.shape_cast %310 : vector<1x16x12xbf16> to vector<16x12xbf16>
    %c0_256 = arith.constant 0 : index
    %c65_257 = arith.constant 65 : index
    %312 = vector.load %arg8[%c0_256, %c65_257] : memref<12x1094xbf16, #tpu.memory_space<vmem>>, vector<12x980xbf16>
    %cst_258 = arith.constant dense<0.000000e+00> : vector<16x980xf32>
    %313 = tpu.matmul %311, %312, %cst_258 {dimension_numbers = #tpu.dot_dimension_numbers<[1], [0], [0], [1], [0, 0, 1, 1], [], []>} : vector<16x12xbf16>, vector<12x980xbf16>, vector<16x980xf32> -> vector<16x980xf32>
    %314 = arith.addf %309, %313 : vector<16x980xf32>
    %c18_259 = arith.constant 18 : index
    %c0_260 = arith.constant 0 : index
    %c0_261 = arith.constant 0 : index
    %315 = vector.load %arg4[%c18_259, %c0_260, %c0_261] : memref<27x16x12xbf16, #tpu.memory_space<vmem>>, vector<1x16x12xbf16>
    %316 = vector.shape_cast %315 : vector<1x16x12xbf16> to vector<16x12xbf16>
    %c0_262 = arith.constant 0 : index
    %c98_263 = arith.constant 98 : index
    %317 = vector.load %arg8[%c0_262, %c98_263] : memref<12x1094xbf16, #tpu.memory_space<vmem>>, vector<12x980xbf16>
    %cst_264 = arith.constant dense<0.000000e+00> : vector<16x980xf32>
    %318 = tpu.matmul %316, %317, %cst_264 {dimension_numbers = #tpu.dot_dimension_numbers<[1], [0], [0], [1], [0, 0, 1, 1], [], []>} : vector<16x12xbf16>, vector<12x980xbf16>, vector<16x980xf32> -> vector<16x980xf32>
    %319 = arith.addf %314, %318 : vector<16x980xf32>
    %c19_265 = arith.constant 19 : index
    %c0_266 = arith.constant 0 : index
    %c0_267 = arith.constant 0 : index
    %320 = vector.load %arg4[%c19_265, %c0_266, %c0_267] : memref<27x16x12xbf16, #tpu.memory_space<vmem>>, vector<1x16x12xbf16>
    %321 = vector.shape_cast %320 : vector<1x16x12xbf16> to vector<16x12xbf16>
    %c0_268 = arith.constant 0 : index
    %c99_269 = arith.constant 99 : index
    %322 = vector.load %arg8[%c0_268, %c99_269] : memref<12x1094xbf16, #tpu.memory_space<vmem>>, vector<12x980xbf16>
    %cst_270 = arith.constant dense<0.000000e+00> : vector<16x980xf32>
    %323 = tpu.matmul %321, %322, %cst_270 {dimension_numbers = #tpu.dot_dimension_numbers<[1], [0], [0], [1], [0, 0, 1, 1], [], []>} : vector<16x12xbf16>, vector<12x980xbf16>, vector<16x980xf32> -> vector<16x980xf32>
    %324 = arith.addf %319, %323 : vector<16x980xf32>
    %c20_271 = arith.constant 20 : index
    %c0_272 = arith.constant 0 : index
    %c0_273 = arith.constant 0 : index
    %325 = vector.load %arg4[%c20_271, %c0_272, %c0_273] : memref<27x16x12xbf16, #tpu.memory_space<vmem>>, vector<1x16x12xbf16>
    %326 = vector.shape_cast %325 : vector<1x16x12xbf16> to vector<16x12xbf16>
    %c0_274 = arith.constant 0 : index
    %c100_275 = arith.constant 100 : index
    %327 = vector.load %arg8[%c0_274, %c100_275] : memref<12x1094xbf16, #tpu.memory_space<vmem>>, vector<12x980xbf16>
    %cst_276 = arith.constant dense<0.000000e+00> : vector<16x980xf32>
    %328 = tpu.matmul %326, %327, %cst_276 {dimension_numbers = #tpu.dot_dimension_numbers<[1], [0], [0], [1], [0, 0, 1, 1], [], []>} : vector<16x12xbf16>, vector<12x980xbf16>, vector<16x980xf32> -> vector<16x980xf32>
    %329 = arith.addf %324, %328 : vector<16x980xf32>
    %c21_277 = arith.constant 21 : index
    %c0_278 = arith.constant 0 : index
    %c0_279 = arith.constant 0 : index
    %330 = vector.load %arg4[%c21_277, %c0_278, %c0_279] : memref<27x16x12xbf16, #tpu.memory_space<vmem>>, vector<1x16x12xbf16>
    %331 = vector.shape_cast %330 : vector<1x16x12xbf16> to vector<16x12xbf16>
    %c0_280 = arith.constant 0 : index
    %c105_281 = arith.constant 105 : index
    %332 = vector.load %arg8[%c0_280, %c105_281] : memref<12x1094xbf16, #tpu.memory_space<vmem>>, vector<12x980xbf16>
    %cst_282 = arith.constant dense<0.000000e+00> : vector<16x980xf32>
    %333 = tpu.matmul %331, %332, %cst_282 {dimension_numbers = #tpu.dot_dimension_numbers<[1], [0], [0], [1], [0, 0, 1, 1], [], []>} : vector<16x12xbf16>, vector<12x980xbf16>, vector<16x980xf32> -> vector<16x980xf32>
    %334 = arith.addf %329, %333 : vector<16x980xf32>
    %c22_283 = arith.constant 22 : index
    %c0_284 = arith.constant 0 : index
    %c0_285 = arith.constant 0 : index
    %335 = vector.load %arg4[%c22_283, %c0_284, %c0_285] : memref<27x16x12xbf16, #tpu.memory_space<vmem>>, vector<1x16x12xbf16>
    %336 = vector.shape_cast %335 : vector<1x16x12xbf16> to vector<16x12xbf16>
    %c0_286 = arith.constant 0 : index
    %c106_287 = arith.constant 106 : index
    %337 = vector.load %arg8[%c0_286, %c106_287] : memref<12x1094xbf16, #tpu.memory_space<vmem>>, vector<12x980xbf16>
    %cst_288 = arith.constant dense<0.000000e+00> : vector<16x980xf32>
    %338 = tpu.matmul %336, %337, %cst_288 {dimension_numbers = #tpu.dot_dimension_numbers<[1], [0], [0], [1], [0, 0, 1, 1], [], []>} : vector<16x12xbf16>, vector<12x980xbf16>, vector<16x980xf32> -> vector<16x980xf32>
    %339 = arith.addf %334, %338 : vector<16x980xf32>
    %c23_289 = arith.constant 23 : index
    %c0_290 = arith.constant 0 : index
    %c0_291 = arith.constant 0 : index
    %340 = vector.load %arg4[%c23_289, %c0_290, %c0_291] : memref<27x16x12xbf16, #tpu.memory_space<vmem>>, vector<1x16x12xbf16>
    %341 = vector.shape_cast %340 : vector<1x16x12xbf16> to vector<16x12xbf16>
    %c0_292 = arith.constant 0 : index
    %c107_293 = arith.constant 107 : index
    %342 = vector.load %arg8[%c0_292, %c107_293] : memref<12x1094xbf16, #tpu.memory_space<vmem>>, vector<12x980xbf16>
    %cst_294 = arith.constant dense<0.000000e+00> : vector<16x980xf32>
    %343 = tpu.matmul %341, %342, %cst_294 {dimension_numbers = #tpu.dot_dimension_numbers<[1], [0], [0], [1], [0, 0, 1, 1], [], []>} : vector<16x12xbf16>, vector<12x980xbf16>, vector<16x980xf32> -> vector<16x980xf32>
    %344 = arith.addf %339, %343 : vector<16x980xf32>
    %c24_295 = arith.constant 24 : index
    %c0_296 = arith.constant 0 : index
    %c0_297 = arith.constant 0 : index
    %345 = vector.load %arg4[%c24_295, %c0_296, %c0_297] : memref<27x16x12xbf16, #tpu.memory_space<vmem>>, vector<1x16x12xbf16>
    %346 = vector.shape_cast %345 : vector<1x16x12xbf16> to vector<16x12xbf16>
    %c0_298 = arith.constant 0 : index
    %c112_299 = arith.constant 112 : index
    %347 = vector.load %arg8[%c0_298, %c112_299] : memref<12x1094xbf16, #tpu.memory_space<vmem>>, vector<12x980xbf16>
    %cst_300 = arith.constant dense<0.000000e+00> : vector<16x980xf32>
    %348 = tpu.matmul %346, %347, %cst_300 {dimension_numbers = #tpu.dot_dimension_numbers<[1], [0], [0], [1], [0, 0, 1, 1], [], []>} : vector<16x12xbf16>, vector<12x980xbf16>, vector<16x980xf32> -> vector<16x980xf32>
    %349 = arith.addf %344, %348 : vector<16x980xf32>
    %c25_301 = arith.constant 25 : index
    %c0_302 = arith.constant 0 : index
    %c0_303 = arith.constant 0 : index
    %350 = vector.load %arg4[%c25_301, %c0_302, %c0_303] : memref<27x16x12xbf16, #tpu.memory_space<vmem>>, vector<1x16x12xbf16>
    %351 = vector.shape_cast %350 : vector<1x16x12xbf16> to vector<16x12xbf16>
    %c0_304 = arith.constant 0 : index
    %c113_305 = arith.constant 113 : index
    %352 = vector.load %arg8[%c0_304, %c113_305] : memref<12x1094xbf16, #tpu.memory_space<vmem>>, vector<12x980xbf16>
    %cst_306 = arith.constant dense<0.000000e+00> : vector<16x980xf32>
    %353 = tpu.matmul %351, %352, %cst_306 {dimension_numbers = #tpu.dot_dimension_numbers<[1], [0], [0], [1], [0, 0, 1, 1], [], []>} : vector<16x12xbf16>, vector<12x980xbf16>, vector<16x980xf32> -> vector<16x980xf32>
    %354 = arith.addf %349, %353 : vector<16x980xf32>
    %c26_307 = arith.constant 26 : index
    %c0_308 = arith.constant 0 : index
    %c0_309 = arith.constant 0 : index
    %355 = vector.load %arg4[%c26_307, %c0_308, %c0_309] : memref<27x16x12xbf16, #tpu.memory_space<vmem>>, vector<1x16x12xbf16>
    %356 = vector.shape_cast %355 : vector<1x16x12xbf16> to vector<16x12xbf16>
    %c0_310 = arith.constant 0 : index
    %c114_311 = arith.constant 114 : index
    %357 = vector.load %arg8[%c0_310, %c114_311] : memref<12x1094xbf16, #tpu.memory_space<vmem>>, vector<12x980xbf16>
    %cst_312 = arith.constant dense<0.000000e+00> : vector<16x980xf32>
    %358 = tpu.matmul %356, %357, %cst_312 {dimension_numbers = #tpu.dot_dimension_numbers<[1], [0], [0], [1], [0, 0, 1, 1], [], []>} : vector<16x12xbf16>, vector<12x980xbf16>, vector<16x980xf32> -> vector<16x980xf32>
    %359 = arith.addf %354, %358 : vector<16x980xf32>
    %360 = math.tanh %359 : vector<16x980xf32>
    %c2_313 = arith.constant 2 : index
    %c0_314 = arith.constant 0 : index
    %c0_315 = arith.constant 0 : index
    %361 = vector.load %arg5[%c2_313, %c0_314, %c0_315] : memref<3x2x980xf32, #tpu.memory_space<vmem>>, vector<1x2x980xf32>
    %362 = vector.shape_cast %361 : vector<1x2x980xf32> to vector<2x980xf32>
    %cst_316 = arith.constant dense<0.000000e+00> : vector<16x2xf32>
    %363 = tpu.matmul %360, %362, %cst_316 {dimension_numbers = #tpu.dot_dimension_numbers<[1], [1], [0], [0], [0, 0, 1, 0], [], []>} : vector<16x980xf32>, vector<2x980xf32>, vector<16x2xf32> -> vector<16x2xf32>
    %cst_317 = arith.constant 0.013888889 : f32
    %364 = vector.broadcast %cst_317 : f32 to vector<16x2xf32>
    %365 = arith.mulf %363, %364 : vector<16x2xf32>
    %366 = vector.extract_strided_slice %365 {offsets = [0, 0], sizes = [16, 1], strides = [1, 1]} : vector<16x2xf32> to vector<16x1xf32>
    %367 = vector.extract_strided_slice %362 {offsets = [0, 0], sizes = [1, 980], strides = [1, 1]} : vector<2x980xf32> to vector<1x980xf32>
    %368 = vector.broadcast %366 : vector<16x1xf32> to vector<16x980xf32>
    %369 = vector.broadcast %367 : vector<1x980xf32> to vector<16x980xf32>
    %370 = arith.mulf %368, %369 : vector<16x980xf32>
    %371 = vector.extract_strided_slice %365 {offsets = [0, 1], sizes = [16, 1], strides = [1, 1]} : vector<16x2xf32> to vector<16x1xf32>
    %372 = vector.extract_strided_slice %362 {offsets = [1, 0], sizes = [1, 980], strides = [1, 1]} : vector<2x980xf32> to vector<1x980xf32>
    %373 = vector.broadcast %371 : vector<16x1xf32> to vector<16x980xf32>
    %374 = vector.broadcast %372 : vector<1x980xf32> to vector<16x980xf32>
    %375 = arith.mulf %373, %374 : vector<16x980xf32>
    %376 = arith.addf %370, %375 : vector<16x980xf32>
    %377 = arith.subf %360, %376 : vector<16x980xf32>
    %378 = arith.mulf %377, %377 : vector<16x980xf32>
    %cst_318 = arith.constant dense<0.000000e+00> : vector<16x2xf32>
    %379 = tpu.matmul %378, %362, %cst_318 {dimension_numbers = #tpu.dot_dimension_numbers<[1], [1], [0], [0], [0, 0, 1, 0], [], []>} : vector<16x980xf32>, vector<2x980xf32>, vector<16x2xf32> -> vector<16x2xf32>
    %cst_319 = arith.constant 0.013888889 : f32
    %380 = vector.broadcast %cst_319 : f32 to vector<16x2xf32>
    %381 = arith.mulf %379, %380 : vector<16x2xf32>
    %cst_320 = arith.constant 9.99999974E-6 : f32
    %382 = vector.broadcast %cst_320 : f32 to vector<16x2xf32>
    %383 = arith.addf %381, %382 : vector<16x2xf32>
    %384 = math.rsqrt %383 : vector<16x2xf32>
    %385 = vector.extract_strided_slice %384 {offsets = [0, 0], sizes = [16, 1], strides = [1, 1]} : vector<16x2xf32> to vector<16x1xf32>
    %386 = vector.extract_strided_slice %362 {offsets = [0, 0], sizes = [1, 980], strides = [1, 1]} : vector<2x980xf32> to vector<1x980xf32>
    %387 = vector.broadcast %385 : vector<16x1xf32> to vector<16x980xf32>
    %388 = vector.broadcast %386 : vector<1x980xf32> to vector<16x980xf32>
    %389 = arith.mulf %387, %388 : vector<16x980xf32>
    %390 = vector.extract_strided_slice %384 {offsets = [0, 1], sizes = [16, 1], strides = [1, 1]} : vector<16x2xf32> to vector<16x1xf32>
    %391 = vector.extract_strided_slice %362 {offsets = [1, 0], sizes = [1, 980], strides = [1, 1]} : vector<2x980xf32> to vector<1x980xf32>
    %392 = vector.broadcast %390 : vector<16x1xf32> to vector<16x980xf32>
    %393 = vector.broadcast %391 : vector<1x980xf32> to vector<16x980xf32>
    %394 = arith.mulf %392, %393 : vector<16x980xf32>
    %395 = arith.addf %389, %394 : vector<16x980xf32>
    %396 = arith.mulf %377, %395 : vector<16x980xf32>
    %c0_321 = arith.constant 0 : index
    %c0_322 = arith.constant 0 : index
    %c0_323 = arith.constant 0 : index
    %397 = vector.load %arg6[%c0_321, %c0_322, %c0_323] : memref<1x16x980xf32, #tpu.memory_space<vmem>>, vector<1x16x980xf32>
    %398 = vector.shape_cast %397 : vector<1x16x980xf32> to vector<16x980xf32>
    %399 = vector.shape_cast %396 : vector<16x980xf32> to vector<1x16x980xf32>
    tpu.vector_store %arg6[%c0_321, %c0_322, %c0_323], %399 {strides = array<i32>} : memref<1x16x980xf32, #tpu.memory_space<vmem>>, vector<1x16x980xf32>,
    return
  }
  func.func @transform_0(%arg0: i32) -> (i32, i32, i32) {
    %c0_i32 = arith.constant 0 : i32
    %c0_i32_0 = arith.constant 0 : i32
    %c0_i32_1 = arith.constant 0 : i32
    return %arg0, %c0_i32, %c0_i32_0 : i32, i32, i32
  }
  func.func @transform_1(%arg0: i32) -> (i32, i32) {
    %c0_i32 = arith.constant 0 : i32
    %c0_i32_0 = arith.constant 0 : i32
    %c0_i32_1 = arith.constant 0 : i32
    return %c0_i32, %c0_i32_0 : i32, i32
  }
  func.func @transform_2(%arg0: i32) -> (i32, i32, i32) {
    %c0_i32 = arith.constant 0 : i32
    %c0_i32_0 = arith.constant 0 : i32
    %c0_i32_1 = arith.constant 0 : i32
    %c0_i32_2 = arith.constant 0 : i32
    return %c0_i32, %c0_i32_0, %c0_i32_1 : i32, i32, i32
  }
  func.func @transform_3(%arg0: i32) -> (i32, i32, i32) {
    %c0_i32 = arith.constant 0 : i32
    %c0_i32_0 = arith.constant 0 : i32
    %c0_i32_1 = arith.constant 0 : i32
    %c0_i32_2 = arith.constant 0 : i32
    return %c0_i32, %c0_i32_0, %c0_i32_1 : i32, i32, i32
  }
  func.func @transform_4(%arg0: i32) -> (i32, i32, i32) {
    %c0_i32 = arith.constant 0 : i32
    %c0_i32_0 = arith.constant 0 : i32
    %c0_i32_1 = arith.constant 0 : i32
    %c0_i32_2 = arith.constant 0 : i32
    return %c0_i32, %c0_i32_0, %c0_i32_1 : i32, i32, i32
  }
  func.func @transform_5(%arg0: i32) -> (i32, i32, i32) {
    %c0_i32 = arith.constant 0 : i32
    %c0_i32_0 = arith.constant 0 : i32
    %c0_i32_1 = arith.constant 0 : i32
    return %arg0, %c0_i32, %c0_i32_0 : i32, i32, i32
  }
}

</mosaic_0001>

<bundles_post_ra>
// kernel: rgb_bvp_feature_extractor.1
= control target key start
LH: loop header
LB: loop body
LE: loop exit
PB: predicated region body
PF: predicated region fallthrough
CT: control target
= control target key end

     0   :  { %v22819_v3 = vmov 0   ;;  %vm322_vm0 = vcmask 785408   ;;  %vm22839_vm1 = vcmask 687104   ;;  %vm21_vm2 = vcmask 1044128   ;;  %s18796_s17 = smov 78   ;;  %s18797_s18 = smov 72   ;;  %s22796_s0 = inlined_call_operand.vmem [shape: bf16[1,96,980], index: 0, kind: input, shape index: {}]   ;;  %s22797_s1 = inlined_call_operand.vmem [shape: bf16[8,96], index: 1, kind: input, shape index: {}]   ;;  %s22798_s4 = inlined_call_operand.vmem [shape: f32[3,2,980], index: 4, kind: input, shape index: {}]   ;;  %s22799_s2 = inlined_call_operand.vmem [shape: bf16[27,12,8], index: 2, kind: input, shape index: {}]   ;;  %s22800_s3 = inlined_call_operand.vmem [shape: bf16[27,16,12], index: 3, kind: input, shape index: {}]   ;;  %s22801_s5 = inlined_call_operand.vmem [shape: f32[1,16,980], index: 5, kind: output, shape index: {}]  }
   0x1   :  { %v34_v0 = vld [vmem:[%s22796_s0] sm:$0xff]  ;;  %358 = vmatprep.mubr.bf16.mxu0 %v22819_v3  ;;  %399 = vmatprep.mubr.bf16.mxu1 %v22819_v3  ;;  %v35_v7 = vld [vmem:[%s22796_s0 + $0x8] sm:$0xff]  ;;  %v36_v46 = vld [vmem:[%s22796_s0 + $0x10] sm:$0xff]  ;;  %vm22_vm3 = vcmask 572420   ;;  %s18798_s19 = smov 70   ;;  %s18799_s20 = smov 79  }
   0x2   :  { %v38_v1 = vld [vmem:[%s22796_s0 + $0x20] sm:$0xff]  ;;  %v39_v8 = vld [vmem:[%s22796_s0 + $0x28] sm:$0xff]  ;;  %18623 = vset.pattern.permute.xlu0 %v22819_v3  ;;  %18625 = vset.pattern.permute.xlu1 %v22819_v3  ;;  %v40_v47 = vld [vmem:[%s22796_s0 + $0x30] sm:$0xff]  ;;  %s18800_s21 = smov 64   ;;  %s18801_s22 = smov 77   ;;  %vm1385_vm5 = vcmask 1043456  }
   0x3   :  { %v42_v2 = vld [vmem:[%s22796_s0 + $0x40] sm:$0xff]  ;;  %v16982_v4 = vcombine.high %v34_v0, %v38_v1  ;;  %v16981_v5 = vcombine.low %v34_v0, %v38_v1  ;;  %v16984_v10 = vcombine.high %v35_v7, %v39_v8  ;;  %v16983_v11 = vcombine.low %v35_v7, %v39_v8  ;;  %v43_v14 = vld [vmem:[%s22796_s0 + $0x48] sm:$0xff]  ;;  %v37_v49 = vld [vmem:[%s22796_s0 + $0x18] sm:$0xff]  ;;  %s18802_s23 = smov 71   ;;  %s18803_s24 = smov 65  }
   0x4   :  { %v46_v6 = vld [vmem:[%s22796_s0 + $0x60] sm:$0xff]  ;;  %v47_v15 = vld [vmem:[%s22796_s0 + $0x68] sm:$0xff]  ;;  %v41_v50 = vld [vmem:[%s22796_s0 + $0x38] sm:$0xff]  ;;  %v16986_v52 = vcombine.high %v36_v46, %v40_v47  ;;  %v16985_v60 = vcombine.low %v36_v46, %v40_v47  ;;  %vm1386_vm6 = vcmask 687108   ;;  %s18804_s25 = smov 127   ;;  %s18805_s26 = smov 30  }
   0x5   :  { %v16990_v9 = vcombine.high %v42_v2, %v46_v6  ;;  %v50_v12 = vld [vmem:[%s22796_s0 + $0x80] sm:$0xff]  ;;  %326 = vmatprep.subr.bf16.mxu0 %v16982_v4  ;;  %v16989_v16 = vcombine.low %v42_v2, %v46_v6  ;;  %367 = vmatprep.subr.bf16.mxu1 %v16984_v10  ;;  %v16992_v17 = vcombine.high %v43_v14, %v47_v15  ;;  %v51_v18 = vld [vmem:[%s22796_s0 + $0x88] sm:$0xff]  ;;  %v44_v54 = vld [vmem:[%s22796_s0 + $0x50] sm:$0xff]  ;;  %s18806_s27 = smov 28   ;;  %s18807_s28 = smov 63   ;;  %vm1439_vm8 = vcmask 1039360  }
   0x6   :  { %v54_v13 = vld [vmem:[%s22796_s0 + $0xa0] sm:$0xff]  ;;  %327 = vmatpush1.bf16.msra.mxu0 %v16981_v5  ;;  %v55_v19 = vld [vmem:[%s22796_s0 + $0xa8] sm:$0xff]  ;;  %368 = vmatpush1.bf16.msra.mxu1 %v16983_v11  ;;  %v16991_v21 = vcombine.low %v43_v14, %v47_v15  ;;  %v48_v55 = vld [vmem:[%s22796_s0 + $0x70] sm:$0xff]  ;;  %v16988_v56 = vcombine.high %v37_v49, %v41_v50  ;;  %v16987_v62 = vcombine.low %v37_v49, %v41_v50  ;;  %s18808_s29 = smov 29   ;;  %s18809_s30 = smov 22   ;;  %vm1447_vm9 = vcmask 64512  }
   0x7   :  { %328 = vmatprep.subr.bf16.mxu0 %v16990_v9  ;;  %v16998_v20 = vcombine.high %v50_v12, %v54_v13  ;;  %369 = vmatprep.subr.bf16.mxu1 %v16992_v17  ;;  %v58_v22 = vld [vmem:[%s22796_s0 + $0xc0] sm:$0xff]  ;;  %v17000_v24 = vcombine.high %v51_v18, %v55_v19  ;;  %v59_v25 = vld [vmem:[%s22796_s0 + $0xc8] sm:$0xff]  ;;  %v16997_v27 = vcombine.low %v50_v12, %v54_v13  ;;  %v45_v57 = vld [vmem:[%s22796_s0 + $0x58] sm:$0xff]  ;;  %s18810_s6 = smov 23   ;;  %s18811_s7 = smov 16   ;;  %vm1875_vm10 = vcmask 1031168  }
   0x8   :  { %v62_v23 = vld [vmem:[%s22796_s0 + $0xe0] sm:$0xff]  ;;  %v63_v26 = vld [vmem:[%s22796_s0 + $0xe8] sm:$0xff]  ;;  %v16999_v29 = vcombine.low %v51_v18, %v55_v19  ;;  %v49_v58 = vld [vmem:[%s22796_s0 + $0x78] sm:$0xff]  ;;  %v16994_v61 = vcombine.high %v44_v54, %v48_v55  ;;  %v16993_v5 = vcombine.low %v44_v54, %v48_v55  ;;  %s18812_s8 = smov 21   ;;  %s18813_s9 = smov 126   ;;  %vm2122_vm11 = vcmask 990208  }
   0x9   :  { %v17006_v28 = vcombine.high %v58_v22, %v62_v23  ;;  %v66_v30 = vld [vmem:[%s22796_s0 + $0x100] sm:$0xff]  ;;  %v17008_v32 = vcombine.high %v59_v25, %v63_v26  ;;  %v67_v33 = vld [vmem:[%s22796_s0 + $0x108] sm:$0xff]  ;;  %v17005_v35 = vcombine.low %v58_v22, %v62_v23  ;;  %v17007_v37 = vcombine.low %v59_v25, %v63_v26  ;;  %v52_v63 = vld [vmem:[%s22796_s0 + $0x90] sm:$0xff]  ;;  %s18814_s10 = smov 121   ;;  %s18815_s11 = smov 120  }
   0xa   :  { %329 = vmatpush1.bf16.msra.mxu0 %v16989_v16  ;;  %370 = vmatpush1.bf16.msra.mxu1 %v16991_v21  ;;  %v70_v31 = vld [vmem:[%s22796_s0 + $0x120] sm:$0xff]  ;;  %v71_v34 = vld [vmem:[%s22796_s0 + $0x128] sm:$0xff]  ;;  %v56_v0 = vld [vmem:[%s22796_s0 + $0xb0] sm:$0xff]  ;;  %v16996_v1 = vcombine.high %v45_v57, %v49_v58  ;;  %v16995_v7 = vcombine.low %v45_v57, %v49_v58  ;;  %s18816_s12 = smov 119   ;;  %s18818_s13 = smov 113   ;;  %vm2369_vm12 = vcmask 982016  }
   0xb   :  { %330 = vmatprep.subr.bf16.mxu0 %v16998_v20  ;;  %371 = vmatprep.subr.bf16.mxu1 %v17000_v24  ;;  %v17014_v36 = vcombine.high %v66_v30, %v70_v31  ;;  %v74_v38 = vld [vmem:[%s22796_s0 + $0x140] sm:$0xff]  ;;  %v17016_v40 = vcombine.high %v67_v33, %v71_v34  ;;  %v75_v41 = vld [vmem:[%s22796_s0 + $0x148] sm:$0xff]  ;;  %v17013_v43 = vcombine.low %v66_v30, %v70_v31  ;;  %v53_v2 = vld [vmem:[%s22796_s0 + $0x98] sm:$0xff]  ;;  %s18819_s15 = smov 112   ;;  %vm2616_vm13 = vcmask 973824   ;;  %s18821_s14 = smov 14  }
   0xc   :  { %v78_v39 = vld [vmem:[%s22796_s0 + $0x160] sm:$0xff]  ;;  %v79_v42 = vld [vmem:[%s22796_s0 + $0x168] sm:$0xff]  ;;  %v17015_v45 = vcombine.low %v67_v33, %v71_v34  ;;  %v57_v4 = vld [vmem:[%s22796_s0 + $0xb8] sm:$0xff]  ;;  %v17002_v6 = vcombine.high %v52_v63, %v56_v0  ;;  %v17001_v13 = vcombine.low %v52_v63, %v56_v0  ;;  %vm2863_vm14 = vcmask 932864  }
   0xd   :  { %v17022_v44 = vcombine.high %v74_v38, %v78_v39  ;;  %v17024_v48 = vcombine.high %v75_v41, %v79_v42  ;;  %v17021_v51 = vcombine.low %v74_v38, %v78_v39  ;;  %v17023_v53 = vcombine.low %v75_v41, %v79_v42  ;;  %v18956_v59 = vld [vmem:[%s22797_s1] sm:$0xf]  ;;  %v60_v8 = vld [vmem:[%s22796_s0 + $0xd0] sm:$0xff]  ;;  %v61_v11 = vld [vmem:[%s22796_s0 + $0xd8] sm:$0xff]  ;;  %s18817_s1 = smov 114  }
   0xe   :  { %331 = vmatpush1.bf16.msra.mxu0 %v16997_v27  ;;  %372 = vmatpush1.bf16.msra.mxu1 %v16999_v29  ;;  %v64_v9 = vld [vmem:[%s22796_s0 + $0xf0] sm:$0xff]  ;;  %v17004_v10 = vcombine.high %v53_v2, %v57_v4  ;;  %v65_v12 = vld [vmem:[%s22796_s0 + $0xf8] sm:$0xff]  ;;  %v17003_v15 = vcombine.low %v53_v2, %v57_v4  ;;  %v19024_v41 = vld [vmem:[%s22798_s4] sm:$0xff]  ;;  %vm3110_vm15 = vcmask 924672  }
   0xf   :  { %332 = vmatprep.subr.bf16.mxu0 %v17006_v28  ;;  %373 = vmatprep.subr.bf16.mxu1 %v17008_v32  ;;  %v17010_v14 = vcombine.high %v60_v8, %v64_v9  ;;  %v68_v16 = vld [vmem:[%s22796_s0 + $0x110] sm:$0xff]  ;;  %v17012_v18 = vcombine.high %v61_v11, %v65_v12  ;;  %v69_v19 = vld [vmem:[%s22796_s0 + $0x118] sm:$0xff]  ;;  %v17009_v21 = vcombine.low %v60_v8, %v64_v9  ;;  %v19038_v55 = vld [vmem:[%s22798_s4 + $0x8] sm:$0xff] }
  0x10   :  { %v72_v17 = vld [vmem:[%s22796_s0 + $0x130] sm:$0xff]  ;;  %v73_v20 = vld [vmem:[%s22796_s0 + $0x138] sm:$0xff]  ;;  %v17011_v23 = vcombine.low %v61_v11, %v65_v12  ;;  %vm23_vm4 = vmor %vm22_vm3, %vm21_vm2  ;;  %vm22844_vm2 = vcmask 646144   ;;  %vm22843_vm3 = vcmask 637952  }
  0x11   :  { %v17018_v22 = vcombine.high %v68_v16, %v72_v17  ;;  %v76_v24 = vld [vmem:[%s22796_s0 + $0x150] sm:$0xff]  ;;  %v17020_v26 = vcombine.high %v69_v19, %v73_v20  ;;  %v77_v27 = vld [vmem:[%s22796_s0 + $0x158] sm:$0xff]  ;;  %v17017_v29 = vcombine.low %v68_v16, %v72_v17  ;;  %v17019_v31 = vcombine.low %v69_v19, %v73_v20  ;;  %24 = vst.msk [vmem:[#allocation2 + $0x1c] sm:$0xff] %vm23_vm4, %v22819_v3  ;;  %vm1387_vm7 = vmor %vm1386_vm6, %vm1385_vm5 }
  0x12   :  { %333 = vmatpush1.bf16.msra.mxu0 %v17005_v35  ;;  %374 = vmatpush1.bf16.msra.mxu1 %v17007_v37  ;;  %v80_v25 = vld [vmem:[%s22796_s0 + $0x170] sm:$0xff]  ;;  %v81_v28 = vld [vmem:[%s22796_s0 + $0x178] sm:$0xff]  ;;  %v18794_v35 = vmov 1983009808   ;;  %v506_v37 = vlaneseq  ;;  %v22817_v17 = vmov 1   ;;  %vm22842_vm4 = vcmask 629760  }
  0x13   :  { %334 = vmatprep.subr.bf16.mxu0 %v17014_v36  ;;  %375 = vmatprep.subr.bf16.mxu1 %v17016_v40  ;;  %v17026_v30 = vcombine.high %v76_v24, %v80_v25  ;;  %v17028_v32 = vcombine.high %v77_v27, %v81_v28  ;;  %v17025_v33 = vcombine.low %v76_v24, %v80_v25  ;;  %v504_v36 = vunpack.c.l.s4 %v18794_v35  ;;  %s22808_s0 = smov 15  }
  0x14   :  { %v17027_v34 = vcombine.low %v77_v27, %v81_v28  ;;  %v19016_v39 = vshrl.u32 %v506_v37, 7  ;;  %vm22802_vm6 = vcmask 588800  }
  0x15   :  { %v505_v38 = vunpack.c.0.s8 %v504_v36 }
  0x16   :  { %335 = vmatpush1.bf16.msra.mxu0 %v17013_v43  ;;  %376 = vmatpush1.bf16.msra.mxu1 %v17015_v45  ;;  %v19094_v19 = vsub.s32 2, %v19016_v39  ;;  %v19097_v20 = vsub.s32 1, %v19016_v39 }
  0x17   :  { %336 = vmatprep.subr.bf16.mxu0 %v17022_v44  ;;  %377 = vmatprep.subr.bf16.mxu1 %v17024_v48  ;;  %v19019_v40 = vsub.s32 %v505_v38, %v19016_v39  ;;  %v502_v44 = vcombine.high %v19024_v41, %v19024_v41 }
  0x18   :  { %22847 = vst [vmem:[#allocation6_spill] sm:$0xff] %v19094_v19  ;;  %22848 = vst [vmem:[#allocation7_spill] sm:$0xff] %v19097_v20  ;;  %v842_v24 = vrot.slane %v19024_v41, %v19094_v19  ;;  %v922_v28 = vrot.slane %v19024_v41, %v19097_v20 }
  0x19   :  { %22845 = vst [vmem:[#allocation4_spill] sm:$0xff] %v19019_v40  ;;  %v509_v42 = vrot.slane %v19024_v41, %v19019_v40  ;;  %v19031_v45 = vrot.slane %v502_v44, %v19019_v40  ;;  %v858_v44 = vrot.slane %v19038_v55, %v19094_v19 }
  0x1a   :  { %337 = vmatpush1.bf16.msra.mxu0 %v17021_v51  ;;  %378 = vmatpush1.bf16.msra.mxu1 %v17023_v53  ;;  %v19142_v38 = vrot.slane %v922_v28, %v19097_v20 }
  0x1b   :  { %408 = vmatprep.subr.bf16.mxu0 %v16986_v52  ;;  %449 = vmatprep.subr.bf16.mxu1 %v16988_v56  ;;  %v517_v43 = vcombine.high %v509_v42, %v509_v42  ;;  %v518_v46 = vcombine.high %v19031_v45, %v19031_v45  ;;  %v19042_v56 = vrot.slane %v19038_v55, %v19019_v40 }
  0x1d   :  { %17029 = vmatmul.mubr.msk.bf16.vlgmr.msra.gmra.mrb[0].mxu0 %vm322_vm0, %v18956_v59  ;;  %17030 = vmatmul.mubr.msk.bf16.vlgmr.msra.gmra.mrb[0].mxu1 %vm322_vm0, %v18956_v59 }
  0x1e   :  { %409 = vmatpush1.bf16.msra.mxu0 %v16985_v60  ;;  %450 = vmatpush1.bf16.msra.mxu1 %v16987_v62  ;;  %v519_v60 = vcombine.high %v19038_v55, %v19038_v55 }
  0x1f   :  { %410 = vmatprep.subr.bf16.mxu0 %v16994_v61  ;;  %451 = vmatprep.subr.bf16.mxu1 %v16996_v1 }
  0x20   :  { %440 = vmatprep.mubr.bf16.mxu0 %v22819_v3  ;;  %481 = vmatprep.mubr.bf16.mxu1 %v22819_v3  ;;  %v19062_v62 = vrot.slane %v519_v60, %v19019_v40 }
  0x22   :  { %411 = vmatpush1.bf16.msra.mxu0 %v16993_v5  ;;  %452 = vmatpush1.bf16.msra.mxu1 %v16995_v7  ;;  %v19068_v0 = vcombine.high %v19062_v62, %v19062_v62 }
  0x23   :  { %412 = vmatprep.subr.bf16.mxu0 %v17002_v6  ;;  %453 = vmatprep.subr.bf16.mxu1 %v17004_v10 }
  0x26   :  { %413 = vmatpush1.bf16.msra.mxu0 %v17001_v13  ;;  %454 = vmatpush1.bf16.msra.mxu1 %v17003_v15 }
  0x27   :  { %414 = vmatprep.subr.bf16.mxu0 %v17010_v14  ;;  %455 = vmatprep.subr.bf16.mxu1 %v17012_v18  ;;  %v19091_v18 = vsub.s32 0, %v19016_v39 }
  0x29   :  { %22846 = vst [vmem:[#allocation5_spill] sm:$0xff] %v19091_v18  ;;  %v838_v25 = vrot.slane %v19024_v41, %v19091_v18 }
  0x2a   :  { %415 = vmatpush1.bf16.msra.mxu0 %v17009_v21  ;;  %456 = vmatpush1.bf16.msra.mxu1 %v17011_v23  ;;  %v19100_v21 = vsub.s32 3, %v19016_v39  ;;  %v19106_v23 = vsub.s32 7, %v19016_v39 }
  0x2b   :  { %416 = vmatprep.subr.bf16.mxu0 %v17018_v22  ;;  %457 = vmatprep.subr.bf16.mxu1 %v17020_v26  ;;  %v19103_v22 = vsub.s32 6, %v19016_v39  ;;  %v19113_v26 = vsub.s32 5, %v19016_v39 }
  0x2c   :  { %22849 = vst [vmem:[#allocation8_spill] sm:$0xff] %v19100_v21  ;;  %22851 = vst [vmem:[#allocation10_spill] sm:$0xff] %v19106_v23  ;;  %v926_v27 = vrot.slane %v19024_v41, %v19100_v21  ;;  %v942_v36 = vrot.slane %v19038_v55, %v19100_v21 }
  0x2d   :  { %22850 = vst [vmem:[#allocation9_spill] sm:$0xff] %v19103_v22  ;;  %22852 = vst [vmem:[#allocation11_spill] sm:$0xff] %v19113_v26  ;;  %v930_v35 = vrot.slane %v19024_v41, %v19113_v26 }
  0x2e   :  { %417 = vmatpush1.bf16.msra.mxu0 %v17017_v29  ;;  %458 = vmatpush1.bf16.msra.mxu1 %v17019_v31  ;;  %v850_v29 = vrot.slane %v19024_v41, %v19103_v22  ;;  %v19124_v31 = vsub.s32 4, %v19016_v39  ;;  %v19139_v37 = vrot.slane %v926_v27, %v19097_v20 }
  0x2f   :  { %418 = vmatprep.subr.bf16.mxu0 %v17026_v30  ;;  %459 = vmatprep.subr.bf16.mxu1 %v17028_v32  ;;  %v934_v30 = vrot.slane %v19024_v41, %v19106_v23 }
  0x30   :  { %22853 = vst [vmem:[#allocation12_spill] sm:$0xff] %v19124_v31  ;;  %v19145_v39 = vrot.slane %v850_v29, %v19091_v18 }
  0x32   :  { %419 = vmatpush1.bf16.msra.mxu0 %v17025_v33  ;;  %460 = vmatpush1.bf16.msra.mxu1 %v17027_v34  ;;  %v19129_v33 = vrot.slane %v842_v24, %v19091_v18  ;;  %v19132_v34 = vrot.slane %v838_v25, %v19091_v18  ;;  %v854_v24 = vrot.slane %v19038_v55, %v19091_v18 }
  0x33   :  { %549 = vmatprep.subr.mxu0 %v517_v43  ;;  %1026 = vmatprep.subr.mxu1 %v517_v43  ;;  %v846_v43 = vrot.slane %v19024_v41, %v19124_v31 }
  0x35   :  { %17031 = vmatmul.mubr.msk.bf16.vlgmr.msra.gmra.mrb[4].mxu0 %vm322_vm0, %v18956_v59  ;;  %17032 = vmatmul.mubr.msk.bf16.vlgmr.msra.gmra.mrb[4].mxu1 %vm322_vm0, %v18956_v59  ;;  %v19050_v59 = vcombine.high %v19042_v56, %v19042_v56  ;;  %vm3357_vm0 = vcmask 916480  }
  0x3b   :  { %550 = vmatpush1.xpose.msra.mxu0 %v509_v42  ;;  %1027 = vmatpush1.xpose.msra.mxu1 %v509_v42  ;;  %v19148_v42 = vrot.slane %v934_v30, %v19097_v20 }
  0x3c   :  { %619 = vmatprep.subr.mxu0 %v518_v46  ;;  %1096 = vmatprep.subr.mxu1 %v518_v46 }
  0xf0   :  { %v360_v47 = vpop.f32.mrb[0].mxu0  ;;  %v401_v49 = vpop.f32.mrb[0].mxu1 }
  0xf1   :  { %18696 = vtanh.f32 %v360_v47  ;;  %v362_v48 = vpop.f32.mrb[1].mxu0  ;;  %v403_v51 = vpop.f32.mrb[1].mxu1 }
  0xf2   :  { %18698 = vtanh.f32 %v362_v48  ;;  %v364_v50 = vpop.f32.mrb[2].mxu0  ;;  %v405_v53 = vpop.f32.mrb[2].mxu1 }
  0xf3   :  { %v365_v52 = vpop.f32.mrb[3].mxu0  ;;  %18700 = vtanh.f32 %v403_v51  ;;  %v406_v54 = vpop.f32.mrb[3].mxu1  ;;  %v19162_v50 = vrot.slane %v942_v36, %v19097_v20  ;;  %v19211_v36 = vrot.slane %v854_v24, %v19091_v18 }
  0xf4   :  { %18702 = vtanh.f32 %v401_v49  ;;  %v19159_v49 = vrot.slane %v930_v35, %v19097_v20  ;;  %v19170_v54 = vrot.slane %v846_v43, %v19091_v18 }
  0xfb   :  { %v19044_v57 = vpop.eup %18696 }
  0xfc   :  { %v19046_v58 = vpop.eup %18698 }
  0xfd   :  { %613 = vmatprep.mubr.f32.mxu0 %v19046_v58  ;;  %v19055_v61 = vpop.eup %18700 }
  0xfe   :  { %614 = vmatmul.mubr.f32.vlgmr.msra.gmra.mrb[8].mxu0 %v19044_v57  ;;  %v19064_v63 = vpop.eup %18702 }
  0xff   :  { %620 = vmatpush1.xpose.msra.mxu0 %v19031_v45  ;;  %683 = vmatprep.mubr.f32.mxu0 %v19055_v61 }
 0x100   :  { %689 = vmatprep.subr.mxu0 %v19050_v59 }
 0x106   :  { %684 = vmatmul.mubr.f32.vlgmr.msra.gmra.mrb[8].mxu0 %v19064_v63 }
 0x107   :  { %690 = vmatpush1.xpose.msra.mxu0 %v19042_v56 }
 0x108   :  { %v442_v1 = vpop.f32.mrb[4].mxu0  ;;  %17033 = vmatprep.subr.msk.mxu0 %vm22839_vm1, %v19068_v0  ;;  %v483_v4 = vpop.f32.mrb[4].mxu1 }
 0x109   :  { %v444_v2 = vpop.f32.mrb[5].mxu0  ;;  %v485_v6 = vpop.f32.mrb[5].mxu1 }
 0x10a   :  { %18704 = vtanh.f32 %v444_v2  ;;  %v446_v5 = vpop.f32.mrb[6].mxu0  ;;  %v487_v8 = vpop.f32.mrb[6].mxu1 }
 0x10b   :  { %18706 = vtanh.f32 %v442_v1  ;;  %v447_v7 = vpop.f32.mrb[7].mxu0  ;;  %v488_v9 = vpop.f32.mrb[7].mxu1 }
 0x10c   :  { %18708 = vtanh.f32 %v485_v6  ;;  %v938_v6 = vrot.slane %v19038_v55, %v19097_v20  ;;  %v950_v7 = vrot.slane %v19038_v55, %v19106_v23 }
 0x10d   :  { %18710 = vtanh.f32 %v483_v4  ;;  %v19173_v4 = vrot.slane %v858_v44, %v19091_v18 }
 0x10e   :  { %v19203_v28 = vrot.slane %v938_v6, %v19097_v20  ;;  %v19208_v35 = vrot.slane %v950_v7, %v19097_v20 }
 0x114   :  { %v19074_v10 = vpop.eup %18704 }
 0x115   :  { %v19076_v11 = vpop.eup %18706  ;;  %753 = vmatprep.mubr.f32.mxu0 %v19074_v10 }
 0x116   :  { %v19079_v12 = vpop.eup %18708  ;;  %754 = vmatmul.mubr.f32.vlgmr.msra.gmra.mrb[8].mxu0 %v19076_v11 }
 0x117   :  { %760 = vmatpush1.xpose.msra.mxu0 %v19062_v62  ;;  %17034 = vmatprep.mubr.msk.f32.mxu0 %vm22839_vm1, %v19079_v12  ;;  %v19085_v13 = vpop.eup %18710 }
 0x11e   :  { %824 = vmatmul.mubr.f32.vlgmr.msra.gmra.mrb[8].mxu0 %v19085_v13 }
 0x11f   :  { %1507 = vmatprep.mubr.bf16.mxu0 %v22819_v3 }
 0x1f1   :  { %v825_v14 = vpop.f32.mrb[8].mxu0 }
 0x1f2   :  { %v829_v15 = vmul.f32 0.0025510204, %v825_v14  ;;  %v827_v16 = vpop.f32.mrb[9].mxu0 }
 0x1f4   :  { %832 = vperm.xlu0 %18623, %v829_v15  }
 0x1f8   :  { %18624 = vset.pattern.permute.xlu0 %v22817_v17 }
 0x1f9   :  { %916 = vperm.xlu0 %18624, %v829_v15  }
 0x273   :  { %v19126_v32 = vpop.permute.xlu0 %832 }
 0x274   :  { %v908_v47 = vmul.f32 %v19129_v33, %v19126_v32  ;;  %v907_v48 = vmul.f32 %v19132_v34, %v19126_v32  ;;  %v910_v52 = vmul.f32 %v19145_v39, %v19126_v32  ;;  %v909_v16 = vmul.f32 %v19170_v54, %v19126_v32 }
 0x278   :  { %v917_v46 = vpop.permute.xlu0 %916 }
 0x279   :  { %v992_v51 = vmul.f32 %v19139_v37, %v917_v46  ;;  %v991_v41 = vmul.f32 %v19142_v38, %v917_v46  ;;  %v994_v53 = vmul.f32 %v19148_v42, %v917_v46  ;;  %v993_v5 = vmul.f32 %v19159_v49, %v917_v46 }
 0x27a   :  { %v996_v15 = vmul.f32 %v19162_v50, %v917_v46 }
 0x27b   :  { %v1000_v60 = vadd.f32 %v992_v51, %v908_v47  ;;  %v999_v1 = vadd.f32 %v991_v41, %v907_v48  ;;  %v1002_v2 = vadd.f32 %v994_v53, %v910_v52  ;;  %v1001_v27 = vadd.f32 %v993_v5, %v909_v16 }
 0x27c   :  { %v995_v47 = vmul.f32 %v19203_v28, %v917_v46  ;;  %v946_v48 = vrot.slane %v19038_v55, %v19113_v26  ;;  %v998_v41 = vmul.f32 %v19208_v35, %v917_v46  ;;  %v862_v52 = vrot.slane %v19038_v55, %v19124_v31 }
 0x27d   :  { %v19181_v8 = vsub.f32 %v19046_v58, %v1000_v60  ;;  %v19184_v9 = vsub.f32 %v19044_v57, %v999_v1  ;;  %v19187_v14 = vsub.f32 %v19055_v61, %v1002_v2  ;;  %v912_v57 = vmul.f32 %v19173_v4, %v19126_v32 }
 0x27e   :  { %v866_v61 = vrot.slane %v19038_v55, %v19103_v22  ;;  %v19218_v44 = vsub.f32 %v19064_v63, %v1001_v27  ;;  %v19237_v60 = vrot.slane %v946_v48, %v19097_v20  ;;  %v902_v2 = vrot.slane %v862_v52, %v19091_v18 }
 0x27f   :  { %v1016_v25 = vmul.f32 %v19181_v8, %v19181_v8  ;;  %v1015_v58 = vmul.f32 %v19184_v9, %v19184_v9  ;;  %v1018_v29 = vmul.f32 %v19187_v14, %v19187_v14  ;;  %v1004_v30 = vadd.f32 %v996_v15, %v912_v57 }
 0x280   :  { %v19215_v43 = vrot.slane %v866_v61, %v19091_v18  ;;  %v997_v5 = vmul.f32 %v19237_v60, %v917_v46  ;;  %v913_v7 = vmul.f32 %v902_v2, %v19126_v32 }
 0x281   :  { %1090 = vmatprep.mubr.f32.mxu1 %v1016_v25  ;;  %v19225_v51 = vsub.f32 %v19074_v10, %v1004_v30 }
 0x282   :  { %1091 = vmatmul.mubr.f32.vlgmr.msra.gmra.mrb[8].mxu1 %v1015_v58  ;;  %v914_v63 = vmul.f32 %v19215_v43, %v19126_v32  ;;  %v1005_v16 = vadd.f32 %v997_v5, %v913_v7 }
 0x283   :  { %1160 = vmatprep.mubr.f32.mxu1 %v1018_v29  ;;  %1097 = vmatpush1.xpose.msra.mxu1 %v19031_v45  ;;  %v911_v45 = vmul.f32 %v19211_v36, %v19126_v32  ;;  %v1020_v10 = vmul.f32 %v19225_v51, %v19225_v51 }
 0x284   :  { %1166 = vmatprep.subr.mxu1 %v19050_v59  ;;  %v1017_v59 = vmul.f32 %v19218_v44, %v19218_v44  ;;  %v1006_v1 = vadd.f32 %v998_v41, %v914_v63 }
 0x285   :  { %v1003_v53 = vadd.f32 %v995_v47, %v911_v45 }
 0x286   :  { %v19250_v6 = vsub.f32 %v19079_v12, %v1006_v1 }
 0x287   :  { %v19244_v55 = vsub.f32 %v19076_v11, %v1003_v53 }
 0x289   :  { %v1019_v15 = vmul.f32 %v19244_v55, %v19244_v55 }
 0x28a   :  { %1161 = vmatmul.mubr.f32.vlgmr.msra.gmra.mrb[8].mxu1 %v1017_v59 }
 0x28b   :  { %1230 = vmatprep.mubr.f32.mxu1 %v1020_v10  ;;  %1167 = vmatpush1.xpose.msra.mxu1 %v19042_v56  ;;  %v1022_v56 = vmul.f32 %v19250_v6, %v19250_v6 }
 0x28c   :  { %17035 = vmatprep.subr.msk.mxu1 %vm22839_vm1, %v19068_v0  ;;  %v19260_v0 = vsub.f32 %v19085_v13, %v1005_v16 }
 0x28e   :  { %v1021_v11 = vmul.f32 %v19260_v0, %v19260_v0 }
 0x292   :  { %1231 = vmatmul.mubr.f32.vlgmr.msra.gmra.mrb[8].mxu1 %v1019_v15 }
 0x293   :  { %17036 = vmatprep.mubr.msk.f32.mxu1 %vm22839_vm1, %v1022_v56  ;;  %1237 = vmatpush1.xpose.msra.mxu1 %v19062_v62  ;;  %v19266_v62 = vld [vmem:[#allocation2 + $0x20] ss:$0 sps:$4 sm:$0xff]  }
 0x294   :  { %3882 = vrot.lane.b32.xlu0 %v19266_v62, %s18796_s17 }
 0x298   :  { %4382 = vrot.lane.b32.xlu0 %v19266_v62, %s18797_s18 }
 0x29a   :  { %1301 = vmatmul.mubr.f32.vlgmr.msra.gmra.mrb[8].mxu1 %v1021_v11 }
 0x29b   :  { %1550 = vmatprep.mubr.bf16.mxu1 %v22819_v3 }
 0x29c   :  { %4882 = vrot.lane.b32.xlu0 %v19266_v62, %s18798_s19 }
 0x2a0   :  { %5382 = vrot.lane.b32.xlu0 %v19266_v62, %s18800_s21 }
 0x36d   :  { %v1302_v12 = vpop.f32.mrb[8].mxu1 }
 0x36e   :  { %v1306_v32 = vmul.f32 0.0025510204, %v1302_v12  ;;  %v1304_v46 = vpop.f32.mrb[9].mxu1 }
 0x370   :  { %v1307_v24 = vadd.f32 1e-05, %v1306_v32 }
 0x372   :  { %18712 = vrsqrt.f32 %v1307_v24 }
 0x37c   :  { %v18713_v13 = vpop.eup %18712 }
 0x37d   :  { %1311 = vperm.xlu1 %18625, %v18713_v13  }
 0x381   :  { %18626 = vset.pattern.permute.xlu1 %v22817_v17 }
 0x382   :  { %1323 = vperm.xlu1 %18626, %v18713_v13  }
 0x386   :  { %3632 = vrot.lane.b32.xlu1 %v19266_v62, %s18799_s20 }
 0x387   :  { %18627 = vset.pattern.permute.xlu1 %v22819_v3 }
 0x38a   :  { %4132 = vrot.lane.b32.xlu1 %v19266_v62, %s18801_s22 }
 0x38e   :  { %4632 = vrot.lane.b32.xlu1 %v19266_v62, %s18802_s23 }
 0x392   :  { %5132 = vrot.lane.b32.xlu1 %v19266_v62, %s18803_s24 }
 0x3fc   :  { %v1312_v25 = vpop.permute.xlu1 %1311 }
 0x3fd   :  { %v1314_v58 = vmul.f32 %v1312_v25, %v19132_v34  ;;  %v1315_v57 = vmul.f32 %v1312_v25, %v19129_v33  ;;  %v1316_v61 = vmul.f32 %v1312_v25, %v19170_v54  ;;  %v1317_v27 = vmul.f32 %v1312_v25, %v19145_v39 }
 0x3fe   :  { %v1318_v29 = vmul.f32 %v1312_v25, %v19211_v36  ;;  %v1319_v30 = vmul.f32 %v1312_v25, %v19173_v4  ;;  %v1320_v47 = vmul.f32 %v1312_v25, %v902_v2  ;;  %v1321_v48 = vmul.f32 %v1312_v25, %v19215_v43 }
 0x401   :  { %v1324_v41 = vpop.permute.xlu1 %1323 }
 0x402   :  { %v1326_v45 = vmul.f32 %v1324_v41, %v19142_v38  ;;  %v1327_v52 = vmul.f32 %v1324_v41, %v19139_v37  ;;  %v1328_v34 = vmul.f32 %v1324_v41, %v19159_v49  ;;  %v1329_v33 = vmul.f32 %v1324_v41, %v19148_v42 }
 0x403   :  { %v1330_v54 = vmul.f32 %v1324_v41, %v19203_v28  ;;  %v1331_v39 = vmul.f32 %v1324_v41, %v19162_v50  ;;  %v1332_v36 = vmul.f32 %v1324_v41, %v19237_v60  ;;  %v1333_v4 = vmul.f32 %v1324_v41, %v19208_v35 }
 0x404   :  { %v1334_v63 = vadd.f32 %v1326_v45, %v1314_v58  ;;  %v1335_v59 = vadd.f32 %v1327_v52, %v1315_v57  ;;  %v1336_v43 = vadd.f32 %v1328_v34, %v1316_v61  ;;  %v1337_v53 = vadd.f32 %v1329_v33, %v1317_v27 }
 0x405   :  { %v1338_v10 = vadd.f32 %v1330_v54, %v1318_v29  ;;  %v1339_v38 = vadd.f32 %v1331_v39, %v1319_v30  ;;  %v1340_v1 = vadd.f32 %v1332_v36, %v1320_v47  ;;  %v1341_v37 = vadd.f32 %v1333_v4, %v1321_v48  ;;  %v19419_v56 = vpop.permute.xlu1 %3632  ;;  %v18638_v30 = vld [vmem:[%s22799_s2 + $0x8] sm:$0x3f]  }
 0x406   :  { %v1342_v49 = vmul.f32 %v1334_v63, %v19184_v9  ;;  %v1343_v42 = vmul.f32 %v1335_v59, %v19181_v8  ;;  %v1344_v28 = vmul.f32 %v1336_v43, %v19218_v44  ;;  %v1345_v50 = vmul.f32 %v1337_v53, %v19187_v14 }
 0x407   :  { %v1346_v60 = vmul.f32 %v1338_v10, %v19244_v55  ;;  %v1347_v35 = vmul.f32 %v1339_v38, %v19225_v51  ;;  %v1348_v2 = vmul.f32 %v1340_v1, %v19260_v0  ;;  %v1349_v5 = vmul.f32 %v1341_v37, %v19250_v6  ;;  %v19421_v0 = vpop.permute.xlu0 %3882  ;;  %v18639_v1 = vld [vmem:[%s22799_s2] sm:$0x3f]  }
 0x408   :  { %v19311_v15 = vpack.c.bf16 %v1342_v49, %v1342_v49  ;;  %v19313_v9 = vpack.c.bf16 %v1343_v42, %v1343_v42  ;;  %v19319_v8 = vpack.c.bf16 %v1344_v28, %v1344_v28  ;;  %v19321_v14 = vpack.c.bf16 %v1345_v50, %v1345_v50 }
 0x409   :  { %v17692_v7 = vpack.c.bf16 %v1349_v5, %v1348_v2  ;;  %v19327_v51 = vpack.c.bf16 %v1346_v60, %v1346_v60  ;;  %v19329_v55 = vpack.c.bf16 %v1347_v35, %v1347_v35  ;;  %v19431_v11 = vpop.permute.xlu1 %4132 }
 0x40a   :  { %1425 = vrot.lane.b32.xlu0 %v19313_v9, %s18804_s25  ;;  %1423 = vrot.lane.b32.xlu1 %v19311_v15, %s18804_s25  ;;  %v1656_v59 = vsel %vm1385_vm5, %v19311_v15, 0  ;;  %v1662_v28 = vsel %vm1385_vm5, %v19319_v8, 0 }
 0x40b   :  { %1388 = vst.msk [vmem:[#allocation2 + $0x18] sm:$0xff] %vm1387_vm7, %v17692_v7  ;;  %v19433_v12 = vpop.permute.xlu0 %4382  ;;  %v1668_v42 = vsel %vm1385_vm5, %v19327_v51, 0  ;;  %vm22803_vm7 = vcmask 580608  }
 0x40d   :  { %v19439_v32 = vpop.permute.xlu1 %4632 }
 0x40e   :  { %1429 = vrot.lane.b32.xlu0 %v19321_v14, %s18804_s25  ;;  %1427 = vrot.lane.b32.xlu1 %v19319_v8, %s18804_s25 }
 0x40f   :  { %v19441_v46 = vpop.permute.xlu0 %4882 }
 0x411   :  { %v19451_v24 = vpop.permute.xlu1 %5132 }
 0x412   :  { %v3586_v44 = vld [vmem:[#allocation2 + $0x18] sm:$0xff]  ;;  %1433 = vrot.lane.b32.xlu0 %v19329_v55, %s18804_s25  ;;  %1431 = vrot.lane.b32.xlu1 %v19327_v51, %s18804_s25 }
 0x413   :  { %v19335_v6 = vcombine.low %v3586_v44, %v3586_v44  ;;  %v19345_v16 = vcombine.high %v3586_v44, %v3586_v44 }
 0x415   :  { %v1674_v5 = vsel %vm1385_vm5, %v19335_v6, 0 }
 0x416   :  { %5882 = vrot.lane.b32.xlu0 %v19266_v62, %s18805_s26  ;;  %1435 = vrot.lane.b32.xlu1 %v19335_v6, %s18804_s25 }
 0x41a   :  { %6382 = vrot.lane.b32.xlu0 %v19266_v62, %s18806_s27  ;;  %5632 = vrot.lane.b32.xlu1 %v19266_v62, %s18807_s28 }
 0x41e   :  { %1437 = vrot.lane.b32.xlu0 %v19345_v16, %s18804_s25  ;;  %6132 = vrot.lane.b32.xlu1 %v19266_v62, %s18808_s29 }
 0x422   :  { %6882 = vrot.lane.b32.xlu0 %v19266_v62, %s18809_s30  ;;  %6632 = vrot.lane.b32.xlu1 %v19266_v62, %s18810_s6 }
 0x426   :  { %7382 = vrot.lane.b32.xlu0 %v19266_v62, %s18811_s7  ;;  %7132 = vrot.lane.b32.xlu1 %v19266_v62, %s18812_s8  ;;  %v19453_v62 = vpop.permute.xlu0 %5382 }
 0x42a   :  { %1861 = vrot.lane.b32.xlu0 %v19313_v9, %s18813_s9  ;;  %1859 = vrot.lane.b32.xlu1 %v19311_v15, %s18813_s9 }
 0x42e   :  { %1865 = vrot.lane.b32.xlu0 %v19321_v14, %s18813_s9  ;;  %1863 = vrot.lane.b32.xlu1 %v19319_v8, %s18813_s9 }
 0x432   :  { %1869 = vrot.lane.b32.xlu0 %v19329_v55, %s18813_s9  ;;  %1867 = vrot.lane.b32.xlu1 %v19327_v51, %s18813_s9 }
 0x436   :  { %1873 = vrot.lane.b32.xlu0 %v19345_v16, %s18813_s9  ;;  %1871 = vrot.lane.b32.xlu1 %v19335_v6, %s18813_s9 }
 0x43a   :  { %2108 = vrot.lane.b32.xlu0 %v19313_v9, %s18814_s10  ;;  %2106 = vrot.lane.b32.xlu1 %v19311_v15, %s18814_s10 }
 0x43e   :  { %2112 = vrot.lane.b32.xlu0 %v19321_v14, %s18814_s10  ;;  %2110 = vrot.lane.b32.xlu1 %v19319_v8, %s18814_s10 }
 0x442   :  { %2116 = vrot.lane.b32.xlu0 %v19329_v55, %s18814_s10  ;;  %2114 = vrot.lane.b32.xlu1 %v19327_v51, %s18814_s10 }
 0x446   :  { %2120 = vrot.lane.b32.xlu0 %v19345_v16, %s18814_s10  ;;  %2118 = vrot.lane.b32.xlu1 %v19335_v6, %s18814_s10 }
 0x44a   :  { %2355 = vrot.lane.b32.xlu0 %v19313_v9, %s18815_s11  ;;  %2353 = vrot.lane.b32.xlu1 %v19311_v15, %s18815_s11 }
 0x44e   :  { %2359 = vrot.lane.b32.xlu0 %v19321_v14, %s18815_s11  ;;  %2357 = vrot.lane.b32.xlu1 %v19319_v8, %s18815_s11 }
 0x452   :  { %2363 = vrot.lane.b32.xlu0 %v19329_v55, %s18815_s11  ;;  %2361 = vrot.lane.b32.xlu1 %v19327_v51, %s18815_s11 }
 0x456   :  { %2367 = vrot.lane.b32.xlu0 %v19345_v16, %s18815_s11  ;;  %2365 = vrot.lane.b32.xlu1 %v19335_v6, %s18815_s11 }
 0x45a   :  { %2602 = vrot.lane.b32.xlu0 %v19313_v9, %s18816_s12  ;;  %2600 = vrot.lane.b32.xlu1 %v19311_v15, %s18816_s12 }
 0x45e   :  { %2606 = vrot.lane.b32.xlu0 %v19321_v14, %s18816_s12  ;;  %2604 = vrot.lane.b32.xlu1 %v19319_v8, %s18816_s12 }
 0x462   :  { %2610 = vrot.lane.b32.xlu0 %v19329_v55, %s18816_s12  ;;  %2608 = vrot.lane.b32.xlu1 %v19327_v51, %s18816_s12 }
 0x466   :  { %2614 = vrot.lane.b32.xlu0 %v19345_v16, %s18816_s12  ;;  %2612 = vrot.lane.b32.xlu1 %v19335_v6, %s18816_s12 }
 0x46a   :  { %2849 = vrot.lane.b32.xlu0 %v19313_v9, %s18817_s1  ;;  %2847 = vrot.lane.b32.xlu1 %v19311_v15, %s18817_s1 }
 0x46e   :  { %2853 = vrot.lane.b32.xlu0 %v19321_v14, %s18817_s1  ;;  %2851 = vrot.lane.b32.xlu1 %v19319_v8, %s18817_s1 }
 0x472   :  { %2857 = vrot.lane.b32.xlu0 %v19329_v55, %s18817_s1  ;;  %2855 = vrot.lane.b32.xlu1 %v19327_v51, %s18817_s1 }
 0x476   :  { %2861 = vrot.lane.b32.xlu0 %v19345_v16, %s18817_s1  ;;  %2859 = vrot.lane.b32.xlu1 %v19335_v6, %s18817_s1 }
 0x47a   :  { %3096 = vrot.lane.b32.xlu0 %v19313_v9, %s18818_s13  ;;  %3094 = vrot.lane.b32.xlu1 %v19311_v15, %s18818_s13 }
 0x47c   :  { %v1424_v13 = vpop.permute.xlu1 %1423  ;;  %v1426_v25 = vpop.permute.xlu0 %1425 }
 0x47d   :  { %v1440_v58 = vsel %vm1439_vm8, %v1424_v13, %v1426_v25 }
 0x47e   :  { %3100 = vrot.lane.b32.xlu0 %v19321_v14, %s18818_s13  ;;  %3098 = vrot.lane.b32.xlu1 %v19319_v8, %s18818_s13  ;;  %v1452_v29 = vsel %vm1385_vm5, %v1440_v58, 0 }
 0x480   :  { %v1428_v57 = vpop.permute.xlu1 %1427  ;;  %v1430_v61 = vpop.permute.xlu0 %1429 }
 0x481   :  { %v1441_v27 = vsel %vm1439_vm8, %v1426_v25, %v1428_v57  ;;  %v1442_v47 = vsel %vm1439_vm8, %v1428_v57, %v1430_v61  ;;  %v18640_v57 = vld [vmem:[%s22799_s2 + $0x10] sm:$0x3f]  }
 0x482   :  { %3104 = vrot.lane.b32.xlu0 %v19329_v55, %s18818_s13  ;;  %3102 = vrot.lane.b32.xlu1 %v19327_v51, %s18818_s13  ;;  %v1458_v52 = vsel %vm1385_vm5, %v1442_v47, 0 }
 0x483   :  { %17052 = vmatprep.subr.msk.bf16.mxu0 %vm1385_vm5, %v1441_v27 }
 0x484   :  { %1476 = vmatpush1.bf16.msra.mxu0 %v1452_v29  ;;  %v1432_v48 = vpop.permute.xlu1 %1431  ;;  %v1434_v41 = vpop.permute.xlu0 %1433 }
 0x485   :  { %v1443_v45 = vsel %vm1439_vm8, %v1430_v61, %v1432_v48  ;;  %v1444_v34 = vsel %vm1439_vm8, %v1432_v48, %v1434_v41 }
 0x486   :  { %3108 = vrot.lane.b32.xlu0 %v19345_v16, %s18818_s13  ;;  %3106 = vrot.lane.b32.xlu1 %v19335_v6, %s18818_s13  ;;  %v1464_v36 = vsel %vm1385_vm5, %v1444_v34, 0 }
 0x487   :  { %17053 = vmatmul.mubr.msk.bf16.vlgmr.msra.gmra.mrb[12].mxu0 %vm1447_vm9, %v18638_v30  ;;  %17054 = vmatprep.subr.msk.bf16.mxu1 %vm1385_vm5, %v1443_v45 }
 0x488   :  { %1519 = vmatpush1.bf16.msra.mxu1 %v1458_v52  ;;  %v1436_v33 = vpop.permute.xlu1 %1435  ;;  %v19484_v54 = vpop.permute.xlu0 %5882  ;;  %1593 = vmatprep.mubr.bf16.mxu0 %v22819_v3 }
 0x489   :  { %v1445_v39 = vsel %vm1439_vm8, %v1434_v41, %v1436_v33 }
 0x48a   :  { %3343 = vrot.lane.b32.xlu0 %v19313_v9, %s18819_s15  ;;  %3341 = vrot.lane.b32.xlu1 %v19311_v15, %s18819_s15 }
 0x48b   :  { %17056 = vmatprep.subr.msk.bf16.mxu0 %vm1385_vm5, %v1445_v39  ;;  %17055 = vmatmul.mubr.msk.bf16.vlgmr.msra.gmra.mrb[12].mxu1 %vm1447_vm9, %v18638_v30 }
 0x48c   :  { %1562 = vmatpush1.bf16.msra.mxu0 %v1464_v36  ;;  %v19495_v4 = vpop.permute.xlu1 %5632  ;;  %v19497_v63 = vpop.permute.xlu0 %6382  ;;  %1636 = vmatprep.mubr.bf16.mxu1 %v22819_v3 }
 0x48d   :  { %17061 = vmatprep.subr.msk.bf16.mxu0 %vm1385_vm5, %v19313_v9 }
 0x48e   :  { %3347 = vrot.lane.b32.xlu0 %v19321_v14, %s18819_s15  ;;  %3345 = vrot.lane.b32.xlu1 %v19319_v8, %s18819_s15 }
 0x48f   :  { %17057 = vmatmul.mubr.msk.bf16.vlgmr.msra.gmra.mrb[16].mxu0 %vm1447_vm9, %v18638_v30 }
 0x490   :  { %1680 = vmatpush1.bf16.msra.mxu0 %v1656_v59  ;;  %v19509_v43 = vpop.permute.xlu1 %6132  ;;  %v1438_v53 = vpop.permute.xlu0 %1437  ;;  %1711 = vmatprep.mubr.bf16.mxu0 %v22819_v3 }
 0x491   :  { %17065 = vmatprep.subr.msk.bf16.mxu0 %vm1385_vm5, %v19329_v55  ;;  %v1446_v10 = vsel %vm1439_vm8, %v1436_v33, %v1438_v53  ;;  %17058 = vmatprep.subr.msk.bf16.mxu1 %vm1385_vm5, %v1438_v53 }
 0x492   :  { %3351 = vrot.lane.b32.xlu0 %v19329_v55, %s18819_s15  ;;  %3349 = vrot.lane.b32.xlu1 %v19327_v51, %s18819_s15  ;;  %v1470_v38 = vsel %vm1385_vm5, %v1446_v10, 0 }
 0x493   :  { %1605 = vmatpush1.bf16.msra.mxu1 %v1470_v38 }
 0x494   :  { %v19524_v37 = vpop.permute.xlu1 %6632  ;;  %17063 = vmatprep.subr.msk.bf16.mxu1 %vm1385_vm5, %v19321_v14  ;;  %v19528_v49 = vpop.permute.xlu0 %6882 }
 0x496   :  { %3355 = vrot.lane.b32.xlu0 %v19345_v16, %s18819_s15  ;;  %3353 = vrot.lane.b32.xlu1 %v19335_v6, %s18819_s15 }
 0x497   :  { %17059 = vmatmul.mubr.msk.bf16.vlgmr.msra.gmra.mrb[16].mxu1 %vm1447_vm9, %v18638_v30  ;;  %17062 = vmatmul.mubr.msk.bf16.vlgmr.msra.gmra.mrb[12].mxu0 %vm1447_vm9, %v18639_v1 }
 0x498   :  { %1766 = vmatpush1.bf16.msra.mxu0 %v1668_v42  ;;  %1723 = vmatpush1.bf16.msra.mxu1 %v1662_v28  ;;  %v19540_v50 = vpop.permute.xlu1 %7132  ;;  %v19542_v60 = vpop.permute.xlu0 %7382 }
 0x499   :  { %17067 = vmatprep.subr.msk.bf16.mxu1 %vm1385_vm5, %v19345_v16  ;;  %1754 = vmatprep.mubr.bf16.mxu1 %v22819_v3 }
 0x49a   :  { %3618 = vrot.lane.b32.xlu0 %v19313_v9, %s18799_s20  ;;  %3616 = vrot.lane.b32.xlu1 %v19311_v15, %s18799_s20 }
 0x49b   :  { %1797 = vmatprep.mubr.bf16.mxu0 %v22819_v3 }
 0x49c   :  { %v1860_v35 = vpop.permute.xlu1 %1859  ;;  %v1862_v2 = vpop.permute.xlu0 %1861 }
 0x49d   :  { %v1876_v7 = vsel %vm1875_vm10, %v1860_v35, %v1862_v2 }
 0x49e   :  { %3622 = vrot.lane.b32.xlu0 %v19321_v14, %s18799_s20  ;;  %3620 = vrot.lane.b32.xlu1 %v19319_v8, %s18799_s20  ;;  %v1887_v58 = vsel %vm1385_vm5, %v1876_v7, 0 }
 0x49f   :  { %17064 = vmatmul.mubr.msk.bf16.vlgmr.msra.gmra.mrb[12].mxu1 %vm1447_vm9, %v18639_v1  ;;  %17066 = vmatmul.mubr.msk.bf16.vlgmr.msra.gmra.mrb[16].mxu0 %vm1447_vm9, %v18639_v1 }
 0x4a0   :  { %1809 = vmatpush1.bf16.msra.mxu1 %v1674_v5  ;;  %v1864_v44 = vpop.permute.xlu1 %1863  ;;  %v1866_v13 = vpop.permute.xlu0 %1865  ;;  %1840 = vmatprep.mubr.bf16.mxu1 %v22819_v3  ;;  %v18641_v5 = vld [vmem:[%s22799_s2 + $0x18] sm:$0x3f]  }
 0x4a1   :  { %v1877_v25 = vsel %vm1875_vm10, %v1862_v2, %v1864_v44  ;;  %1942 = vmatprep.mubr.bf16.mxu0 %v22819_v3  ;;  %v1878_v29 = vsel %vm1875_vm10, %v1864_v44, %v1866_v13 }
 0x4a2   :  { %3626 = vrot.lane.b32.xlu0 %v19329_v55, %s18799_s20  ;;  %3624 = vrot.lane.b32.xlu1 %v19327_v51, %s18799_s20  ;;  %v1893_v48 = vsel %vm1385_vm5, %v1878_v29, 0 }
 0x4a3   :  { %17072 = vmatprep.subr.msk.bf16.mxu0 %vm1385_vm5, %v1877_v25 }
 0x4a4   :  { %1911 = vmatpush1.bf16.msra.mxu0 %v1887_v58  ;;  %v1868_v61 = vpop.permute.xlu1 %1867  ;;  %v1870_v27 = vpop.permute.xlu0 %1869 }
 0x4a5   :  { %v1879_v30 = vsel %vm1875_vm10, %v1866_v13, %v1868_v61  ;;  %v1880_v47 = vsel %vm1875_vm10, %v1868_v61, %v1870_v27 }
 0x4a6   :  { %3630 = vrot.lane.b32.xlu0 %v19345_v16, %s18799_s20  ;;  %3628 = vrot.lane.b32.xlu1 %v19335_v6, %s18799_s20  ;;  %v1899_v34 = vsel %vm1385_vm5, %v1880_v47, 0 }
 0x4a7   :  { %17068 = vmatmul.mubr.msk.bf16.vlgmr.msra.gmra.mrb[16].mxu1 %vm1447_vm9, %v18639_v1  ;;  %17073 = vmatmul.mubr.msk.bf16.vlgmr.msra.gmra.mrb[12].mxu0 %vm1447_vm9, %v18640_v57 }
 0x4a8   :  { %17074 = vmatprep.subr.msk.bf16.mxu1 %vm1385_vm5, %v1879_v30  ;;  %v1872_v41 = vpop.permute.xlu1 %1871  ;;  %v1874_v45 = vpop.permute.xlu0 %1873  ;;  %1985 = vmatprep.mubr.bf16.mxu1 %v22819_v3 }
 0x4a9   :  { %1954 = vmatpush1.bf16.msra.mxu1 %v1893_v48  ;;  %v1881_v52 = vsel %vm1875_vm10, %v1870_v27, %v1872_v41  ;;  %2028 = vmatprep.mubr.bf16.mxu0 %v22819_v3  ;;  %v1882_v33 = vsel %vm1875_vm10, %v1872_v41, %v1874_v45 }
 0x4aa   :  { %17078 = vmatprep.subr.msk.bf16.mxu1 %vm1385_vm5, %v1874_v45  ;;  %3866 = vrot.lane.b32.xlu0 %v19311_v15, %s18796_s17  ;;  %v1905_v53 = vsel %vm1385_vm5, %v1882_v33, 0 }
 0x4ab   :  { %3868 = vrot.lane.b32.xlu1 %v19313_v9, %s18796_s17  ;;  %17076 = vmatprep.subr.msk.bf16.mxu0 %vm1385_vm5, %v1881_v52 }
 0x4ac   :  { %1997 = vmatpush1.bf16.msra.mxu0 %v1899_v34  ;;  %v2107_v39 = vpop.permute.xlu1 %2106  ;;  %v2109_v36 = vpop.permute.xlu0 %2108 }
 0x4ad   :  { %v2123_v59 = vsel %vm2122_vm11, %v2107_v39, %v2109_v36 }
 0x4ae   :  { %3870 = vrot.lane.b32.xlu0 %v19319_v8, %s18796_s17  ;;  %v2134_v42 = vsel %vm1385_vm5, %v2123_v59, 0  ;;  %v18642_v59 = vld [vmem:[%s22799_s2 + $0x20] sm:$0x3f]  }
 0x4af   :  { %3872 = vrot.lane.b32.xlu1 %v19321_v14, %s18796_s17  ;;  %17075 = vmatmul.mubr.msk.bf16.vlgmr.msra.gmra.mrb[12].mxu1 %vm1447_vm9, %v18640_v57 }
 0x4b0   :  { %17077 = vmatmul.mubr.msk.bf16.vlgmr.msra.gmra.mrb[16].mxu0 %vm1447_vm9, %v18640_v57  ;;  %2040 = vmatpush1.bf16.msra.mxu1 %v1905_v53  ;;  %v2111_v10 = vpop.permute.xlu1 %2110  ;;  %v2113_v38 = vpop.permute.xlu0 %2112 }
 0x4b1   :  { %v2124_v1 = vsel %vm2122_vm11, %v2109_v36, %v2111_v10  ;;  %2071 = vmatprep.mubr.bf16.mxu1 %v22819_v3  ;;  %2189 = vmatprep.mubr.bf16.mxu0 %v22819_v3  ;;  %v2125_v28 = vsel %vm2122_vm11, %v2111_v10, %v2113_v38 }
 0x4b2   :  { %3874 = vrot.lane.b32.xlu0 %v19327_v51, %s18796_s17  ;;  %17083 = vmatprep.subr.msk.bf16.mxu0 %vm1385_vm5, %v2124_v1  ;;  %v2140_v13 = vsel %vm1385_vm5, %v2125_v28, 0 }
 0x4b3   :  { %3876 = vrot.lane.b32.xlu1 %v19329_v55, %s18796_s17  ;;  %2158 = vmatpush1.bf16.msra.mxu0 %v2134_v42 }
 0x4b4   :  { %v2115_v35 = vpop.permute.xlu1 %2114  ;;  %v2117_v2 = vpop.permute.xlu0 %2116 }
 0x4b5   :  { %v2126_v7 = vsel %vm2122_vm11, %v2113_v38, %v2115_v35  ;;  %v2127_v44 = vsel %vm2122_vm11, %v2115_v35, %v2117_v2 }
 0x4b6   :  { %3878 = vrot.lane.b32.xlu0 %v19335_v6, %s18796_s17  ;;  %17085 = vmatprep.subr.msk.bf16.mxu1 %vm1385_vm5, %v2126_v7 }
 0x4b7   :  { %3880 = vrot.lane.b32.xlu1 %v19345_v16, %s18796_s17  ;;  %17079 = vmatmul.mubr.msk.bf16.vlgmr.msra.gmra.mrb[16].mxu1 %vm1447_vm9, %v18640_v57  ;;  %v2146_v57 = vsel %vm1385_vm5, %v2127_v44, 0 }
 0x4b8   :  { %17084 = vmatmul.mubr.msk.bf16.vlgmr.msra.gmra.mrb[12].mxu0 %vm1447_vm9, %v18641_v5  ;;  %2201 = vmatpush1.bf16.msra.mxu1 %v2140_v13  ;;  %v2119_v25 = vpop.permute.xlu1 %2118  ;;  %v2121_v58 = vpop.permute.xlu0 %2120 }
 0x4b9   :  { %17089 = vmatprep.subr.msk.bf16.mxu1 %vm1385_vm5, %v2121_v58  ;;  %v2128_v61 = vsel %vm2122_vm11, %v2117_v2, %v2119_v25  ;;  %2232 = vmatprep.mubr.bf16.mxu1 %v22819_v3  ;;  %v2129_v27 = vsel %vm2122_vm11, %v2119_v25, %v2121_v58 }
 0x4ba   :  { %4118 = vrot.lane.b32.xlu0 %v19313_v9, %s18801_s22  ;;  %17087 = vmatprep.subr.msk.bf16.mxu0 %vm1385_vm5, %v2128_v61  ;;  %v2152_v48 = vsel %vm1385_vm5, %v2129_v27, 0 }
 0x4bb   :  { %4116 = vrot.lane.b32.xlu1 %v19311_v15, %s18801_s22  ;;  %2244 = vmatpush1.bf16.msra.mxu0 %v2146_v57 }
 0x4bc   :  { %v2354_v29 = vpop.permute.xlu1 %2353  ;;  %v2356_v30 = vpop.permute.xlu0 %2355  ;;  %2275 = vmatprep.mubr.bf16.mxu0 %v22819_v3 }
 0x4bd   :  { %v2370_v47 = vsel %vm2369_vm12, %v2354_v29, %v2356_v30 }
 0x4be   :  { %4122 = vrot.lane.b32.xlu0 %v19321_v14, %s18801_s22  ;;  %v2381_v34 = vsel %vm1385_vm5, %v2370_v47, 0  ;;  %v18643_v47 = vld [vmem:[%s22799_s2 + $0x28] sm:$0x3f]  }
 0x4bf   :  { %4120 = vrot.lane.b32.xlu1 %v19319_v8, %s18801_s22  ;;  %17086 = vmatmul.mubr.msk.bf16.vlgmr.msra.gmra.mrb[12].mxu1 %vm1447_vm9, %v18641_v5 }
 0x4c0   :  { %17088 = vmatmul.mubr.msk.bf16.vlgmr.msra.gmra.mrb[16].mxu0 %vm1447_vm9, %v18641_v5  ;;  %2287 = vmatpush1.bf16.msra.mxu1 %v2152_v48  ;;  %v2358_v41 = vpop.permute.xlu1 %2357  ;;  %v2360_v45 = vpop.permute.xlu0 %2359 }
 0x4c1   :  { %v2371_v52 = vsel %vm2369_vm12, %v2356_v30, %v2358_v41  ;;  %2318 = vmatprep.mubr.bf16.mxu1 %v22819_v3  ;;  %2436 = vmatprep.mubr.bf16.mxu0 %v22819_v3  ;;  %v2372_v33 = vsel %vm2369_vm12, %v2358_v41, %v2360_v45 }
 0x4c2   :  { %4126 = vrot.lane.b32.xlu0 %v19329_v55, %s18801_s22  ;;  %17094 = vmatprep.subr.msk.bf16.mxu0 %vm1385_vm5, %v2371_v52  ;;  %v2387_v38 = vsel %vm1385_vm5, %v2372_v33, 0 }
 0x4c3   :  { %4124 = vrot.lane.b32.xlu1 %v19327_v51, %s18801_s22  ;;  %2405 = vmatpush1.bf16.msra.mxu0 %v2381_v34 }
 0x4c4   :  { %v2362_v39 = vpop.permute.xlu1 %2361  ;;  %v2364_v36 = vpop.permute.xlu0 %2363 }
 0x4c5   :  { %v2373_v53 = vsel %vm2369_vm12, %v2360_v45, %v2362_v39  ;;  %v2374_v10 = vsel %vm2369_vm12, %v2362_v39, %v2364_v36 }
 0x4c6   :  { %4130 = vrot.lane.b32.xlu0 %v19345_v16, %s18801_s22  ;;  %17096 = vmatprep.subr.msk.bf16.mxu1 %vm1385_vm5, %v2373_v53  ;;  %v2393_v35 = vsel %vm1385_vm5, %v2374_v10, 0 }
 0x4c7   :  { %4128 = vrot.lane.b32.xlu1 %v19335_v6, %s18801_s22  ;;  %17090 = vmatmul.mubr.msk.bf16.vlgmr.msra.gmra.mrb[16].mxu1 %vm1447_vm9, %v18641_v5 }
 0x4c8   :  { %17095 = vmatmul.mubr.msk.bf16.vlgmr.msra.gmra.mrb[12].mxu0 %vm1447_vm9, %v18642_v59  ;;  %2448 = vmatpush1.bf16.msra.mxu1 %v2387_v38  ;;  %v2366_v1 = vpop.permute.xlu1 %2365  ;;  %v2368_v42 = vpop.permute.xlu0 %2367 }
 0x4c9   :  { %17100 = vmatprep.subr.msk.bf16.mxu1 %vm1385_vm5, %v2368_v42  ;;  %v2375_v28 = vsel %vm2369_vm12, %v2364_v36, %v2366_v1  ;;  %2479 = vmatprep.mubr.bf16.mxu1 %v22819_v3  ;;  %v2376_v2 = vsel %vm2369_vm12, %v2366_v1, %v2368_v42 }
 0x4ca   :  { %4366 = vrot.lane.b32.xlu0 %v19311_v15, %s18797_s18  ;;  %17098 = vmatprep.subr.msk.bf16.mxu0 %vm1385_vm5, %v2375_v28  ;;  %v2399_v13 = vsel %vm1385_vm5, %v2376_v2, 0 }
 0x4cb   :  { %4368 = vrot.lane.b32.xlu1 %v19313_v9, %s18797_s18  ;;  %2491 = vmatpush1.bf16.msra.mxu0 %v2393_v35 }
 0x4cc   :  { %v2601_v5 = vpop.permute.xlu1 %2600  ;;  %v2603_v7 = vpop.permute.xlu0 %2602  ;;  %2522 = vmatprep.mubr.bf16.mxu0 %v22819_v3 }
 0x4cd   :  { %v2617_v44 = vsel %vm2616_vm13, %v2601_v5, %v2603_v7 }
 0x4ce   :  { %4370 = vrot.lane.b32.xlu0 %v19319_v8, %s18797_s18  ;;  %v2628_v57 = vsel %vm1385_vm5, %v2617_v44, 0  ;;  %v18644_v44 = vld [vmem:[%s22799_s2 + $0x30] sm:$0x3f]  }
 0x4cf   :  { %4372 = vrot.lane.b32.xlu1 %v19321_v14, %s18797_s18  ;;  %17097 = vmatmul.mubr.msk.bf16.vlgmr.msra.gmra.mrb[12].mxu1 %vm1447_vm9, %v18642_v59 }
 0x4d0   :  { %17099 = vmatmul.mubr.msk.bf16.vlgmr.msra.gmra.mrb[16].mxu0 %vm1447_vm9, %v18642_v59  ;;  %2534 = vmatpush1.bf16.msra.mxu1 %v2399_v13  ;;  %v2605_v25 = vpop.permute.xlu1 %2604  ;;  %v2607_v58 = vpop.permute.xlu0 %2606 }
 0x4d1   :  { %v2618_v61 = vsel %vm2616_vm13, %v2603_v7, %v2605_v25  ;;  %2565 = vmatprep.mubr.bf16.mxu1 %v22819_v3  ;;  %2683 = vmatprep.mubr.bf16.mxu0 %v22819_v3  ;;  %v2619_v27 = vsel %vm2616_vm13, %v2605_v25, %v2607_v58 }
 0x4d2   :  { %4374 = vrot.lane.b32.xlu0 %v19327_v51, %s18797_s18  ;;  %17105 = vmatprep.subr.msk.bf16.mxu0 %vm1385_vm5, %v2618_v61  ;;  %v2634_v45 = vsel %vm1385_vm5, %v2619_v27, 0 }
 0x4d3   :  { %4376 = vrot.lane.b32.xlu1 %v19329_v55, %s18797_s18  ;;  %2652 = vmatpush1.bf16.msra.mxu0 %v2628_v57 }
 0x4d4   :  { %v2609_v29 = vpop.permute.xlu1 %2608  ;;  %v2611_v30 = vpop.permute.xlu0 %2610 }
 0x4d5   :  { %v2620_v48 = vsel %vm2616_vm13, %v2607_v58, %v2609_v29  ;;  %v2621_v41 = vsel %vm2616_vm13, %v2609_v29, %v2611_v30 }
 0x4d6   :  { %4378 = vrot.lane.b32.xlu0 %v19335_v6, %s18797_s18  ;;  %17107 = vmatprep.subr.msk.bf16.mxu1 %vm1385_vm5, %v2620_v48  ;;  %v2640_v39 = vsel %vm1385_vm5, %v2621_v41, 0 }
 0x4d7   :  { %4380 = vrot.lane.b32.xlu1 %v19345_v16, %s18797_s18  ;;  %17101 = vmatmul.mubr.msk.bf16.vlgmr.msra.gmra.mrb[16].mxu1 %vm1447_vm9, %v18642_v59 }
 0x4d8   :  { %17106 = vmatmul.mubr.msk.bf16.vlgmr.msra.gmra.mrb[12].mxu0 %vm1447_vm9, %v18643_v47  ;;  %2695 = vmatpush1.bf16.msra.mxu1 %v2634_v45  ;;  %v2613_v52 = vpop.permute.xlu1 %2612  ;;  %v2615_v34 = vpop.permute.xlu0 %2614 }
 0x4d9   :  { %17111 = vmatprep.subr.msk.bf16.mxu1 %vm1385_vm5, %v2615_v34  ;;  %v2622_v33 = vsel %vm2616_vm13, %v2611_v30, %v2613_v52  ;;  %2726 = vmatprep.mubr.bf16.mxu1 %v22819_v3  ;;  %v2623_v36 = vsel %vm2616_vm13, %v2613_v52, %v2615_v34 }
 0x4da   :  { %4618 = vrot.lane.b32.xlu0 %v19313_v9, %s18802_s23  ;;  %17109 = vmatprep.subr.msk.bf16.mxu0 %vm1385_vm5, %v2622_v33  ;;  %v2646_v38 = vsel %vm1385_vm5, %v2623_v36, 0 }
 0x4db   :  { %4616 = vrot.lane.b32.xlu1 %v19311_v15, %s18802_s23  ;;  %2738 = vmatpush1.bf16.msra.mxu0 %v2640_v39 }
 0x4dc   :  { %v2848_v59 = vpop.permute.xlu1 %2847  ;;  %v2850_v53 = vpop.permute.xlu0 %2849  ;;  %2769 = vmatprep.mubr.bf16.mxu0 %v22819_v3 }
 0x4dd   :  { %v2864_v10 = vsel %vm2863_vm14, %v2848_v59, %v2850_v53 }
 0x4de   :  { %4622 = vrot.lane.b32.xlu0 %v19321_v14, %s18802_s23  ;;  %v2875_v35 = vsel %vm1385_vm5, %v2864_v10, 0  ;;  %v18645_v10 = vld [vmem:[%s22799_s2 + $0x38] sm:$0x3f]  }
 0x4df   :  { %4620 = vrot.lane.b32.xlu1 %v19319_v8, %s18802_s23  ;;  %17108 = vmatmul.mubr.msk.bf16.vlgmr.msra.gmra.mrb[12].mxu1 %vm1447_vm9, %v18643_v47 }
 0x4e0   :  { %17110 = vmatmul.mubr.msk.bf16.vlgmr.msra.gmra.mrb[16].mxu0 %vm1447_vm9, %v18643_v47  ;;  %2781 = vmatpush1.bf16.msra.mxu1 %v2646_v38  ;;  %v2852_v1 = vpop.permute.xlu1 %2851  ;;  %v2854_v42 = vpop.permute.xlu0 %2853 }
 0x4e1   :  { %v2865_v28 = vsel %vm2863_vm14, %v2850_v53, %v2852_v1  ;;  %2812 = vmatprep.mubr.bf16.mxu1 %v22819_v3  ;;  %2930 = vmatprep.mubr.bf16.mxu0 %v22819_v3  ;;  %v2866_v2 = vsel %vm2863_vm14, %v2852_v1, %v2854_v42 }
 0x4e2   :  { %4626 = vrot.lane.b32.xlu0 %v19329_v55, %s18802_s23  ;;  %17116 = vmatprep.subr.msk.bf16.mxu0 %vm1385_vm5, %v2865_v28  ;;  %v2881_v58 = vsel %vm1385_vm5, %v2866_v2, 0 }
 0x4e3   :  { %4624 = vrot.lane.b32.xlu1 %v19327_v51, %s18802_s23  ;;  %2899 = vmatpush1.bf16.msra.mxu0 %v2875_v35 }
 0x4e4   :  { %v2856_v5 = vpop.permute.xlu1 %2855  ;;  %v2858_v7 = vpop.permute.xlu0 %2857 }
 0x4e5   :  { %v2867_v13 = vsel %vm2863_vm14, %v2854_v42, %v2856_v5  ;;  %v2868_v25 = vsel %vm2863_vm14, %v2856_v5, %v2858_v7 }
 0x4e6   :  { %4630 = vrot.lane.b32.xlu0 %v19345_v16, %s18802_s23  ;;  %17118 = vmatprep.subr.msk.bf16.mxu1 %vm1385_vm5, %v2867_v13  ;;  %v2887_v29 = vsel %vm1385_vm5, %v2868_v25, 0 }
 0x4e7   :  { %4628 = vrot.lane.b32.xlu1 %v19335_v6, %s18802_s23  ;;  %17112 = vmatmul.mubr.msk.bf16.vlgmr.msra.gmra.mrb[16].mxu1 %vm1447_vm9, %v18643_v47 }
 0x4e8   :  { %17117 = vmatmul.mubr.msk.bf16.vlgmr.msra.gmra.mrb[12].mxu0 %vm1447_vm9, %v18644_v44  ;;  %2942 = vmatpush1.bf16.msra.mxu1 %v2881_v58  ;;  %v2860_v61 = vpop.permute.xlu1 %2859  ;;  %v2862_v57 = vpop.permute.xlu0 %2861 }
 0x4e9   :  { %17122 = vmatprep.subr.msk.bf16.mxu1 %vm1385_vm5, %v2862_v57  ;;  %v2869_v27 = vsel %vm2863_vm14, %v2858_v7, %v2860_v61  ;;  %2973 = vmatprep.mubr.bf16.mxu1 %v22819_v3  ;;  %v2870_v30 = vsel %vm2863_vm14, %v2860_v61, %v2862_v57 }
 0x4ea   :  { %4866 = vrot.lane.b32.xlu0 %v19311_v15, %s18798_s19  ;;  %17120 = vmatprep.subr.msk.bf16.mxu0 %vm1385_vm5, %v2869_v27  ;;  %v2893_v45 = vsel %vm1385_vm5, %v2870_v30, 0 }
 0x4eb   :  { %4868 = vrot.lane.b32.xlu1 %v19313_v9, %s18798_s19  ;;  %2985 = vmatpush1.bf16.msra.mxu0 %v2887_v29 }
 0x4ec   :  { %v3095_v47 = vpop.permute.xlu1 %3094  ;;  %v3097_v48 = vpop.permute.xlu0 %3096  ;;  %3016 = vmatprep.mubr.bf16.mxu0 %v22819_v3 }
 0x4ed   :  { %v3111_v41 = vsel %vm3110_vm15, %v3095_v47, %v3097_v48 }
 0x4ee   :  { %4870 = vrot.lane.b32.xlu0 %v19319_v8, %s18798_s19  ;;  %v3122_v39 = vsel %vm1385_vm5, %v3111_v41, 0  ;;  %v18646_v41 = vld [vmem:[%s22799_s2 + $0x40] sm:$0x3f]  }
 0x4ef   :  { %4872 = vrot.lane.b32.xlu1 %v19321_v14, %s18798_s19  ;;  %17119 = vmatmul.mubr.msk.bf16.vlgmr.msra.gmra.mrb[12].mxu1 %vm1447_vm9, %v18644_v44 }
 0x4f0   :  { %17121 = vmatmul.mubr.msk.bf16.vlgmr.msra.gmra.mrb[16].mxu0 %vm1447_vm9, %v18644_v44  ;;  %3028 = vmatpush1.bf16.msra.mxu1 %v2893_v45  ;;  %v3099_v52 = vpop.permute.xlu1 %3098  ;;  %v3101_v34 = vpop.permute.xlu0 %3100 }
 0x4f1   :  { %v3112_v33 = vsel %vm3110_vm15, %v3097_v48, %v3099_v52  ;;  %3059 = vmatprep.mubr.bf16.mxu1 %v22819_v3  ;;  %3177 = vmatprep.mubr.bf16.mxu0 %v22819_v3  ;;  %v3113_v36 = vsel %vm3110_vm15, %v3099_v52, %v3101_v34 }
 0x4f2   :  { %4874 = vrot.lane.b32.xlu0 %v19327_v51, %s18798_s19  ;;  %17127 = vmatprep.subr.msk.bf16.mxu0 %vm1385_vm5, %v3112_v33  ;;  %v3128_v42 = vsel %vm1385_vm5, %v3113_v36, 0 }
 0x4f3   :  { %4876 = vrot.lane.b32.xlu1 %v19329_v55, %s18798_s19  ;;  %3146 = vmatpush1.bf16.msra.mxu0 %v3122_v39 }
 0x4f4   :  { %v3103_v59 = vpop.permute.xlu1 %3102  ;;  %v3105_v53 = vpop.permute.xlu0 %3104 }
 0x4f5   :  { %v3114_v38 = vsel %vm3110_vm15, %v3101_v34, %v3103_v59  ;;  %v3115_v1 = vsel %vm3110_vm15, %v3103_v59, %v3105_v53 }
 0x4f6   :  { %4878 = vrot.lane.b32.xlu0 %v19335_v6, %s18798_s19  ;;  %17129 = vmatprep.subr.msk.bf16.mxu1 %vm1385_vm5, %v3114_v38  ;;  %v3134_v5 = vsel %vm1385_vm5, %v3115_v1, 0 }
 0x4f7   :  { %4880 = vrot.lane.b32.xlu1 %v19345_v16, %s18798_s19  ;;  %17123 = vmatmul.mubr.msk.bf16.vlgmr.msra.gmra.mrb[16].mxu1 %vm1447_vm9, %v18644_v44 }
 0x4f8   :  { %17128 = vmatmul.mubr.msk.bf16.vlgmr.msra.gmra.mrb[12].mxu0 %vm1447_vm9, %v18645_v10  ;;  %3189 = vmatpush1.bf16.msra.mxu1 %v3128_v42  ;;  %v3107_v28 = vpop.permute.xlu1 %3106  ;;  %v3109_v35 = vpop.permute.xlu0 %3108 }
 0x4f9   :  { %17133 = vmatprep.subr.msk.bf16.mxu1 %vm1385_vm5, %v3109_v35  ;;  %v3116_v2 = vsel %vm3110_vm15, %v3105_v53, %v3107_v28  ;;  %3220 = vmatprep.mubr.bf16.mxu1 %v22819_v3  ;;  %v3117_v7 = vsel %vm3110_vm15, %v3107_v28, %v3109_v35 }
 0x4fa   :  { %5118 = vrot.lane.b32.xlu0 %v19313_v9, %s18803_s24  ;;  %17131 = vmatprep.subr.msk.bf16.mxu0 %vm1385_vm5, %v3116_v2  ;;  %v3140_v58 = vsel %vm1385_vm5, %v3117_v7, 0 }
 0x4fb   :  { %5116 = vrot.lane.b32.xlu1 %v19311_v15, %s18803_s24  ;;  %3232 = vmatpush1.bf16.msra.mxu0 %v3134_v5 }
 0x4fc   :  { %v3342_v44 = vpop.permute.xlu1 %3341  ;;  %v3344_v13 = vpop.permute.xlu0 %3343  ;;  %3263 = vmatprep.mubr.bf16.mxu0 %v22819_v3 }
 0x4fd   :  { %v3358_v25 = vsel %vm3357_vm0, %v3342_v44, %v3344_v13 }
 0x4fe   :  { %5122 = vrot.lane.b32.xlu0 %v19321_v14, %s18803_s24  ;;  %v3369_v29 = vsel %vm1385_vm5, %v3358_v25, 0  ;;  %v18647_v25 = vld [vmem:[%s22799_s2 + $0x48] sm:$0x3f]  }
 0x4ff   :  { %5120 = vrot.lane.b32.xlu1 %v19319_v8, %s18803_s24  ;;  %17130 = vmatmul.mubr.msk.bf16.vlgmr.msra.gmra.mrb[12].mxu1 %vm1447_vm9, %v18645_v10 }
 0x500   :  { %17132 = vmatmul.mubr.msk.bf16.vlgmr.msra.gmra.mrb[16].mxu0 %vm1447_vm9, %v18645_v10  ;;  %3275 = vmatpush1.bf16.msra.mxu1 %v3140_v58  ;;  %v3346_v61 = vpop.permute.xlu1 %3345  ;;  %v3348_v57 = vpop.permute.xlu0 %3347 }
 0x501   :  { %v3359_v27 = vsel %vm3357_vm0, %v3344_v13, %v3346_v61  ;;  %3306 = vmatprep.mubr.bf16.mxu1 %v22819_v3  ;;  %3424 = vmatprep.mubr.bf16.mxu0 %v22819_v3  ;;  %v3360_v30 = vsel %vm3357_vm0, %v3346_v61, %v3348_v57 }
 0x502   :  { %5126 = vrot.lane.b32.xlu0 %v19329_v55, %s18803_s24  ;;  %17138 = vmatprep.subr.msk.bf16.mxu0 %vm1385_vm5, %v3359_v27  ;;  %v3375_v34 = vsel %vm1385_vm5, %v3360_v30, 0 }
 0x503   :  { %5124 = vrot.lane.b32.xlu1 %v19327_v51, %s18803_s24  ;;  %3393 = vmatpush1.bf16.msra.mxu0 %v3369_v29 }
 0x504   :  { %v3350_v47 = vpop.permute.xlu1 %3349  ;;  %v3352_v48 = vpop.permute.xlu0 %3351 }
 0x505   :  { %v3361_v45 = vsel %vm3357_vm0, %v3348_v57, %v3350_v47  ;;  %v3362_v52 = vsel %vm3357_vm0, %v3350_v47, %v3352_v48 }
 0x506   :  { %5130 = vrot.lane.b32.xlu0 %v19345_v16, %s18803_s24  ;;  %17140 = vmatprep.subr.msk.bf16.mxu1 %vm1385_vm5, %v3361_v45  ;;  %v3381_v59 = vsel %vm1385_vm5, %v3362_v52, 0 }
 0x507   :  { %5128 = vrot.lane.b32.xlu1 %v19335_v6, %s18803_s24  ;;  %17134 = vmatmul.mubr.msk.bf16.vlgmr.msra.gmra.mrb[16].mxu1 %vm1447_vm9, %v18645_v10 }
 0x508   :  { %17139 = vmatmul.mubr.msk.bf16.vlgmr.msra.gmra.mrb[12].mxu0 %vm1447_vm9, %v18646_v41  ;;  %3436 = vmatpush1.bf16.msra.mxu1 %v3375_v34  ;;  %v3354_v33 = vpop.permute.xlu1 %3353  ;;  %v3356_v39 = vpop.permute.xlu0 %3355 }
 0x509   :  { %17144 = vmatprep.subr.msk.bf16.mxu1 %vm1385_vm5, %v3356_v39  ;;  %v3363_v36 = vsel %vm3357_vm0, %v3352_v48, %v3354_v33  ;;  %3467 = vmatprep.mubr.bf16.mxu1 %v22819_v3  ;;  %v3364_v53 = vsel %vm3357_vm0, %v3354_v33, %v3356_v39 }
 0x50a   :  { %5366 = vrot.lane.b32.xlu0 %v19311_v15, %s18800_s21  ;;  %17142 = vmatprep.subr.msk.bf16.mxu0 %vm1385_vm5, %v3363_v36  ;;  %v3387_v42 = vsel %vm1385_vm5, %v3364_v53, 0 }
 0x50b   :  { %5368 = vrot.lane.b32.xlu1 %v19313_v9, %s18800_s21  ;;  %3479 = vmatpush1.bf16.msra.mxu0 %v3381_v59 }
 0x50c   :  { %v3617_v10 = vpop.permute.xlu1 %3616  ;;  %v3619_v38 = vpop.permute.xlu0 %3618  ;;  %3510 = vmatprep.mubr.bf16.mxu0 %v22819_v3 }
 0x50d   :  { %v3635_v1 = vsel %vm22844_vm2, %v3617_v10, %v3619_v38 }
 0x50e   :  { %5370 = vrot.lane.b32.xlu0 %v19319_v8, %s18800_s21  ;;  %v3647_v5 = vsel %vm1385_vm5, %v3635_v1, 0 }
 0x50f   :  { %5372 = vrot.lane.b32.xlu1 %v19321_v14, %s18800_s21  ;;  %17141 = vmatmul.mubr.msk.bf16.vlgmr.msra.gmra.mrb[12].mxu1 %vm1447_vm9, %v18646_v41 }
 0x510   :  { %17143 = vmatmul.mubr.msk.bf16.vlgmr.msra.gmra.mrb[16].mxu0 %vm1447_vm9, %v18646_v41  ;;  %3522 = vmatpush1.bf16.msra.mxu1 %v3387_v42  ;;  %v3621_v28 = vpop.permute.xlu1 %3620  ;;  %v3623_v35 = vpop.permute.xlu0 %3622 }
 0x511   :  { %v3636_v2 = vsel %vm22844_vm2, %v3619_v38, %v3621_v28  ;;  %3553 = vmatprep.mubr.bf16.mxu1 %v22819_v3  ;;  %3702 = vmatprep.mubr.bf16.mxu0 %v22819_v3  ;;  %v3637_v7 = vsel %vm22844_vm2, %v3621_v28, %v3623_v35  ;;  %v18648_v38 = vld [vmem:[%s22799_s2 + $0x50] sm:$0x3f]  }
 0x512   :  { %5374 = vrot.lane.b32.xlu0 %v19327_v51, %s18800_s21  ;;  %17158 = vmatprep.subr.msk.bf16.mxu0 %vm1385_vm5, %v3636_v2  ;;  %v3653_v61 = vsel %vm1385_vm5, %v3637_v7, 0 }
 0x513   :  { %5376 = vrot.lane.b32.xlu1 %v19329_v55, %s18800_s21  ;;  %3671 = vmatpush1.bf16.msra.mxu0 %v3647_v5 }
 0x514   :  { %v3625_v44 = vpop.permute.xlu1 %3624  ;;  %v3627_v13 = vpop.permute.xlu0 %3626 }
 0x515   :  { %v3638_v58 = vsel %vm22844_vm2, %v3623_v35, %v3625_v44  ;;  %v3639_v57 = vsel %vm22844_vm2, %v3625_v44, %v3627_v13 }
 0x516   :  { %5378 = vrot.lane.b32.xlu0 %v19335_v6, %s18800_s21  ;;  %17160 = vmatprep.subr.msk.bf16.mxu1 %vm1385_vm5, %v3638_v58  ;;  %v3659_v48 = vsel %vm1385_vm5, %v3639_v57, 0 }
 0x517   :  { %5380 = vrot.lane.b32.xlu1 %v19345_v16, %s18800_s21  ;;  %17145 = vmatmul.mubr.msk.bf16.vlgmr.msra.gmra.mrb[16].mxu1 %vm1447_vm9, %v18646_v41 }
 0x518   :  { %17159 = vmatmul.mubr.msk.bf16.vlgmr.msra.gmra.mrb[12].mxu0 %vm1447_vm9, %v18647_v25  ;;  %3714 = vmatpush1.bf16.msra.mxu1 %v3653_v61  ;;  %v3629_v27 = vpop.permute.xlu1 %3628  ;;  %v3631_v29 = vpop.permute.xlu0 %3630 }
 0x519   :  { %v3640_v30 = vsel %vm22844_vm2, %v3627_v13, %v3629_v27  ;;  %v3642_v47 = vsel %vm22844_vm2, %v3631_v29, %v19419_v56  ;;  %3745 = vmatprep.mubr.bf16.mxu1 %v22819_v3  ;;  %3788 = vmatprep.mubr.bf16.mxu0 %v22819_v3  ;;  %v3641_v41 = vsel %vm22844_vm2, %v3629_v27, %v3631_v29 }
 0x51a   :  { %5618 = vrot.lane.b32.xlu0 %v19313_v9, %s18807_s28  ;;  %17162 = vmatprep.subr.msk.bf16.mxu0 %vm1385_vm5, %v3640_v30  ;;  %v3665_v34 = vsel %vm1385_vm5, %v3641_v41, 0  ;;  %v18649_v41 = vld [vmem:[%s22799_s2 + $0x58] sm:$0x3f]  }
 0x51b   :  { %5616 = vrot.lane.b32.xlu1 %v19311_v15, %s18807_s28  ;;  %17164 = vmatprep.subr.msk.bf16.mxu1 %vm1385_vm5, %v3642_v47 }
 0x51c   :  { %3757 = vmatpush1.bf16.msra.mxu0 %v3659_v48  ;;  %v3867_v56 = vpop.permute.xlu0 %3866 }
 0x51d   :  { %v3869_v45 = vpop.permute.xlu1 %3868 }
 0x51e   :  { %5622 = vrot.lane.b32.xlu0 %v19321_v14, %s18807_s28  ;;  %v3885_v52 = vsel %vm22843_vm3, %v3867_v56, %v3869_v45 }
 0x51f   :  { %5620 = vrot.lane.b32.xlu1 %v19319_v8, %s18807_s28  ;;  %17161 = vmatmul.mubr.msk.bf16.vlgmr.msra.gmra.mrb[12].mxu1 %vm1447_vm9, %v18647_v25  ;;  %v3897_v59 = vsel %vm1385_vm5, %v3885_v52, 0 }
 0x520   :  { %17163 = vmatmul.mubr.msk.bf16.vlgmr.msra.gmra.mrb[16].mxu0 %vm1447_vm9, %v18647_v25  ;;  %3800 = vmatpush1.bf16.msra.mxu1 %v3665_v34  ;;  %v3871_v33 = vpop.permute.xlu0 %3870 }
 0x521   :  { %v3873_v39 = vpop.permute.xlu1 %3872  ;;  %v3886_v36 = vsel %vm22843_vm3, %v3869_v45, %v3871_v33  ;;  %3831 = vmatprep.mubr.bf16.mxu1 %v22819_v3  ;;  %3952 = vmatprep.mubr.bf16.mxu0 %v22819_v3 }
 0x522   :  { %5626 = vrot.lane.b32.xlu0 %v19329_v55, %s18807_s28  ;;  %17169 = vmatprep.subr.msk.bf16.mxu0 %vm1385_vm5, %v3886_v36  ;;  %v3887_v53 = vsel %vm22843_vm3, %v3871_v33, %v3873_v39 }
 0x523   :  { %5624 = vrot.lane.b32.xlu1 %v19327_v51, %s18807_s28  ;;  %3921 = vmatpush1.bf16.msra.mxu0 %v3897_v59  ;;  %v3903_v28 = vsel %vm1385_vm5, %v3887_v53, 0 }
 0x524   :  { %v3875_v10 = vpop.permute.xlu0 %3874 }
 0x525   :  { %v3877_v1 = vpop.permute.xlu1 %3876  ;;  %v3888_v42 = vsel %vm22843_vm3, %v3873_v39, %v3875_v10 }
 0x526   :  { %5630 = vrot.lane.b32.xlu0 %v19345_v16, %s18807_s28  ;;  %17171 = vmatprep.subr.msk.bf16.mxu1 %vm1385_vm5, %v3888_v42  ;;  %v3889_v35 = vsel %vm22843_vm3, %v3875_v10, %v3877_v1 }
 0x527   :  { %5628 = vrot.lane.b32.xlu1 %v19335_v6, %s18807_s28  ;;  %17165 = vmatmul.mubr.msk.bf16.vlgmr.msra.gmra.mrb[16].mxu1 %vm1447_vm9, %v18647_v25  ;;  %v3909_v13 = vsel %vm1385_vm5, %v3889_v35, 0 }
 0x528   :  { %17170 = vmatmul.mubr.msk.bf16.vlgmr.msra.gmra.mrb[12].mxu0 %vm1447_vm9, %v18648_v38  ;;  %3964 = vmatpush1.bf16.msra.mxu1 %v3903_v28  ;;  %v3879_v2 = vpop.permute.xlu0 %3878 }
 0x529   :  { %v3881_v5 = vpop.permute.xlu1 %3880  ;;  %v3890_v7 = vsel %vm22843_vm3, %v3877_v1, %v3879_v2  ;;  %3995 = vmatprep.mubr.bf16.mxu1 %v22819_v3  ;;  %4038 = vmatprep.mubr.bf16.mxu0 %v22819_v3 }
 0x52a   :  { %5866 = vrot.lane.b32.xlu0 %v19311_v15, %s18805_s26  ;;  %17173 = vmatprep.subr.msk.bf16.mxu0 %vm1385_vm5, %v3890_v7  ;;  %v3892_v44 = vsel %vm22843_vm3, %v3881_v5, %v19421_v0  ;;  %v3891_v25 = vsel %vm22843_vm3, %v3879_v2, %v3881_v5  ;;  %vm9216_vm3 = vcmask 1045508  }
 0x52b   :  { %5868 = vrot.lane.b32.xlu1 %v19313_v9, %s18805_s26  ;;  %17175 = vmatprep.subr.msk.bf16.mxu1 %vm1385_vm5, %v3892_v44  ;;  %v3915_v0 = vsel %vm1385_vm5, %v3891_v25, 0  ;;  %v18650_v25 = vld [vmem:[%s22799_s2 + $0x60] sm:$0x3f]  }
 0x52c   :  { %4007 = vmatpush1.bf16.msra.mxu0 %v3909_v13  ;;  %v4119_v58 = vpop.permute.xlu0 %4118 }
 0x52d   :  { %v4117_v61 = vpop.permute.xlu1 %4116 }
 0x52e   :  { %5870 = vrot.lane.b32.xlu0 %v19319_v8, %s18805_s26  ;;  %v4135_v57 = vsel %vm22842_vm4, %v4117_v61, %v4119_v58 }
 0x52f   :  { %5872 = vrot.lane.b32.xlu1 %v19321_v14, %s18805_s26  ;;  %17172 = vmatmul.mubr.msk.bf16.vlgmr.msra.gmra.mrb[12].mxu1 %vm1447_vm9, %v18648_v38  ;;  %v4147_v47 = vsel %vm1385_vm5, %v4135_v57, 0 }
 0x530   :  { %17174 = vmatmul.mubr.msk.bf16.vlgmr.msra.gmra.mrb[16].mxu0 %vm1447_vm9, %v18648_v38  ;;  %4050 = vmatpush1.bf16.msra.mxu1 %v3915_v0  ;;  %v4123_v27 = vpop.permute.xlu0 %4122 }
 0x531   :  { %v4121_v29 = vpop.permute.xlu1 %4120  ;;  %4081 = vmatprep.mubr.bf16.mxu1 %v22819_v3  ;;  %4202 = vmatprep.mubr.bf16.mxu0 %v22819_v3 }
 0x532   :  { %5874 = vrot.lane.b32.xlu0 %v19327_v51, %s18805_s26  ;;  %v4136_v30 = vsel %vm22842_vm4, %v4119_v58, %v4121_v29  ;;  %v4137_v56 = vsel %vm22842_vm4, %v4121_v29, %v4123_v27 }
 0x533   :  { %5876 = vrot.lane.b32.xlu1 %v19329_v55, %s18805_s26  ;;  %17180 = vmatprep.subr.msk.bf16.mxu0 %vm1385_vm5, %v4136_v30  ;;  %v4153_v33 = vsel %vm1385_vm5, %v4137_v56, 0 }
 0x534   :  { %4171 = vmatpush1.bf16.msra.mxu0 %v4147_v47  ;;  %v4127_v48 = vpop.permute.xlu0 %4126 }
 0x535   :  { %v4125_v45 = vpop.permute.xlu1 %4124 }
 0x536   :  { %5878 = vrot.lane.b32.xlu0 %v19335_v6, %s18805_s26  ;;  %v4138_v52 = vsel %vm22842_vm4, %v4123_v27, %v4125_v45  ;;  %v4139_v34 = vsel %vm22842_vm4, %v4125_v45, %v4127_v48 }
 0x537   :  { %5880 = vrot.lane.b32.xlu1 %v19345_v16, %s18805_s26  ;;  %17176 = vmatmul.mubr.msk.bf16.vlgmr.msra.gmra.mrb[16].mxu1 %vm1447_vm9, %v18648_v38  ;;  %v4159_v10 = vsel %vm1385_vm5, %v4139_v34, 0 }
 0x538   :  { %17181 = vmatmul.mubr.msk.bf16.vlgmr.msra.gmra.mrb[12].mxu0 %vm1447_vm9, %v18649_v41  ;;  %17182 = vmatprep.subr.msk.bf16.mxu1 %vm1385_vm5, %v4138_v52  ;;  %v4131_v39 = vpop.permute.xlu0 %4130 }
 0x539   :  { %4214 = vmatpush1.bf16.msra.mxu1 %v4153_v33  ;;  %v4129_v36 = vpop.permute.xlu1 %4128  ;;  %v4142_v59 = vsel %vm22842_vm4, %v4131_v39, %v19431_v11  ;;  %4245 = vmatprep.mubr.bf16.mxu1 %v22819_v3 }
 0x53a   :  { %6118 = vrot.lane.b32.xlu0 %v19313_v9, %s18808_s29  ;;  %v4140_v53 = vsel %vm22842_vm4, %v4127_v48, %v4129_v36  ;;  %17186 = vmatprep.subr.msk.bf16.mxu1 %vm1385_vm5, %v4142_v59  ;;  %v4141_v38 = vsel %vm22842_vm4, %v4129_v36, %v4131_v39 }
 0x53b   :  { %6116 = vrot.lane.b32.xlu1 %v19311_v15, %s18808_s29  ;;  %17184 = vmatprep.subr.msk.bf16.mxu0 %vm1385_vm5, %v4140_v53  ;;  %v4165_v28 = vsel %vm1385_vm5, %v4141_v38, 0  ;;  %v18651_v53 = vld [vmem:[%s22799_s2 + $0x68] sm:$0x3f]  }
 0x53c   :  { %4257 = vmatpush1.bf16.msra.mxu0 %v4159_v10  ;;  %v4367_v11 = vpop.permute.xlu0 %4366  ;;  %4288 = vmatprep.mubr.bf16.mxu0 %v22819_v3 }
 0x53d   :  { %v4369_v1 = vpop.permute.xlu1 %4368 }
 0x53e   :  { %6122 = vrot.lane.b32.xlu0 %v19321_v14, %s18808_s29  ;;  %v4385_v42 = vsel %vm22802_vm6, %v4367_v11, %v4369_v1 }
 0x53f   :  { %6120 = vrot.lane.b32.xlu1 %v19319_v8, %s18808_s29  ;;  %17183 = vmatmul.mubr.msk.bf16.vlgmr.msra.gmra.mrb[12].mxu1 %vm1447_vm9, %v18649_v41  ;;  %v4397_v7 = vsel %vm1385_vm5, %v4385_v42, 0 }
 0x540   :  { %17185 = vmatmul.mubr.msk.bf16.vlgmr.msra.gmra.mrb[16].mxu0 %vm1447_vm9, %v18649_v41  ;;  %4300 = vmatpush1.bf16.msra.mxu1 %v4165_v28  ;;  %v4371_v35 = vpop.permute.xlu0 %4370 }
 0x541   :  { %v4373_v2 = vpop.permute.xlu1 %4372  ;;  %v4386_v5 = vsel %vm22802_vm6, %v4369_v1, %v4371_v35  ;;  %4331 = vmatprep.mubr.bf16.mxu1 %v22819_v3  ;;  %4452 = vmatprep.mubr.bf16.mxu0 %v22819_v3 }
 0x542   :  { %6126 = vrot.lane.b32.xlu0 %v19329_v55, %s18808_s29  ;;  %17191 = vmatprep.subr.msk.bf16.mxu0 %vm1385_vm5, %v4386_v5  ;;  %v4387_v44 = vsel %vm22802_vm6, %v4371_v35, %v4373_v2 }
 0x543   :  { %6124 = vrot.lane.b32.xlu1 %v19327_v51, %s18808_s29  ;;  %4421 = vmatpush1.bf16.msra.mxu0 %v4397_v7  ;;  %v4403_v0 = vsel %vm1385_vm5, %v4387_v44, 0 }
 0x544   :  { %v4375_v13 = vpop.permute.xlu0 %4374 }
 0x545   :  { %v4377_v58 = vpop.permute.xlu1 %4376  ;;  %v4388_v61 = vsel %vm22802_vm6, %v4373_v2, %v4375_v13 }
 0x546   :  { %6130 = vrot.lane.b32.xlu0 %v19345_v16, %s18808_s29  ;;  %17193 = vmatprep.subr.msk.bf16.mxu1 %vm1385_vm5, %v4388_v61  ;;  %v4389_v57 = vsel %vm22802_vm6, %v4375_v13, %v4377_v58 }
 0x547   :  { %6128 = vrot.lane.b32.xlu1 %v19335_v6, %s18808_s29  ;;  %17187 = vmatmul.mubr.msk.bf16.vlgmr.msra.gmra.mrb[16].mxu1 %vm1447_vm9, %v18649_v41  ;;  %v4409_v48 = vsel %vm1385_vm5, %v4389_v57, 0 }
 0x548   :  { %17192 = vmatmul.mubr.msk.bf16.vlgmr.msra.gmra.mrb[12].mxu0 %vm1447_vm9, %v18650_v25  ;;  %4464 = vmatpush1.bf16.msra.mxu1 %v4403_v0  ;;  %v4379_v27 = vpop.permute.xlu0 %4378 }
 0x549   :  { %v4381_v29 = vpop.permute.xlu1 %4380  ;;  %v4390_v30 = vsel %vm22802_vm6, %v4377_v58, %v4379_v27  ;;  %4495 = vmatprep.mubr.bf16.mxu1 %v22819_v3  ;;  %4538 = vmatprep.mubr.bf16.mxu0 %v22819_v3 }
 0x54a   :  { %6366 = vrot.lane.b32.xlu0 %v19311_v15, %s18806_s27  ;;  %17195 = vmatprep.subr.msk.bf16.mxu0 %vm1385_vm5, %v4390_v30  ;;  %v4392_v47 = vsel %vm22802_vm6, %v4381_v29, %v19433_v12  ;;  %v4391_v41 = vsel %vm22802_vm6, %v4379_v27, %v4381_v29  ;;  %vm22804_vm6 = vcmask 572416  }
 0x54b   :  { %6368 = vrot.lane.b32.xlu1 %v19313_v9, %s18806_s27  ;;  %17197 = vmatprep.subr.msk.bf16.mxu1 %vm1385_vm5, %v4392_v47  ;;  %v4415_v12 = vsel %vm1385_vm5, %v4391_v41, 0  ;;  %v18652_v47 = vld [vmem:[%s22799_s2 + $0x70] sm:$0x3f]  }
 0x54c   :  { %4507 = vmatpush1.bf16.msra.mxu0 %v4409_v48  ;;  %v4619_v56 = vpop.permute.xlu0 %4618 }
 0x54d   :  { %v4617_v45 = vpop.permute.xlu1 %4616 }
 0x54e   :  { %6370 = vrot.lane.b32.xlu0 %v19319_v8, %s18806_s27  ;;  %v4635_v52 = vsel %vm22803_vm7, %v4617_v45, %v4619_v56 }
 0x54f   :  { %6372 = vrot.lane.b32.xlu1 %v19321_v14, %s18806_s27  ;;  %17194 = vmatmul.mubr.msk.bf16.vlgmr.msra.gmra.mrb[12].mxu1 %vm1447_vm9, %v18650_v25  ;;  %v4647_v36 = vsel %vm1385_vm5, %v4635_v52, 0 }
 0x550   :  { %17196 = vmatmul.mubr.msk.bf16.vlgmr.msra.gmra.mrb[16].mxu0 %vm1447_vm9, %v18650_v25  ;;  %4550 = vmatpush1.bf16.msra.mxu1 %v4415_v12  ;;  %v4623_v34 = vpop.permute.xlu0 %4622 }
 0x551   :  { %v4621_v33 = vpop.permute.xlu1 %4620  ;;  %4581 = vmatprep.mubr.bf16.mxu1 %v22819_v3  ;;  %4702 = vmatprep.mubr.bf16.mxu0 %v22819_v3 }
 0x552   :  { %6374 = vrot.lane.b32.xlu0 %v19327_v51, %s18806_s27  ;;  %v4636_v39 = vsel %vm22803_vm7, %v4619_v56, %v4621_v33  ;;  %v4637_v10 = vsel %vm22803_vm7, %v4621_v33, %v4623_v34 }
 0x553   :  { %6376 = vrot.lane.b32.xlu1 %v19329_v55, %s18806_s27  ;;  %17202 = vmatprep.subr.msk.bf16.mxu0 %vm1385_vm5, %v4636_v39  ;;  %v4653_v42 = vsel %vm1385_vm5, %v4637_v10, 0 }
 0x554   :  { %4671 = vmatpush1.bf16.msra.mxu0 %v4647_v36  ;;  %v4627_v59 = vpop.permute.xlu0 %4626 }
 0x555   :  { %v4625_v38 = vpop.permute.xlu1 %4624 }
 0x556   :  { %6378 = vrot.lane.b32.xlu0 %v19335_v6, %s18806_s27  ;;  %v4638_v11 = vsel %vm22803_vm7, %v4623_v34, %v4625_v38  ;;  %v4639_v1 = vsel %vm22803_vm7, %v4625_v38, %v4627_v59 }
 0x557   :  { %6380 = vrot.lane.b32.xlu1 %v19345_v16, %s18806_s27  ;;  %17198 = vmatmul.mubr.msk.bf16.vlgmr.msra.gmra.mrb[16].mxu1 %vm1447_vm9, %v18650_v25  ;;  %v4659_v7 = vsel %vm1385_vm5, %v4639_v1, 0 }
 0x558   :  { %17203 = vmatmul.mubr.msk.bf16.vlgmr.msra.gmra.mrb[12].mxu0 %vm1447_vm9, %v18651_v53  ;;  %17204 = vmatprep.subr.msk.bf16.mxu1 %vm1385_vm5, %v4638_v11  ;;  %v4631_v28 = vpop.permute.xlu0 %4630 }
 0x559   :  { %4714 = vmatpush1.bf16.msra.mxu1 %v4653_v42  ;;  %v4629_v35 = vpop.permute.xlu1 %4628  ;;  %v4642_v2 = vsel %vm22803_vm7, %v4631_v28, %v19439_v32  ;;  %4745 = vmatprep.mubr.bf16.mxu1 %v22819_v3 }
 0x55a   :  { %6618 = vrot.lane.b32.xlu0 %v19313_v9, %s18810_s6  ;;  %v4640_v5 = vsel %vm22803_vm7, %v4627_v59, %v4629_v35  ;;  %17208 = vmatprep.subr.msk.bf16.mxu1 %vm1385_vm5, %v4642_v2  ;;  %v4641_v44 = vsel %vm22803_vm7, %v4629_v35, %v4631_v28  ;;  %vm22805_vm7 = vcmask 531456   ;;  %v18653_v35 = vld [vmem:[%s22799_s2 + $0x78] sm:$0x3f]  }
 0x55b   :  { %6616 = vrot.lane.b32.xlu1 %v19311_v15, %s18810_s6  ;;  %17206 = vmatprep.subr.msk.bf16.mxu0 %vm1385_vm5, %v4640_v5  ;;  %v4665_v58 = vsel %vm1385_vm5, %v4641_v44, 0 }
 0x55c   :  { %4757 = vmatpush1.bf16.msra.mxu0 %v4659_v7  ;;  %v4867_v32 = vpop.permute.xlu0 %4866  ;;  %4788 = vmatprep.mubr.bf16.mxu0 %v22819_v3 }
 0x55d   :  { %v4869_v13 = vpop.permute.xlu1 %4868 }
 0x55e   :  { %6622 = vrot.lane.b32.xlu0 %v19321_v14, %s18810_s6  ;;  %v4885_v25 = vsel %vm22804_vm6, %v4867_v32, %v4869_v13 }
 0x55f   :  { %6620 = vrot.lane.b32.xlu1 %v19319_v8, %s18810_s6  ;;  %17205 = vmatmul.mubr.msk.bf16.vlgmr.msra.gmra.mrb[12].mxu1 %vm1447_vm9, %v18651_v53  ;;  %v4897_v27 = vsel %vm1385_vm5, %v4885_v25, 0 }
 0x560   :  { %17207 = vmatmul.mubr.msk.bf16.vlgmr.msra.gmra.mrb[16].mxu0 %vm1447_vm9, %v18651_v53  ;;  %4800 = vmatpush1.bf16.msra.mxu1 %v4665_v58  ;;  %v4871_v61 = vpop.permute.xlu0 %4870 }
 0x561   :  { %v4873_v0 = vpop.permute.xlu1 %4872  ;;  %v4886_v57 = vsel %vm22804_vm6, %v4869_v13, %v4871_v61  ;;  %4831 = vmatprep.mubr.bf16.mxu1 %v22819_v3  ;;  %4952 = vmatprep.mubr.bf16.mxu0 %v22819_v3 }
 0x562   :  { %6626 = vrot.lane.b32.xlu0 %v19329_v55, %s18810_s6  ;;  %17213 = vmatprep.subr.msk.bf16.mxu0 %vm1385_vm5, %v4886_v57  ;;  %v4887_v29 = vsel %vm22804_vm6, %v4871_v61, %v4873_v0 }
 0x563   :  { %6624 = vrot.lane.b32.xlu1 %v19327_v51, %s18810_s6  ;;  %4921 = vmatpush1.bf16.msra.mxu0 %v4897_v27  ;;  %v4903_v56 = vsel %vm1385_vm5, %v4887_v29, 0 }
 0x564   :  { %v4875_v30 = vpop.permute.xlu0 %4874 }
 0x565   :  { %v4877_v48 = vpop.permute.xlu1 %4876  ;;  %v4888_v41 = vsel %vm22804_vm6, %v4873_v0, %v4875_v30 }
 0x566   :  { %6630 = vrot.lane.b32.xlu0 %v19345_v16, %s18810_s6  ;;  %17215 = vmatprep.subr.msk.bf16.mxu1 %vm1385_vm5, %v4888_v41  ;;  %v4889_v45 = vsel %vm22804_vm6, %v4875_v30, %v4877_v48 }
 0x567   :  { %6628 = vrot.lane.b32.xlu1 %v19335_v6, %s18810_s6  ;;  %17209 = vmatmul.mubr.msk.bf16.vlgmr.msra.gmra.mrb[16].mxu1 %vm1447_vm9, %v18651_v53  ;;  %v4909_v39 = vsel %vm1385_vm5, %v4889_v45, 0 }
 0x568   :  { %17214 = vmatmul.mubr.msk.bf16.vlgmr.msra.gmra.mrb[12].mxu0 %vm1447_vm9, %v18652_v47  ;;  %4964 = vmatpush1.bf16.msra.mxu1 %v4903_v56  ;;  %v4879_v12 = vpop.permute.xlu0 %4878 }
 0x569   :  { %v4881_v52 = vpop.permute.xlu1 %4880  ;;  %v4890_v34 = vsel %vm22804_vm6, %v4877_v48, %v4879_v12  ;;  %4995 = vmatprep.mubr.bf16.mxu1 %v22819_v3  ;;  %5038 = vmatprep.mubr.bf16.mxu0 %v22819_v3 }
 0x56a   :  { %6866 = vrot.lane.b32.xlu0 %v19311_v15, %s18809_s30  ;;  %17217 = vmatprep.subr.msk.bf16.mxu0 %vm1385_vm5, %v4890_v34  ;;  %v4892_v33 = vsel %vm22804_vm6, %v4881_v52, %v19441_v46  ;;  %v4891_v36 = vsel %vm22804_vm6, %v4879_v12, %v4881_v52  ;;  %vm22806_vm6 = vcmask 523264   ;;  %v18654_v52 = vld [vmem:[%s22799_s2 + $0x80] sm:$0x3f]  }
 0x56b   :  { %6868 = vrot.lane.b32.xlu1 %v19313_v9, %s18809_s30  ;;  %17219 = vmatprep.subr.msk.bf16.mxu1 %vm1385_vm5, %v4892_v33  ;;  %v4915_v46 = vsel %vm1385_vm5, %v4891_v36, 0 }
 0x56c   :  { %5007 = vmatpush1.bf16.msra.mxu0 %v4909_v39  ;;  %v5119_v59 = vpop.permute.xlu0 %5118 }
 0x56d   :  { %v5117_v53 = vpop.permute.xlu1 %5116 }
 0x56e   :  { %6870 = vrot.lane.b32.xlu0 %v19319_v8, %s18809_s30  ;;  %v5135_v10 = vsel %vm22805_vm7, %v5117_v53, %v5119_v59 }
 0x56f   :  { %6872 = vrot.lane.b32.xlu1 %v19321_v14, %s18809_s30  ;;  %17216 = vmatmul.mubr.msk.bf16.vlgmr.msra.gmra.mrb[12].mxu1 %vm1447_vm9, %v18652_v47  ;;  %v5147_v42 = vsel %vm1385_vm5, %v5135_v10, 0 }
 0x570   :  { %17218 = vmatmul.mubr.msk.bf16.vlgmr.msra.gmra.mrb[16].mxu0 %vm1447_vm9, %v18652_v47  ;;  %5050 = vmatpush1.bf16.msra.mxu1 %v4915_v46  ;;  %v5123_v38 = vpop.permute.xlu0 %5122 }
 0x571   :  { %v5121_v11 = vpop.permute.xlu1 %5120  ;;  %5081 = vmatprep.mubr.bf16.mxu1 %v22819_v3  ;;  %5202 = vmatprep.mubr.bf16.mxu0 %v22819_v3 }
 0x572   :  { %6874 = vrot.lane.b32.xlu0 %v19327_v51, %s18809_s30  ;;  %v5136_v1 = vsel %vm22805_vm7, %v5119_v59, %v5121_v11  ;;  %v5137_v2 = vsel %vm22805_vm7, %v5121_v11, %v5123_v38 }
 0x573   :  { %6876 = vrot.lane.b32.xlu1 %v19329_v55, %s18809_s30  ;;  %17224 = vmatprep.subr.msk.bf16.mxu0 %vm1385_vm5, %v5136_v1  ;;  %v5153_v32 = vsel %vm1385_vm5, %v5137_v2, 0 }
 0x574   :  { %5171 = vmatpush1.bf16.msra.mxu0 %v5147_v42  ;;  %v5127_v28 = vpop.permute.xlu0 %5126 }
 0x575   :  { %v5125_v5 = vpop.permute.xlu1 %5124 }
 0x576   :  { %6878 = vrot.lane.b32.xlu0 %v19335_v6, %s18809_s30  ;;  %v5138_v7 = vsel %vm22805_vm7, %v5123_v38, %v5125_v5  ;;  %v5139_v44 = vsel %vm22805_vm7, %v5125_v5, %v5127_v28 }
 0x577   :  { %6880 = vrot.lane.b32.xlu1 %v19345_v16, %s18809_s30  ;;  %17220 = vmatmul.mubr.msk.bf16.vlgmr.msra.gmra.mrb[16].mxu1 %vm1447_vm9, %v18652_v47  ;;  %v5159_v0 = vsel %vm1385_vm5, %v5139_v44, 0 }
 0x578   :  { %17225 = vmatmul.mubr.msk.bf16.vlgmr.msra.gmra.mrb[12].mxu0 %vm1447_vm9, %v18653_v35  ;;  %17226 = vmatprep.subr.msk.bf16.mxu1 %vm1385_vm5, %v5138_v7  ;;  %v5131_v13 = vpop.permute.xlu0 %5130 }
 0x579   :  { %5214 = vmatpush1.bf16.msra.mxu1 %v5153_v32  ;;  %v5129_v25 = vpop.permute.xlu1 %5128  ;;  %v5142_v58 = vsel %vm22805_vm7, %v5131_v13, %v19451_v24  ;;  %5245 = vmatprep.mubr.bf16.mxu1 %v22819_v3  ;;  %v18655_v32 = vld [vmem:[%s22799_s2 + $0x88] sm:$0x3f]  }
 0x57a   :  { %7118 = vrot.lane.b32.xlu0 %v19313_v9, %s18812_s8  ;;  %v5140_v61 = vsel %vm22805_vm7, %v5127_v28, %v5129_v25  ;;  %17230 = vmatprep.subr.msk.bf16.mxu1 %vm1385_vm5, %v5142_v58  ;;  %v5141_v57 = vsel %vm22805_vm7, %v5129_v25, %v5131_v13  ;;  %vm22807_vm7 = vcmask 515072  }
 0x57b   :  { %7116 = vrot.lane.b32.xlu1 %v19311_v15, %s18812_s8  ;;  %17228 = vmatprep.subr.msk.bf16.mxu0 %vm1385_vm5, %v5140_v61  ;;  %v5165_v30 = vsel %vm1385_vm5, %v5141_v57, 0 }
 0x57c   :  { %5257 = vmatpush1.bf16.msra.mxu0 %v5159_v0  ;;  %v5367_v24 = vpop.permute.xlu0 %5366  ;;  %5288 = vmatprep.mubr.bf16.mxu0 %v22819_v3 }
 0x57d   :  { %v5369_v27 = vpop.permute.xlu1 %5368 }
 0x57e   :  { %7122 = vrot.lane.b32.xlu0 %v19321_v14, %s18812_s8  ;;  %v5385_v29 = vsel %vm22806_vm6, %v5367_v24, %v5369_v27 }
 0x57f   :  { %7120 = vrot.lane.b32.xlu1 %v19319_v8, %s18812_s8  ;;  %17227 = vmatmul.mubr.msk.bf16.vlgmr.msra.gmra.mrb[12].mxu1 %vm1447_vm9, %v18653_v35  ;;  %v5397_v56 = vsel %vm1385_vm5, %v5385_v29, 0 }
 0x580   :  { %17229 = vmatmul.mubr.msk.bf16.vlgmr.msra.gmra.mrb[16].mxu0 %vm1447_vm9, %v18653_v35  ;;  %5300 = vmatpush1.bf16.msra.mxu1 %v5165_v30  ;;  %v5371_v47 = vpop.permute.xlu0 %5370 }
 0x581   :  { %v5373_v48 = vpop.permute.xlu1 %5372  ;;  %v5386_v41 = vsel %vm22806_vm6, %v5369_v27, %v5371_v47  ;;  %5331 = vmatprep.mubr.bf16.mxu1 %v22819_v3  ;;  %5452 = vmatprep.mubr.bf16.mxu0 %v22819_v3 }
 0x582   :  { %7126 = vrot.lane.b32.xlu0 %v19329_v55, %s18812_s8  ;;  %17235 = vmatprep.subr.msk.bf16.mxu0 %vm1385_vm5, %v5386_v41  ;;  %v5387_v45 = vsel %vm22806_vm6, %v5371_v47, %v5373_v48 }
 0x583   :  { %7124 = vrot.lane.b32.xlu1 %v19327_v51, %s18812_s8  ;;  %5421 = vmatpush1.bf16.msra.mxu0 %v5397_v56  ;;  %v5403_v39 = vsel %vm1385_vm5, %v5387_v45, 0 }
 0x584   :  { %v5375_v12 = vpop.permute.xlu0 %5374 }
 0x585   :  { %v5377_v34 = vpop.permute.xlu1 %5376  ;;  %v5388_v33 = vsel %vm22806_vm6, %v5373_v48, %v5375_v12 }
 0x586   :  { %7130 = vrot.lane.b32.xlu0 %v19345_v16, %s18812_s8  ;;  %17237 = vmatprep.subr.msk.bf16.mxu1 %vm1385_vm5, %v5388_v33  ;;  %v5389_v36 = vsel %vm22806_vm6, %v5375_v12, %v5377_v34 }
 0x587   :  { %7128 = vrot.lane.b32.xlu1 %v19335_v6, %s18812_s8  ;;  %17231 = vmatmul.mubr.msk.bf16.vlgmr.msra.gmra.mrb[16].mxu1 %vm1447_vm9, %v18653_v35  ;;  %v5409_v38 = vsel %vm1385_vm5, %v5389_v36, 0  ;;  %v18656_v36 = vld [vmem:[%s22799_s2 + $0x90] sm:$0x3f]  }
 0x588   :  { %17236 = vmatmul.mubr.msk.bf16.vlgmr.msra.gmra.mrb[12].mxu0 %vm1447_vm9, %v18654_v52  ;;  %5464 = vmatpush1.bf16.msra.mxu1 %v5403_v39  ;;  %v5379_v59 = vpop.permute.xlu0 %5378 }
 0x589   :  { %v5381_v53 = vpop.permute.xlu1 %5380  ;;  %v5390_v46 = vsel %vm22806_vm6, %v5377_v34, %v5379_v59  ;;  %5495 = vmatprep.mubr.bf16.mxu1 %v22819_v3  ;;  %5538 = vmatprep.mubr.bf16.mxu0 %v22819_v3 }
 0x58a   :  { %7366 = vrot.lane.b32.xlu0 %v19311_v15, %s18811_s7  ;;  %17239 = vmatprep.subr.msk.bf16.mxu0 %vm1385_vm5, %v5390_v46  ;;  %v5392_v10 = vsel %vm22806_vm6, %v5381_v53, %v19453_v62  ;;  %v5391_v11 = vsel %vm22806_vm6, %v5379_v59, %v5381_v53  ;;  %vm22810_vm6 = vcmask 244736  }
 0x58b   :  { %7368 = vrot.lane.b32.xlu1 %v19313_v9, %s18811_s7  ;;  %17241 = vmatprep.subr.msk.bf16.mxu1 %vm1385_vm5, %v5392_v10  ;;  %v5415_v62 = vsel %vm1385_vm5, %v5391_v11, 0 }
 0x58c   :  { %5507 = vmatpush1.bf16.msra.mxu0 %v5409_v38  ;;  %v5619_v1 = vpop.permute.xlu0 %5618 }
 0x58d   :  { %v5617_v42 = vpop.permute.xlu1 %5616 }
 0x58e   :  { %7370 = vrot.lane.b32.xlu0 %v19319_v8, %s18811_s7  ;;  %v5635_v28 = vsel %vm22807_vm7, %v5617_v42, %v5619_v1 }
 0x58f   :  { %7372 = vrot.lane.b32.xlu1 %v19321_v14, %s18811_s7  ;;  %17238 = vmatmul.mubr.msk.bf16.vlgmr.msra.gmra.mrb[12].mxu1 %vm1447_vm9, %v18654_v52  ;;  %v5647_v7 = vsel %vm1385_vm5, %v5635_v28, 0 }
 0x590   :  { %17240 = vmatmul.mubr.msk.bf16.vlgmr.msra.gmra.mrb[16].mxu0 %vm1447_vm9, %v18654_v52  ;;  %5550 = vmatpush1.bf16.msra.mxu1 %v5415_v62  ;;  %v5623_v35 = vpop.permute.xlu0 %5622  ;;  %v18786_v62 = vld [vmem:[#allocation2 + $0x20] ss:$0 sps:$4 sm:$0xff]  }
 0x591   :  { %v5621_v2 = vpop.permute.xlu1 %5620  ;;  %5581 = vmatprep.mubr.bf16.mxu1 %v22819_v3  ;;  %5702 = vmatprep.mubr.bf16.mxu0 %v22819_v3 }
 0x592   :  { %7374 = vrot.lane.b32.xlu0 %v19327_v51, %s18811_s7  ;;  %v5636_v5 = vsel %vm22807_vm7, %v5619_v1, %v5621_v2  ;;  %v5637_v13 = vsel %vm22807_vm7, %v5621_v2, %v5623_v35 }
 0x593   :  { %7376 = vrot.lane.b32.xlu1 %v19329_v55, %s18811_s7  ;;  %17246 = vmatprep.subr.msk.bf16.mxu0 %vm1385_vm5, %v5636_v5  ;;  %v5653_v0 = vsel %vm1385_vm5, %v5637_v13, 0  ;;  %v18657_v13 = vld [vmem:[%s22799_s2 + $0x98] sm:$0x3f]  }
 0x594   :  { %5671 = vmatpush1.bf16.msra.mxu0 %v5647_v7  ;;  %v5627_v44 = vpop.permute.xlu0 %5626 }
 0x595   :  { %v5625_v25 = vpop.permute.xlu1 %5624 }
 0x596   :  { %7378 = vrot.lane.b32.xlu0 %v19335_v6, %s18811_s7  ;;  %v5638_v58 = vsel %vm22807_vm7, %v5623_v35, %v5625_v25  ;;  %v5639_v61 = vsel %vm22807_vm7, %v5625_v25, %v5627_v44 }
 0x597   :  { %7380 = vrot.lane.b32.xlu1 %v19345_v16, %s18811_s7  ;;  %17242 = vmatmul.mubr.msk.bf16.vlgmr.msra.gmra.mrb[16].mxu1 %vm1447_vm9, %v18654_v52  ;;  %v5659_v30 = vsel %vm1385_vm5, %v5639_v61, 0 }
 0x598   :  { %17247 = vmatmul.mubr.msk.bf16.vlgmr.msra.gmra.mrb[12].mxu0 %vm1447_vm9, %v18655_v32  ;;  %17248 = vmatprep.subr.msk.bf16.mxu1 %vm1385_vm5, %v5638_v58  ;;  %v5631_v57 = vpop.permute.xlu0 %5630 }
 0x599   :  { %5714 = vmatpush1.bf16.msra.mxu1 %v5653_v0  ;;  %v5629_v24 = vpop.permute.xlu1 %5628  ;;  %v5642_v27 = vsel %vm22807_vm7, %v5631_v57, %v19495_v4  ;;  %5745 = vmatprep.mubr.bf16.mxu1 %v22819_v3 }
 0x59a   :  { %7618 = vrot.lane.b32.xlu0 %v19313_v9, %s22808_s0  ;;  %v5640_v29 = vsel %vm22807_vm7, %v5627_v44, %v5629_v24  ;;  %17252 = vmatprep.subr.msk.bf16.mxu1 %vm1385_vm5, %v5642_v27  ;;  %v5641_v47 = vsel %vm22807_vm7, %v5629_v24, %v5631_v57  ;;  %vm22811_vm7 = vcmask 236544  }
 0x59b   :  { %7616 = vrot.lane.b32.xlu1 %v19311_v15, %s22808_s0  ;;  %17250 = vmatprep.subr.msk.bf16.mxu0 %vm1385_vm5, %v5640_v29  ;;  %v5665_v56 = vsel %vm1385_vm5, %v5641_v47, 0 }
 0x59c   :  { %5757 = vmatpush1.bf16.msra.mxu0 %v5659_v30  ;;  %v5867_v4 = vpop.permute.xlu0 %5866  ;;  %5788 = vmatprep.mubr.bf16.mxu0 %v22819_v3 }
 0x59d   :  { %v5869_v48 = vpop.permute.xlu1 %5868 }
 0x59e   :  { %7622 = vrot.lane.b32.xlu0 %v19321_v14, %s22808_s0  ;;  %v5885_v41 = vsel %vm22810_vm6, %v5867_v4, %v5869_v48 }
 0x59f   :  { %7620 = vrot.lane.b32.xlu1 %v19319_v8, %s22808_s0  ;;  %17249 = vmatmul.mubr.msk.bf16.vlgmr.msra.gmra.mrb[12].mxu1 %vm1447_vm9, %v18655_v32  ;;  %v5897_v34 = vsel %vm1385_vm5, %v5885_v41, 0 }
 0x5a0   :  { %17251 = vmatmul.mubr.msk.bf16.vlgmr.msra.gmra.mrb[16].mxu0 %vm1447_vm9, %v18655_v32  ;;  %5800 = vmatpush1.bf16.msra.mxu1 %v5665_v56  ;;  %v5871_v45 = vpop.permute.xlu0 %5870 }
 0x5a1   :  { %v5873_v12 = vpop.permute.xlu1 %5872  ;;  %v5886_v52 = vsel %vm22810_vm6, %v5869_v48, %v5871_v45  ;;  %5831 = vmatprep.mubr.bf16.mxu1 %v22819_v3  ;;  %5952 = vmatprep.mubr.bf16.mxu0 %v22819_v3 }
 0x5a2   :  { %7626 = vrot.lane.b32.xlu0 %v19329_v55, %s22808_s0  ;;  %17257 = vmatprep.subr.msk.bf16.mxu0 %vm1385_vm5, %v5886_v52  ;;  %v5887_v33 = vsel %vm22810_vm6, %v5871_v45, %v5873_v12 }
 0x5a3   :  { %7624 = vrot.lane.b32.xlu1 %v19327_v51, %s22808_s0  ;;  %5921 = vmatpush1.bf16.msra.mxu0 %v5897_v34  ;;  %v5903_v46 = vsel %vm1385_vm5, %v5887_v33, 0 }
 0x5a4   :  { %v5875_v39 = vpop.permute.xlu0 %5874 }
 0x5a5   :  { %v5877_v59 = vpop.permute.xlu1 %5876  ;;  %v5888_v53 = vsel %vm22810_vm6, %v5873_v12, %v5875_v39  ;;  %v18658_v12 = vld [vmem:[%s22799_s2 + $0xa0] sm:$0x3f]  }
 0x5a6   :  { %7630 = vrot.lane.b32.xlu0 %v19345_v16, %s22808_s0  ;;  %17259 = vmatprep.subr.msk.bf16.mxu1 %vm1385_vm5, %v5888_v53  ;;  %v5889_v10 = vsel %vm22810_vm6, %v5875_v39, %v5877_v59 }
 0x5a7   :  { %7628 = vrot.lane.b32.xlu1 %v19335_v6, %s22808_s0  ;;  %17253 = vmatmul.mubr.msk.bf16.vlgmr.msra.gmra.mrb[16].mxu1 %vm1447_vm9, %v18655_v32  ;;  %v5909_v28 = vsel %vm1385_vm5, %v5889_v10, 0 }
 0x5a8   :  { %17258 = vmatmul.mubr.msk.bf16.vlgmr.msra.gmra.mrb[12].mxu0 %vm1447_vm9, %v18656_v36  ;;  %5964 = vmatpush1.bf16.msra.mxu1 %v5903_v46  ;;  %v5879_v38 = vpop.permute.xlu0 %5878 }
 0x5a9   :  { %v5881_v11 = vpop.permute.xlu1 %5880  ;;  %v5890_v1 = vsel %vm22810_vm6, %v5877_v59, %v5879_v38  ;;  %5995 = vmatprep.mubr.bf16.mxu1 %v22819_v3  ;;  %6038 = vmatprep.mubr.bf16.mxu0 %v22819_v3 }
 0x5aa   :  { %7866 = vrot.lane.b32.xlu0 %v19311_v15, %s18821_s14  ;;  %17261 = vmatprep.subr.msk.bf16.mxu0 %vm1385_vm5, %v5890_v1  ;;  %v5892_v42 = vsel %vm22810_vm6, %v5881_v11, %v19484_v54  ;;  %v5891_v35 = vsel %vm22810_vm6, %v5879_v38, %v5881_v11  ;;  %vm22812_vm6 = vcmask 228352  }
 0x5ab   :  { %7632 = vrot.lane.b32.xlu1 %v18786_v62, %s22808_s0  ;;  %17263 = vmatprep.subr.msk.bf16.mxu1 %vm1385_vm5, %v5892_v42  ;;  %v5915_v15 = vsel %vm1385_vm5, %v5891_v35, 0  ;;  %s18822_s0 = smov 49  }
 0x5ac   :  { %6007 = vmatpush1.bf16.msra.mxu0 %v5909_v28  ;;  %v6119_v2 = vpop.permute.xlu0 %6118 }
 0x5ad   :  { %v6117_v5 = vpop.permute.xlu1 %6116 }
 0x5ae   :  { %7870 = vrot.lane.b32.xlu0 %v19319_v8, %s18821_s14  ;;  %v6135_v54 = vsel %vm22811_vm7, %v6117_v5, %v6119_v2 }
 0x5af   :  { %7868 = vrot.lane.b32.xlu1 %v19313_v9, %s18821_s14  ;;  %17260 = vmatmul.mubr.msk.bf16.vlgmr.msra.gmra.mrb[12].mxu1 %vm1447_vm9, %v18656_v36  ;;  %v6147_v8 = vsel %vm1385_vm5, %v6135_v54, 0  ;;  %v18659_v54 = vld [vmem:[%s22799_s2 + $0xa8] sm:$0x3f]  }
 0x5b0   :  { %17262 = vmatmul.mubr.msk.bf16.vlgmr.msra.gmra.mrb[16].mxu0 %vm1447_vm9, %v18656_v36  ;;  %6050 = vmatpush1.bf16.msra.mxu1 %v5915_v15  ;;  %v6123_v7 = vpop.permute.xlu0 %6122 }
 0x5b1   :  { %v6121_v44 = vpop.permute.xlu1 %6120  ;;  %6081 = vmatprep.mubr.bf16.mxu1 %v22819_v3  ;;  %6202 = vmatprep.mubr.bf16.mxu0 %v22819_v3 }
 0x5b2   :  { %7874 = vrot.lane.b32.xlu0 %v19327_v51, %s18821_s14  ;;  %v6136_v9 = vsel %vm22811_vm7, %v6119_v2, %v6121_v44  ;;  %v6137_v25 = vsel %vm22811_vm7, %v6121_v44, %v6123_v7 }
 0x5b3   :  { %7872 = vrot.lane.b32.xlu1 %v19321_v14, %s18821_s14  ;;  %17268 = vmatprep.subr.msk.bf16.mxu0 %vm1385_vm5, %v6136_v9  ;;  %v6153_v61 = vsel %vm1385_vm5, %v6137_v25, 0 }
 0x5b4   :  { %6171 = vmatpush1.bf16.msra.mxu0 %v6147_v8  ;;  %v6127_v32 = vpop.permute.xlu0 %6126 }
 0x5b5   :  { %v6125_v58 = vpop.permute.xlu1 %6124 }
 0x5b6   :  { %7878 = vrot.lane.b32.xlu0 %v19335_v6, %s18821_s14  ;;  %v6138_v51 = vsel %vm22811_vm7, %v6123_v7, %v6125_v58  ;;  %v6139_v14 = vsel %vm22811_vm7, %v6125_v58, %v6127_v32 }
 0x5b7   :  { %7876 = vrot.lane.b32.xlu1 %v19329_v55, %s18821_s14  ;;  %17264 = vmatmul.mubr.msk.bf16.vlgmr.msra.gmra.mrb[16].mxu1 %vm1447_vm9, %v18656_v36  ;;  %v6159_v24 = vsel %vm1385_vm5, %v6139_v14, 0 }
 0x5b8   :  { %17269 = vmatmul.mubr.msk.bf16.vlgmr.msra.gmra.mrb[12].mxu0 %vm1447_vm9, %v18657_v13  ;;  %17270 = vmatprep.subr.msk.bf16.mxu1 %vm1385_vm5, %v6138_v51  ;;  %v6131_v0 = vpop.permute.xlu0 %6130 }
 0x5b9   :  { %6214 = vmatpush1.bf16.msra.mxu1 %v6153_v61  ;;  %v6129_v57 = vpop.permute.xlu1 %6128  ;;  %v6142_v6 = vsel %vm22811_vm7, %v6131_v0, %v19509_v43  ;;  %6245 = vmatprep.mubr.bf16.mxu1 %v22819_v3 }
 0x5ba   :  { %7882 = vrot.lane.b32.xlu0 %v18786_v62, %s18821_s14  ;;  %v6140_v55 = vsel %vm22811_vm7, %v6127_v32, %v6129_v57  ;;  %17274 = vmatprep.subr.msk.bf16.mxu1 %vm1385_vm5, %v6142_v6  ;;  %v6141_v27 = vsel %vm22811_vm7, %v6129_v57, %v6131_v0  ;;  %vm22813_vm7 = vcmask 187392  }
 0x5bb   :  { %7880 = vrot.lane.b32.xlu1 %v19345_v16, %s18821_s14  ;;  %17272 = vmatprep.subr.msk.bf16.mxu0 %vm1385_vm5, %v6140_v55  ;;  %v6165_v47 = vsel %vm1385_vm5, %v6141_v27, 0 }
 0x5bc   :  { %6257 = vmatpush1.bf16.msra.mxu0 %v6159_v24  ;;  %v6367_v43 = vpop.permute.xlu0 %6366  ;;  %6288 = vmatprep.mubr.bf16.mxu0 %v22819_v3 }
 0x5bd   :  { %v6369_v29 = vpop.permute.xlu1 %6368 }
 0x5be   :  { %v6385_v30 = vsel %vm22812_vm6, %v6367_v43, %v6369_v29 }
 0x5bf   :  { %17271 = vmatmul.mubr.msk.bf16.vlgmr.msra.gmra.mrb[12].mxu1 %vm1447_vm9, %v18657_v13  ;;  %v6397_v41 = vsel %vm1385_vm5, %v6385_v30, 0  ;;  %v18660_v30 = vld [vmem:[%s22799_s2 + $0xb0] sm:$0x3f]  }
 0x5c0   :  { %17273 = vmatmul.mubr.msk.bf16.vlgmr.msra.gmra.mrb[16].mxu0 %vm1447_vm9, %v18657_v13  ;;  %6300 = vmatpush1.bf16.msra.mxu1 %v6165_v47  ;;  %v6371_v16 = vpop.permute.xlu0 %6370 }
 0x5c1   :  { %v6373_v4 = vpop.permute.xlu1 %6372  ;;  %v6386_v48 = vsel %vm22812_vm6, %v6369_v29, %v6371_v16  ;;  %6331 = vmatprep.mubr.bf16.mxu1 %v22819_v3  ;;  %6452 = vmatprep.mubr.bf16.mxu0 %v22819_v3 }
 0x5c2   :  { %17279 = vmatprep.subr.msk.bf16.mxu0 %vm1385_vm5, %v6386_v48  ;;  %v6387_v56 = vsel %vm22812_vm6, %v6371_v16, %v6373_v4 }
 0x5c3   :  { %6421 = vmatpush1.bf16.msra.mxu0 %v6397_v41  ;;  %v6403_v39 = vsel %vm1385_vm5, %v6387_v56, 0 }
 0x5c4   :  { %v6375_v45 = vpop.permute.xlu0 %6374 }
 0x5c5   :  { %v6377_v52 = vpop.permute.xlu1 %6376  ;;  %v6388_v34 = vsel %vm22812_vm6, %v6373_v4, %v6375_v45 }
 0x5c6   :  { %17281 = vmatprep.subr.msk.bf16.mxu1 %vm1385_vm5, %v6388_v34  ;;  %v6389_v33 = vsel %vm22812_vm6, %v6375_v45, %v6377_v52 }
 0x5c7   :  { %17275 = vmatmul.mubr.msk.bf16.vlgmr.msra.gmra.mrb[16].mxu1 %vm1447_vm9, %v18657_v13  ;;  %v6409_v10 = vsel %vm1385_vm5, %v6389_v33, 0 }
 0x5c8   :  { %17280 = vmatmul.mubr.msk.bf16.vlgmr.msra.gmra.mrb[12].mxu0 %vm1447_vm9, %v18658_v12  ;;  %6464 = vmatpush1.bf16.msra.mxu1 %v6403_v39  ;;  %v6379_v36 = vpop.permute.xlu0 %6378 }
 0x5c9   :  { %v6381_v59 = vpop.permute.xlu1 %6380  ;;  %v6390_v53 = vsel %vm22812_vm6, %v6377_v52, %v6379_v36  ;;  %6495 = vmatprep.mubr.bf16.mxu1 %v22819_v3  ;;  %6538 = vmatprep.mubr.bf16.mxu0 %v22819_v3 }
 0x5ca   :  { %17283 = vmatprep.subr.msk.bf16.mxu0 %vm1385_vm5, %v6390_v53  ;;  %v6392_v46 = vsel %vm22812_vm6, %v6381_v59, %v19497_v63  ;;  %v6391_v38 = vsel %vm22812_vm6, %v6379_v36, %v6381_v59  ;;  %vm22814_vm6 = vcmask 179200  }
 0x5cb   :  { %17285 = vmatprep.subr.msk.bf16.mxu1 %vm1385_vm5, %v6392_v46  ;;  %6507 = vmatpush1.bf16.msra.mxu0 %v6409_v10  ;;  %v6415_v42 = vsel %vm1385_vm5, %v6391_v38, 0 }
 0x5cc   :  { %v6619_v11 = vpop.permute.xlu0 %6618 }
 0x5cd   :  { %v6617_v1 = vpop.permute.xlu1 %6616 }
 0x5ce   :  { %v6635_v62 = vsel %vm22813_vm7, %v6617_v1, %v6619_v11  ;;  %v18661_v1 = vld [vmem:[%s22799_s2 + $0xb8] sm:$0x3f]  }
 0x5cf   :  { %17282 = vmatmul.mubr.msk.bf16.vlgmr.msra.gmra.mrb[12].mxu1 %vm1447_vm9, %v18658_v12  ;;  %v6647_v2 = vsel %vm1385_vm5, %v6635_v62, 0 }
 0x5d0   :  { %17284 = vmatmul.mubr.msk.bf16.vlgmr.msra.gmra.mrb[16].mxu0 %vm1447_vm9, %v18658_v12  ;;  %6550 = vmatpush1.bf16.msra.mxu1 %v6415_v42  ;;  %v6623_v63 = vpop.permute.xlu0 %6622 }
 0x5d1   :  { %v6621_v28 = vpop.permute.xlu1 %6620  ;;  %6581 = vmatprep.mubr.bf16.mxu1 %v22819_v3  ;;  %6702 = vmatprep.mubr.bf16.mxu0 %v22819_v3 }
 0x5d2   :  { %v6636_v35 = vsel %vm22813_vm7, %v6619_v11, %v6621_v28  ;;  %v6637_v5 = vsel %vm22813_vm7, %v6621_v28, %v6623_v63 }
 0x5d3   :  { %17290 = vmatprep.subr.msk.bf16.mxu0 %vm1385_vm5, %v6636_v35  ;;  %v6653_v9 = vsel %vm1385_vm5, %v6637_v5, 0 }
 0x5d4   :  { %6671 = vmatpush1.bf16.msra.mxu0 %v6647_v2  ;;  %v6627_v15 = vpop.permute.xlu0 %6626 }
 0x5d5   :  { %v6625_v7 = vpop.permute.xlu1 %6624 }
 0x5d6   :  { %v6638_v44 = vsel %vm22813_vm7, %v6623_v63, %v6625_v7  ;;  %v6639_v8 = vsel %vm22813_vm7, %v6625_v7, %v6627_v15 }
 0x5d7   :  { %17286 = vmatmul.mubr.msk.bf16.vlgmr.msra.gmra.mrb[16].mxu1 %vm1447_vm9, %v18658_v12  ;;  %17292 = vmatprep.subr.msk.bf16.mxu1 %vm1385_vm5, %v6638_v44  ;;  %v6659_v51 = vsel %vm1385_vm5, %v6639_v8, 0 }
 0x5d8   :  { %17291 = vmatmul.mubr.msk.bf16.vlgmr.msra.gmra.mrb[12].mxu0 %vm1447_vm9, %v18659_v54  ;;  %6714 = vmatpush1.bf16.msra.mxu1 %v6653_v9  ;;  %v6631_v32 = vpop.permute.xlu0 %6630 }
 0x5d9   :  { %v6629_v13 = vpop.permute.xlu1 %6628  ;;  %v6642_v25 = vsel %vm22813_vm7, %v6631_v32, %v19524_v37  ;;  %6745 = vmatprep.mubr.bf16.mxu1 %v22819_v3  ;;  %6788 = vmatprep.mubr.bf16.mxu0 %v22819_v3 }
 0x5da   :  { %v6640_v58 = vsel %vm22813_vm7, %v6627_v15, %v6629_v13  ;;  %17296 = vmatprep.subr.msk.bf16.mxu1 %vm1385_vm5, %v6642_v25  ;;  %v6641_v14 = vsel %vm22813_vm7, %v6629_v13, %v6631_v32  ;;  %vm22815_vm7 = vcmask 171008  }
 0x5db   :  { %17294 = vmatprep.subr.msk.bf16.mxu0 %vm1385_vm5, %v6640_v58  ;;  %v6665_v57 = vsel %vm1385_vm5, %v6641_v14, 0 }
 0x5dc   :  { %6757 = vmatpush1.bf16.msra.mxu0 %v6659_v51  ;;  %v6867_v61 = vpop.permute.xlu0 %6866 }
 0x5dd   :  { %v6869_v0 = vpop.permute.xlu1 %6868 }
 0x5de   :  { %v6885_v37 = vsel %vm22814_vm6, %v6867_v61, %v6869_v0  ;;  %v18662_v61 = vld [vmem:[%s22799_s2 + $0xc0] sm:$0x3f]  }
 0x5df   :  { %17293 = vmatmul.mubr.msk.bf16.vlgmr.msra.gmra.mrb[12].mxu1 %vm1447_vm9, %v18659_v54  ;;  %v6897_v27 = vsel %vm1385_vm5, %v6885_v37, 0 }
 0x5e0   :  { %17295 = vmatmul.mubr.msk.bf16.vlgmr.msra.gmra.mrb[16].mxu0 %vm1447_vm9, %v18659_v54  ;;  %6800 = vmatpush1.bf16.msra.mxu1 %v6665_v57  ;;  %v6871_v6 = vpop.permute.xlu0 %6870 }
 0x5e1   :  { %v6873_v55 = vpop.permute.xlu1 %6872  ;;  %v6886_v24 = vsel %vm22814_vm6, %v6869_v0, %v6871_v6  ;;  %6831 = vmatprep.mubr.bf16.mxu1 %v22819_v3  ;;  %6952 = vmatprep.mubr.bf16.mxu0 %v22819_v3 }
 0x5e2   :  { %17301 = vmatprep.subr.msk.bf16.mxu0 %vm1385_vm5, %v6886_v24  ;;  %v6887_v43 = vsel %vm22814_vm6, %v6871_v6, %v6873_v55 }
 0x5e3   :  { %6921 = vmatpush1.bf16.msra.mxu0 %v6897_v27  ;;  %v6903_v48 = vsel %vm1385_vm5, %v6887_v43, 0 }
 0x5e4   :  { %v6875_v29 = vpop.permute.xlu0 %6874 }
 0x5e5   :  { %v6877_v47 = vpop.permute.xlu1 %6876  ;;  %v6888_v16 = vsel %vm22814_vm6, %v6873_v55, %v6875_v29 }
 0x5e6   :  { %17303 = vmatprep.subr.msk.bf16.mxu1 %vm1385_vm5, %v6888_v16  ;;  %v6889_v4 = vsel %vm22814_vm6, %v6875_v29, %v6877_v47 }
 0x5e7   :  { %17297 = vmatmul.mubr.msk.bf16.vlgmr.msra.gmra.mrb[16].mxu1 %vm1447_vm9, %v18659_v54  ;;  %v6909_v52 = vsel %vm1385_vm5, %v6889_v4, 0 }
 0x5e8   :  { %17302 = vmatmul.mubr.msk.bf16.vlgmr.msra.gmra.mrb[12].mxu0 %vm1447_vm9, %v18660_v30  ;;  %6964 = vmatpush1.bf16.msra.mxu1 %v6903_v48  ;;  %v6879_v41 = vpop.permute.xlu0 %6878 }
 0x5e9   :  { %v6881_v56 = vpop.permute.xlu1 %6880  ;;  %v6890_v45 = vsel %vm22814_vm6, %v6877_v47, %v6879_v41  ;;  %6995 = vmatprep.mubr.bf16.mxu1 %v22819_v3  ;;  %7038 = vmatprep.mubr.bf16.mxu0 %v22819_v3 }
 0x5ea   :  { %17305 = vmatprep.subr.msk.bf16.mxu0 %vm1385_vm5, %v6890_v45  ;;  %v6892_v12 = vsel %vm22814_vm6, %v6881_v56, %v19528_v49  ;;  %v6891_v34 = vsel %vm22814_vm6, %v6879_v41, %v6881_v56  ;;  %vm22816_vm6 = vcmask 130048  }
 0x5eb   :  { %17307 = vmatprep.subr.msk.bf16.mxu1 %vm1385_vm5, %v6892_v12  ;;  %7007 = vmatpush1.bf16.msra.mxu0 %v6909_v52  ;;  %v6915_v36 = vsel %vm1385_vm5, %v6891_v34, 0  ;;  %v18663_v34 = vld [vmem:[%s22799_s2 + $0xc8] sm:$0x3f]  }
 0x5ec   :  { %v7119_v33 = vpop.permute.xlu0 %7118 }
 0x5ed   :  { %v7117_v39 = vpop.permute.xlu1 %7116 }
 0x5ee   :  { %v7135_v59 = vsel %vm22815_vm7, %v7117_v39, %v7119_v33 }
 0x5ef   :  { %17304 = vmatmul.mubr.msk.bf16.vlgmr.msra.gmra.mrb[12].mxu1 %vm1447_vm9, %v18660_v30  ;;  %v7147_v10 = vsel %vm1385_vm5, %v7135_v59, 0 }
 0x5f0   :  { %17306 = vmatmul.mubr.msk.bf16.vlgmr.msra.gmra.mrb[16].mxu0 %vm1447_vm9, %v18660_v30  ;;  %7050 = vmatpush1.bf16.msra.mxu1 %v6915_v36  ;;  %v7123_v49 = vpop.permute.xlu0 %7122 }
 0x5f1   :  { %v7121_v53 = vpop.permute.xlu1 %7120  ;;  %7081 = vmatprep.mubr.bf16.mxu1 %v22819_v3  ;;  %7202 = vmatprep.mubr.bf16.mxu0 %v22819_v3 }
 0x5f2   :  { %v7136_v46 = vsel %vm22815_vm7, %v7119_v33, %v7121_v53  ;;  %v7137_v38 = vsel %vm22815_vm7, %v7121_v53, %v7123_v49 }
 0x5f3   :  { %17312 = vmatprep.subr.msk.bf16.mxu0 %vm1385_vm5, %v7136_v46  ;;  %v7153_v63 = vsel %vm1385_vm5, %v7137_v38, 0 }
 0x5f4   :  { %7171 = vmatpush1.bf16.msra.mxu0 %v7147_v10  ;;  %v7127_v11 = vpop.permute.xlu0 %7126 }
 0x5f5   :  { %v7125_v42 = vpop.permute.xlu1 %7124 }
 0x5f6   :  { %v7138_v62 = vsel %vm22815_vm7, %v7123_v49, %v7125_v42  ;;  %v7139_v28 = vsel %vm22815_vm7, %v7125_v42, %v7127_v11 }
 0x5f7   :  { %17308 = vmatmul.mubr.msk.bf16.vlgmr.msra.gmra.mrb[16].mxu1 %vm1447_vm9, %v18660_v30  ;;  %17314 = vmatprep.subr.msk.bf16.mxu1 %vm1385_vm5, %v7138_v62  ;;  %v7159_v54 = vsel %vm1385_vm5, %v7139_v28, 0 }
 0x5f8   :  { %17313 = vmatmul.mubr.msk.bf16.vlgmr.msra.gmra.mrb[12].mxu0 %vm1447_vm9, %v18661_v1  ;;  %7214 = vmatpush1.bf16.msra.mxu1 %v7153_v63  ;;  %v7131_v35 = vpop.permute.xlu0 %7130 }
 0x5f9   :  { %v7129_v2 = vpop.permute.xlu1 %7128  ;;  %v7142_v5 = vsel %vm22815_vm7, %v7131_v35, %v19540_v50  ;;  %7245 = vmatprep.mubr.bf16.mxu1 %v22819_v3  ;;  %7288 = vmatprep.mubr.bf16.mxu0 %v22819_v3 }
 0x5fa   :  { %v7140_v15 = vsel %vm22815_vm7, %v7127_v11, %v7129_v2  ;;  %17318 = vmatprep.subr.msk.bf16.mxu1 %vm1385_vm5, %v7142_v5  ;;  %v7141_v7 = vsel %vm22815_vm7, %v7129_v2, %v7131_v35  ;;  %vm22841_vm7 = vcmask 121856  }
 0x5fb   :  { %17316 = vmatprep.subr.msk.bf16.mxu0 %vm1385_vm5, %v7140_v15  ;;  %v7165_v8 = vsel %vm1385_vm5, %v7141_v7, 0 }
 0x5fc   :  { %7257 = vmatpush1.bf16.msra.mxu0 %v7159_v54  ;;  %v7367_v44 = vpop.permute.xlu0 %7366  ;;  %v18664_v54 = vld [vmem:[%s22799_s2 + $0xd0] sm:$0x3f]  }
 0x5fd   :  { %v7369_v9 = vpop.permute.xlu1 %7368 }
 0x5fe   :  { %v7385_v50 = vsel %vm22816_vm6, %v7367_v44, %v7369_v9 }
 0x5ff   :  { %17315 = vmatmul.mubr.msk.bf16.vlgmr.msra.gmra.mrb[12].mxu1 %vm1447_vm9, %v18661_v1  ;;  %v7397_v58 = vsel %vm1385_vm5, %v7385_v50, 0 }
 0x600   :  { %17317 = vmatmul.mubr.msk.bf16.vlgmr.msra.gmra.mrb[16].mxu0 %vm1447_vm9, %v18661_v1  ;;  %7300 = vmatpush1.bf16.msra.mxu1 %v7165_v8  ;;  %v7371_v32 = vpop.permute.xlu0 %7370 }
 0x601   :  { %v7373_v13 = vpop.permute.xlu1 %7372  ;;  %v7386_v25 = vsel %vm22816_vm6, %v7369_v9, %v7371_v32  ;;  %7331 = vmatprep.mubr.bf16.mxu1 %v22819_v3  ;;  %7452 = vmatprep.mubr.bf16.mxu0 %v22819_v3 }
 0x602   :  { %17323 = vmatprep.subr.msk.bf16.mxu0 %vm1385_vm5, %v7386_v25  ;;  %v7387_v51 = vsel %vm22816_vm6, %v7371_v32, %v7373_v13 }
 0x603   :  { %7421 = vmatpush1.bf16.msra.mxu0 %v7397_v58  ;;  %v7403_v6 = vsel %vm1385_vm5, %v7387_v51, 0 }
 0x604   :  { %v7375_v14 = vpop.permute.xlu0 %7374 }
 0x605   :  { %v7377_v0 = vpop.permute.xlu1 %7376  ;;  %v7388_v37 = vsel %vm22816_vm6, %v7373_v13, %v7375_v14 }
 0x606   :  { %17325 = vmatprep.subr.msk.bf16.mxu1 %vm1385_vm5, %v7388_v37  ;;  %v7389_v57 = vsel %vm22816_vm6, %v7375_v14, %v7377_v0 }
 0x607   :  { %17319 = vmatmul.mubr.msk.bf16.vlgmr.msra.gmra.mrb[16].mxu1 %vm1447_vm9, %v18661_v1  ;;  %v7409_v29 = vsel %vm1385_vm5, %v7389_v57, 0  ;;  %v20531_v57 = vld [vmem:[%s22798_s4 + $0x10] sm:$0xff] }
 0x608   :  { %17324 = vmatmul.mubr.msk.bf16.vlgmr.msra.gmra.mrb[12].mxu0 %vm1447_vm9, %v18662_v61  ;;  %7464 = vmatpush1.bf16.msra.mxu1 %v7403_v6  ;;  %v7379_v55 = vpop.permute.xlu0 %7378  ;;  %v8136_v6 = vrot.slane %v20531_v57, %v19019_v40 }
 0x609   :  { %v7381_v24 = vpop.permute.xlu1 %7380  ;;  %v7390_v27 = vsel %vm22816_vm6, %v7377_v0, %v7379_v55  ;;  %7495 = vmatprep.mubr.bf16.mxu1 %v22819_v3  ;;  %7538 = vmatprep.mubr.bf16.mxu0 %v22819_v3 }
 0x60a   :  { %17327 = vmatprep.subr.msk.bf16.mxu0 %vm1385_vm5, %v7390_v27  ;;  %v7392_v43 = vsel %vm22816_vm6, %v7381_v24, %v19542_v60  ;;  %v7391_v30 = vsel %vm22816_vm6, %v7379_v55, %v7381_v24  ;;  %vm22840_vm6 = vcmask 113664   ;;  %v8144_v55 = vcombine.high %v8136_v6, %v8136_v6 }
 0x60b   :  { %17329 = vmatprep.subr.msk.bf16.mxu1 %vm1385_vm5, %v7392_v43  ;;  %7507 = vmatpush1.bf16.msra.mxu0 %v7409_v29  ;;  %v7415_v4 = vsel %vm1385_vm5, %v7391_v30, 0  ;;  %v8129_v24 = vcombine.high %v20531_v57, %v20531_v57 }
 0x60c   :  { %v7619_v47 = vpop.permute.xlu0 %7618 }
 0x60d   :  { %v7617_v16 = vpop.permute.xlu1 %7616  ;;  %v20538_v27 = vrot.slane %v8129_v24, %v19019_v40  ;;  %v8601_v24 = vrot.slane %v20531_v57, %v19106_v23 }
 0x60e   :  { %v7635_v48 = vsel %vm22841_vm7, %v7617_v16, %v7619_v47 }
 0x60f   :  { %17326 = vmatmul.mubr.msk.bf16.vlgmr.msra.gmra.mrb[12].mxu1 %vm1447_vm9, %v18662_v61  ;;  %v7647_v45 = vsel %vm1385_vm5, %v7635_v48, 0  ;;  %v8145_v43 = vcombine.high %v20538_v27, %v20538_v27 }
 0x610   :  { %17328 = vmatmul.mubr.msk.bf16.vlgmr.msra.gmra.mrb[16].mxu0 %vm1447_vm9, %v18662_v61  ;;  %7550 = vmatpush1.bf16.msra.mxu1 %v7415_v4  ;;  %v7623_v60 = vpop.permute.xlu0 %7622  ;;  %v20545_v4 = vld [vmem:[%s22798_s4 + $0x18] sm:$0xff] }
 0x611   :  { %v7621_v41 = vpop.permute.xlu1 %7620  ;;  %7581 = vmatprep.mubr.bf16.mxu1 %v22819_v3  ;;  %7702 = vmatprep.mubr.bf16.mxu0 %v22819_v3 }
 0x612   :  { %v7636_v56 = vsel %vm22841_vm7, %v7619_v47, %v7621_v41  ;;  %v7637_v12 = vsel %vm22841_vm7, %v7621_v41, %v7623_v60 }
 0x613   :  { %17334 = vmatprep.subr.msk.bf16.mxu0 %vm1385_vm5, %v7636_v56  ;;  %v7653_v36 = vsel %vm1385_vm5, %v7637_v12, 0  ;;  %v20549_v56 = vrot.slane %v20545_v4, %v19019_v40 }
 0x614   :  { %7671 = vmatpush1.bf16.msra.mxu0 %v7647_v45  ;;  %v7627_v52 = vpop.permute.xlu0 %7626 }
 0x615   :  { %v7625_v33 = vpop.permute.xlu1 %7624 }
 0x616   :  { %v7638_v39 = vsel %vm22841_vm7, %v7623_v60, %v7625_v33  ;;  %v7639_v59 = vsel %vm22841_vm7, %v7625_v33, %v7627_v52 }
 0x617   :  { %17330 = vmatmul.mubr.msk.bf16.vlgmr.msra.gmra.mrb[16].mxu1 %vm1447_vm9, %v18662_v61  ;;  %17336 = vmatprep.subr.msk.bf16.mxu1 %vm1385_vm5, %v7638_v39  ;;  %v7659_v10 = vsel %vm1385_vm5, %v7639_v59, 0  ;;  %v8146_v59 = vcombine.high %v20545_v4, %v20545_v4 }
 0x618   :  { %17335 = vmatmul.mubr.msk.bf16.vlgmr.msra.gmra.mrb[12].mxu0 %vm1447_vm9, %v18663_v34  ;;  %7714 = vmatpush1.bf16.msra.mxu1 %v7653_v36  ;;  %v7631_v49 = vpop.permute.xlu0 %7630  ;;  %v20555_v36 = vcombine.high %v20549_v56, %v20549_v56 }
 0x619   :  { %v7629_v53 = vpop.permute.xlu1 %7628  ;;  %7745 = vmatprep.mubr.bf16.mxu1 %v22819_v3  ;;  %7788 = vmatprep.mubr.bf16.mxu0 %v22819_v3 }
 0x61a   :  { %v7640_v46 = vsel %vm22841_vm7, %v7627_v52, %v7629_v53  ;;  %v7641_v38 = vsel %vm22841_vm7, %v7629_v53, %v7631_v49 }
 0x61b   :  { %17338 = vmatprep.subr.msk.bf16.mxu0 %vm1385_vm5, %v7640_v46  ;;  %v7665_v62 = vsel %vm1385_vm5, %v7641_v38, 0  ;;  %v20569_v38 = vrot.slane %v8146_v59, %v19019_v40 }
 0x61c   :  { %7757 = vmatpush1.bf16.msra.mxu0 %v7659_v10  ;;  %v7867_v11 = vpop.permute.xlu0 %7866 }
 0x61d   :  { %v7633_v1 = vpop.permute.xlu1 %7632 }
 0x61e   :  { %v7642_v42 = vsel %vm22841_vm7, %v7631_v49, %v7633_v1  ;;  %vm9180_vm7 = vcmask 400384  }
 0x61f   :  { %17337 = vmatmul.mubr.msk.bf16.vlgmr.msra.gmra.mrb[12].mxu1 %vm1447_vm9, %v18663_v34  ;;  %17340 = vmatprep.subr.msk.bf16.mxu1 %vm1385_vm5, %v7642_v42 }
 0x620   :  { %17339 = vmatmul.mubr.msk.bf16.vlgmr.msra.gmra.mrb[16].mxu0 %vm1447_vm9, %v18663_v34  ;;  %7800 = vmatpush1.bf16.msra.mxu1 %v7665_v62  ;;  %v7871_v63 = vpop.permute.xlu0 %7870 }
 0x621   :  { %v7869_v28 = vpop.permute.xlu1 %7868  ;;  %7831 = vmatprep.mubr.bf16.mxu1 %v22819_v3  ;;  %7952 = vmatprep.mubr.bf16.mxu0 %v22819_v3 }
 0x622   :  { %v7885_v35 = vsel %vm22840_vm6, %v7867_v11, %v7869_v28  ;;  %v7886_v2 = vsel %vm22840_vm6, %v7869_v28, %v7871_v63 }
 0x623   :  { %17345 = vmatprep.subr.msk.bf16.mxu0 %vm1385_vm5, %v7886_v2  ;;  %v7897_v5 = vsel %vm1385_vm5, %v7885_v35, 0 }
 0x624   :  { %7921 = vmatpush1.bf16.msra.mxu0 %v7897_v5  ;;  %v7875_v15 = vpop.permute.xlu0 %7874 }
 0x625   :  { %v7873_v7 = vpop.permute.xlu1 %7872 }
 0x626   :  { %v7887_v44 = vsel %vm22840_vm6, %v7871_v63, %v7873_v7  ;;  %v7888_v9 = vsel %vm22840_vm6, %v7873_v7, %v7875_v15  ;;  %v20578_v63 = vcombine.high %v20569_v38, %v20569_v38 }
 0x627   :  { %17341 = vmatmul.mubr.msk.bf16.vlgmr.msra.gmra.mrb[16].mxu1 %vm1447_vm9, %v18663_v34  ;;  %17347 = vmatprep.subr.msk.bf16.mxu1 %vm1385_vm5, %v7888_v9  ;;  %v7903_v50 = vsel %vm1385_vm5, %v7887_v44, 0 }
 0x628   :  { %17346 = vmatmul.mubr.msk.bf16.vlgmr.msra.gmra.mrb[12].mxu0 %vm1447_vm9, %v18664_v54  ;;  %7964 = vmatpush1.bf16.msra.mxu1 %v7903_v50  ;;  %v7879_v8 = vpop.permute.xlu0 %7878 }
 0x629   :  { %v7877_v32 = vpop.permute.xlu1 %7876  ;;  %7995 = vmatprep.mubr.bf16.mxu1 %v22819_v3  ;;  %8038 = vmatprep.mubr.bf16.mxu0 %v22819_v3 }
 0x62a   :  { %v7889_v13 = vsel %vm22840_vm6, %v7875_v15, %v7877_v32  ;;  %v7890_v25 = vsel %vm22840_vm6, %v7877_v32, %v7879_v8 }
 0x62b   :  { %17349 = vmatprep.subr.msk.bf16.mxu0 %vm1385_vm5, %v7890_v25  ;;  %v7909_v58 = vsel %vm1385_vm5, %v7889_v13, 0 }
 0x62c   :  { %8007 = vmatpush1.bf16.msra.mxu0 %v7909_v58  ;;  %v7883_v51 = vpop.permute.xlu0 %7882 }
 0x62d   :  { %v7881_v14 = vpop.permute.xlu1 %7880  ;;  %8178 = vmatprep.subr.mxu0 %v8144_v55 }
 0x62e   :  { %v7891_v61 = vsel %vm22840_vm6, %v7879_v8, %v7881_v14  ;;  %v7892_v0 = vsel %vm22840_vm6, %v7881_v14, %v7883_v51  ;;  %vm9207_vm6 = vcmask 1047556  }
 0x62f   :  { %17348 = vmatmul.mubr.msk.bf16.vlgmr.msra.gmra.mrb[12].mxu1 %vm1447_vm9, %v18664_v54  ;;  %17351 = vmatprep.subr.msk.bf16.mxu1 %vm1385_vm5, %v7892_v0  ;;  %v7915_v37 = vsel %vm1385_vm5, %v7891_v61, 0  ;;  %v8497_v61 = vrot.slane %v20531_v57, %v19094_v19  ;;  %v8593_v0 = vrot.slane %v20531_v57, %v19100_v21 }
 0x630   :  { %17350 = vmatmul.mubr.msk.bf16.vlgmr.msra.gmra.mrb[16].mxu0 %vm1447_vm9, %v18664_v54  ;;  %8050 = vmatpush1.bf16.msra.mxu1 %v7915_v37  ;;  %v8493_v37 = vrot.slane %v20531_v57, %v19091_v18 }
 0x631   :  { %8081 = vmatprep.mubr.bf16.mxu1 %v22819_v3  ;;  %8728 = vmatprep.subr.mxu1 %v8144_v55  ;;  %v8505_v55 = vrot.slane %v20531_v57, %v19103_v22 }
 0x635   :  { %8179 = vmatpush1.xpose.msra.mxu0 %v8136_v6 }
 0x636   :  { %8253 = vmatprep.subr.mxu0 %v8145_v43 }
 0x637   :  { %17352 = vmatmul.mubr.msk.bf16.vlgmr.msra.gmra.mrb[16].mxu1 %vm1447_vm9, %v18664_v54  ;;  %vm25_vm9 = vcmask 396288  }
 0x639   :  { %8729 = vmatpush1.xpose.msra.mxu1 %v8136_v6  ;;  %v8589_v6 = vrot.slane %v20531_v57, %v19097_v20 }
 0x63a   :  { %8803 = vmatprep.subr.mxu1 %v8145_v43  ;;  %v8501_v43 = vrot.slane %v20531_v57, %v19124_v31 }
 0x63c   :  { %v20669_v59 = vrot.slane %v8501_v43, %v19091_v18 }
 0x6fb   :  { %v7954_v29 = vpop.f32.mrb[12].mxu0 }
 0x6fc   :  { %v7956_v30 = vpop.f32.mrb[13].mxu0 }
 0x6fd   :  { %18714 = vtanh.f32 %v7956_v30  ;;  %v7958_v47 = vpop.f32.mrb[14].mxu0  ;;  %v20639_v30 = vrot.slane %v8497_v61, %v19091_v18 }
 0x6fe   :  { %18716 = vtanh.f32 %v7954_v29  ;;  %v7960_v16 = vpop.f32.mrb[15].mxu0  ;;  %v8597_v29 = vrot.slane %v20531_v57, %v19113_v26  ;;  %v8513_v57 = vrot.slane %v20545_v4, %v19094_v19 }
 0x6ff   :  { %18718 = vtanh.f32 %v7960_v16  ;;  %v20645_v16 = vrot.slane %v8493_v37, %v19091_v18 }
 0x700   :  { %18720 = vtanh.f32 %v7958_v47  ;;  %v20642_v47 = vrot.slane %v8593_v0, %v19097_v20 }
 0x702   :  { %v7997_v48 = vpop.f32.mrb[12].mxu1 }
 0x703   :  { %v8040_v60 = vpop.f32.mrb[16].mxu0  ;;  %v7999_v41 = vpop.f32.mrb[13].mxu1 }
 0x704   :  { %v8042_v45 = vpop.f32.mrb[17].mxu0  ;;  %v8001_v12 = vpop.f32.mrb[14].mxu1  ;;  %18722 = vtanh.f32 %v7999_v41  ;;  %v20654_v41 = vrot.slane %v8601_v24, %v19097_v20 }
 0x705   :  { %v8044_v52 = vpop.f32.mrb[18].mxu0  ;;  %v8003_v34 = vpop.f32.mrb[15].mxu1  ;;  %18724 = vtanh.f32 %v7997_v48  ;;  %v20648_v48 = vrot.slane %v8589_v6, %v19097_v20 }
 0x706   :  { %v8046_v33 = vpop.f32.mrb[19].mxu0  ;;  %18726 = vtanh.f32 %v8003_v34 }
 0x707   :  { %v20551_v39 = vpop.eup %18714  ;;  %18728 = vtanh.f32 %v8001_v12  ;;  %v8509_v12 = vrot.slane %v20545_v4, %v19091_v18 }
 0x708   :  { %v20559_v49 = vpop.eup %18716  ;;  %8242 = vmatprep.mubr.f32.mxu0 %v20551_v39  ;;  %18730 = vtanh.f32 %v8042_v45  ;;  %v8609_v45 = vrot.slane %v20545_v4, %v19100_v21 }
 0x709   :  { %v20562_v53 = vpop.eup %18718  ;;  %8243 = vmatmul.mubr.f32.vlgmr.msra.gmra.mrb[10].mxu0 %v20559_v49  ;;  %18732 = vtanh.f32 %v8040_v60  ;;  %v20651_v60 = vrot.slane %v8505_v55, %v19091_v18  ;;  %v20695_v37 = vrot.slane %v8509_v12, %v19091_v18 }
 0x70a   :  { %8247 = vmatprep.mubr.f32.mxu0 %v20562_v53  ;;  %v8083_v46 = vpop.f32.mrb[16].mxu1  ;;  %8254 = vmatpush1.xpose.msra.mxu0 %v20538_v27  ;;  %v20571_v11 = vpop.eup %18720  ;;  %18734 = vtanh.f32 %v8046_v33 }
 0x70b   :  { %v8085_v10 = vpop.f32.mrb[17].mxu1  ;;  %8328 = vmatprep.subr.mxu0 %v20555_v36  ;;  %18736 = vtanh.f32 %v8044_v52  ;;  %v8605_v52 = vrot.slane %v20545_v4, %v19097_v20 }
 0x70c   :  { %v8087_v1 = vpop.f32.mrb[18].mxu1  ;;  %18738 = vtanh.f32 %v8085_v10  ;;  %v8521_v10 = vrot.slane %v20545_v4, %v19103_v22  ;;  %v8617_v22 = vrot.slane %v20545_v4, %v19106_v23 }
 0x70d   :  { %8248 = vmatmul.mubr.f32.gmra.mrb[20].mxu0 %v20571_v11  ;;  %v8089_v42 = vpop.f32.mrb[19].mxu1  ;;  %18740 = vtanh.f32 %v8083_v46  ;;  %v20672_v46 = vrot.slane %v8597_v29, %v19097_v20  ;;  %v20698_v6 = vrot.slane %v8605_v52, %v19097_v20 }
 0x70e   :  { %v20574_v62 = vpop.eup %18722  ;;  %18742 = vtanh.f32 %v8089_v42 }
 0x70f   :  { %v20580_v28 = vpop.eup %18724  ;;  %8317 = vmatprep.mubr.f32.mxu0 %v20574_v62  ;;  %18744 = vtanh.f32 %v8087_v1 }
 0x710   :  { %v20585_v35 = vpop.eup %18726 }
 0x711   :  { %8318 = vmatmul.mubr.f32.vlgmr.msra.gmra.mrb[10].mxu0 %v20580_v28  ;;  %v20589_v2 = vpop.eup %18728 }
 0x712   :  { %8329 = vmatpush1.xpose.msra.mxu0 %v20549_v56  ;;  %8322 = vmatprep.mubr.f32.mxu0 %v20585_v35  ;;  %v20592_v5 = vpop.eup %18730 }
 0x713   :  { %17355 = vmatprep.subr.msk.mxu0 %vm22839_vm1, %v20578_v63  ;;  %v20596_v15 = vpop.eup %18732 }
 0x714   :  { %v20598_v54 = vpop.eup %18734 }
 0x715   :  { %8323 = vmatmul.mubr.f32.gmra.mrb[20].mxu0 %v20589_v2  ;;  %v20603_v7 = vpop.eup %18736 }
 0x716   :  { %8392 = vmatprep.mubr.f32.mxu0 %v20592_v5  ;;  %v20605_v44 = vpop.eup %18738 }
 0x717   :  { %v20610_v9 = vpop.eup %18740 }
 0x718   :  { %v20612_v50 = vpop.eup %18742 }
 0x719   :  { %8393 = vmatmul.mubr.f32.vlgmr.msra.gmra.mrb[10].mxu0 %v20596_v15  ;;  %v20617_v8 = vpop.eup %18744 }
 0x71a   :  { %8397 = vmatprep.mubr.f32.mxu0 %v20598_v54  ;;  %8404 = vmatpush1.xpose.msra.mxu0 %v20569_v38 }
 0x71d   :  { %8398 = vmatmul.mubr.f32.gmra.mrb[20].mxu0 %v20603_v7 }
 0x71e   :  { %17356 = vmatprep.mubr.msk.f32.mxu0 %vm22839_vm1, %v20605_v44 }
 0x721   :  { %8468 = vmatmul.mubr.f32.vlgmr.msra.gmra.mrb[10].mxu0 %v20610_v9 }
 0x722   :  { %17357 = vmatprep.mubr.msk.f32.mxu0 %vm22839_vm1, %v20612_v50 }
 0x725   :  { %8473 = vmatmul.mubr.f32.gmra.mrb[20].mxu0 %v20617_v8 }
 0x726   :  { %9358 = vmatprep.mubr.bf16.mxu0 %v22819_v3 }
 0x7f4   :  { %v8469_v32 = vpop.f32.mrb[10].mxu0 }
 0x7f5   :  { %v8478_v13 = vmul.f32 0.005, %v8469_v32  ;;  %v8471_v25 = vpop.f32.mrb[11].mxu0 }
 0x7f7   :  { %8579 = vperm.xlu0 %18624, %v8478_v13   ;;  %8482 = vperm.xlu1 %18627, %v8478_v13  }
 0x7f8   :  { %v8474_v58 = vpop.f32.mrb[20].mxu0 }
 0x7f9   :  { %v8479_v51 = vmul.f32 0.005, %v8474_v58  ;;  %v8476_v14 = vpop.f32.mrb[21].mxu0 }
 0x7fa   :  { %v20692_v14 = vrot.slane %v8609_v45, %v19097_v20  ;;  %v20709_v45 = vrot.slane %v8521_v10, %v19091_v18 }
 0x7fb   :  { %8583 = vperm.xlu0 %18624, %v8479_v51   ;;  %8487 = vperm.xlu1 %18627, %v8479_v51   ;;  %v20689_v51 = vrot.slane %v8513_v57, %v19091_v18 }
 0x7ff   :  { %18628 = vset.pattern.permute.xlu0 %v22819_v3 }
 0x876   :  { %v20664_v34 = vpop.permute.xlu0 %8579  ;;  %v20666_v33 = vpop.permute.xlu1 %8482 }
 0x877   :  { %v8563_v1 = vmul.f32 %v20639_v30, %v20666_v33  ;;  %v8659_v42 = vmul.f32 %v20642_v47, %v20664_v34  ;;  %v8562_v32 = vmul.f32 %v20645_v16, %v20666_v33  ;;  %v8658_v13 = vmul.f32 %v20648_v48, %v20664_v34 }
 0x878   :  { %v8565_v25 = vmul.f32 %v20651_v60, %v20666_v33  ;;  %v8661_v58 = vmul.f32 %v20654_v41, %v20664_v34  ;;  %v8564_v29 = vmul.f32 %v20669_v59, %v20666_v33  ;;  %v8660_v57 = vmul.f32 %v20672_v46, %v20664_v34 }
 0x879   :  { %v8675_v61 = vadd.f32 %v8659_v42, %v8563_v1  ;;  %v8674_v0 = vadd.f32 %v8658_v13, %v8562_v32  ;;  %v8567_v10 = vmul.f32 %v20689_v51, %v20666_v33 }
 0x87a   :  { %v20700_v55 = vpop.permute.xlu0 %8583  ;;  %v20702_v24 = vpop.permute.xlu1 %8487  ;;  %v8677_v43 = vadd.f32 %v8661_v58, %v8565_v25  ;;  %v8676_v17 = vadd.f32 %v8660_v57, %v8564_v29 }
 0x87b   :  { %v20712_v12 = vsub.f32 %v20551_v39, %v8675_v61  ;;  %v20715_v52 = vsub.f32 %v20559_v49, %v8674_v0  ;;  %v8571_v1 = vmul.f32 %v20639_v30, %v20702_v24  ;;  %v8667_v42 = vmul.f32 %v20642_v47, %v20700_v55 }
 0x87c   :  { %v8570_v32 = vmul.f32 %v20645_v16, %v20702_v24  ;;  %v8666_v13 = vmul.f32 %v20648_v48, %v20700_v55  ;;  %v8663_v39 = vmul.f32 %v20692_v14, %v20664_v34  ;;  %v8573_v61 = vmul.f32 %v20651_v60, %v20702_v24 }
 0x87d   :  { %v8707_v49 = vmul.f32 %v20712_v12, %v20712_v12  ;;  %v8706_v25 = vmul.f32 %v20715_v52, %v20715_v52  ;;  %v8683_v58 = vadd.f32 %v8667_v42, %v8571_v1  ;;  %v8669_v3 = vmul.f32 %v20654_v41, %v20700_v55 }
 0x87e   :  { %v8682_v0 = vadd.f32 %v8666_v13, %v8570_v32  ;;  %v20743_v19 = vsub.f32 %v20574_v62, %v8677_v43  ;;  %v8572_v1 = vmul.f32 %v20669_v59, %v20702_v24  ;;  %v8668_v42 = vmul.f32 %v20672_v46, %v20700_v55 }
 0x87f   :  { %8792 = vmatprep.mubr.f32.mxu1 %v8707_v49  ;;  %v20740_v21 = vsub.f32 %v20562_v53, %v8683_v58  ;;  %v8685_v57 = vadd.f32 %v8669_v3, %v8573_v61  ;;  %v8517_v32 = vrot.slane %v20545_v4, %v19124_v31  ;;  %v8613_v53 = vrot.slane %v20545_v4, %v19113_v26 }
 0x880   :  { %8793 = vmatmul.mubr.f32.vlgmr.msra.gmra.mrb[10].mxu1 %v8706_v25  ;;  %v20750_v29 = vsub.f32 %v20571_v11, %v8682_v0  ;;  %v8679_v43 = vadd.f32 %v8663_v39, %v8567_v10  ;;  %v8566_v13 = vmul.f32 %v20695_v37, %v20666_v33  ;;  %v8662_v11 = vmul.f32 %v20698_v6, %v20664_v34 }
 0x881   :  { %v8715_v62 = vmul.f32 %v20740_v21, %v20740_v21  ;;  %8804 = vmatpush1.xpose.msra.mxu1 %v20538_v27  ;;  %v20766_v49 = vsub.f32 %v20580_v28, %v8676_v17  ;;  %v8684_v25 = vadd.f32 %v8668_v42, %v8572_v1  ;;  %v20770_v4 = vrot.slane %v8617_v22, %v19097_v20 }
 0x882   :  { %v8714_v3 = vmul.f32 %v20750_v29, %v20750_v29  ;;  %8878 = vmatprep.subr.mxu1 %v20555_v36  ;;  %v8709_v27 = vmul.f32 %v20743_v19, %v20743_v19  ;;  %v20775_v10 = vsub.f32 %v20585_v35, %v8685_v57  ;;  %v8575_v39 = vmul.f32 %v20689_v51, %v20702_v24 }
 0x883   :  { %8797 = vmatprep.mubr.f32.mxu1 %v8715_v62  ;;  %v8671_v17 = vmul.f32 %v20692_v14, %v20700_v55  ;;  %v20782_v36 = vsub.f32 %v20592_v5, %v8679_v43  ;;  %v8678_v22 = vadd.f32 %v8662_v11, %v8566_v13  ;;  %v20785_v28 = vrot.slane %v8517_v32, %v19091_v18 }
 0x884   :  { %8798 = vmatmul.mubr.f32.gmra.mrb[20].mxu1 %v8714_v3  ;;  %v20788_v58 = vrot.slane %v8613_v53, %v19097_v20  ;;  %v8708_v35 = vmul.f32 %v20766_v49, %v20766_v49  ;;  %v20793_v61 = vsub.f32 %v20589_v2, %v8684_v25  ;;  %v8574_v0 = vmul.f32 %v20695_v37, %v20702_v24 }
 0x885   :  { %8867 = vmatprep.mubr.f32.mxu1 %v8709_v27  ;;  %v8670_v5 = vmul.f32 %v20698_v6, %v20700_v55  ;;  %v8717_v1 = vmul.f32 %v20775_v10, %v20775_v10  ;;  %v8687_v42 = vadd.f32 %v8671_v17, %v8575_v39  ;;  %v8569_v57 = vmul.f32 %v20709_v45, %v20666_v33 }
 0x886   :  { %v8665_v32 = vmul.f32 %v20770_v4, %v20664_v34  ;;  %v8711_v2 = vmul.f32 %v20782_v36, %v20782_v36  ;;  %v20809_v53 = vsub.f32 %v20596_v15, %v8678_v22  ;;  %v8716_v62 = vmul.f32 %v20793_v61, %v20793_v61 }
 0x887   :  { %v8686_v43 = vadd.f32 %v8670_v5, %v8574_v0  ;;  %v8568_v13 = vmul.f32 %v20785_v28, %v20666_v33  ;;  %v8664_v11 = vmul.f32 %v20788_v58, %v20664_v34  ;;  %v8577_v15 = vmul.f32 %v20709_v45, %v20702_v24 }
 0x888   :  { %8868 = vmatmul.mubr.f32.vlgmr.msra.gmra.mrb[10].mxu1 %v8708_v35  ;;  %v8681_v3 = vadd.f32 %v8665_v32, %v8569_v57  ;;  %v8673_v25 = vmul.f32 %v20770_v4, %v20700_v55  ;;  %v8672_v34 = vmul.f32 %v20788_v58, %v20700_v55 }
 0x889   :  { %8872 = vmatprep.mubr.f32.mxu1 %v8717_v1  ;;  %8879 = vmatpush1.xpose.msra.mxu1 %v20549_v56  ;;  %v20820_v56 = vsub.f32 %v20598_v54, %v8687_v42  ;;  %v20829_v33 = vsub.f32 %v20603_v7, %v8686_v43  ;;  %v8680_v27 = vadd.f32 %v8664_v11, %v8568_v13 }
 0x88a   :  { %17358 = vmatprep.subr.msk.mxu1 %vm22839_vm1, %v20578_v63  ;;  %v8710_v63 = vmul.f32 %v20809_v53, %v20809_v53  ;;  %v8576_v54 = vmul.f32 %v20785_v28, %v20702_v24  ;;  %v20838_v17 = vsub.f32 %v20605_v44, %v8681_v3  ;;  %v8689_v22 = vadd.f32 %v8673_v25, %v8577_v15 }
 0x88b   :  { %v8719_v39 = vmul.f32 %v20820_v56, %v20820_v56  ;;  %v8718_v7 = vmul.f32 %v20829_v33, %v20829_v33  ;;  %v20844_v35 = vsub.f32 %v20610_v9, %v8680_v27  ;;  %v22855_v3 = vmov 1  }
 0x88c   :  { %8873 = vmatmul.mubr.f32.gmra.mrb[20].mxu1 %v8716_v62  ;;  %v8688_v24 = vadd.f32 %v8672_v34, %v8576_v54  ;;  %v8713_v55 = vmul.f32 %v20838_v17, %v20838_v17  ;;  %v20849_v0 = vsub.f32 %v20612_v50, %v8689_v22  ;;  %v22854_v50 = vmov 0  }
 0x88d   :  { %8942 = vmatprep.mubr.f32.mxu1 %v8711_v2  ;;  %v8712_v44 = vmul.f32 %v20844_v35, %v20844_v35  ;;  %26 = vst.msk [vmem:[#allocation3] sm:$0xf] %vm25_vm9, %v22854_v50  ;;  %vm27_vm9 = vcmask 394240  }
 0x88e   :  { %v8721_v9 = vmul.f32 %v20849_v0, %v20849_v0  ;;  %28 = vst.msk [vmem:[#allocation3 + $0x24] sm:$0x3] %vm27_vm9, %v22854_v50  ;;  %vm29_vm9 = vcmask 568360  }
 0x88f   :  { %30 = vst.msk [vmem:[#allocation3 + $0x20] sm:$0xf] %vm29_vm9, %v22854_v50  ;;  %vm9206_vm9 = vcmask 1043848  }
 0x890   :  { %8943 = vmatmul.mubr.f32.vlgmr.msra.gmra.mrb[10].mxu1 %v8710_v63  ;;  %vm9208_vm4 = vmor %vm9207_vm6, %vm9206_vm9  ;;  %vm9213_vm6 = vcmask 35840  }
 0x891   :  { %8947 = vmatprep.mubr.f32.mxu1 %v8719_v39  ;;  %8954 = vmatpush1.xpose.msra.mxu1 %v20569_v38  ;;  %v20855_v38 = vsub.f32 %v20617_v8, %v8688_v24 }
 0x893   :  { %v8720_v5 = vmul.f32 %v20855_v38, %v20855_v38 }
 0x894   :  { %8948 = vmatmul.mubr.f32.gmra.mrb[20].mxu1 %v8718_v7 }
 0x895   :  { %17359 = vmatprep.mubr.msk.f32.mxu1 %vm22839_vm1, %v8713_v55 }
 0x898   :  { %9018 = vmatmul.mubr.f32.vlgmr.msra.gmra.mrb[10].mxu1 %v8712_v44 }
 0x899   :  { %17360 = vmatprep.mubr.msk.f32.mxu1 %vm22839_vm1, %v8721_v9  ;;  %vm31_vm1 = vcmask 566312  }
 0x89a   :  { %32 = vst.msk [vmem:[#allocation3 + $0x44] sm:$0x3] %vm31_vm1, %v22854_v50  ;;  %vm9215_vm1 = vcmask 1041800  }
 0x89b   :  { %vm9217_vm2 = vmor %vm9216_vm3, %vm9215_vm1  ;;  %vm9222_vm3 = vcmask 33792  }
 0x89c   :  { %9023 = vmatmul.mubr.f32.gmra.mrb[20].mxu1 %v8720_v5 }
 0x89d   :  { %9401 = vmatprep.mubr.bf16.mxu1 %v22854_v50 }
 0x96b   :  { %v9019_v1 = vpop.f32.mrb[10].mxu1 }
 0x96c   :  { %v9028_v42 = vmul.f32 0.005, %v9019_v1  ;;  %v9021_v57 = vpop.f32.mrb[11].mxu1 }
 0x96e   :  { %v9030_v32 = vadd.f32 1e-05, %v9028_v42 }
 0x96f   :  { %v9024_v2 = vpop.f32.mrb[20].mxu1 }
 0x970   :  { %18746 = vrsqrt.f32 %v9030_v32  ;;  %v9029_v8 = vmul.f32 0.005, %v9024_v2  ;;  %v9026_v62 = vpop.f32.mrb[21].mxu1 }
 0x972   :  { %v9031_v43 = vadd.f32 1e-05, %v9029_v8 }
 0x974   :  { %18748 = vrsqrt.f32 %v9031_v43 }
 0x97a   :  { %v18747_v13 = vpop.eup %18746 }
 0x97b   :  { %9036 = vperm.xlu1 %18627, %v18747_v13  }
 0x97e   :  { %v18749_v11 = vpop.eup %18748 }
 0x97f   :  { %18629 = vset.pattern.permute.xlu1 %v22855_v3  ;;  %9041 = vperm.xlu0 %18628, %v18749_v11  }
 0x980   :  { %9061 = vperm.xlu1 %18629, %v18747_v13  }
 0x984   :  { %9065 = vperm.xlu1 %18629, %v18749_v11  }
 0x9fa   :  { %v9037_v15 = vpop.permute.xlu1 %9036 }
 0x9fb   :  { %v9046_v25 = vmul.f32 %v9037_v15, %v20669_v59  ;;  %v9047_v63 = vmul.f32 %v9037_v15, %v20651_v60  ;;  %v9044_v27 = vmul.f32 %v9037_v15, %v20645_v16  ;;  %v9045_v34 = vmul.f32 %v9037_v15, %v20639_v30 }
 0x9fc   :  { %v9050_v39 = vmul.f32 %v9037_v15, %v20785_v28  ;;  %v9051_v22 = vmul.f32 %v9037_v15, %v20709_v45  ;;  %v9048_v7 = vmul.f32 %v9037_v15, %v20695_v37  ;;  %v9049_v5 = vmul.f32 %v9037_v15, %v20689_v51 }
 0x9fe   :  { %v20867_v54 = vpop.permute.xlu0 %9041 }
 0x9ff   :  { %v9062_v24 = vpop.permute.xlu1 %9061  ;;  %v9054_v55 = vmul.f32 %v20867_v54, %v20669_v59  ;;  %v9055_v44 = vmul.f32 %v20867_v54, %v20651_v60  ;;  %v9052_v9 = vmul.f32 %v20867_v54, %v20645_v16  ;;  %v9053_v15 = vmul.f32 %v20867_v54, %v20639_v30 }
 0xa00   :  { %v9070_v1 = vmul.f32 %v9062_v24, %v20672_v46  ;;  %v9071_v42 = vmul.f32 %v9062_v24, %v20654_v41  ;;  %v9068_v57 = vmul.f32 %v9062_v24, %v20648_v48  ;;  %v9069_v32 = vmul.f32 %v9062_v24, %v20642_v47 }
 0xa01   :  { %v9074_v2 = vmul.f32 %v9062_v24, %v20788_v58  ;;  %v9075_v59 = vmul.f32 %v9062_v24, %v20770_v4  ;;  %v9072_v8 = vmul.f32 %v9062_v24, %v20698_v6  ;;  %v9073_v60 = vmul.f32 %v9062_v24, %v20692_v14 }
 0xa02   :  { %v9086_v62 = vadd.f32 %v9070_v1, %v9046_v25  ;;  %v9087_v16 = vadd.f32 %v9071_v42, %v9047_v63  ;;  %v9084_v43 = vadd.f32 %v9068_v57, %v9044_v27  ;;  %v9085_v13 = vadd.f32 %v9069_v32, %v9045_v34 }
 0xa03   :  { %v9066_v11 = vpop.permute.xlu1 %9065  ;;  %v9090_v3 = vadd.f32 %v9074_v2, %v9050_v39  ;;  %v9091_v26 = vadd.f32 %v9075_v59, %v9051_v22  ;;  %v9088_v31 = vadd.f32 %v9072_v8, %v9048_v7  ;;  %v9089_v22 = vadd.f32 %v9073_v60, %v9049_v5 }
 0xa04   :  { %v9102_v23 = vmul.f32 %v9086_v62, %v20766_v49  ;;  %v9103_v20 = vmul.f32 %v9087_v16, %v20743_v19  ;;  %v9100_v18 = vmul.f32 %v9084_v43, %v20715_v52  ;;  %v9101_v40 = vmul.f32 %v9085_v13, %v20712_v12 }
 0xa05   :  { %v9078_v25 = vmul.f32 %v9066_v11, %v20672_v46  ;;  %v9079_v63 = vmul.f32 %v9066_v11, %v20654_v41  ;;  %v9076_v27 = vmul.f32 %v9066_v11, %v20648_v48  ;;  %v9077_v34 = vmul.f32 %v9066_v11, %v20642_v47 }
 0xa06   :  { %v17694_v30 = vpack.c.bf16 %v9103_v20, %v9102_v23  ;;  %v17693_v39 = vpack.c.bf16 %v9101_v40, %v9100_v18  ;;  %v9106_v19 = vmul.f32 %v9090_v3, %v20844_v35  ;;  %v9107_v41 = vmul.f32 %v9091_v26, %v20838_v17 }
 0xa07   :  { %v9094_v7 = vadd.f32 %v9078_v25, %v9054_v55  ;;  %v9095_v24 = vadd.f32 %v9079_v63, %v9055_v44  ;;  %v9092_v49 = vadd.f32 %v9076_v27, %v9052_v9  ;;  %v9093_v1 = vadd.f32 %v9077_v34, %v9053_v15 }
 0xa08   :  { %9158 = vrot.lane.b32.xlu1 %v17694_v30, %s18822_s0  ;;  %9156 = vrot.lane.b32.xlu0 %v17693_v39, %s18822_s0  ;;  %v9104_v48 = vmul.f32 %v9088_v31, %v20809_v53  ;;  %v9105_v47 = vmul.f32 %v9089_v22, %v20782_v36  ;;  %v9058_v46 = vmul.f32 %v20867_v54, %v20785_v28 }
 0xa09   :  { %v9110_v20 = vmul.f32 %v9094_v7, %v20793_v61  ;;  %v9111_v40 = vmul.f32 %v9095_v24, %v20775_v10  ;;  %v9108_v18 = vmul.f32 %v9092_v49, %v20750_v29  ;;  %v9109_v23 = vmul.f32 %v9093_v1, %v20740_v21 }
 0xa0a   :  { %v9059_v26 = vmul.f32 %v20867_v54, %v20709_v45  ;;  %v9082_v31 = vmul.f32 %v9066_v11, %v20788_v58  ;;  %v9083_v10 = vmul.f32 %v9066_v11, %v20770_v4  ;;  %v9056_v29 = vmul.f32 %v20867_v54, %v20695_v37 }
 0xa0b   :  { %v17698_v12 = vpack.c.bf16 %v9111_v40, %v9110_v20  ;;  %v17697_v52 = vpack.c.bf16 %v9109_v23, %v9108_v18  ;;  %v9057_v61 = vmul.f32 %v20867_v54, %v20689_v51  ;;  %v9080_v36 = vmul.f32 %v9066_v11, %v20698_v6 }
 0xa0c   :  { %v9098_v21 = vadd.f32 %v9082_v31, %v9058_v46  ;;  %v9081_v28 = vmul.f32 %v9066_v11, %v20692_v14  ;;  %v9099_v45 = vadd.f32 %v9083_v10, %v9059_v26  ;;  %v17696_v58 = vpack.c.bf16 %v9107_v41, %v9106_v19 }
 0xa0d   :  { %9166 = vrot.lane.b32.xlu1 %v17698_v12, %s18822_s0  ;;  %9164 = vrot.lane.b32.xlu0 %v17697_v52, %s18822_s0  ;;  %v9096_v53 = vadd.f32 %v9080_v36, %v9056_v29  ;;  %v17695_v37 = vpack.c.bf16 %v9105_v47, %v9104_v48 }
 0xa0e   :  { %v9097_v4 = vadd.f32 %v9081_v28, %v9057_v61  ;;  %v9114_v17 = vmul.f32 %v9098_v21, %v20855_v38  ;;  %v9115_v51 = vmul.f32 %v9099_v45, %v20849_v0 }
 0xa0f   :  { %v9112_v6 = vmul.f32 %v9096_v53, %v20829_v33 }
 0xa10   :  { %v9113_v14 = vmul.f32 %v9097_v4, %v20820_v56  ;;  %v17700_v35 = vpack.c.bf16 %v9115_v51, %v9114_v17 }
 0xa11   :  { %9162 = vrot.lane.b32.xlu1 %v17696_v58, %s18822_s0  ;;  %9160 = vrot.lane.b32.xlu0 %v17695_v37, %s18822_s0 }
 0xa12   :  { %v17699_v3 = vpack.c.bf16 %v9113_v14, %v9112_v6 }
 0xa15   :  { %9170 = vrot.lane.b32.xlu1 %v17700_v35, %s18822_s0  ;;  %9168 = vrot.lane.b32.xlu0 %v17699_v3, %s18822_s0 }
 0xa7a   :  { %v9159_v0 = vpop.permute.xlu1 %9158  ;;  %v9157_v38 = vpop.permute.xlu0 %9156 }
 0xa7b   :  { %v9173_v33 = vrot.slane %v9159_v0, 4  ;;  %v9172_v56 = vrot.slane %v9157_v38, 4 }
 0xa7d   :  { %v9181_v54 = vsel %vm9180_vm7, %v9172_v56, %v9157_v38  ;;  %v9183_v55 = vsel %vm1385_vm5, %v9172_v56, %v9173_v33  ;;  %v18667_v38 = vld [vmem:[%s22800_s3 + $0x8] sm:$0xff]  }
 0xa7e   :  { %v20937_v44 = vsel %vm9180_vm7, %v9183_v55, %v9159_v0  ;;  %9209 = vst.msk [vmem:[#allocation3] sm:$0xff] %vm9208_vm4, %v9181_v54  ;;  %vm22864_vm4 = vcmask 637952  }
 0xa7f   :  { %v9167_v9 = vpop.permute.xlu1 %9166  ;;  %v9165_v5 = vpop.permute.xlu0 %9164  ;;  %vm22866_vm9 = vmmov %vm22864_vm4 }
 0xa80   :  { %v9177_v42 = vrot.slane %v9167_v9, 4  ;;  %v9176_v57 = vrot.slane %v9165_v5, 4  ;;  %vm22867_vm1 = vmmov %vm22864_vm4 }
 0xa82   :  { %v9189_v32 = vsel %vm9180_vm7, %v9176_v57, %v9165_v5  ;;  %v9190_v2 = vsel %vm1385_vm5, %v9176_v57, %v9177_v42 }
 0xa83   :  { %v9191_v59 = vsel %vm9180_vm7, %v9190_v2, %v9167_v9  ;;  %9218 = vst.msk [vmem:[#allocation3 + $0x24] sm:$0x33] %vm9217_vm2, %v9189_v32  ;;  %v9163_v8 = vpop.permute.xlu1 %9162  ;;  %v9161_v60 = vpop.permute.xlu0 %9160  ;;  %vm9297_vm2 = vcmask 97280  }
 0xa84   :  { %9219 = vst [vmem:[#allocation3 + $0x2c] sm:$0x33] %v9191_v59  ;;  %v9175_v62 = vrot.slane %v9163_v8, 4  ;;  %v9174_v16 = vrot.slane %v9161_v60, 4 }
 0xa85   :  { %v9226_v30 = vld [vmem:[#allocation3] sm:$0xff] }
 0xa86   :  { %9214 = vst.msk [vmem:[#allocation3 + $0x20] sm:$0xf] %vm9213_vm6, %v9175_v62  ;;  %v9185_v43 = vsel %vm1385_vm5, %v9173_v33, %v9174_v16  ;;  %v9187_v13 = vsel %vm1385_vm5, %v9174_v16, %v9175_v62  ;;  %vm22868_vm6 = vmmov %vm22867_vm1 }
 0xa87   :  { %v20945_v11 = vsel %vm9180_vm7, %v9185_v43, %v9161_v60  ;;  %v20948_v15 = vsel %vm9180_vm7, %v9187_v13, %v9163_v8  ;;  %v9171_v25 = vpop.permute.xlu1 %9170  ;;  %v9169_v63 = vpop.permute.xlu0 %9168 }
 0xa88   :  { %v9179_v27 = vrot.slane %v9171_v25, 4  ;;  %v9178_v34 = vrot.slane %v9169_v63, 4 }
 0xa8a   :  { %v9230_v39 = vld [vmem:[#allocation3 + $0x24] sm:$0x33]  ;;  %9223 = vst.msk [vmem:[#allocation3 + $0x44] sm:$0x3] %vm9222_vm3, %v9179_v27  ;;  %v9192_v22 = vsel %vm1385_vm5, %v9177_v42, %v9178_v34  ;;  %v9194_v7 = vsel %vm1385_vm5, %v9178_v34, %v9179_v27  ;;  %vm9301_vm5 = vcmask 1045504   ;;  %vm22869_vm3 = vmmov %vm22867_vm1 }
 0xa8b   :  { %v20952_v24 = vcombine.low %v9226_v30, %v9230_v39  ;;  %v20954_v49 = vcombine.high %v9226_v30, %v9230_v39  ;;  %v9193_v1 = vsel %vm9180_vm7, %v9192_v22, %v9169_v63  ;;  %v9195_v19 = vsel %vm9180_vm7, %v9194_v7, %v9171_v25  ;;  %v9231_v41 = vld [vmem:[#allocation3 + $0x2c] sm:$0x33]  ;;  %v11432_v31 = vld [vmem:[#allocation3 + $0x24] sm:$0x33]  ;;  %v18668_v25 = vld [vmem:[%s22800_s3] sm:$0xff]  }
 0xa8c   :  { %9220 = vst [vmem:[#allocation3 + $0x34] sm:$0x33] %v9193_v1  ;;  %9221 = vst [vmem:[#allocation3 + $0x3c] sm:$0x33] %v9195_v19  ;;  %v20979_v20 = vcombine.high %v20937_v44, %v9231_v41  ;;  %v20982_v40 = vcombine.low %v20937_v44, %v9231_v41  ;;  %v21020_v12 = vcombine.high %v9226_v30, %v11432_v31  ;;  %v11433_v22 = vld [vmem:[#allocation3 + $0x2c] sm:$0x33] }
 0xa8d   :  { %9276 = vrot.lane.b32.xlu1 %v20954_v49, %s18804_s25  ;;  %9274 = vrot.lane.b32.xlu0 %v20952_v24, %s18804_s25  ;;  %v21022_v52 = vcombine.low %v9226_v30, %v11432_v31  ;;  %v11431_v29 = vld [vmem:[#allocation3 + $0x20] sm:$0xf]  ;;  %v9507_v60 = vsel %vm9301_vm5, %v20952_v24, 0  ;;  %v21229_v1 = vcombine.low %v20937_v44, %v11433_v22  ;;  %vm22865_vm7 = vmmov %vm22864_vm4 }
 0xa8e   :  { %v9513_v30 = vsel %vm9301_vm5, %v20982_v40, 0 }
 0xa91   :  { %9712 = vrot.lane.b32.xlu1 %v20954_v49, %s18813_s9  ;;  %9710 = vrot.lane.b32.xlu0 %v20952_v24, %s18813_s9  ;;  %v11436_v10 = vld [vmem:[#allocation3 + $0x44] sm:$0x3] }
 0xa92   :  { %v21028_v21 = vcombine.low %v11431_v29, %v11436_v10 }
 0xa93   :  { %v9232_v48 = vld [vmem:[#allocation3 + $0x34] sm:$0x33]  ;;  %v9233_v23 = vld [vmem:[#allocation3 + $0x3c] sm:$0x33] }
 0xa94   :  { %v20989_v18 = vcombine.high %v20945_v11, %v9232_v48  ;;  %v20992_v47 = vcombine.low %v20945_v11, %v9232_v48  ;;  %v20999_v46 = vcombine.low %v20948_v15, %v9233_v23  ;;  %v21010_v26 = vcombine.high %v20948_v15, %v9233_v23  ;;  %v11434_v19 = vld [vmem:[#allocation3 + $0x34] sm:$0x33] }
 0xa95   :  { %9958 = vrot.lane.b32.xlu1 %v20954_v49, %s18814_s10  ;;  %9956 = vrot.lane.b32.xlu0 %v20952_v24, %s18814_s10 }
 0xa96   :  { %v9519_v34 = vsel %vm9301_vm5, %v20992_v47, 0  ;;  %v9525_v48 = vsel %vm9301_vm5, %v20999_v46, 0 }
 0xa99   :  { %10204 = vrot.lane.b32.xlu1 %v20954_v49, %s18815_s11  ;;  %10202 = vrot.lane.b32.xlu0 %v20952_v24, %s18815_s11 }
 0xa9d   :  { %10450 = vrot.lane.b32.xlu1 %v20954_v49, %s18816_s12  ;;  %10448 = vrot.lane.b32.xlu0 %v20952_v24, %s18816_s12 }
 0xaa1   :  { %9280 = vrot.lane.b32.xlu1 %v20979_v20, %s18804_s25  ;;  %9278 = vrot.lane.b32.xlu0 %v20982_v40, %s18804_s25 }
 0xaa5   :  { %9284 = vrot.lane.b32.xlu1 %v20989_v18, %s18804_s25  ;;  %9282 = vrot.lane.b32.xlu0 %v20992_v47, %s18804_s25 }
 0xaa9   :  { %10696 = vrot.lane.b32.xlu1 %v20954_v49, %s18817_s1  ;;  %9286 = vrot.lane.b32.xlu0 %v20999_v46, %s18804_s25 }
 0xaad   :  { %10942 = vrot.lane.b32.xlu1 %v20954_v49, %s18818_s13  ;;  %10694 = vrot.lane.b32.xlu0 %v20952_v24, %s18817_s1 }
 0xab1   :  { %9288 = vrot.lane.b32.xlu1 %v21010_v26, %s18804_s25  ;;  %10940 = vrot.lane.b32.xlu0 %v20952_v24, %s18818_s13 }
 0xab5   :  { %11188 = vrot.lane.b32.xlu1 %v20954_v49, %s18819_s15  ;;  %11186 = vrot.lane.b32.xlu0 %v20952_v24, %s18819_s15  ;;  %v21224_v24 = vcombine.high %v20937_v44, %v11433_v22 }
 0xab9   :  { %11481 = vrot.lane.b32.xlu1 %v21020_v12, %s18799_s20  ;;  %11479 = vrot.lane.b32.xlu0 %v21022_v52, %s18799_s20 }
 0xabd   :  { %11728 = vrot.lane.b32.xlu1 %v21022_v52, %s18796_s17  ;;  %11495 = vrot.lane.b32.xlu0 %v21028_v21, %s18799_s20 }
 0xac1   :  { %9716 = vrot.lane.b32.xlu1 %v20979_v20, %s18813_s9  ;;  %9714 = vrot.lane.b32.xlu0 %v20982_v40, %s18813_s9 }
 0xac5   :  { %9720 = vrot.lane.b32.xlu1 %v20989_v18, %s18813_s9  ;;  %9718 = vrot.lane.b32.xlu0 %v20992_v47, %s18813_s9 }
 0xac9   :  { %11744 = vrot.lane.b32.xlu1 %v21028_v21, %s18796_s17  ;;  %9722 = vrot.lane.b32.xlu0 %v20999_v46, %s18813_s9 }
 0xacd   :  { %9724 = vrot.lane.b32.xlu1 %v21010_v26, %s18813_s9  ;;  %11730 = vrot.lane.b32.xlu0 %v21020_v12, %s18796_s17 }
 0xad1   :  { %9962 = vrot.lane.b32.xlu1 %v20979_v20, %s18814_s10  ;;  %9960 = vrot.lane.b32.xlu0 %v20982_v40, %s18814_s10 }
 0xad5   :  { %9966 = vrot.lane.b32.xlu1 %v20989_v18, %s18814_s10  ;;  %9964 = vrot.lane.b32.xlu0 %v20992_v47, %s18814_s10 }
 0xad9   :  { %11979 = vrot.lane.b32.xlu1 %v21020_v12, %s18801_s22  ;;  %9968 = vrot.lane.b32.xlu0 %v20999_v46, %s18814_s10 }
 0xadd   :  { %9970 = vrot.lane.b32.xlu1 %v21010_v26, %s18814_s10  ;;  %11977 = vrot.lane.b32.xlu0 %v21022_v52, %s18801_s22 }
 0xae1   :  { %10208 = vrot.lane.b32.xlu1 %v20979_v20, %s18815_s11  ;;  %10206 = vrot.lane.b32.xlu0 %v20982_v40, %s18815_s11 }
 0xae5   :  { %10212 = vrot.lane.b32.xlu1 %v20989_v18, %s18815_s11  ;;  %10210 = vrot.lane.b32.xlu0 %v20992_v47, %s18815_s11 }
 0xae9   :  { %12226 = vrot.lane.b32.xlu1 %v21022_v52, %s18797_s18  ;;  %10214 = vrot.lane.b32.xlu0 %v20999_v46, %s18815_s11 }
 0xaed   :  { %10216 = vrot.lane.b32.xlu1 %v21010_v26, %s18815_s11  ;;  %11993 = vrot.lane.b32.xlu0 %v21028_v21, %s18801_s22 }
 0xaf1   :  { %10454 = vrot.lane.b32.xlu1 %v20979_v20, %s18816_s12  ;;  %10452 = vrot.lane.b32.xlu0 %v20982_v40, %s18816_s12 }
 0xaf5   :  { %10458 = vrot.lane.b32.xlu1 %v20989_v18, %s18816_s12  ;;  %10456 = vrot.lane.b32.xlu0 %v20992_v47, %s18816_s12 }
 0xaf9   :  { %12242 = vrot.lane.b32.xlu1 %v21028_v21, %s18797_s18  ;;  %10460 = vrot.lane.b32.xlu0 %v20999_v46, %s18816_s12 }
 0xafd   :  { %10462 = vrot.lane.b32.xlu1 %v21010_v26, %s18816_s12  ;;  %12228 = vrot.lane.b32.xlu0 %v21020_v12, %s18797_s18 }
 0xaff   :  { %v9277_v61 = vpop.permute.xlu1 %9276  ;;  %v9275_v36 = vpop.permute.xlu0 %9274 }
 0xb00   :  { %v9290_v6 = vsel %vm1439_vm8, %v9275_v36, %v9277_v61 }
 0xb01   :  { %10700 = vrot.lane.b32.xlu1 %v20979_v20, %s18817_s1  ;;  %10698 = vrot.lane.b32.xlu0 %v20982_v40, %s18817_s1  ;;  %v9303_v0 = vsel %vm9301_vm5, %v9290_v6, 0 }
 0xb03   :  { %v21102_v28 = vpop.permute.xlu1 %9712  ;;  %v21104_v45 = vpop.permute.xlu0 %9710 }
 0xb04   :  { %v9726_v44 = vsel %vm1875_vm10, %v21104_v45, %v21102_v28 }
 0xb05   :  { %10704 = vrot.lane.b32.xlu1 %v20989_v18, %s18817_s1  ;;  %10702 = vrot.lane.b32.xlu0 %v20992_v47, %s18817_s1 }
 0xb07   :  { %v21110_v58 = vpop.permute.xlu1 %9958  ;;  %v21112_v53 = vpop.permute.xlu0 %9956 }
 0xb09   :  { %12477 = vrot.lane.b32.xlu1 %v21020_v12, %s18802_s23  ;;  %10706 = vrot.lane.b32.xlu0 %v20999_v46, %s18817_s1 }
 0xb0b   :  { %v21118_v4 = vpop.permute.xlu1 %10204  ;;  %v21120_v37 = vpop.permute.xlu0 %10202 }
 0xb0d   :  { %10708 = vrot.lane.b32.xlu1 %v21010_v26, %s18817_s1  ;;  %12475 = vrot.lane.b32.xlu0 %v21022_v52, %s18802_s23 }
 0xb0f   :  { %v21126_v17 = vpop.permute.xlu1 %10450  ;;  %v21128_v51 = vpop.permute.xlu0 %10448 }
 0xb11   :  { %10946 = vrot.lane.b32.xlu1 %v20979_v20, %s18818_s13  ;;  %10944 = vrot.lane.b32.xlu0 %v20982_v40, %s18818_s13 }
 0xb13   :  { %v9281_v14 = vpop.permute.xlu1 %9280  ;;  %v9279_v35 = vpop.permute.xlu0 %9278 }
 0xb14   :  { %v9291_v3 = vsel %vm1439_vm8, %v9277_v61, %v9279_v35  ;;  %v9292_v56 = vsel %vm1439_vm8, %v9279_v35, %v9281_v14 }
 0xb15   :  { %10950 = vrot.lane.b32.xlu1 %v20989_v18, %s18818_s13  ;;  %10948 = vrot.lane.b32.xlu0 %v20992_v47, %s18818_s13  ;;  %v9309_v5 = vsel %vm9301_vm5, %v9292_v56, 0 }
 0xb16   :  { %17380 = vmatprep.subr.msk.bf16.mxu0 %vm9301_vm5, %v9291_v3 }
 0xb17   :  { %9327 = vmatpush1.bf16.msra.mxu0 %v9303_v0  ;;  %v9285_v33 = vpop.permute.xlu1 %9284  ;;  %v9283_v54 = vpop.permute.xlu0 %9282 }
 0xb18   :  { %v9293_v55 = vsel %vm1439_vm8, %v9281_v14, %v9283_v54  ;;  %v9294_v9 = vsel %vm1439_vm8, %v9283_v54, %v9285_v33  ;;  %v9972_v54 = vsel %vm2122_vm11, %v21112_v53, %v21110_v58  ;;  %v18670_v53 = vld [vmem:[%s22800_s3 + $0x18] sm:$0xff]  }
 0xb19   :  { %12724 = vrot.lane.b32.xlu1 %v21022_v52, %s18798_s19  ;;  %10952 = vrot.lane.b32.xlu0 %v20999_v46, %s18818_s13  ;;  %v9315_v2 = vsel %vm9301_vm5, %v9294_v9, 0 }
 0xb1a   :  { %17381 = vmatmul.mubr.msk.bf16.vlgmr.msra.gmra.mrb[24].mxu0 %vm9297_vm2, %v18667_v38  ;;  %17382 = vmatprep.subr.msk.bf16.mxu1 %vm9301_vm5, %v9293_v55 }
 0xb1b   :  { %v21155_v42 = vpop.permute.xlu1 %10696  ;;  %9444 = vmatprep.mubr.bf16.mxu0 %v22854_v50  ;;  %9370 = vmatpush1.bf16.msra.mxu1 %v9309_v5  ;;  %v9287_v57 = vpop.permute.xlu0 %9286 }
 0xb1c   :  { %v9295_v32 = vsel %vm1439_vm8, %v9285_v33, %v9287_v57 }
 0xb1d   :  { %10954 = vrot.lane.b32.xlu1 %v21010_v26, %s18818_s13  ;;  %12491 = vrot.lane.b32.xlu0 %v21028_v21, %s18802_s23 }
 0xb1e   :  { %17384 = vmatprep.subr.msk.bf16.mxu0 %vm9301_vm5, %v9295_v32  ;;  %17383 = vmatmul.mubr.msk.bf16.vlgmr.msra.gmra.mrb[24].mxu1 %vm9297_vm2, %v18667_v38 }
 0xb1f   :  { %9413 = vmatpush1.bf16.msra.mxu0 %v9315_v2  ;;  %v21165_v59 = vpop.permute.xlu1 %10942  ;;  %v21170_v8 = vpop.permute.xlu0 %10694  ;;  %9487 = vmatprep.mubr.bf16.mxu1 %v22854_v50 }
 0xb20   :  { %17389 = vmatprep.subr.msk.bf16.mxu0 %vm9301_vm5, %v20954_v49 }
 0xb21   :  { %11192 = vrot.lane.b32.xlu1 %v20979_v20, %s18819_s15  ;;  %11190 = vrot.lane.b32.xlu0 %v20982_v40, %s18819_s15 }
 0xb22   :  { %17385 = vmatmul.mubr.msk.bf16.vlgmr.msra.gmra.mrb[28].mxu0 %vm9297_vm2, %v18667_v38 }
 0xb23   :  { %9531 = vmatpush1.bf16.msra.mxu0 %v9507_v60  ;;  %v9289_v62 = vpop.permute.xlu1 %9288  ;;  %9562 = vmatprep.mubr.bf16.mxu0 %v22854_v50  ;;  %v21184_v43 = vpop.permute.xlu0 %10940 }
 0xb24   :  { %v9296_v16 = vsel %vm1439_vm8, %v9287_v57, %v9289_v62  ;;  %17393 = vmatprep.subr.msk.bf16.mxu0 %vm9301_vm5, %v20989_v18  ;;  %17386 = vmatprep.subr.msk.bf16.mxu1 %vm9301_vm5, %v9289_v62  ;;  %v9983_v57 = vsel %vm9301_vm5, %v9972_v54, 0  ;;  %v10464_v54 = vsel %vm2616_vm13, %v21128_v51, %v21126_v17  ;;  %v18672_v51 = vld [vmem:[%s22800_s3 + $0x28] sm:$0xff]   ;;  %vm22856_vm8 = vcmask 646144  }
 0xb25   :  { %11196 = vrot.lane.b32.xlu1 %v20989_v18, %s18819_s15  ;;  %v9321_v13 = vsel %vm9301_vm5, %v9296_v16, 0  ;;  %11194 = vrot.lane.b32.xlu0 %v20992_v47, %s18819_s15  ;;  %v21249_v18 = vcombine.low %v20945_v11, %v11434_v19  ;;  %v11435_v47 = vld [vmem:[#allocation3 + $0x3c] sm:$0x33] }
 0xb26   :  { %9456 = vmatpush1.bf16.msra.mxu1 %v9321_v13  ;;  %v21264_v10 = vcombine.low %v20948_v15, %v11435_v47 }
 0xb27   :  { %v21195_v63 = vpop.permute.xlu1 %11188  ;;  %17391 = vmatprep.subr.msk.bf16.mxu1 %vm9301_vm5, %v20979_v20  ;;  %v21199_v27 = vpop.permute.xlu0 %11186  ;;  %v21242_v20 = vcombine.high %v20945_v11, %v11434_v19  ;;  %v18669_v11 = vld [vmem:[%s22800_s3 + $0x10] sm:$0xff]  }
 0xb29   :  { %12740 = vrot.lane.b32.xlu1 %v21028_v21, %s18798_s19  ;;  %17387 = vmatmul.mubr.msk.bf16.vlgmr.msra.gmra.mrb[28].mxu1 %vm9297_vm2, %v18667_v38 }
 0xb2a   :  { %11198 = vrot.lane.b32.xlu0 %v20999_v46, %s18819_s15  ;;  %17390 = vmatmul.mubr.msk.bf16.vlgmr.msra.gmra.mrb[24].mxu0 %vm9297_vm2, %v18668_v25 }
 0xb2b   :  { %9617 = vmatpush1.bf16.msra.mxu0 %v9519_v34  ;;  %9574 = vmatpush1.bf16.msra.mxu1 %v9513_v30  ;;  %v21211_v39 = vpop.permute.xlu1 %11481  ;;  %v21215_v7 = vpop.permute.xlu0 %11479 }
 0xb2c   :  { %17395 = vmatprep.subr.msk.bf16.mxu1 %vm9301_vm5, %v21010_v26  ;;  %9605 = vmatprep.mubr.bf16.mxu1 %v22854_v50 }
 0xb2d   :  { %11200 = vrot.lane.b32.xlu1 %v21010_v26, %s18819_s15  ;;  %9648 = vmatprep.mubr.bf16.mxu0 %v22854_v50  ;;  %v9737_v26 = vsel %vm9301_vm5, %v9726_v44, 0 }
 0xb2e   :  { %12726 = vrot.lane.b32.xlu0 %v21020_v12, %s18798_s19 }
 0xb2f   :  { %v21226_v49 = vpop.permute.xlu1 %11728  ;;  %v21231_v41 = vpop.permute.xlu0 %11495 }
 0xb31   :  { %11485 = vrot.lane.b32.xlu1 %v21224_v24, %s18799_s20  ;;  %17392 = vmatmul.mubr.msk.bf16.vlgmr.msra.gmra.mrb[24].mxu1 %vm9297_vm2, %v18668_v25 }
 0xb32   :  { %11483 = vrot.lane.b32.xlu0 %v21229_v1, %s18799_s20  ;;  %17394 = vmatmul.mubr.msk.bf16.vlgmr.msra.gmra.mrb[28].mxu0 %vm9297_vm2, %v18668_v25 }
 0xb33   :  { %9660 = vmatpush1.bf16.msra.mxu1 %v9525_v48  ;;  %v9717_v40 = vpop.permute.xlu1 %9716  ;;  %9691 = vmatprep.mubr.bf16.mxu1 %v22854_v50  ;;  %v9715_v23 = vpop.permute.xlu0 %9714 }
 0xb34   :  { %9792 = vmatprep.mubr.bf16.mxu0 %v22854_v50  ;;  %v9727_v46 = vsel %vm1875_vm10, %v21102_v28, %v9715_v23  ;;  %v9728_v29 = vsel %vm1875_vm10, %v9715_v23, %v9717_v40  ;;  %v21275_v28 = vcombine.high %v20948_v15, %v11435_v47 }
 0xb35   :  { %11489 = vrot.lane.b32.xlu1 %v21242_v20, %s18799_s20  ;;  %17400 = vmatprep.subr.msk.bf16.mxu0 %vm9301_vm5, %v9727_v46  ;;  %v9743_v6 = vsel %vm9301_vm5, %v9728_v29, 0 }
 0xb36   :  { %11487 = vrot.lane.b32.xlu0 %v21249_v18, %s18799_s20  ;;  %9761 = vmatpush1.bf16.msra.mxu0 %v9737_v26 }
 0xb37   :  { %v9721_v31 = vpop.permute.xlu1 %9720  ;;  %v9719_v61 = vpop.permute.xlu0 %9718 }
 0xb38   :  { %v9729_v36 = vsel %vm1875_vm10, %v9717_v40, %v9719_v61  ;;  %v9730_v45 = vsel %vm1875_vm10, %v9719_v61, %v9721_v31  ;;  %v10218_v40 = vsel %vm2369_vm12, %v21120_v37, %v21118_v4  ;;  %v18671_v37 = vld [vmem:[%s22800_s3 + $0x20] sm:$0xff]  }
 0xb39   :  { %12975 = vrot.lane.b32.xlu1 %v21020_v12, %s18803_s24  ;;  %17396 = vmatmul.mubr.msk.bf16.vlgmr.msra.gmra.mrb[28].mxu1 %vm9297_vm2, %v18668_v25  ;;  %v9749_v3 = vsel %vm9301_vm5, %v9730_v45, 0  ;;  %v10229_v26 = vsel %vm9301_vm5, %v10218_v40, 0  ;;  %v10710_v40 = vsel %vm2863_vm14, %v21170_v8, %v21155_v42  ;;  %v18673_v8 = vld [vmem:[%s22800_s3 + $0x30] sm:$0xff]  }
 0xb3a   :  { %11491 = vrot.lane.b32.xlu0 %v21264_v10, %s18799_s20  ;;  %17401 = vmatmul.mubr.msk.bf16.vlgmr.msra.gmra.mrb[24].mxu0 %vm9297_vm2, %v18669_v11 }
 0xb3b   :  { %17402 = vmatprep.subr.msk.bf16.mxu1 %vm9301_vm5, %v9729_v36  ;;  %v21280_v14 = vpop.permute.xlu1 %11744  ;;  %9835 = vmatprep.mubr.bf16.mxu1 %v22854_v50  ;;  %v9723_v35 = vpop.permute.xlu0 %9722 }
 0xb3c   :  { %9804 = vmatpush1.bf16.msra.mxu1 %v9743_v6  ;;  %9878 = vmatprep.mubr.bf16.mxu0 %v22854_v50  ;;  %v9731_v15 = vsel %vm1875_vm10, %v9721_v31, %v9723_v35 }
 0xb3d   :  { %11493 = vrot.lane.b32.xlu1 %v21275_v28, %s18799_s20  ;;  %17404 = vmatprep.subr.msk.bf16.mxu0 %vm9301_vm5, %v9731_v15 }
 0xb3e   :  { %12973 = vrot.lane.b32.xlu0 %v21022_v52, %s18803_s24  ;;  %9847 = vmatpush1.bf16.msra.mxu0 %v9749_v3 }
 0xb3f   :  { %v9725_v0 = vpop.permute.xlu1 %9724  ;;  %v21292_v33 = vpop.permute.xlu0 %11730 }
 0xb40   :  { %v9732_v38 = vsel %vm1875_vm10, %v9723_v35, %v9725_v0  ;;  %17406 = vmatprep.subr.msk.bf16.mxu1 %vm9301_vm5, %v9725_v0  ;;  %vm22857_vm10 = vmmov %vm22856_vm8 }
 0xb41   :  { %11732 = vrot.lane.b32.xlu1 %v21229_v1, %s18796_s17  ;;  %17403 = vmatmul.mubr.msk.bf16.vlgmr.msra.gmra.mrb[24].mxu1 %vm9297_vm2, %v18669_v11  ;;  %v9755_v56 = vsel %vm9301_vm5, %v9732_v38, 0 }
 0xb42   :  { %12989 = vrot.lane.b32.xlu0 %v21028_v21, %s18803_s24  ;;  %17405 = vmatmul.mubr.msk.bf16.vlgmr.msra.gmra.mrb[28].mxu0 %vm9297_vm2, %v18669_v11 }
 0xb43   :  { %9890 = vmatpush1.bf16.msra.mxu1 %v9755_v56  ;;  %v9963_v55 = vpop.permute.xlu1 %9962  ;;  %9921 = vmatprep.mubr.bf16.mxu1 %v22854_v50  ;;  %v9961_v9 = vpop.permute.xlu0 %9960 }
 0xb44   :  { %10038 = vmatprep.mubr.bf16.mxu0 %v22854_v50  ;;  %v9973_v5 = vsel %vm2122_vm11, %v21110_v58, %v9961_v9  ;;  %v9974_v2 = vsel %vm2122_vm11, %v9961_v9, %v9963_v55 }
 0xb45   :  { %11736 = vrot.lane.b32.xlu1 %v21249_v18, %s18796_s17  ;;  %17411 = vmatprep.subr.msk.bf16.mxu0 %vm9301_vm5, %v9973_v5  ;;  %v9989_v16 = vsel %vm9301_vm5, %v9974_v2, 0 }
 0xb46   :  { %11734 = vrot.lane.b32.xlu0 %v21224_v24, %s18796_s17  ;;  %10007 = vmatpush1.bf16.msra.mxu0 %v9983_v57  ;;  %v10475_v57 = vsel %vm9301_vm5, %v10464_v54, 0  ;;  %v10956_v54 = vsel %vm3110_vm15, %v21184_v43, %v21165_v59  ;;  %v18674_v43 = vld [vmem:[%s22800_s3 + $0x38] sm:$0xff]  }
 0xb47   :  { %v9967_v32 = vpop.permute.xlu1 %9966  ;;  %v9965_v60 = vpop.permute.xlu0 %9964 }
 0xb48   :  { %v9975_v58 = vsel %vm2122_vm11, %v9963_v55, %v9965_v60  ;;  %v9976_v62 = vsel %vm2122_vm11, %v9965_v60, %v9967_v32 }
 0xb49   :  { %11740 = vrot.lane.b32.xlu1 %v21264_v10, %s18796_s17  ;;  %17407 = vmatmul.mubr.msk.bf16.vlgmr.msra.gmra.mrb[28].mxu1 %vm9297_vm2, %v18669_v11  ;;  %v9995_v30 = vsel %vm9301_vm5, %v9976_v62, 0 }
 0xb4a   :  { %11738 = vrot.lane.b32.xlu0 %v21242_v20, %s18796_s17  ;;  %17412 = vmatmul.mubr.msk.bf16.vlgmr.msra.gmra.mrb[24].mxu0 %vm9297_vm2, %v18670_v53 }
 0xb4b   :  { %17413 = vmatprep.subr.msk.bf16.mxu1 %vm9301_vm5, %v9975_v58  ;;  %v21329_v13 = vpop.permute.xlu1 %11979  ;;  %10081 = vmatprep.mubr.bf16.mxu1 %v22854_v50  ;;  %v9969_v25 = vpop.permute.xlu0 %9968 }
 0xb4c   :  { %10050 = vmatpush1.bf16.msra.mxu1 %v9989_v16  ;;  %10124 = vmatprep.mubr.bf16.mxu0 %v22854_v50  ;;  %v9977_v34 = vsel %vm2122_vm11, %v9967_v32, %v9969_v25 }
 0xb4d   :  { %13222 = vrot.lane.b32.xlu1 %v21022_v52, %s18800_s21  ;;  %17415 = vmatprep.subr.msk.bf16.mxu0 %vm9301_vm5, %v9977_v34 }
 0xb4e   :  { %11742 = vrot.lane.b32.xlu0 %v21275_v28, %s18796_s17  ;;  %10093 = vmatpush1.bf16.msra.mxu0 %v9995_v30 }
 0xb4f   :  { %v9971_v22 = vpop.permute.xlu1 %9970  ;;  %v21341_v48 = vpop.permute.xlu0 %11977 }
 0xb50   :  { %v9978_v19 = vsel %vm2122_vm11, %v9969_v25, %v9971_v22  ;;  %17417 = vmatprep.subr.msk.bf16.mxu1 %vm9301_vm5, %v9971_v22  ;;  %vm22858_vm11 = vmmov %vm22856_vm8 }
 0xb51   :  { %11983 = vrot.lane.b32.xlu1 %v21224_v24, %s18801_s22  ;;  %17414 = vmatmul.mubr.msk.bf16.vlgmr.msra.gmra.mrb[24].mxu1 %vm9297_vm2, %v18670_v53  ;;  %v10001_v44 = vsel %vm9301_vm5, %v9978_v19, 0 }
 0xb52   :  { %11981 = vrot.lane.b32.xlu0 %v21229_v1, %s18801_s22  ;;  %17416 = vmatmul.mubr.msk.bf16.vlgmr.msra.gmra.mrb[28].mxu0 %vm9297_vm2, %v18670_v53 }
 0xb53   :  { %10136 = vmatpush1.bf16.msra.mxu1 %v10001_v44  ;;  %v10209_v23 = vpop.permute.xlu1 %10208  ;;  %10167 = vmatprep.mubr.bf16.mxu1 %v22854_v50  ;;  %v10207_v47 = vpop.permute.xlu0 %10206 }
 0xb54   :  { %10284 = vmatprep.mubr.bf16.mxu0 %v22854_v50  ;;  %v10219_v46 = vsel %vm2369_vm12, %v21118_v4, %v10207_v47  ;;  %v10220_v31 = vsel %vm2369_vm12, %v10207_v47, %v10209_v23 }
 0xb55   :  { %11987 = vrot.lane.b32.xlu1 %v21242_v20, %s18801_s22  ;;  %17422 = vmatprep.subr.msk.bf16.mxu0 %vm9301_vm5, %v10219_v46  ;;  %v10235_v36 = vsel %vm9301_vm5, %v10220_v31, 0 }
 0xb56   :  { %11985 = vrot.lane.b32.xlu0 %v21249_v18, %s18801_s22  ;;  %10253 = vmatpush1.bf16.msra.mxu0 %v10229_v26  ;;  %v10721_v26 = vsel %vm9301_vm5, %v10710_v40, 0  ;;  %v11202_v40 = vsel %vm3357_vm0, %v21199_v27, %v21195_v63  ;;  %v18675_v27 = vld [vmem:[%s22800_s3 + $0x40] sm:$0xff]  }
 0xb57   :  { %v10213_v11 = vpop.permute.xlu1 %10212  ;;  %v10211_v29 = vpop.permute.xlu0 %10210 }
 0xb58   :  { %v10221_v4 = vsel %vm2369_vm12, %v10209_v23, %v10211_v29  ;;  %v10222_v61 = vsel %vm2369_vm12, %v10211_v29, %v10213_v11 }
 0xb59   :  { %13238 = vrot.lane.b32.xlu1 %v21028_v21, %s18800_s21  ;;  %17418 = vmatmul.mubr.msk.bf16.vlgmr.msra.gmra.mrb[28].mxu1 %vm9297_vm2, %v18670_v53  ;;  %v10241_v15 = vsel %vm9301_vm5, %v10222_v61, 0 }
 0xb5a   :  { %11989 = vrot.lane.b32.xlu0 %v21264_v10, %s18801_s22  ;;  %17423 = vmatmul.mubr.msk.bf16.vlgmr.msra.gmra.mrb[24].mxu0 %vm9297_vm2, %v18671_v37 }
 0xb5b   :  { %17424 = vmatprep.subr.msk.bf16.mxu1 %vm9301_vm5, %v10221_v4  ;;  %v21378_v45 = vpop.permute.xlu1 %12226  ;;  %10327 = vmatprep.mubr.bf16.mxu1 %v22854_v50  ;;  %v10215_v6 = vpop.permute.xlu0 %10214 }
 0xb5c   :  { %10296 = vmatpush1.bf16.msra.mxu1 %v10235_v36  ;;  %10370 = vmatprep.mubr.bf16.mxu0 %v22854_v50  ;;  %v10223_v35 = vsel %vm2369_vm12, %v10213_v11, %v10215_v6 }
 0xb5d   :  { %11991 = vrot.lane.b32.xlu1 %v21275_v28, %s18801_s22  ;;  %17426 = vmatprep.subr.msk.bf16.mxu0 %vm9301_vm5, %v10223_v35 }
 0xb5e   :  { %13224 = vrot.lane.b32.xlu0 %v21020_v12, %s18800_s21  ;;  %10339 = vmatpush1.bf16.msra.mxu0 %v10241_v15 }
 0xb5f   :  { %v10217_v3 = vpop.permute.xlu1 %10216  ;;  %v21390_v38 = vpop.permute.xlu0 %11993 }
 0xb60   :  { %v10224_v0 = vsel %vm2369_vm12, %v10215_v6, %v10217_v3  ;;  %17428 = vmatprep.subr.msk.bf16.mxu1 %vm9301_vm5, %v10217_v3  ;;  %vm22859_vm12 = vmmov %vm22856_vm8 }
 0xb61   :  { %12230 = vrot.lane.b32.xlu1 %v21229_v1, %s18797_s18  ;;  %17425 = vmatmul.mubr.msk.bf16.vlgmr.msra.gmra.mrb[24].mxu1 %vm9297_vm2, %v18671_v37  ;;  %v10247_v56 = vsel %vm9301_vm5, %v10224_v0, 0 }
 0xb62   :  { %13471 = vrot.lane.b32.xlu0 %v21022_v52, %s18807_s28  ;;  %17427 = vmatmul.mubr.msk.bf16.vlgmr.msra.gmra.mrb[28].mxu0 %vm9297_vm2, %v18671_v37 }
 0xb63   :  { %10382 = vmatpush1.bf16.msra.mxu1 %v10247_v56  ;;  %v10455_v55 = vpop.permute.xlu1 %10454  ;;  %10413 = vmatprep.mubr.bf16.mxu1 %v22854_v50  ;;  %v10453_v9 = vpop.permute.xlu0 %10452 }
 0xb64   :  { %10530 = vmatprep.mubr.bf16.mxu0 %v22854_v50  ;;  %v10465_v5 = vsel %vm2616_vm13, %v21126_v17, %v10453_v9  ;;  %v10466_v32 = vsel %vm2616_vm13, %v10453_v9, %v10455_v55 }
 0xb65   :  { %12234 = vrot.lane.b32.xlu1 %v21249_v18, %s18797_s18  ;;  %17433 = vmatprep.subr.msk.bf16.mxu0 %vm9301_vm5, %v10465_v5  ;;  %v10481_v58 = vsel %vm9301_vm5, %v10466_v32, 0 }
 0xb66   :  { %12232 = vrot.lane.b32.xlu0 %v21224_v24, %s18797_s18  ;;  %10499 = vmatpush1.bf16.msra.mxu0 %v10475_v57  ;;  %v10967_v57 = vsel %vm9301_vm5, %v10956_v54, 0  ;;  %v11497_v54 = vsel %vm22856_vm8, %v21215_v7, %v21211_v39  ;;  %v18676_v7 = vld [vmem:[%s22800_s3 + $0x48] sm:$0xff]  }
 0xb67   :  { %v10459_v53 = vpop.permute.xlu1 %10458  ;;  %v10457_v2 = vpop.permute.xlu0 %10456 }
 0xb68   :  { %v10467_v17 = vsel %vm2616_vm13, %v10455_v55, %v10457_v2  ;;  %v10468_v60 = vsel %vm2616_vm13, %v10457_v2, %v10459_v53 }
 0xb69   :  { %12238 = vrot.lane.b32.xlu1 %v21264_v10, %s18797_s18  ;;  %17429 = vmatmul.mubr.msk.bf16.vlgmr.msra.gmra.mrb[28].mxu1 %vm9297_vm2, %v18671_v37  ;;  %v10487_v34 = vsel %vm9301_vm5, %v10468_v60, 0 }
 0xb6a   :  { %12236 = vrot.lane.b32.xlu0 %v21242_v20, %s18797_s18  ;;  %17434 = vmatmul.mubr.msk.bf16.vlgmr.msra.gmra.mrb[24].mxu0 %vm9297_vm2, %v18672_v51 }
 0xb6b   :  { %17435 = vmatprep.subr.msk.bf16.mxu1 %vm9301_vm5, %v10467_v17  ;;  %v21427_v62 = vpop.permute.xlu1 %12242  ;;  %10573 = vmatprep.mubr.bf16.mxu1 %v22854_v50  ;;  %v10461_v16 = vpop.permute.xlu0 %10460 }
 0xb6c   :  { %10542 = vmatpush1.bf16.msra.mxu1 %v10481_v58  ;;  %10616 = vmatprep.mubr.bf16.mxu0 %v22854_v50  ;;  %v10469_v25 = vsel %vm2616_vm13, %v10459_v53, %v10461_v16 }
 0xb6d   :  { %13473 = vrot.lane.b32.xlu1 %v21020_v12, %s18807_s28  ;;  %17437 = vmatprep.subr.msk.bf16.mxu0 %vm9301_vm5, %v10469_v25 }
 0xb6e   :  { %12240 = vrot.lane.b32.xlu0 %v21275_v28, %s18797_s18  ;;  %10585 = vmatpush1.bf16.msra.mxu0 %v10487_v34 }
 0xb6f   :  { %v10463_v30 = vpop.permute.xlu1 %10462  ;;  %v21439_v19 = vpop.permute.xlu0 %12228 }
 0xb70   :  { %v10470_v22 = vsel %vm2616_vm13, %v10461_v16, %v10463_v30  ;;  %17439 = vmatprep.subr.msk.bf16.mxu1 %vm9301_vm5, %v10463_v30  ;;  %vm22860_vm13 = vmmov %vm22856_vm8 }
 0xb71   :  { %12481 = vrot.lane.b32.xlu1 %v21224_v24, %s18802_s23  ;;  %17436 = vmatmul.mubr.msk.bf16.vlgmr.msra.gmra.mrb[24].mxu1 %vm9297_vm2, %v18672_v51  ;;  %v10493_v44 = vsel %vm9301_vm5, %v10470_v22, 0 }
 0xb72   :  { %12479 = vrot.lane.b32.xlu0 %v21229_v1, %s18802_s23  ;;  %17438 = vmatmul.mubr.msk.bf16.vlgmr.msra.gmra.mrb[28].mxu0 %vm9297_vm2, %v18672_v51 }
 0xb73   :  { %10628 = vmatpush1.bf16.msra.mxu1 %v10493_v44  ;;  %v10701_v23 = vpop.permute.xlu1 %10700  ;;  %10659 = vmatprep.mubr.bf16.mxu1 %v22854_v50  ;;  %v10699_v47 = vpop.permute.xlu0 %10698 }
 0xb74   :  { %10776 = vmatprep.mubr.bf16.mxu0 %v22854_v50  ;;  %v10711_v46 = vsel %vm2863_vm14, %v21155_v42, %v10699_v47  ;;  %v10712_v11 = vsel %vm2863_vm14, %v10699_v47, %v10701_v23 }
 0xb75   :  { %12485 = vrot.lane.b32.xlu1 %v21242_v20, %s18802_s23  ;;  %17444 = vmatprep.subr.msk.bf16.mxu0 %vm9301_vm5, %v10711_v46  ;;  %v10727_v4 = vsel %vm9301_vm5, %v10712_v11, 0 }
 0xb76   :  { %12483 = vrot.lane.b32.xlu0 %v21249_v18, %s18802_s23  ;;  %10745 = vmatpush1.bf16.msra.mxu0 %v10721_v26  ;;  %v11213_v26 = vsel %vm9301_vm5, %v11202_v40, 0 }
 0xb77   :  { %v10705_v37 = vpop.permute.xlu1 %10704  ;;  %v10703_v31 = vpop.permute.xlu0 %10702 }
 0xb78   :  { %v10713_v42 = vsel %vm2863_vm14, %v10701_v23, %v10703_v31  ;;  %v10714_v29 = vsel %vm2863_vm14, %v10703_v31, %v10705_v37 }
 0xb79   :  { %13720 = vrot.lane.b32.xlu1 %v21022_v52, %s18805_s26  ;;  %17440 = vmatmul.mubr.msk.bf16.vlgmr.msra.gmra.mrb[28].mxu1 %vm9297_vm2, %v18672_v51  ;;  %v10733_v35 = vsel %vm9301_vm5, %v10714_v29, 0 }
 0xb7a   :  { %12487 = vrot.lane.b32.xlu0 %v21264_v10, %s18802_s23  ;;  %17445 = vmatmul.mubr.msk.bf16.vlgmr.msra.gmra.mrb[24].mxu0 %vm9297_vm2, %v18673_v8 }
 0xb7b   :  { %17446 = vmatprep.subr.msk.bf16.mxu1 %vm9301_vm5, %v10713_v42  ;;  %v21476_v61 = vpop.permute.xlu1 %12477  ;;  %10819 = vmatprep.mubr.bf16.mxu1 %v22854_v50  ;;  %v10707_v36 = vpop.permute.xlu0 %10706 }
 0xb7c   :  { %10788 = vmatpush1.bf16.msra.mxu1 %v10727_v4  ;;  %10862 = vmatprep.mubr.bf16.mxu0 %v22854_v50  ;;  %v10715_v6 = vsel %vm2863_vm14, %v10705_v37, %v10707_v36 }
 0xb7d   :  { %12489 = vrot.lane.b32.xlu1 %v21275_v28, %s18802_s23  ;;  %17448 = vmatprep.subr.msk.bf16.mxu0 %vm9301_vm5, %v10715_v6 }
 0xb7e   :  { %13487 = vrot.lane.b32.xlu0 %v21028_v21, %s18807_s28  ;;  %10831 = vmatpush1.bf16.msra.mxu0 %v10733_v35 }
 0xb7f   :  { %v10709_v15 = vpop.permute.xlu1 %10708  ;;  %v21488_v0 = vpop.permute.xlu0 %12475 }
 0xb80   :  { %v10716_v3 = vsel %vm2863_vm14, %v10707_v36, %v10709_v15  ;;  %17450 = vmatprep.subr.msk.bf16.mxu1 %vm9301_vm5, %v10709_v15  ;;  %vm22861_vm14 = vmmov %vm22856_vm8 }
 0xb81   :  { %12728 = vrot.lane.b32.xlu1 %v21229_v1, %s18798_s19  ;;  %17447 = vmatmul.mubr.msk.bf16.vlgmr.msra.gmra.mrb[24].mxu1 %vm9297_vm2, %v18673_v8  ;;  %v10739_v56 = vsel %vm9301_vm5, %v10716_v3, 0 }
 0xb82   :  { %13722 = vrot.lane.b32.xlu0 %v21020_v12, %s18805_s26  ;;  %17449 = vmatmul.mubr.msk.bf16.vlgmr.msra.gmra.mrb[28].mxu0 %vm9297_vm2, %v18673_v8 }
 0xb83   :  { %10874 = vmatpush1.bf16.msra.mxu1 %v10739_v56  ;;  %v10947_v55 = vpop.permute.xlu1 %10946  ;;  %10905 = vmatprep.mubr.bf16.mxu1 %v22854_v50  ;;  %v10945_v9 = vpop.permute.xlu0 %10944 }
 0xb84   :  { %11022 = vmatprep.mubr.bf16.mxu0 %v22854_v50  ;;  %v10957_v5 = vsel %vm3110_vm15, %v21165_v59, %v10945_v9  ;;  %v10958_v53 = vsel %vm3110_vm15, %v10945_v9, %v10947_v55 }
 0xb85   :  { %12732 = vrot.lane.b32.xlu1 %v21249_v18, %s18798_s19  ;;  %17455 = vmatprep.subr.msk.bf16.mxu0 %vm9301_vm5, %v10957_v5  ;;  %v10973_v17 = vsel %vm9301_vm5, %v10958_v53, 0 }
 0xb86   :  { %12730 = vrot.lane.b32.xlu0 %v21224_v24, %s18798_s19  ;;  %10991 = vmatpush1.bf16.msra.mxu0 %v10967_v57  ;;  %v11509_v57 = vsel %vm9301_vm5, %v11497_v54, 0 }
 0xb87   :  { %v10951_v51 = vpop.permute.xlu1 %10950  ;;  %v10949_v32 = vpop.permute.xlu0 %10948 }
 0xb88   :  { %v10959_v59 = vsel %vm3110_vm15, %v10947_v55, %v10949_v32  ;;  %v10960_v2 = vsel %vm3110_vm15, %v10949_v32, %v10951_v51 }
 0xb89   :  { %12736 = vrot.lane.b32.xlu1 %v21264_v10, %s18798_s19  ;;  %17451 = vmatmul.mubr.msk.bf16.vlgmr.msra.gmra.mrb[28].mxu1 %vm9297_vm2, %v18673_v8  ;;  %v10979_v25 = vsel %vm9301_vm5, %v10960_v2, 0 }
 0xb8a   :  { %12734 = vrot.lane.b32.xlu0 %v21242_v20, %s18798_s19  ;;  %17456 = vmatmul.mubr.msk.bf16.vlgmr.msra.gmra.mrb[24].mxu0 %vm9297_vm2, %v18674_v43 }
 0xb8b   :  { %17457 = vmatprep.subr.msk.bf16.mxu1 %vm9301_vm5, %v10959_v59  ;;  %v21525_v60 = vpop.permute.xlu1 %12724  ;;  %11065 = vmatprep.mubr.bf16.mxu1 %v22854_v50  ;;  %v10953_v58 = vpop.permute.xlu0 %10952 }
 0xb8c   :  { %11034 = vmatpush1.bf16.msra.mxu1 %v10973_v17  ;;  %11108 = vmatprep.mubr.bf16.mxu0 %v22854_v50  ;;  %v10961_v16 = vsel %vm3110_vm15, %v10951_v51, %v10953_v58 }
 0xb8d   :  { %13736 = vrot.lane.b32.xlu1 %v21028_v21, %s18805_s26  ;;  %17459 = vmatprep.subr.msk.bf16.mxu0 %vm9301_vm5, %v10961_v16 }
 0xb8e   :  { %12738 = vrot.lane.b32.xlu0 %v21275_v28, %s18798_s19  ;;  %11077 = vmatpush1.bf16.msra.mxu0 %v10979_v25 }
 0xb8f   :  { %v10955_v34 = vpop.permute.xlu1 %10954  ;;  %v21537_v22 = vpop.permute.xlu0 %12491 }
 0xb90   :  { %v10962_v30 = vsel %vm3110_vm15, %v10953_v58, %v10955_v34  ;;  %17461 = vmatprep.subr.msk.bf16.mxu1 %vm9301_vm5, %v10955_v34  ;;  %vm22862_vm15 = vmmov %vm22856_vm8 }
 0xb91   :  { %12979 = vrot.lane.b32.xlu1 %v21224_v24, %s18803_s24  ;;  %17458 = vmatmul.mubr.msk.bf16.vlgmr.msra.gmra.mrb[24].mxu1 %vm9297_vm2, %v18674_v43  ;;  %v10985_v44 = vsel %vm9301_vm5, %v10962_v30, 0 }
 0xb92   :  { %12977 = vrot.lane.b32.xlu0 %v21229_v1, %s18803_s24  ;;  %17460 = vmatmul.mubr.msk.bf16.vlgmr.msra.gmra.mrb[28].mxu0 %vm9297_vm2, %v18674_v43 }
 0xb93   :  { %11120 = vmatpush1.bf16.msra.mxu1 %v10985_v44  ;;  %v11193_v23 = vpop.permute.xlu1 %11192  ;;  %11151 = vmatprep.mubr.bf16.mxu1 %v22854_v50  ;;  %v11191_v47 = vpop.permute.xlu0 %11190 }
 0xb94   :  { %11268 = vmatprep.mubr.bf16.mxu0 %v22854_v50  ;;  %v11203_v46 = vsel %vm3357_vm0, %v21195_v63, %v11191_v47  ;;  %v11204_v37 = vsel %vm3357_vm0, %v11191_v47, %v11193_v23 }
 0xb95   :  { %12983 = vrot.lane.b32.xlu1 %v21242_v20, %s18803_s24  ;;  %17466 = vmatprep.subr.msk.bf16.mxu0 %vm9301_vm5, %v11203_v46  ;;  %v11219_v42 = vsel %vm9301_vm5, %v11204_v37, 0 }
 0xb96   :  { %12981 = vrot.lane.b32.xlu0 %v21249_v18, %s18803_s24  ;;  %11237 = vmatpush1.bf16.msra.mxu0 %v11213_v26  ;;  %v18677_v26 = vld [vmem:[%s22800_s3 + $0x50] sm:$0xff]  }
 0xb97   :  { %v11197_v8 = vpop.permute.xlu1 %11196  ;;  %v11195_v11 = vpop.permute.xlu0 %11194 }
 0xb98   :  { %v11205_v63 = vsel %vm3357_vm0, %v11193_v23, %v11195_v11  ;;  %v11206_v31 = vsel %vm3357_vm0, %v11195_v11, %v11197_v8  ;;  %v11746_v23 = vsel %vm22864_vm4, %v21226_v49, %v21292_v33 }
 0xb99   :  { %13971 = vrot.lane.b32.xlu1 %v21020_v12, %s18808_s29  ;;  %17462 = vmatmul.mubr.msk.bf16.vlgmr.msra.gmra.mrb[28].mxu1 %vm9297_vm2, %v18674_v43  ;;  %v11225_v6 = vsel %vm9301_vm5, %v11206_v31, 0  ;;  %v11758_v49 = vsel %vm9301_vm5, %v11746_v23, 0 }
 0xb9a   :  { %12985 = vrot.lane.b32.xlu0 %v21264_v10, %s18803_s24  ;;  %17467 = vmatmul.mubr.msk.bf16.vlgmr.msra.gmra.mrb[24].mxu0 %vm9297_vm2, %v18675_v27 }
 0xb9b   :  { %17468 = vmatprep.subr.msk.bf16.mxu1 %vm9301_vm5, %v11205_v63  ;;  %v21574_v29 = vpop.permute.xlu1 %12740  ;;  %11311 = vmatprep.mubr.bf16.mxu1 %v22854_v50 }
 0xb9c   :  { %11280 = vmatpush1.bf16.msra.mxu1 %v11219_v42  ;;  %v11199_v4 = vpop.permute.xlu0 %11198  ;;  %11354 = vmatprep.mubr.bf16.mxu0 %v22854_v50 }
 0xb9d   :  { %12987 = vrot.lane.b32.xlu1 %v21275_v28, %s18803_s24  ;;  %v11207_v36 = vsel %vm3357_vm0, %v11197_v8, %v11199_v4 }
 0xb9e   :  { %13969 = vrot.lane.b32.xlu0 %v21022_v52, %s18808_s29  ;;  %17470 = vmatprep.subr.msk.bf16.mxu0 %vm9301_vm5, %v11207_v36 }
 0xb9f   :  { %11323 = vmatpush1.bf16.msra.mxu0 %v11225_v6  ;;  %v11201_v35 = vpop.permute.xlu1 %11200 }
 0xba0   :  { %v11208_v15 = vsel %vm3357_vm0, %v11199_v4, %v11201_v35  ;;  %v21586_v3 = vpop.permute.xlu0 %12726  ;;  %17472 = vmatprep.subr.msk.bf16.mxu1 %vm9301_vm5, %v11201_v35  ;;  %vm22863_vm0 = vmmov %vm22856_vm8 }
 0xba1   :  { %13226 = vrot.lane.b32.xlu1 %v21229_v1, %s18800_s21  ;;  %17469 = vmatmul.mubr.msk.bf16.vlgmr.msra.gmra.mrb[24].mxu1 %vm9297_vm2, %v18675_v27  ;;  %v11231_v56 = vsel %vm9301_vm5, %v11208_v15, 0  ;;  %vm22870_vm8 = vmmov %vm22867_vm1 }
 0xba2   :  { %13985 = vrot.lane.b32.xlu0 %v21028_v21, %s18808_s29  ;;  %17471 = vmatmul.mubr.msk.bf16.vlgmr.msra.gmra.mrb[28].mxu0 %vm9297_vm2, %v18675_v27 }
 0xba3   :  { %11366 = vmatpush1.bf16.msra.mxu1 %v11231_v56  ;;  %v11486_v55 = vpop.permute.xlu1 %11485  ;;  %11397 = vmatprep.mubr.bf16.mxu1 %v22854_v50 }
 0xba4   :  { %v11484_v9 = vpop.permute.xlu0 %11483  ;;  %11564 = vmatprep.mubr.bf16.mxu0 %v22854_v50 }
 0xba5   :  { %13230 = vrot.lane.b32.xlu1 %v21249_v18, %s18800_s21  ;;  %v11498_v5 = vsel %vm22857_vm10, %v21211_v39, %v11484_v9  ;;  %v11499_v51 = vsel %vm22858_vm11, %v11484_v9, %v11486_v55  ;;  %vm22871_vm10 = vmmov %vm22867_vm1  ;;  %vm22872_vm11 = vcmask 629760  }
 0xba6   :  { %13228 = vrot.lane.b32.xlu0 %v21224_v24, %s18800_s21  ;;  %17486 = vmatprep.subr.msk.bf16.mxu0 %vm9301_vm5, %v11498_v5  ;;  %v11515_v59 = vsel %vm9301_vm5, %v11499_v51, 0 }
 0xba7   :  { %11533 = vmatpush1.bf16.msra.mxu0 %v11509_v57  ;;  %v11490_v43 = vpop.permute.xlu1 %11489 }
 0xba8   :  { %v11488_v53 = vpop.permute.xlu0 %11487 }
 0xba9   :  { %13234 = vrot.lane.b32.xlu1 %v21264_v10, %s18800_s21  ;;  %17473 = vmatmul.mubr.msk.bf16.vlgmr.msra.gmra.mrb[28].mxu1 %vm9297_vm2, %v18675_v27  ;;  %v11500_v39 = vsel %vm22859_vm12, %v11486_v55, %v11488_v53  ;;  %v11501_v32 = vsel %vm22860_vm13, %v11488_v53, %v11490_v43  ;;  %v11995_v55 = vsel %vm22872_vm11, %v21341_v48, %v21329_v13  ;;  %vm22873_vm12 = vmmov %vm22872_vm11  ;;  %v18678_v48 = vld [vmem:[%s22800_s3 + $0x58] sm:$0xff]  }
 0xbaa   :  { %13232 = vrot.lane.b32.xlu0 %v21242_v20, %s18800_s21  ;;  %17487 = vmatmul.mubr.msk.bf16.vlgmr.msra.gmra.mrb[24].mxu0 %vm9297_vm2, %v18676_v7  ;;  %v11521_v16 = vsel %vm9301_vm5, %v11501_v32, 0  ;;  %v12007_v57 = vsel %vm9301_vm5, %v11995_v55, 0  ;;  %vm22874_vm13 = vmmov %vm22872_vm11 }
 0xbab   :  { %17488 = vmatprep.subr.msk.bf16.mxu1 %vm9301_vm5, %v11500_v39  ;;  %v21623_v2 = vpop.permute.xlu1 %12975  ;;  %11607 = vmatprep.mubr.bf16.mxu1 %v22854_v50 }
 0xbac   :  { %11576 = vmatpush1.bf16.msra.mxu1 %v11515_v59  ;;  %v11492_v17 = vpop.permute.xlu0 %11491  ;;  %11650 = vmatprep.mubr.bf16.mxu0 %v22854_v50 }
 0xbad   :  { %14218 = vrot.lane.b32.xlu1 %v21022_v52, %s18806_s27  ;;  %v11502_v58 = vsel %vm22861_vm14, %v11490_v43, %v11492_v17  ;;  %vm22875_vm14 = vmmov %vm22872_vm11 }
 0xbae   :  { %13236 = vrot.lane.b32.xlu0 %v21275_v28, %s18800_s21  ;;  %17490 = vmatprep.subr.msk.bf16.mxu0 %vm9301_vm5, %v11502_v58 }
 0xbaf   :  { %11619 = vmatpush1.bf16.msra.mxu0 %v11521_v16  ;;  %v11494_v25 = vpop.permute.xlu1 %11493 }
 0xbb0   :  { %v11503_v34 = vsel %vm22862_vm15, %v11492_v17, %v11494_v25  ;;  %v21635_v30 = vpop.permute.xlu0 %12973  ;;  %v11504_v44 = vsel %vm22863_vm0, %v11494_v25, %v21231_v41  ;;  %vm22876_vm15 = vmmov %vm22872_vm11 }
 0xbb1   :  { %13477 = vrot.lane.b32.xlu1 %v21224_v24, %s18807_s28  ;;  %17489 = vmatmul.mubr.msk.bf16.vlgmr.msra.gmra.mrb[24].mxu1 %vm9297_vm2, %v18676_v7  ;;  %v11527_v40 = vsel %vm9301_vm5, %v11503_v34, 0  ;;  %vm22877_vm0 = vmmov %vm22872_vm11 }
 0xbb2   :  { %13475 = vrot.lane.b32.xlu0 %v21229_v1, %s18807_s28  ;;  %17491 = vmatmul.mubr.msk.bf16.vlgmr.msra.gmra.mrb[28].mxu0 %vm9297_vm2, %v18676_v7  ;;  %vm22878_vm4 = vmmov %vm22877_vm0 }
 0xbb3   :  { %17492 = vmatprep.subr.msk.bf16.mxu1 %vm9301_vm5, %v11504_v44  ;;  %v11733_v47 = vpop.permute.xlu1 %11732  ;;  %11693 = vmatprep.mubr.bf16.mxu1 %v22854_v50 }
 0xbb4   :  { %11662 = vmatpush1.bf16.msra.mxu1 %v11527_v40  ;;  %v21651_v41 = vpop.permute.xlu0 %12989  ;;  %v11747_v46 = vsel %vm22865_vm7, %v21292_v33, %v11733_v47  ;;  %11813 = vmatprep.mubr.bf16.mxu0 %v22854_v50  ;;  %vm22879_vm7 = vmmov %vm22877_vm0 }
 0xbb5   :  { %13481 = vrot.lane.b32.xlu1 %v21242_v20, %s18807_s28  ;;  %17497 = vmatprep.subr.msk.bf16.mxu0 %vm9301_vm5, %v11747_v46 }
 0xbb6   :  { %13479 = vrot.lane.b32.xlu0 %v21249_v18, %s18807_s28  ;;  %11782 = vmatpush1.bf16.msra.mxu0 %v11758_v49  ;;  %v18679_v49 = vld [vmem:[%s22800_s3 + $0x60] sm:$0xff]  }
 0xbb7   :  { %v11737_v27 = vpop.permute.xlu1 %11736 }
 0xbb8   :  { %v11735_v8 = vpop.permute.xlu0 %11734 }
 0xbb9   :  { %v11748_v33 = vsel %vm22866_vm9, %v11733_v47, %v11735_v8  ;;  %14234 = vrot.lane.b32.xlu1 %v21028_v21, %s18806_s27  ;;  %17493 = vmatmul.mubr.msk.bf16.vlgmr.msra.gmra.mrb[28].mxu1 %vm9297_vm2, %v18676_v7  ;;  %v11749_v37 = vsel %vm22867_vm1, %v11735_v8, %v11737_v27  ;;  %vm22880_vm9 = vcmask 588800  }
 0xbba   :  { %13483 = vrot.lane.b32.xlu0 %v21264_v10, %s18807_s28  ;;  %17498 = vmatmul.mubr.msk.bf16.vlgmr.msra.gmra.mrb[24].mxu0 %vm9297_vm2, %v18677_v26  ;;  %v11764_v11 = vsel %vm9301_vm5, %v11748_v33, 0  ;;  %v12244_v23 = vsel %vm22880_vm9, %v21378_v45, %v21439_v19  ;;  %vm22881_vm1 = vmmov %vm22880_vm9 }
 0xbbb   :  { %17499 = vmatprep.subr.msk.bf16.mxu1 %vm9301_vm5, %v11749_v37  ;;  %v11741_v63 = vpop.permute.xlu1 %11740  ;;  %11856 = vmatprep.mubr.bf16.mxu1 %v22854_v50  ;;  %v12256_v45 = vsel %vm9301_vm5, %v12244_v23, 0  ;;  %vm22886_vm11 = vmmov %vm22881_vm1 }
 0xbbc   :  { %11825 = vmatpush1.bf16.msra.mxu1 %v11764_v11  ;;  %v11739_v31 = vpop.permute.xlu0 %11738  ;;  %11899 = vmatprep.mubr.bf16.mxu0 %v22854_v50 }
 0xbbd   :  { %v11750_v42 = vsel %vm22868_vm6, %v11737_v27, %v11739_v31  ;;  %13485 = vrot.lane.b32.xlu1 %v21275_v28, %s18807_s28  ;;  %v11751_v4 = vsel %vm22869_vm3, %v11739_v31, %v11741_v63  ;;  %vm22882_vm6 = vmmov %vm22881_vm1 }
 0xbbe   :  { %14220 = vrot.lane.b32.xlu0 %v21020_v12, %s18806_s27  ;;  %17501 = vmatprep.subr.msk.bf16.mxu0 %vm9301_vm5, %v11751_v4  ;;  %v11770_v36 = vsel %vm9301_vm5, %v11750_v42, 0  ;;  %vm22883_vm3 = vmmov %vm22881_vm1 }
 0xbbf   :  { %11868 = vmatpush1.bf16.msra.mxu0 %v11770_v36  ;;  %v21685_v6 = vpop.permute.xlu1 %13222 }
 0xbc0   :  { %v11743_v35 = vpop.permute.xlu0 %11742 }
 0xbc1   :  { %v11752_v15 = vsel %vm22870_vm8, %v11741_v63, %v11743_v35  ;;  %13724 = vrot.lane.b32.xlu1 %v21229_v1, %s18805_s26  ;;  %17500 = vmatmul.mubr.msk.bf16.vlgmr.msra.gmra.mrb[24].mxu1 %vm9297_vm2, %v18677_v26  ;;  %v11753_v56 = vsel %vm22871_vm10, %v11743_v35, %v21280_v14  ;;  %vm22884_vm8 = vmmov %vm22881_vm1 }
 0xbc2   :  { %14467 = vrot.lane.b32.xlu0 %v21022_v52, %s18810_s6  ;;  %17502 = vmatmul.mubr.msk.bf16.vlgmr.msra.gmra.mrb[28].mxu0 %vm9297_vm2, %v18677_v26  ;;  %v11776_v54 = vsel %vm9301_vm5, %v11752_v15, 0  ;;  %vm22885_vm10 = vmmov %vm22881_vm1 }
 0xbc3   :  { %17503 = vmatprep.subr.msk.bf16.mxu1 %vm9301_vm5, %v11753_v56  ;;  %v11984_v9 = vpop.permute.xlu1 %11983  ;;  %11942 = vmatprep.mubr.bf16.mxu1 %v22854_v50 }
 0xbc4   :  { %11911 = vmatpush1.bf16.msra.mxu1 %v11776_v54  ;;  %v11982_v5 = vpop.permute.xlu0 %11981  ;;  %12062 = vmatprep.mubr.bf16.mxu0 %v22854_v50 }
 0xbc5   :  { %13728 = vrot.lane.b32.xlu1 %v21249_v18, %s18805_s26  ;;  %v11996_v14 = vsel %vm22873_vm12, %v21329_v13, %v11982_v5  ;;  %v11997_v43 = vsel %vm22874_vm13, %v11982_v5, %v11984_v9  ;;  %vm22887_vm12 = vmmov %vm22881_vm1  ;;  %vm22888_vm13 = vcmask 580608  }
 0xbc6   :  { %13726 = vrot.lane.b32.xlu0 %v21224_v24, %s18805_s26  ;;  %17508 = vmatprep.subr.msk.bf16.mxu0 %vm9301_vm5, %v11996_v14  ;;  %v12013_v39 = vsel %vm9301_vm5, %v11997_v43, 0  ;;  %v12493_v54 = vsel %vm22888_vm13, %v21488_v0, %v21476_v61  ;;  %v18680_v0 = vld [vmem:[%s22800_s3 + $0x68] sm:$0xff]  }
 0xbc7   :  { %12031 = vmatpush1.bf16.msra.mxu0 %v12007_v57  ;;  %v11988_v7 = vpop.permute.xlu1 %11987  ;;  %v12505_v5 = vsel %vm9301_vm5, %v12493_v54, 0 }
 0xbc8   :  { %v11986_v51 = vpop.permute.xlu0 %11985 }
 0xbc9   :  { %13732 = vrot.lane.b32.xlu1 %v21264_v10, %s18805_s26  ;;  %17504 = vmatmul.mubr.msk.bf16.vlgmr.msra.gmra.mrb[28].mxu1 %vm9297_vm2, %v18677_v26  ;;  %v11998_v13 = vsel %vm22875_vm14, %v11984_v9, %v11986_v51  ;;  %v11999_v53 = vsel %vm22876_vm15, %v11986_v51, %v11988_v7  ;;  %vm22889_vm14 = vmmov %vm22888_vm13 }
 0xbca   :  { %13730 = vrot.lane.b32.xlu0 %v21242_v20, %s18805_s26  ;;  %17509 = vmatmul.mubr.msk.bf16.vlgmr.msra.gmra.mrb[24].mxu0 %vm9297_vm2, %v18678_v48  ;;  %v12019_v58 = vsel %vm9301_vm5, %v11999_v53, 0  ;;  %vm22890_vm15 = vmmov %vm22888_vm13 }
 0xbcb   :  { %17510 = vmatprep.subr.msk.bf16.mxu1 %vm9301_vm5, %v11998_v13  ;;  %v21725_v32 = vpop.permute.xlu1 %13238  ;;  %12105 = vmatprep.mubr.bf16.mxu1 %v22854_v50 }
 0xbcc   :  { %12074 = vmatpush1.bf16.msra.mxu1 %v12013_v39  ;;  %v11990_v59 = vpop.permute.xlu0 %11989  ;;  %12148 = vmatprep.mubr.bf16.mxu0 %v22854_v50 }
 0xbcd   :  { %14469 = vrot.lane.b32.xlu1 %v21020_v12, %s18810_s6  ;;  %v12000_v17 = vsel %vm22877_vm0, %v11988_v7, %v11990_v59  ;;  %vm22891_vm0 = vmmov %vm22888_vm13 }
 0xbce   :  { %13734 = vrot.lane.b32.xlu0 %v21275_v28, %s18805_s26  ;;  %17512 = vmatprep.subr.msk.bf16.mxu0 %vm9301_vm5, %v12000_v17  ;;  %vm22894_vm9 = vmmov %vm22891_vm0 }
 0xbcf   :  { %12117 = vmatpush1.bf16.msra.mxu0 %v12019_v58  ;;  %v11992_v16 = vpop.permute.xlu1 %11991 }
 0xbd0   :  { %v12001_v25 = vsel %vm22878_vm4, %v11990_v59, %v11992_v16  ;;  %v21737_v34 = vpop.permute.xlu0 %13224  ;;  %v12002_v44 = vsel %vm22879_vm7, %v11992_v16, %v21390_v38  ;;  %vm22892_vm4 = vmmov %vm22891_vm0 }
 0xbd1   :  { %13975 = vrot.lane.b32.xlu1 %v21224_v24, %s18808_s29  ;;  %17511 = vmatmul.mubr.msk.bf16.vlgmr.msra.gmra.mrb[24].mxu1 %vm9297_vm2, %v18678_v48  ;;  %v12025_v40 = vsel %vm9301_vm5, %v12001_v25, 0  ;;  %vm22893_vm7 = vmmov %vm22891_vm0 }
 0xbd2   :  { %13973 = vrot.lane.b32.xlu0 %v21229_v1, %s18808_s29  ;;  %17513 = vmatmul.mubr.msk.bf16.vlgmr.msra.gmra.mrb[28].mxu0 %vm9297_vm2, %v18678_v48 }
 0xbd3   :  { %17514 = vmatprep.subr.msk.bf16.mxu1 %vm9301_vm5, %v12002_v44  ;;  %v12231_v47 = vpop.permute.xlu1 %12230  ;;  %12191 = vmatprep.mubr.bf16.mxu1 %v22854_v50 }
 0xbd4   :  { %12160 = vmatpush1.bf16.msra.mxu1 %v12025_v40  ;;  %v21753_v38 = vpop.permute.xlu0 %13471  ;;  %v12245_v46 = vsel %vm22881_vm1, %v21439_v19, %v12231_v47  ;;  %12311 = vmatprep.mubr.bf16.mxu0 %v22854_v50  ;;  %vm22895_vm1 = vmmov %vm22891_vm0 }
 0xbd5   :  { %13979 = vrot.lane.b32.xlu1 %v21242_v20, %s18808_s29  ;;  %17519 = vmatprep.subr.msk.bf16.mxu0 %vm9301_vm5, %v12245_v46 }
 0xbd6   :  { %13977 = vrot.lane.b32.xlu0 %v21249_v18, %s18808_s29  ;;  %12280 = vmatpush1.bf16.msra.mxu0 %v12256_v45 }
 0xbd7   :  { %v12235_v26 = vpop.permute.xlu1 %12234 }
 0xbd8   :  { %v12233_v27 = vpop.permute.xlu0 %12232 }
 0xbd9   :  { %v12246_v19 = vsel %vm22882_vm6, %v12231_v47, %v12233_v27  ;;  %14716 = vrot.lane.b32.xlu1 %v21022_v52, %s18809_s30  ;;  %17515 = vmatmul.mubr.msk.bf16.vlgmr.msra.gmra.mrb[28].mxu1 %vm9297_vm2, %v18678_v48  ;;  %v12247_v8 = vsel %vm22883_vm3, %v12233_v27, %v12235_v26  ;;  %vm22896_vm6 = vcmask 572416   ;;  %v18681_v47 = vld [vmem:[%s22800_s3 + $0x70] sm:$0xff]  }
 0xbda   :  { %13981 = vrot.lane.b32.xlu0 %v21264_v10, %s18808_s29  ;;  %17520 = vmatmul.mubr.msk.bf16.vlgmr.msra.gmra.mrb[24].mxu0 %vm9297_vm2, %v18679_v49  ;;  %v12262_v33 = vsel %vm9301_vm5, %v12246_v19, 0  ;;  %v12742_v44 = vsel %vm22896_vm6, %v21525_v60, %v21586_v3  ;;  %vm22897_vm3 = vmmov %vm22896_vm6 }
 0xbdb   :  { %17521 = vmatprep.subr.msk.bf16.mxu1 %vm9301_vm5, %v12247_v8  ;;  %v12239_v37 = vpop.permute.xlu1 %12238  ;;  %12354 = vmatprep.mubr.bf16.mxu1 %v22854_v50  ;;  %v12754_v60 = vsel %vm9301_vm5, %v12742_v44, 0  ;;  %vm22902_vm13 = vmmov %vm22897_vm3 }
 0xbdc   :  { %12323 = vmatpush1.bf16.msra.mxu1 %v12262_v33  ;;  %v12237_v11 = vpop.permute.xlu0 %12236  ;;  %12397 = vmatprep.mubr.bf16.mxu0 %v22854_v50 }
 0xbdd   :  { %v12248_v63 = vsel %vm22884_vm8, %v12235_v26, %v12237_v11  ;;  %13983 = vrot.lane.b32.xlu1 %v21275_v28, %s18808_s29  ;;  %v12249_v31 = vsel %vm22885_vm10, %v12237_v11, %v12239_v37  ;;  %vm22898_vm8 = vmmov %vm22897_vm3 }
 0xbde   :  { %14483 = vrot.lane.b32.xlu0 %v21028_v21, %s18810_s6  ;;  %17523 = vmatprep.subr.msk.bf16.mxu0 %vm9301_vm5, %v12249_v31  ;;  %v12268_v42 = vsel %vm9301_vm5, %v12248_v63, 0  ;;  %vm22899_vm10 = vmmov %vm22897_vm3 }
 0xbdf   :  { %12366 = vmatpush1.bf16.msra.mxu0 %v12268_v42  ;;  %v21787_v4 = vpop.permute.xlu1 %13473 }
 0xbe0   :  { %v12241_v36 = vpop.permute.xlu0 %12240 }
 0xbe1   :  { %v12250_v35 = vsel %vm22886_vm11, %v12239_v37, %v12241_v36  ;;  %14222 = vrot.lane.b32.xlu1 %v21229_v1, %s18806_s27  ;;  %17522 = vmatmul.mubr.msk.bf16.vlgmr.msra.gmra.mrb[24].mxu1 %vm9297_vm2, %v18679_v49  ;;  %v12251_v15 = vsel %vm22887_vm12, %v12241_v36, %v21427_v62  ;;  %vm22900_vm11 = vmmov %vm22897_vm3 }
 0xbe2   :  { %14718 = vrot.lane.b32.xlu0 %v21020_v12, %s18809_s30  ;;  %17524 = vmatmul.mubr.msk.bf16.vlgmr.msra.gmra.mrb[28].mxu0 %vm9297_vm2, %v18679_v49  ;;  %v12274_v56 = vsel %vm9301_vm5, %v12250_v35, 0  ;;  %vm22901_vm12 = vmmov %vm22897_vm3 }
 0xbe3   :  { %17525 = vmatprep.subr.msk.bf16.mxu1 %vm9301_vm5, %v12251_v15  ;;  %v12482_v55 = vpop.permute.xlu1 %12481  ;;  %12440 = vmatprep.mubr.bf16.mxu1 %v22854_v50 }
 0xbe4   :  { %12409 = vmatpush1.bf16.msra.mxu1 %v12274_v56  ;;  %v12480_v9 = vpop.permute.xlu0 %12479  ;;  %12560 = vmatprep.mubr.bf16.mxu0 %v22854_v50 }
 0xbe5   :  { %14226 = vrot.lane.b32.xlu1 %v21249_v18, %s18806_s27  ;;  %v12494_v62 = vsel %vm22889_vm14, %v21476_v61, %v12480_v9  ;;  %v12495_v57 = vsel %vm22890_vm15, %v12480_v9, %v12482_v55  ;;  %vm22903_vm14 = vmmov %vm22897_vm3  ;;  %vm22904_vm15 = vcmask 531456  }
 0xbe6   :  { %14224 = vrot.lane.b32.xlu0 %v21224_v24, %s18806_s27  ;;  %17530 = vmatprep.subr.msk.bf16.mxu0 %vm9301_vm5, %v12494_v62  ;;  %v12511_v43 = vsel %vm9301_vm5, %v12495_v57, 0  ;;  %v12991_v35 = vsel %vm22904_vm15, %v21635_v30, %v21623_v2  ;;  %v18682_v30 = vld [vmem:[%s22800_s3 + $0x78] sm:$0xff]  }
 0xbe7   :  { %12529 = vmatpush1.bf16.msra.mxu0 %v12505_v5  ;;  %v12486_v14 = vpop.permute.xlu1 %12485  ;;  %v13003_v54 = vsel %vm9301_vm5, %v12991_v35, 0 }
 0xbe8   :  { %v12484_v48 = vpop.permute.xlu0 %12483 }
 0xbe9   :  { %14230 = vrot.lane.b32.xlu1 %v21264_v10, %s18806_s27  ;;  %17526 = vmatmul.mubr.msk.bf16.vlgmr.msra.gmra.mrb[28].mxu1 %vm9297_vm2, %v18679_v49  ;;  %v12496_v61 = vsel %vm22891_vm0, %v12482_v55, %v12484_v48  ;;  %v12497_v7 = vsel %vm22892_vm4, %v12484_v48, %v12486_v14  ;;  %vm22905_vm0 = vmmov %vm22904_vm15 }
 0xbea   :  { %14228 = vrot.lane.b32.xlu0 %v21242_v20, %s18806_s27  ;;  %17531 = vmatmul.mubr.msk.bf16.vlgmr.msra.gmra.mrb[24].mxu0 %vm9297_vm2, %v18680_v0  ;;  %v12517_v39 = vsel %vm9301_vm5, %v12497_v7, 0  ;;  %vm22906_vm4 = vmmov %vm22905_vm0 }
 0xbeb   :  { %17532 = vmatprep.subr.msk.bf16.mxu1 %vm9301_vm5, %v12496_v61  ;;  %v21827_v51 = vpop.permute.xlu1 %13720  ;;  %12603 = vmatprep.mubr.bf16.mxu1 %v22854_v50  ;;  %vm22910_vm6 = vmmov %vm22905_vm0 }
 0xbec   :  { %12572 = vmatpush1.bf16.msra.mxu1 %v12511_v43  ;;  %v12488_v13 = vpop.permute.xlu0 %12487  ;;  %12646 = vmatprep.mubr.bf16.mxu0 %v22854_v50 }
 0xbed   :  { %14732 = vrot.lane.b32.xlu1 %v21028_v21, %s18809_s30  ;;  %v12498_v53 = vsel %vm22893_vm7, %v12486_v14, %v12488_v13  ;;  %vm22907_vm7 = vmmov %vm22905_vm0 }
 0xbee   :  { %14232 = vrot.lane.b32.xlu0 %v21275_v28, %s18806_s27  ;;  %17534 = vmatprep.subr.msk.bf16.mxu0 %vm9301_vm5, %v12498_v53 }
 0xbef   :  { %12615 = vmatpush1.bf16.msra.mxu0 %v12517_v39  ;;  %v12490_v59 = vpop.permute.xlu1 %12489 }
 0xbf0   :  { %v12499_v17 = vsel %vm22894_vm9, %v12488_v13, %v12490_v59  ;;  %v21839_v58 = vpop.permute.xlu0 %13487  ;;  %v12500_v16 = vsel %vm22895_vm1, %v12490_v59, %v21537_v22  ;;  %vm22908_vm9 = vmmov %vm22905_vm0 }
 0xbf1   :  { %14473 = vrot.lane.b32.xlu1 %v21224_v24, %s18810_s6  ;;  %17533 = vmatmul.mubr.msk.bf16.vlgmr.msra.gmra.mrb[24].mxu1 %vm9297_vm2, %v18680_v0  ;;  %v12523_v25 = vsel %vm9301_vm5, %v12499_v17, 0  ;;  %vm22909_vm1 = vmmov %vm22905_vm0 }
 0xbf2   :  { %14471 = vrot.lane.b32.xlu0 %v21229_v1, %s18810_s6  ;;  %17535 = vmatmul.mubr.msk.bf16.vlgmr.msra.gmra.mrb[28].mxu0 %vm9297_vm2, %v18680_v0 }
 0xbf3   :  { %17536 = vmatprep.subr.msk.bf16.mxu1 %vm9301_vm5, %v12500_v16  ;;  %v12729_v40 = vpop.permute.xlu1 %12728  ;;  %12689 = vmatprep.mubr.bf16.mxu1 %v22854_v50 }
 0xbf4   :  { %12658 = vmatpush1.bf16.msra.mxu1 %v12523_v25  ;;  %v21855_v22 = vpop.permute.xlu0 %13722  ;;  %v12743_v23 = vsel %vm22897_vm3, %v21586_v3, %v12729_v40  ;;  %12809 = vmatprep.mubr.bf16.mxu0 %v22854_v50  ;;  %vm22911_vm3 = vmmov %vm22905_vm0  ;;  %v18683_v25 = vld [vmem:[%s22800_s3 + $0x80] sm:$0xff]  }
 0xbf5   :  { %14477 = vrot.lane.b32.xlu1 %v21242_v20, %s18810_s6  ;;  %17541 = vmatprep.subr.msk.bf16.mxu0 %vm9301_vm5, %v12743_v23 }
 0xbf6   :  { %14475 = vrot.lane.b32.xlu0 %v21249_v18, %s18810_s6  ;;  %12778 = vmatpush1.bf16.msra.mxu0 %v12754_v60 }
 0xbf7   :  { %v12733_v46 = vpop.permute.xlu1 %12732 }
 0xbf8   :  { %v12731_v45 = vpop.permute.xlu0 %12730 }
 0xbf9   :  { %v12744_v3 = vsel %vm22898_vm8, %v12729_v40, %v12731_v45  ;;  %14967 = vrot.lane.b32.xlu1 %v21020_v12, %s18812_s8  ;;  %17537 = vmatmul.mubr.msk.bf16.vlgmr.msra.gmra.mrb[28].mxu1 %vm9297_vm2, %v18680_v0  ;;  %v12745_v49 = vsel %vm22899_vm10, %v12731_v45, %v12733_v46  ;;  %vm22912_vm8 = vcmask 523264  }
 0xbfa   :  { %14479 = vrot.lane.b32.xlu0 %v21264_v10, %s18810_s6  ;;  %17542 = vmatmul.mubr.msk.bf16.vlgmr.msra.gmra.mrb[24].mxu0 %vm9297_vm2, %v18681_v47  ;;  %v12760_v26 = vsel %vm9301_vm5, %v12744_v3, 0  ;;  %v13240_v59 = vsel %vm22912_vm8, %v21685_v6, %v21737_v34  ;;  %vm22913_vm10 = vmmov %vm22912_vm8 }
 0xbfb   :  { %17543 = vmatprep.subr.msk.bf16.mxu1 %vm9301_vm5, %v12745_v49  ;;  %v12737_v27 = vpop.permute.xlu1 %12736  ;;  %12852 = vmatprep.mubr.bf16.mxu1 %v22854_v50  ;;  %v13252_v6 = vsel %vm9301_vm5, %v13240_v59, 0  ;;  %vm22918_vm15 = vmmov %vm22912_vm8 }
 0xbfc   :  { %12821 = vmatpush1.bf16.msra.mxu1 %v12760_v26  ;;  %v12735_v19 = vpop.permute.xlu0 %12734  ;;  %12895 = vmatprep.mubr.bf16.mxu0 %v22854_v50 }
 0xbfd   :  { %v12746_v8 = vsel %vm22900_vm11, %v12733_v46, %v12735_v19  ;;  %14481 = vrot.lane.b32.xlu1 %v21275_v28, %s18810_s6  ;;  %v12747_v33 = vsel %vm22901_vm12, %v12735_v19, %v12737_v27  ;;  %vm22914_vm11 = vmmov %vm22912_vm8 }
 0xbfe   :  { %14965 = vrot.lane.b32.xlu0 %v21022_v52, %s18812_s8  ;;  %17545 = vmatprep.subr.msk.bf16.mxu0 %vm9301_vm5, %v12747_v33  ;;  %v12766_v37 = vsel %vm9301_vm5, %v12746_v8, 0  ;;  %vm22915_vm12 = vmmov %vm22912_vm8 }
 0xbff   :  { %12864 = vmatpush1.bf16.msra.mxu0 %v12766_v37  ;;  %v21889_v11 = vpop.permute.xlu1 %13736 }
 0xc00   :  { %v12739_v63 = vpop.permute.xlu0 %12738 }
 0xc01   :  { %v12748_v31 = vsel %vm22902_vm13, %v12737_v27, %v12739_v63  ;;  %14720 = vrot.lane.b32.xlu1 %v21229_v1, %s18809_s30  ;;  %17544 = vmatmul.mubr.msk.bf16.vlgmr.msra.gmra.mrb[24].mxu1 %vm9297_vm2, %v18681_v47  ;;  %v12749_v42 = vsel %vm22903_vm14, %v12739_v63, %v21574_v29  ;;  %vm22916_vm13 = vmmov %vm22912_vm8 }
 0xc02   :  { %14981 = vrot.lane.b32.xlu0 %v21028_v21, %s18812_s8  ;;  %17546 = vmatmul.mubr.msk.bf16.vlgmr.msra.gmra.mrb[28].mxu0 %vm9297_vm2, %v18681_v47  ;;  %v12772_v36 = vsel %vm9301_vm5, %v12748_v31, 0  ;;  %vm22917_vm14 = vmmov %vm22912_vm8 }
 0xc03   :  { %17547 = vmatprep.subr.msk.bf16.mxu1 %vm9301_vm5, %v12749_v42  ;;  %v12980_v15 = vpop.permute.xlu1 %12979  ;;  %12938 = vmatprep.mubr.bf16.mxu1 %v22854_v50  ;;  %v18684_v42 = vld [vmem:[%s22800_s3 + $0x88] sm:$0xff]  }
 0xc04   :  { %12907 = vmatpush1.bf16.msra.mxu1 %v12772_v36  ;;  %v12978_v56 = vpop.permute.xlu0 %12977  ;;  %13058 = vmatprep.mubr.bf16.mxu0 %v22854_v50 }
 0xc05   :  { %14724 = vrot.lane.b32.xlu1 %v21249_v18, %s18809_s30  ;;  %v12992_v29 = vsel %vm22905_vm0, %v21623_v2, %v12978_v56  ;;  %v12993_v9 = vsel %vm22906_vm4, %v12978_v56, %v12980_v15  ;;  %vm22919_vm0 = vmmov %vm22912_vm8  ;;  %vm22921_vm4 = vcmask 515072  }
 0xc06   :  { %14722 = vrot.lane.b32.xlu0 %v21224_v24, %s18809_s30  ;;  %17552 = vmatprep.subr.msk.bf16.mxu0 %vm9301_vm5, %v12992_v29  ;;  %v13009_v0 = vsel %vm9301_vm5, %v12993_v9, 0  ;;  %v13489_v37 = vsel %vm22921_vm4, %v21753_v38, %v21787_v4 }
 0xc07   :  { %13027 = vmatpush1.bf16.msra.mxu0 %v13003_v54  ;;  %v12984_v55 = vpop.permute.xlu1 %12983  ;;  %v13501_v38 = vsel %vm9301_vm5, %v13489_v37, 0 }
 0xc08   :  { %v12982_v62 = vpop.permute.xlu0 %12981 }
 0xc09   :  { %14728 = vrot.lane.b32.xlu1 %v21264_v10, %s18809_s30  ;;  %17548 = vmatmul.mubr.msk.bf16.vlgmr.msra.gmra.mrb[28].mxu1 %vm9297_vm2, %v18681_v47  ;;  %v12994_v2 = vsel %vm22907_vm7, %v12980_v15, %v12982_v62  ;;  %v12995_v5 = vsel %vm22908_vm9, %v12982_v62, %v12984_v55  ;;  %vm22922_vm7 = vmmov %vm22921_vm4 }
 0xc0a   :  { %14726 = vrot.lane.b32.xlu0 %v21242_v20, %s18809_s30  ;;  %17553 = vmatmul.mubr.msk.bf16.vlgmr.msra.gmra.mrb[24].mxu0 %vm9297_vm2, %v18682_v30  ;;  %v13015_v61 = vsel %vm9301_vm5, %v12995_v5, 0  ;;  %vm22923_vm9 = vmmov %vm22921_vm4 }
 0xc0b   :  { %17554 = vmatprep.subr.msk.bf16.mxu1 %vm9301_vm5, %v12994_v2  ;;  %v21929_v14 = vpop.permute.xlu1 %13971  ;;  %13101 = vmatprep.mubr.bf16.mxu1 %v22854_v50 }
 0xc0c   :  { %13070 = vmatpush1.bf16.msra.mxu1 %v13009_v0  ;;  %v12986_v57 = vpop.permute.xlu0 %12985  ;;  %13144 = vmatprep.mubr.bf16.mxu0 %v22854_v50 }
 0xc0d   :  { %15214 = vrot.lane.b32.xlu1 %v21022_v52, %s18811_s7  ;;  %v12996_v48 = vsel %vm22909_vm1, %v12984_v55, %v12986_v57  ;;  %vm22924_vm1 = vmmov %vm22921_vm4 }
 0xc0e   :  { %14730 = vrot.lane.b32.xlu0 %v21275_v28, %s18809_s30  ;;  %17556 = vmatprep.subr.msk.bf16.mxu0 %vm9301_vm5, %v12996_v48  ;;  %vm22927_vm8 = vmmov %vm22924_vm1 }
 0xc0f   :  { %13113 = vmatpush1.bf16.msra.mxu0 %v13015_v61  ;;  %v12988_v7 = vpop.permute.xlu1 %12987 }
 0xc10   :  { %v12997_v43 = vsel %vm22910_vm6, %v12986_v57, %v12988_v7  ;;  %v12998_v13 = vsel %vm22911_vm3, %v12988_v7, %v21651_v41  ;;  %v21943_v53 = vpop.permute.xlu0 %13969  ;;  %vm22925_vm6 = vmmov %vm22924_vm1 }
 0xc11   :  { %v13021_v39 = vsel %vm9301_vm5, %v12997_v43, 0  ;;  %14971 = vrot.lane.b32.xlu1 %v21224_v24, %s18812_s8  ;;  %17555 = vmatmul.mubr.msk.bf16.vlgmr.msra.gmra.mrb[24].mxu1 %vm9297_vm2, %v18682_v30  ;;  %vm22926_vm3 = vmmov %vm22924_vm1  ;;  %v18685_v43 = vld [vmem:[%s22800_s3 + $0x90] sm:$0xff]  }
 0xc12   :  { %14969 = vrot.lane.b32.xlu0 %v21229_v1, %s18812_s8  ;;  %17557 = vmatmul.mubr.msk.bf16.vlgmr.msra.gmra.mrb[28].mxu0 %vm9297_vm2, %v18682_v30 }
 0xc13   :  { %17558 = vmatprep.subr.msk.bf16.mxu1 %vm9301_vm5, %v12998_v13  ;;  %v13227_v41 = vpop.permute.xlu1 %13226  ;;  %13187 = vmatprep.mubr.bf16.mxu1 %v22854_v50 }
 0xc14   :  { %13156 = vmatpush1.bf16.msra.mxu1 %v13021_v39  ;;  %v13241_v17 = vsel %vm22913_vm10, %v21737_v34, %v13227_v41  ;;  %v21959_v16 = vpop.permute.xlu0 %13985  ;;  %13307 = vmatprep.mubr.bf16.mxu0 %v22854_v50  ;;  %vm22928_vm10 = vmmov %vm22924_vm1 }
 0xc15   :  { %14975 = vrot.lane.b32.xlu1 %v21242_v20, %s18812_s8  ;;  %17563 = vmatprep.subr.msk.bf16.mxu0 %vm9301_vm5, %v13241_v17 }
 0xc16   :  { %14973 = vrot.lane.b32.xlu0 %v21249_v18, %s18812_s8  ;;  %13276 = vmatpush1.bf16.msra.mxu0 %v13252_v6 }
 0xc17   :  { %v13231_v34 = vpop.permute.xlu1 %13230 }
 0xc18   :  { %v13229_v44 = vpop.permute.xlu0 %13228 }
 0xc19   :  { %v13242_v40 = vsel %vm22914_vm11, %v13227_v41, %v13229_v44  ;;  %v13243_v23 = vsel %vm22915_vm12, %v13229_v44, %v13231_v34  ;;  %15230 = vrot.lane.b32.xlu1 %v21028_v21, %s18811_s7  ;;  %17559 = vmatmul.mubr.msk.bf16.vlgmr.msra.gmra.mrb[28].mxu1 %vm9297_vm2, %v18682_v30  ;;  %vm22929_vm11 = vcmask 244736  }
 0xc1a   :  { %v13258_v60 = vsel %vm9301_vm5, %v13242_v40, 0  ;;  %14977 = vrot.lane.b32.xlu0 %v21264_v10, %s18812_s8  ;;  %17564 = vmatmul.mubr.msk.bf16.vlgmr.msra.gmra.mrb[24].mxu0 %vm9297_vm2, %v18683_v25  ;;  %v13738_v48 = vsel %vm22929_vm11, %v21827_v51, %v21855_v22  ;;  %vm22930_vm12 = vmmov %vm22929_vm11 }
 0xc1b   :  { %17565 = vmatprep.subr.msk.bf16.mxu1 %vm9301_vm5, %v13243_v23  ;;  %v13235_v47 = vpop.permute.xlu1 %13234  ;;  %13350 = vmatprep.mubr.bf16.mxu1 %v22854_v50  ;;  %v13750_v51 = vsel %vm9301_vm5, %v13738_v48, 0 }
 0xc1c   :  { %13319 = vmatpush1.bf16.msra.mxu1 %v13258_v60  ;;  %v13233_v46 = vpop.permute.xlu0 %13232  ;;  %13393 = vmatprep.mubr.bf16.mxu0 %v22854_v50 }
 0xc1d   :  { %v13244_v45 = vsel %vm22916_vm13, %v13231_v34, %v13233_v46  ;;  %v13245_v3 = vsel %vm22917_vm14, %v13233_v46, %v13235_v47  ;;  %14979 = vrot.lane.b32.xlu1 %v21275_v28, %s18812_s8  ;;  %s22920_s8 = smov 15   ;;  %vm22931_vm13 = vmmov %vm22929_vm11 }
 0xc1e   :  { %v13264_v49 = vsel %vm9301_vm5, %v13244_v45, 0  ;;  %15216 = vrot.lane.b32.xlu0 %v21020_v12, %s18811_s7  ;;  %17567 = vmatprep.subr.msk.bf16.mxu0 %vm9301_vm5, %v13245_v3  ;;  %vm22932_vm14 = vmmov %vm22929_vm11 }
 0xc1f   :  { %13362 = vmatpush1.bf16.msra.mxu0 %v13264_v49  ;;  %v21991_v26 = vpop.permute.xlu1 %14218 }
 0xc20   :  { %v13237_v27 = vpop.permute.xlu0 %13236 }
 0xc21   :  { %v13246_v19 = vsel %vm22918_vm15, %v13235_v47, %v13237_v27  ;;  %v13247_v8 = vsel %vm22919_vm0, %v13237_v27, %v21725_v32  ;;  %15218 = vrot.lane.b32.xlu1 %v21229_v1, %s18811_s7  ;;  %17566 = vmatmul.mubr.msk.bf16.vlgmr.msra.gmra.mrb[24].mxu1 %vm9297_vm2, %v18683_v25  ;;  %vm22933_vm15 = vmmov %vm22929_vm11 }
 0xc22   :  { %v13270_v33 = vsel %vm9301_vm5, %v13246_v19, 0  ;;  %15463 = vrot.lane.b32.xlu0 %v21022_v52, %s22920_s8  ;;  %17568 = vmatmul.mubr.msk.bf16.vlgmr.msra.gmra.mrb[28].mxu0 %vm9297_vm2, %v18683_v25  ;;  %vm22934_vm0 = vmmov %vm22929_vm11 }
 0xc23   :  { %17569 = vmatprep.subr.msk.bf16.mxu1 %vm9301_vm5, %v13247_v8  ;;  %v13478_v63 = vpop.permute.xlu1 %13477  ;;  %13436 = vmatprep.mubr.bf16.mxu1 %v22854_v50  ;;  %vm22935_vm4 = vmmov %vm22934_vm0 }
 0xc24   :  { %13405 = vmatpush1.bf16.msra.mxu1 %v13270_v33  ;;  %v13476_v32 = vpop.permute.xlu0 %13475  ;;  %13556 = vmatprep.mubr.bf16.mxu0 %v22854_v50 }
 0xc25   :  { %v13490_v31 = vsel %vm22922_vm7, %v21787_v4, %v13476_v32  ;;  %15222 = vrot.lane.b32.xlu1 %v21249_v18, %s18811_s7  ;;  %v13491_v35 = vsel %vm22923_vm9, %v13476_v32, %v13478_v63  ;;  %vm22936_vm7 = vmmov %vm22934_vm0  ;;  %vm22937_vm9 = vcmask 236544  }
 0xc26   :  { %15220 = vrot.lane.b32.xlu0 %v21224_v24, %s18811_s7  ;;  %17574 = vmatprep.subr.msk.bf16.mxu0 %vm9301_vm5, %v13490_v31  ;;  %v13507_v56 = vsel %vm9301_vm5, %v13491_v35, 0  ;;  %v13987_v46 = vsel %vm22937_vm9, %v21943_v53, %v21929_v14  ;;  %v18686_v53 = vld [vmem:[%s22800_s3 + $0x98] sm:$0xff]  }
 0xc27   :  { %13525 = vmatpush1.bf16.msra.mxu0 %v13501_v38  ;;  %v13482_v36 = vpop.permute.xlu1 %13481 }
 0xc28   :  { %v13480_v15 = vpop.permute.xlu0 %13479 }
 0xc29   :  { %v13492_v4 = vsel %vm22924_vm1, %v13478_v63, %v13480_v15  ;;  %15226 = vrot.lane.b32.xlu1 %v21264_v10, %s18811_s7  ;;  %17570 = vmatmul.mubr.msk.bf16.vlgmr.msra.gmra.mrb[28].mxu1 %vm9297_vm2, %v18683_v25  ;;  %v13493_v29 = vsel %vm22925_vm6, %v13480_v15, %v13482_v36  ;;  %vm22938_vm1 = vmmov %vm22937_vm9 }
 0xc2a   :  { %15224 = vrot.lane.b32.xlu0 %v21242_v20, %s18811_s7  ;;  %17575 = vmatmul.mubr.msk.bf16.vlgmr.msra.gmra.mrb[24].mxu0 %vm9297_vm2, %v18684_v42  ;;  %v13513_v9 = vsel %vm9301_vm5, %v13493_v29, 0  ;;  %vm22939_vm6 = vmmov %vm22938_vm1 }
 0xc2b   :  { %17576 = vmatprep.subr.msk.bf16.mxu1 %vm9301_vm5, %v13492_v4  ;;  %v22031_v54 = vpop.permute.xlu1 %14234  ;;  %13599 = vmatprep.mubr.bf16.mxu1 %v22854_v50  ;;  %vm22943_vm11 = vmmov %vm22938_vm1 }
 0xc2c   :  { %13568 = vmatpush1.bf16.msra.mxu1 %v13507_v56  ;;  %v13484_v30 = vpop.permute.xlu0 %13483  ;;  %13642 = vmatprep.mubr.bf16.mxu0 %v22854_v50 }
 0xc2d   :  { %v13494_v55 = vsel %vm22926_vm3, %v13482_v36, %v13484_v30  ;;  %15465 = vrot.lane.b32.xlu1 %v21020_v12, %s22920_s8  ;;  %vm22940_vm3 = vmmov %vm22938_vm1 }
 0xc2e   :  { %15228 = vrot.lane.b32.xlu0 %v21275_v28, %s18811_s7  ;;  %17578 = vmatprep.subr.msk.bf16.mxu0 %vm9301_vm5, %v13494_v55 }
 0xc2f   :  { %13611 = vmatpush1.bf16.msra.mxu0 %v13513_v9  ;;  %v13486_v62 = vpop.permute.xlu1 %13485 }
 0xc30   :  { %v13495_v2 = vsel %vm22927_vm8, %v13484_v30, %v13486_v62  ;;  %v13496_v5 = vsel %vm22928_vm10, %v13486_v62, %v21839_v58  ;;  %v22045_v0 = vpop.permute.xlu0 %14220  ;;  %vm22941_vm8 = vmmov %vm22938_vm1 }
 0xc31   :  { %v13519_v57 = vsel %vm9301_vm5, %v13495_v2, 0  ;;  %15469 = vrot.lane.b32.xlu1 %v21224_v24, %s22920_s8  ;;  %17577 = vmatmul.mubr.msk.bf16.vlgmr.msra.gmra.mrb[24].mxu1 %vm9297_vm2, %v18684_v42  ;;  %vm22942_vm10 = vmmov %vm22938_vm1 }
 0xc32   :  { %15467 = vrot.lane.b32.xlu0 %v21229_v1, %s22920_s8  ;;  %17579 = vmatmul.mubr.msk.bf16.vlgmr.msra.gmra.mrb[28].mxu0 %vm9297_vm2, %v18684_v42 }
 0xc33   :  { %17580 = vmatprep.subr.msk.bf16.mxu1 %vm9301_vm5, %v13496_v5  ;;  %v13725_v58 = vpop.permute.xlu1 %13724  ;;  %13685 = vmatprep.mubr.bf16.mxu1 %v22854_v50 }
 0xc34   :  { %13654 = vmatpush1.bf16.msra.mxu1 %v13519_v57  ;;  %v13739_v61 = vsel %vm22930_vm12, %v21855_v22, %v13725_v58  ;;  %v22061_v7 = vpop.permute.xlu0 %14467  ;;  %13805 = vmatprep.mubr.bf16.mxu0 %v22854_v50  ;;  %vm22944_vm12 = vmmov %vm22938_vm1 }
 0xc35   :  { %15473 = vrot.lane.b32.xlu1 %v21242_v20, %s22920_s8  ;;  %17585 = vmatprep.subr.msk.bf16.mxu0 %vm9301_vm5, %v13739_v61 }
 0xc36   :  { %15471 = vrot.lane.b32.xlu0 %v21249_v18, %s22920_s8  ;;  %13774 = vmatpush1.bf16.msra.mxu0 %v13750_v51 }
 0xc37   :  { %v13729_v22 = vpop.permute.xlu1 %13728 }
 0xc38   :  { %v13727_v13 = vpop.permute.xlu0 %13726 }
 0xc39   :  { %v13740_v39 = vsel %vm22931_vm13, %v13725_v58, %v13727_v13  ;;  %v13741_v59 = vsel %vm22932_vm14, %v13727_v13, %v13729_v22  ;;  %15712 = vrot.lane.b32.xlu1 %v21022_v52, %s18821_s14  ;;  %17581 = vmatmul.mubr.msk.bf16.vlgmr.msra.gmra.mrb[28].mxu1 %vm9297_vm2, %v18684_v42  ;;  %vm22945_vm13 = vcmask 228352  }
 0xc3a   :  { %v13756_v41 = vsel %vm9301_vm5, %v13740_v39, 0  ;;  %15475 = vrot.lane.b32.xlu0 %v21264_v10, %s22920_s8  ;;  %17586 = vmatmul.mubr.msk.bf16.vlgmr.msra.gmra.mrb[24].mxu0 %vm9297_vm2, %v18685_v43  ;;  %vm22946_vm14 = vmmov %vm22945_vm13 }
 0xc3b   :  { %17587 = vmatprep.subr.msk.bf16.mxu1 %vm9301_vm5, %v13741_v59  ;;  %v13733_v17 = vpop.permute.xlu1 %13732  ;;  %13848 = vmatprep.mubr.bf16.mxu1 %v22854_v50 }
 0xc3c   :  { %13817 = vmatpush1.bf16.msra.mxu1 %v13756_v41  ;;  %v13731_v6 = vpop.permute.xlu0 %13730  ;;  %13891 = vmatprep.mubr.bf16.mxu0 %v22854_v50 }
 0xc3d   :  { %v13742_v52 = vsel %vm22933_vm15, %v13729_v22, %v13731_v6  ;;  %v13743_v25 = vsel %vm22934_vm0, %v13731_v6, %v13733_v17  ;;  %15477 = vrot.lane.b32.xlu1 %v21275_v28, %s22920_s8  ;;  %vm22947_vm15 = vmmov %vm22945_vm13  ;;  %v18688_v22 = vld [vmem:[%s22800_s3 + $0xa8] sm:$0xff]  }
 0xc3e   :  { %v13762_v34 = vsel %vm9301_vm5, %v13742_v52, 0  ;;  %15479 = vrot.lane.b32.xlu0 %v21028_v21, %s22920_s8  ;;  %17589 = vmatprep.subr.msk.bf16.mxu0 %vm9301_vm5, %v13743_v25  ;;  %vm22948_vm0 = vmmov %vm22945_vm13 }
 0xc3f   :  { %13860 = vmatpush1.bf16.msra.mxu0 %v13762_v34  ;;  %v22093_v44 = vpop.permute.xlu1 %14469  ;;  %vm22951_vm9 = vmmov %vm22948_vm0 }
 0xc40   :  { %v13735_v40 = vpop.permute.xlu0 %13734 }
 0xc41   :  { %v13744_v23 = vsel %vm22935_vm4, %v13733_v17, %v13735_v40  ;;  %v13745_v60 = vsel %vm22936_vm7, %v13735_v40, %v21889_v11  ;;  %15716 = vrot.lane.b32.xlu1 %v21229_v1, %s18821_s14  ;;  %17588 = vmatmul.mubr.msk.bf16.vlgmr.msra.gmra.mrb[24].mxu1 %vm9297_vm2, %v18685_v43  ;;  %vm22949_vm4 = vmmov %vm22948_vm0 }
 0xc42   :  { %v13768_v47 = vsel %vm9301_vm5, %v13744_v23, 0  ;;  %15714 = vrot.lane.b32.xlu0 %v21020_v12, %s18821_s14  ;;  %17590 = vmatmul.mubr.msk.bf16.vlgmr.msra.gmra.mrb[28].mxu0 %vm9297_vm2, %v18685_v43  ;;  %v13999_v12 = vsel %vm9301_vm5, %v13987_v46, 0  ;;  %vm22950_vm7 = vmmov %vm22948_vm0 }
 0xc43   :  { %17591 = vmatprep.subr.msk.bf16.mxu1 %vm9301_vm5, %v13745_v60  ;;  %v13976_v45 = vpop.permute.xlu1 %13975  ;;  %13934 = vmatprep.mubr.bf16.mxu1 %v22854_v50 }
 0xc44   :  { %13903 = vmatpush1.bf16.msra.mxu1 %v13768_v47  ;;  %v13974_v1 = vpop.permute.xlu0 %13973  ;;  %14054 = vmatprep.mubr.bf16.mxu0 %v22854_v50 }
 0xc45   :  { %v13988_v11 = vsel %vm22938_vm1, %v21929_v14, %v13974_v1  ;;  %15720 = vrot.lane.b32.xlu1 %v21249_v18, %s18821_s14  ;;  %v13989_v49 = vsel %vm22939_vm6, %v13974_v1, %v13976_v45  ;;  %vm22952_vm1 = vmmov %vm22948_vm0  ;;  %vm22953_vm6 = vcmask 187392  }
 0xc46   :  { %15718 = vrot.lane.b32.xlu0 %v21224_v24, %s18821_s14  ;;  %17596 = vmatprep.subr.msk.bf16.mxu0 %vm9301_vm5, %v13988_v11  ;;  %v14005_v24 = vsel %vm9301_vm5, %v13989_v49, 0  ;;  %v14485_v58 = vsel %vm22953_vm6, %v22061_v7, %v22093_v44 }
 0xc47   :  { %14023 = vmatpush1.bf16.msra.mxu0 %v13999_v12  ;;  %v13980_v3 = vpop.permute.xlu1 %13979 }
 0xc48   :  { %v13978_v27 = vpop.permute.xlu0 %13977 }
 0xc49   :  { %v13990_v14 = vsel %vm22940_vm3, %v13976_v45, %v13978_v27  ;;  %15724 = vrot.lane.b32.xlu1 %v21264_v10, %s18821_s14  ;;  %17592 = vmatmul.mubr.msk.bf16.vlgmr.msra.gmra.mrb[28].mxu1 %vm9297_vm2, %v18685_v43  ;;  %v13991_v18 = vsel %vm22941_vm8, %v13978_v27, %v13980_v3  ;;  %vm22954_vm3 = vmmov %vm22953_vm6  ;;  %v14497_v43 = vsel %vm9301_vm5, %v14485_v58, 0 }
 0xc4a   :  { %15722 = vrot.lane.b32.xlu0 %v21242_v20, %s18821_s14  ;;  %17597 = vmatmul.mubr.msk.bf16.vlgmr.msra.gmra.mrb[24].mxu0 %vm9297_vm2, %v18686_v53  ;;  %v14011_v20 = vsel %vm9301_vm5, %v13991_v18, 0  ;;  %vm22955_vm8 = vmmov %vm22954_vm3 }
 0xc4b   :  { %17598 = vmatprep.subr.msk.bf16.mxu1 %vm9301_vm5, %v13990_v14  ;;  %v22133_v19 = vpop.permute.xlu1 %14716  ;;  %14097 = vmatprep.mubr.bf16.mxu1 %v22854_v50 }
 0xc4c   :  { %14066 = vmatpush1.bf16.msra.mxu1 %v14005_v24  ;;  %v13982_v8 = vpop.permute.xlu0 %13981  ;;  %14140 = vmatprep.mubr.bf16.mxu0 %v22854_v50 }
 0xc4d   :  { %v13992_v10 = vsel %vm22942_vm10, %v13980_v3, %v13982_v8  ;;  %15728 = vrot.lane.b32.xlu1 %v21028_v21, %s18821_s14  ;;  %v14236_v21 = vsel %vm22945_vm13, %v21991_v26, %v22045_v0  ;;  %v18687_v26 = vld [vmem:[%s22800_s3 + $0xa0] sm:$0xff]   ;;  %vm22956_vm10 = vmmov %vm22954_vm3 }
 0xc4e   :  { %15726 = vrot.lane.b32.xlu0 %v21275_v28, %s18821_s14  ;;  %17600 = vmatprep.subr.msk.bf16.mxu0 %vm9301_vm5, %v13992_v10  ;;  %v14248_v42 = vsel %vm9301_vm5, %v14236_v21, 0  ;;  %vm22959_vm13 = vmmov %vm22954_vm3 }
 0xc4f   :  { %14109 = vmatpush1.bf16.msra.mxu0 %v14011_v20  ;;  %v13984_v33 = vpop.permute.xlu1 %13983 }
 0xc50   :  { %v13993_v37 = vsel %vm22943_vm11, %v13982_v8, %v13984_v33  ;;  %v13994_v63 = vsel %vm22944_vm12, %v13984_v33, %v21959_v16  ;;  %v22147_v32 = vpop.permute.xlu0 %14483  ;;  %vm22957_vm11 = vmmov %vm22954_vm3 }
 0xc51   :  { %v14017_v31 = vsel %vm9301_vm5, %v13993_v37, 0  ;;  %17599 = vmatmul.mubr.msk.bf16.vlgmr.msra.gmra.mrb[24].mxu1 %vm9297_vm2, %v18686_v53  ;;  %17602 = vmatprep.subr.msk.bf16.mxu1 %vm9301_vm5, %v13994_v63  ;;  %vm22958_vm12 = vmmov %vm22954_vm3 }
 0xc52   :  { %17601 = vmatmul.mubr.msk.bf16.vlgmr.msra.gmra.mrb[28].mxu0 %vm9297_vm2, %v18686_v53  ;;  %14152 = vmatpush1.bf16.msra.mxu1 %v14017_v31 }
 0xc53   :  { %v14223_v28 = vpop.permute.xlu1 %14222  ;;  %14183 = vmatprep.mubr.bf16.mxu1 %v22854_v50  ;;  %14303 = vmatprep.mubr.bf16.mxu0 %v22854_v50 }
 0xc54   :  { %v14237_v16 = vsel %vm22946_vm14, %v22045_v0, %v14223_v28  ;;  %v22160_v38 = vpop.permute.xlu0 %14718  ;;  %vm22960_vm14 = vmmov %vm22954_vm3 }
 0xc55   :  { %17607 = vmatprep.subr.msk.bf16.mxu0 %vm9301_vm5, %v14237_v16 }
 0xc56   :  { %14272 = vmatpush1.bf16.msra.mxu0 %v14248_v42 }
 0xc57   :  { %v14227_v36 = vpop.permute.xlu1 %14226 }
 0xc58   :  { %v14225_v35 = vpop.permute.xlu0 %14224 }
 0xc59   :  { %v14238_v15 = vsel %vm22947_vm15, %v14223_v28, %v14225_v35  ;;  %v14239_v4 = vsel %vm22948_vm0, %v14225_v35, %v14227_v36  ;;  %17603 = vmatmul.mubr.msk.bf16.vlgmr.msra.gmra.mrb[28].mxu1 %vm9297_vm2, %v18686_v53  ;;  %vm22961_vm15 = vcmask 179200   ;;  %v18689_v53 = vld [vmem:[%s22800_s3 + $0xb0] sm:$0xff]  }
 0xc5a   :  { %v14254_v56 = vsel %vm9301_vm5, %v14238_v15, 0  ;;  %17608 = vmatmul.mubr.msk.bf16.vlgmr.msra.gmra.mrb[24].mxu0 %vm9297_vm2, %v18687_v26  ;;  %17609 = vmatprep.subr.msk.bf16.mxu1 %vm9301_vm5, %v14239_v4  ;;  %v14734_v46 = vsel %vm22961_vm15, %v22133_v19, %v22160_v38  ;;  %vm22962_vm0 = vmmov %vm22961_vm15 }
 0xc5b   :  { %14315 = vmatpush1.bf16.msra.mxu1 %v14254_v56  ;;  %v14231_v29 = vpop.permute.xlu1 %14230  ;;  %14346 = vmatprep.mubr.bf16.mxu1 %v22854_v50  ;;  %v14746_v12 = vsel %vm9301_vm5, %v14734_v46, 0  ;;  %vm22967_vm6 = vmmov %vm22962_vm0 }
 0xc5c   :  { %v14229_v30 = vpop.permute.xlu0 %14228  ;;  %14389 = vmatprep.mubr.bf16.mxu0 %v22854_v50 }
 0xc5d   :  { %v14240_v55 = vsel %vm22949_vm4, %v14227_v36, %v14229_v30  ;;  %v14241_v9 = vsel %vm22950_vm7, %v14229_v30, %v14231_v29  ;;  %vm22963_vm4 = vmmov %vm22962_vm0 }
 0xc5e   :  { %v14260_v62 = vsel %vm9301_vm5, %v14240_v55, 0  ;;  %17611 = vmatprep.subr.msk.bf16.mxu0 %vm9301_vm5, %v14241_v9  ;;  %vm22964_vm7 = vmmov %vm22962_vm0 }
 0xc5f   :  { %14358 = vmatpush1.bf16.msra.mxu0 %v14260_v62  ;;  %v22179_v2 = vpop.permute.xlu1 %14732 }
 0xc60   :  { %v14233_v5 = vpop.permute.xlu0 %14232 }
 0xc61   :  { %v14242_v0 = vsel %vm22951_vm9, %v14231_v29, %v14233_v5  ;;  %v14243_v57 = vsel %vm22952_vm1, %v14233_v5, %v22031_v54  ;;  %17610 = vmatmul.mubr.msk.bf16.vlgmr.msra.gmra.mrb[24].mxu1 %vm9297_vm2, %v18687_v26  ;;  %vm22965_vm9 = vmmov %vm22962_vm0 }
 0xc62   :  { %v14266_v48 = vsel %vm9301_vm5, %v14242_v0, 0  ;;  %17612 = vmatmul.mubr.msk.bf16.vlgmr.msra.gmra.mrb[28].mxu0 %vm9297_vm2, %v18687_v26  ;;  %17613 = vmatprep.subr.msk.bf16.mxu1 %vm9301_vm5, %v14243_v57  ;;  %vm22966_vm1 = vmmov %vm22962_vm0 }
 0xc63   :  { %14401 = vmatpush1.bf16.msra.mxu1 %v14266_v48  ;;  %v14474_v61 = vpop.permute.xlu1 %14473  ;;  %14432 = vmatprep.mubr.bf16.mxu1 %v22854_v50 }
 0xc64   :  { %v14472_v51 = vpop.permute.xlu0 %14471  ;;  %14552 = vmatprep.mubr.bf16.mxu0 %v22854_v50 }
 0xc65   :  { %v14486_v54 = vsel %vm22954_vm3, %v22093_v44, %v14472_v51  ;;  %v14487_v7 = vsel %vm22955_vm8, %v14472_v51, %v14474_v61  ;;  %vm22968_vm3 = vmmov %vm22962_vm0  ;;  %vm22969_vm8 = vcmask 171008  }
 0xc66   :  { %17618 = vmatprep.subr.msk.bf16.mxu0 %vm9301_vm5, %v14486_v54  ;;  %v14503_v41 = vsel %vm9301_vm5, %v14487_v7, 0  ;;  %vm22975_vm15 = vmmov %vm22969_vm8 }
 0xc67   :  { %14521 = vmatpush1.bf16.msra.mxu0 %v14497_v43  ;;  %v14478_v13 = vpop.permute.xlu1 %14477 }
 0xc68   :  { %v14476_v39 = vpop.permute.xlu0 %14475 }
 0xc69   :  { %v14488_v59 = vsel %vm22956_vm10, %v14474_v61, %v14476_v39  ;;  %17614 = vmatmul.mubr.msk.bf16.vlgmr.msra.gmra.mrb[28].mxu1 %vm9297_vm2, %v18687_v26  ;;  %v14489_v17 = vsel %vm22957_vm11, %v14476_v39, %v14478_v13  ;;  %vm22970_vm10 = vmmov %vm22969_vm8  ;;  %v18690_v26 = vld [vmem:[%s22800_s3 + $0xb8] sm:$0xff]  }
 0xc6a   :  { %17619 = vmatmul.mubr.msk.bf16.vlgmr.msra.gmra.mrb[24].mxu0 %vm9297_vm2, %v18688_v22  ;;  %17620 = vmatprep.subr.msk.bf16.mxu1 %vm9301_vm5, %v14488_v59  ;;  %v14509_v34 = vsel %vm9301_vm5, %v14489_v17, 0  ;;  %vm22971_vm11 = vmmov %vm22969_vm8 }
 0xc6b   :  { %14564 = vmatpush1.bf16.msra.mxu1 %v14503_v41  ;;  %v14968_v6 = vpop.permute.xlu1 %14967  ;;  %14595 = vmatprep.mubr.bf16.mxu1 %v22854_v50 }
 0xc6c   :  { %v14480_v52 = vpop.permute.xlu0 %14479  ;;  %14638 = vmatprep.mubr.bf16.mxu0 %v22854_v50 }
 0xc6d   :  { %v14490_v25 = vsel %vm22958_vm12, %v14478_v13, %v14480_v52  ;;  %vm22972_vm12 = vmmov %vm22969_vm8 }
 0xc6e   :  { %17622 = vmatprep.subr.msk.bf16.mxu0 %vm9301_vm5, %v14490_v25 }
 0xc6f   :  { %14607 = vmatpush1.bf16.msra.mxu0 %v14509_v34  ;;  %v14482_v44 = vpop.permute.xlu1 %14481 }
 0xc70   :  { %v14491_v40 = vsel %vm22959_vm13, %v14480_v52, %v14482_v44  ;;  %v14492_v23 = vsel %vm22960_vm14, %v14482_v44, %v22147_v32  ;;  %v14966_v60 = vpop.permute.xlu0 %14965  ;;  %vm22973_vm13 = vmmov %vm22969_vm8 }
 0xc71   :  { %v14515_v47 = vsel %vm9301_vm5, %v14491_v40, 0  ;;  %17621 = vmatmul.mubr.msk.bf16.vlgmr.msra.gmra.mrb[24].mxu1 %vm9297_vm2, %v18688_v22  ;;  %17624 = vmatprep.subr.msk.bf16.mxu1 %vm9301_vm5, %v14492_v23  ;;  %v14983_v21 = vsel %vm22969_vm8, %v14966_v60, %v14968_v6  ;;  %vm22974_vm14 = vmmov %vm22969_vm8 }
 0xc72   :  { %17623 = vmatmul.mubr.msk.bf16.vlgmr.msra.gmra.mrb[28].mxu0 %vm9297_vm2, %v18688_v22  ;;  %14650 = vmatpush1.bf16.msra.mxu1 %v14515_v47  ;;  %v14995_v42 = vsel %vm9301_vm5, %v14983_v21, 0 }
 0xc73   :  { %v14721_v45 = vpop.permute.xlu1 %14720  ;;  %14681 = vmatprep.mubr.bf16.mxu1 %v22854_v50  ;;  %14801 = vmatprep.mubr.bf16.mxu0 %v22854_v50 }
 0xc74   :  { %v14735_v1 = vsel %vm22962_vm0, %v22160_v38, %v14721_v45  ;;  %v22226_v11 = vpop.permute.xlu0 %14981  ;;  %vm22976_vm0 = vmmov %vm22969_vm8 }
 0xc75   :  { %17629 = vmatprep.subr.msk.bf16.mxu0 %vm9301_vm5, %v14735_v1 }
 0xc76   :  { %14770 = vmatpush1.bf16.msra.mxu0 %v14746_v12 }
 0xc77   :  { %v14725_v3 = vpop.permute.xlu1 %14724 }
 0xc78   :  { %v14723_v49 = vpop.permute.xlu0 %14722 }
 0xc79   :  { %v14736_v27 = vsel %vm22963_vm4, %v14721_v45, %v14723_v49  ;;  %v14737_v14 = vsel %vm22964_vm7, %v14723_v49, %v14725_v3  ;;  %17625 = vmatmul.mubr.msk.bf16.vlgmr.msra.gmra.mrb[28].mxu1 %vm9297_vm2, %v18688_v22  ;;  %vm22977_vm4 = vcmask 130048   ;;  %v18691_v22 = vld [vmem:[%s22800_s3 + $0xc0] sm:$0xff]  }
 0xc7a   :  { %v14752_v24 = vsel %vm9301_vm5, %v14736_v27, 0  ;;  %17630 = vmatmul.mubr.msk.bf16.vlgmr.msra.gmra.mrb[24].mxu0 %vm9297_vm2, %v18689_v53  ;;  %17631 = vmatprep.subr.msk.bf16.mxu1 %vm9301_vm5, %v14737_v14  ;;  %vm22978_vm7 = vmmov %vm22977_vm4 }
 0xc7b   :  { %14813 = vmatpush1.bf16.msra.mxu1 %v14752_v24  ;;  %v14729_v18 = vpop.permute.xlu1 %14728  ;;  %14844 = vmatprep.mubr.bf16.mxu1 %v22854_v50 }
 0xc7c   :  { %v14727_v19 = vpop.permute.xlu0 %14726  ;;  %14887 = vmatprep.mubr.bf16.mxu0 %v22854_v50 }
 0xc7d   :  { %v14738_v8 = vsel %vm22965_vm9, %v14725_v3, %v14727_v19  ;;  %v14739_v10 = vsel %vm22966_vm1, %v14727_v19, %v14729_v18  ;;  %vm22979_vm9 = vmmov %vm22977_vm4 }
 0xc7e   :  { %v14758_v20 = vsel %vm9301_vm5, %v14738_v8, 0  ;;  %17633 = vmatprep.subr.msk.bf16.mxu0 %vm9301_vm5, %v14739_v10  ;;  %vm22980_vm1 = vmmov %vm22977_vm4 }
 0xc7f   :  { %14856 = vmatpush1.bf16.msra.mxu0 %v14758_v20  ;;  %v15215_v33 = vpop.permute.xlu1 %15214  ;;  %vm22983_vm8 = vmmov %vm22980_vm1 }
 0xc80   :  { %v14731_v37 = vpop.permute.xlu0 %14730 }
 0xc81   :  { %v14740_v63 = vsel %vm22967_vm6, %v14729_v18, %v14731_v37  ;;  %v14741_v32 = vsel %vm22968_vm3, %v14731_v37, %v22179_v2  ;;  %17632 = vmatmul.mubr.msk.bf16.vlgmr.msra.gmra.mrb[24].mxu1 %vm9297_vm2, %v18689_v53  ;;  %vm22981_vm6 = vmmov %vm22980_vm1 }
 0xc82   :  { %v14764_v31 = vsel %vm9301_vm5, %v14740_v63, 0  ;;  %17634 = vmatmul.mubr.msk.bf16.vlgmr.msra.gmra.mrb[28].mxu0 %vm9297_vm2, %v18689_v53  ;;  %17635 = vmatprep.subr.msk.bf16.mxu1 %vm9301_vm5, %v14741_v32  ;;  %vm22982_vm3 = vmmov %vm22980_vm1 }
 0xc83   :  { %14899 = vmatpush1.bf16.msra.mxu1 %v14764_v31  ;;  %v14972_v28 = vpop.permute.xlu1 %14971  ;;  %14930 = vmatprep.mubr.bf16.mxu1 %v22854_v50 }
 0xc84   :  { %v14970_v16 = vpop.permute.xlu0 %14969  ;;  %15050 = vmatprep.mubr.bf16.mxu0 %v22854_v50 }
 0xc85   :  { %v14984_v38 = vsel %vm22970_vm10, %v14968_v6, %v14970_v16  ;;  %v14985_v36 = vsel %vm22971_vm11, %v14970_v16, %v14972_v28  ;;  %vm22984_vm10 = vmmov %vm22980_vm1  ;;  %vm22985_vm11 = vcmask 121856  }
 0xc86   :  { %17640 = vmatprep.subr.msk.bf16.mxu0 %vm9301_vm5, %v14984_v38  ;;  %v15001_v56 = vsel %vm9301_vm5, %v14985_v36, 0 }
 0xc87   :  { %15019 = vmatpush1.bf16.msra.mxu0 %v14995_v42  ;;  %v14976_v35 = vpop.permute.xlu1 %14975 }
 0xc88   :  { %v14974_v15 = vpop.permute.xlu0 %14973 }
 0xc89   :  { %v14986_v4 = vsel %vm22972_vm12, %v14972_v28, %v14974_v15  ;;  %17636 = vmatmul.mubr.msk.bf16.vlgmr.msra.gmra.mrb[28].mxu1 %vm9297_vm2, %v18689_v53  ;;  %v14987_v29 = vsel %vm22973_vm13, %v14974_v15, %v14976_v35  ;;  %vm22986_vm12 = vmmov %vm22985_vm11  ;;  %v18692_v53 = vld [vmem:[%s22800_s3 + $0xc8] sm:$0xff]  }
 0xc8a   :  { %17641 = vmatmul.mubr.msk.bf16.vlgmr.msra.gmra.mrb[24].mxu0 %vm9297_vm2, %v18690_v26  ;;  %17642 = vmatprep.subr.msk.bf16.mxu1 %vm9301_vm5, %v14986_v4  ;;  %v15007_v62 = vsel %vm9301_vm5, %v14987_v29, 0  ;;  %vm22987_vm13 = vmmov %vm22985_vm11 }
 0xc8b   :  { %15062 = vmatpush1.bf16.msra.mxu1 %v15001_v56  ;;  %v15231_v30 = vpop.permute.xlu1 %15230  ;;  %15093 = vmatprep.mubr.bf16.mxu1 %v22854_v50 }
 0xc8c   :  { %v14978_v55 = vpop.permute.xlu0 %14977  ;;  %15136 = vmatprep.mubr.bf16.mxu0 %v22854_v50 }
 0xc8d   :  { %v14988_v9 = vsel %vm22974_vm14, %v14976_v35, %v14978_v55  ;;  %vm22988_vm14 = vmmov %vm22985_vm11 }
 0xc8e   :  { %17644 = vmatprep.subr.msk.bf16.mxu0 %vm9301_vm5, %v14988_v9 }
 0xc8f   :  { %15105 = vmatpush1.bf16.msra.mxu0 %v15007_v62  ;;  %v14980_v2 = vpop.permute.xlu1 %14979 }
 0xc90   :  { %v14989_v5 = vsel %vm22975_vm15, %v14978_v55, %v14980_v2  ;;  %v14990_v0 = vsel %vm22976_vm0, %v14980_v2, %v22226_v11  ;;  %v15217_v57 = vpop.permute.xlu0 %15216  ;;  %vm22989_vm15 = vmmov %vm22985_vm11 }
 0xc91   :  { %v15013_v48 = vsel %vm9301_vm5, %v14989_v5, 0  ;;  %17643 = vmatmul.mubr.msk.bf16.vlgmr.msra.gmra.mrb[24].mxu1 %vm9297_vm2, %v18690_v26  ;;  %17646 = vmatprep.subr.msk.bf16.mxu1 %vm9301_vm5, %v14990_v0  ;;  %v15232_v58 = vsel %vm22977_vm4, %v15215_v33, %v15217_v57  ;;  %vm22990_vm0 = vmmov %vm22985_vm11 }
 0xc92   :  { %17645 = vmatmul.mubr.msk.bf16.vlgmr.msra.gmra.mrb[28].mxu0 %vm9297_vm2, %v18690_v26  ;;  %15148 = vmatpush1.bf16.msra.mxu1 %v15013_v48  ;;  %v15244_v43 = vsel %vm9301_vm5, %v15232_v58, 0  ;;  %vm22991_vm4 = vmmov %vm22990_vm0  ;;  %v22366_v58 = vld [vmem:[%s22798_s4 + $0x20] sm:$0xff] }
 0xc93   :  { %v15219_v61 = vpop.permute.xlu1 %15218  ;;  %15179 = vmatprep.mubr.bf16.mxu1 %v22854_v50  ;;  %15299 = vmatprep.mubr.bf16.mxu0 %v22854_v50 }
 0xc94   :  { %v15233_v51 = vsel %vm22978_vm7, %v15217_v57, %v15219_v61  ;;  %v15464_v54 = vpop.permute.xlu0 %15463  ;;  %vm22992_vm7 = vmmov %vm22990_vm0 }
 0xc95   :  { %17651 = vmatprep.subr.msk.bf16.mxu0 %vm9301_vm5, %v15233_v51 }
 0xc96   :  { %15268 = vmatpush1.bf16.msra.mxu0 %v15244_v43  ;;  %v15974_v43 = vcombine.high %v22366_v58, %v22366_v58 }
 0xc97   :  { %v15223_v7 = vpop.permute.xlu1 %15222 }
 0xc98   :  { %v15221_v13 = vpop.permute.xlu0 %15220 }
 0xc99   :  { %v15234_v39 = vsel %vm22979_vm9, %v15219_v61, %v15221_v13  ;;  %v15235_v59 = vsel %vm22980_vm1, %v15221_v13, %v15223_v7  ;;  %17647 = vmatmul.mubr.msk.bf16.vlgmr.msra.gmra.mrb[28].mxu1 %vm9297_vm2, %v18690_v26  ;;  %vm22993_vm9 = vcmask 113664   ;;  %v18693_v26 = vld [vmem:[%s22800_s3 + $0xd0] sm:$0xff]  }
 0xc9a   :  { %v15250_v41 = vsel %vm9301_vm5, %v15234_v39, 0  ;;  %17652 = vmatmul.mubr.msk.bf16.vlgmr.msra.gmra.mrb[24].mxu0 %vm9297_vm2, %v18691_v22  ;;  %17653 = vmatprep.subr.msk.bf16.mxu1 %vm9301_vm5, %v15235_v59  ;;  %vm22994_vm1 = vmmov %vm22993_vm9  ;;  %v23001_v61 = vld [vmem:[#allocation4_spill] sm:$0xff] }
 0xc9b   :  { %15311 = vmatpush1.bf16.msra.mxu1 %v15250_v41  ;;  %v15227_v17 = vpop.permute.xlu1 %15226  ;;  %15342 = vmatprep.mubr.bf16.mxu1 %v22854_v50  ;;  %v15981_v51 = vrot.slane %v22366_v58, %v23001_v61 }
 0xc9c   :  { %v15225_v6 = vpop.permute.xlu0 %15224  ;;  %15385 = vmatprep.mubr.bf16.mxu0 %v22854_v50 }
 0xc9d   :  { %v15236_v52 = vsel %vm22981_vm6, %v15223_v7, %v15225_v6  ;;  %v15237_v25 = vsel %vm22982_vm3, %v15225_v6, %v15227_v17  ;;  %vm22995_vm6 = vmmov %vm22994_vm1 }
 0xc9e   :  { %v15256_v34 = vsel %vm9301_vm5, %v15236_v52, 0  ;;  %17655 = vmatprep.subr.msk.bf16.mxu0 %vm9301_vm5, %v15237_v25  ;;  %vm22996_vm3 = vmmov %vm22994_vm1 }
 0xc9f   :  { %15354 = vmatpush1.bf16.msra.mxu0 %v15256_v34  ;;  %v15466_v44 = vpop.permute.xlu1 %15465 }
 0xca0   :  { %v15229_v40 = vpop.permute.xlu0 %15228  ;;  %v15481_v46 = vsel %vm22985_vm11, %v15464_v54, %v15466_v44  ;;  %vm22999_vm11 = vmmov %vm22994_vm1  ;;  %v15989_v54 = vcombine.high %v15981_v51, %v15981_v51 }
 0xca1   :  { %v15238_v23 = vsel %vm22983_vm8, %v15227_v17, %v15229_v40  ;;  %v15239_v60 = vsel %vm22984_vm10, %v15229_v40, %v15231_v30  ;;  %17654 = vmatmul.mubr.msk.bf16.vlgmr.msra.gmra.mrb[24].mxu1 %vm9297_vm2, %v18691_v22  ;;  %v15493_v12 = vsel %vm9301_vm5, %v15481_v46, 0  ;;  %vm22997_vm8 = vmmov %vm22994_vm1  ;;  %v22380_v17 = vld [vmem:[%s22798_s4 + $0x28] sm:$0xff] }
 0xca2   :  { %v15262_v47 = vsel %vm9301_vm5, %v15238_v23, 0  ;;  %17656 = vmatmul.mubr.msk.bf16.vlgmr.msra.gmra.mrb[28].mxu0 %vm9297_vm2, %v18691_v22  ;;  %17657 = vmatprep.subr.msk.bf16.mxu1 %vm9301_vm5, %v15239_v60  ;;  %vm22998_vm10 = vmmov %vm22994_vm1  ;;  %v22384_v34 = vrot.slane %v22380_v17, %v23001_v61 }
 0xca3   :  { %15397 = vmatpush1.bf16.msra.mxu1 %v15262_v47  ;;  %v15470_v45 = vpop.permute.xlu1 %15469  ;;  %15428 = vmatprep.mubr.bf16.mxu1 %v22854_v50 }
 0xca4   :  { %v15468_v1 = vpop.permute.xlu0 %15467  ;;  %15548 = vmatprep.mubr.bf16.mxu0 %v22854_v50 }
 0xca5   :  { %v15482_v11 = vsel %vm22986_vm12, %v15466_v44, %v15468_v1  ;;  %v15483_v3 = vsel %vm22987_vm13, %v15468_v1, %v15470_v45  ;;  %vm23000_vm12 = vmmov %vm22994_vm1  ;;  %v15991_v1 = vcombine.high %v22380_v17, %v22380_v17 }
 0xca6   :  { %17662 = vmatprep.subr.msk.bf16.mxu0 %vm9301_vm5, %v15482_v11  ;;  %v15499_v24 = vsel %vm9301_vm5, %v15483_v3, 0 }
 0xca7   :  { %15517 = vmatpush1.bf16.msra.mxu0 %v15493_v12  ;;  %v15474_v49 = vpop.permute.xlu1 %15473 }
 0xca8   :  { %v15472_v27 = vpop.permute.xlu0 %15471 }
 0xca9   :  { %v15484_v14 = vsel %vm22988_vm14, %v15470_v45, %v15472_v27  ;;  %17658 = vmatmul.mubr.msk.bf16.vlgmr.msra.gmra.mrb[28].mxu1 %vm9297_vm2, %v18691_v22  ;;  %v15485_v18 = vsel %vm22989_vm15, %v15472_v27, %v15474_v49  ;;  %v22373_v22 = vrot.slane %v15974_v43, %v23001_v61  ;;  %v22390_v45 = vcombine.high %v22384_v34, %v22384_v34 }
 0xcaa   :  { %17663 = vmatmul.mubr.msk.bf16.vlgmr.msra.gmra.mrb[24].mxu0 %vm9297_vm2, %v18692_v53  ;;  %17664 = vmatprep.subr.msk.bf16.mxu1 %vm9301_vm5, %v15484_v14  ;;  %v15505_v20 = vsel %vm9301_vm5, %v15485_v18, 0 }
 0xcab   :  { %15560 = vmatpush1.bf16.msra.mxu1 %v15499_v24  ;;  %v15713_v19 = vpop.permute.xlu1 %15712  ;;  %15591 = vmatprep.mubr.bf16.mxu1 %v22854_v50  ;;  %v15990_v7 = vcombine.high %v22373_v22, %v22373_v22 }
 0xcac   :  { %v15476_v8 = vpop.permute.xlu0 %15475  ;;  %15634 = vmatprep.mubr.bf16.mxu0 %v22854_v50 }
 0xcad   :  { %v15486_v10 = vsel %vm22990_vm0, %v15474_v49, %v15476_v8  ;;  %v22404_v49 = vrot.slane %v15991_v1, %v23001_v61  ;;  %v23011_v61 = vld [vmem:[#allocation12_spill] sm:$0xff] }
 0xcae   :  { %17666 = vmatprep.subr.msk.bf16.mxu0 %vm9301_vm5, %v15486_v10 }
 0xcaf   :  { %15603 = vmatpush1.bf16.msra.mxu0 %v15505_v20  ;;  %v15478_v33 = vpop.permute.xlu1 %15477 }
 0xcb0   :  { %v15487_v37 = vsel %vm22991_vm4, %v15476_v8, %v15478_v33  ;;  %v15480_v63 = vpop.permute.xlu0 %15479 }
 0xcb1   :  { %v15511_v32 = vsel %vm9301_vm5, %v15487_v37, 0  ;;  %v15488_v31 = vsel %vm22992_vm7, %v15478_v33, %v15480_v63  ;;  %17665 = vmatmul.mubr.msk.bf16.vlgmr.msra.gmra.mrb[24].mxu1 %vm9297_vm2, %v18692_v53 }
 0xcb2   :  { %17667 = vmatmul.mubr.msk.bf16.vlgmr.msra.gmra.mrb[28].mxu0 %vm9297_vm2, %v18692_v53  ;;  %17668 = vmatprep.subr.msk.bf16.mxu1 %vm9301_vm5, %v15488_v31 }
 0xcb3   :  { %15646 = vmatpush1.bf16.msra.mxu1 %v15511_v32  ;;  %v15717_v21 = vpop.permute.xlu1 %15716  ;;  %15677 = vmatprep.mubr.bf16.mxu1 %v22854_v50 }
 0xcb4   :  { %v15715_v28 = vpop.permute.xlu0 %15714  ;;  %15797 = vmatprep.mubr.bf16.mxu0 %v22854_v50 }
 0xcb5   :  { %v15730_v16 = vsel %vm22993_vm9, %v15713_v19, %v15715_v28  ;;  %v15731_v38 = vsel %vm22994_vm1, %v15715_v28, %v15717_v21  ;;  %v22413_v19 = vcombine.high %v22404_v49, %v22404_v49 }
 0xcb6   :  { %v15742_v42 = vsel %vm9301_vm5, %v15730_v16, 0  ;;  %17673 = vmatprep.subr.msk.bf16.mxu0 %vm9301_vm5, %v15731_v38 }
 0xcb7   :  { %15766 = vmatpush1.bf16.msra.mxu0 %v15742_v42  ;;  %v15721_v36 = vpop.permute.xlu1 %15720 }
 0xcb8   :  { %v15719_v35 = vpop.permute.xlu0 %15718 }
 0xcb9   :  { %v15732_v15 = vsel %vm22995_vm6, %v15717_v21, %v15719_v35  ;;  %v15733_v4 = vsel %vm22996_vm3, %v15719_v35, %v15721_v36  ;;  %17669 = vmatmul.mubr.msk.bf16.vlgmr.msra.gmra.mrb[28].mxu1 %vm9297_vm2, %v18692_v53 }
 0xcba   :  { %v15748_v56 = vsel %vm9301_vm5, %v15732_v15, 0  ;;  %17674 = vmatmul.mubr.msk.bf16.vlgmr.msra.gmra.mrb[24].mxu0 %vm9297_vm2, %v18693_v26  ;;  %17675 = vmatprep.subr.msk.bf16.mxu1 %vm9301_vm5, %v15733_v4  ;;  %v23005_v4 = vld [vmem:[#allocation6_spill] sm:$0xff] }
 0xcbb   :  { %15809 = vmatpush1.bf16.msra.mxu1 %v15748_v56  ;;  %v15725_v29 = vpop.permute.xlu1 %15724  ;;  %15840 = vmatprep.mubr.bf16.mxu1 %v22854_v50  ;;  %v16342_v56 = vrot.slane %v22366_v58, %v23005_v4  ;;  %v16358_v43 = vrot.slane %v22380_v17, %v23005_v4 }
 0xcbc   :  { %v15723_v30 = vpop.permute.xlu0 %15722  ;;  %15883 = vmatprep.mubr.bf16.mxu0 %v22854_v50 }
 0xcbd   :  { %v15734_v55 = vsel %vm22997_vm8, %v15721_v36, %v15723_v30  ;;  %v15735_v9 = vsel %vm22998_vm10, %v15723_v30, %v15725_v29 }
 0xcbe   :  { %v15754_v62 = vsel %vm9301_vm5, %v15734_v55, 0  ;;  %17677 = vmatprep.subr.msk.bf16.mxu0 %vm9301_vm5, %v15735_v9  ;;  %v23007_v55 = vld [vmem:[#allocation5_spill] sm:$0xff] }
 0xcbf   :  { %15852 = vmatpush1.bf16.msra.mxu0 %v15754_v62  ;;  %v15729_v2 = vpop.permute.xlu1 %15728  ;;  %v16338_v9 = vrot.slane %v22366_v58, %v23007_v55  ;;  %v23008_v62 = vld [vmem:[#allocation7_spill] sm:$0xff] }
 0xcc0   :  { %v15727_v5 = vpop.permute.xlu0 %15726  ;;  %16023 = vmatprep.subr.mxu0 %v15989_v54 }
 0xcc1   :  { %v15736_v0 = vsel %vm22999_vm11, %v15725_v29, %v15727_v5  ;;  %v15737_v57 = vsel %vm23000_vm12, %v15727_v5, %v15729_v2  ;;  %17676 = vmatmul.mubr.msk.bf16.vlgmr.msra.gmra.mrb[24].mxu1 %vm9297_vm2, %v18693_v26  ;;  %v23006_v29 = vld [vmem:[#allocation8_spill] sm:$0xff]  ;;  %v16434_v2 = vrot.slane %v22366_v58, %v23008_v62  ;;  %v23009_v5 = vld [vmem:[#allocation9_spill] sm:$0xff] }
 0xcc2   :  { %v15760_v48 = vsel %vm9301_vm5, %v15736_v0, 0  ;;  %17678 = vmatmul.mubr.msk.bf16.vlgmr.msra.gmra.mrb[28].mxu0 %vm9297_vm2, %v18693_v26  ;;  %17679 = vmatprep.subr.msk.bf16.mxu1 %vm9301_vm5, %v15737_v57  ;;  %vm23002_vm5 = vcmask 687104   ;;  %v16438_v30 = vrot.slane %v22366_v58, %v23006_v29  ;;  %v16350_v0 = vrot.slane %v22366_v58, %v23009_v5  ;;  %v23010_v57 = vld [vmem:[#allocation10_spill] sm:$0xff] }
 0xcc3   :  { %15895 = vmatpush1.bf16.msra.mxu1 %v15760_v48  ;;  %15926 = vmatprep.mubr.bf16.mxu1 %v22854_v50  ;;  %v16446_v48 = vrot.slane %v22366_v58, %v23010_v57  ;;  %v16462_v4 = vrot.slane %v22380_v17, %v23010_v57 }
 0xcc4   :  { %16573 = vmatprep.subr.mxu1 %v15989_v54 }
 0xcc8   :  { %16024 = vmatpush1.xpose.msra.mxu0 %v15981_v51 }
 0xcc9   :  { %17680 = vmatmul.mubr.msk.bf16.vlgmr.msra.gmra.mrb[28].mxu1 %vm9297_vm2, %v18693_v26  ;;  %16098 = vmatprep.subr.mxu0 %v15990_v7  ;;  %vm23003_vm2 = vmmov %vm23002_vm5 }
 0xcca   :  { %vm23004_vm13 = vmmov %vm23003_vm2 }
 0xccb   :  { %vm23013_vm14 = vmmov %vm23003_vm2 }
 0xccc   :  { %16574 = vmatpush1.xpose.msra.mxu1 %v15981_v51  ;;  %v23012_v51 = vld [vmem:[#allocation11_spill] sm:$0xff]  ;;  %vm23014_vm15 = vmmov %vm23003_vm2 }
 0xccd   :  { %16648 = vmatprep.subr.mxu1 %v15990_v7  ;;  %v16442_v54 = vrot.slane %v22366_v58, %v23012_v51  ;;  %v22475_v7 = vrot.slane %v16342_v56, %v23007_v55  ;;  %vm23015_vm0 = vmmov %vm23003_vm2 }
 0xcce   :  { %vm23017_vm4 = vmmov %vm23015_vm0 }
 0xccf   :  { %vm23018_vm7 = vmmov %vm23015_vm0 }
 0xd8d   :  { %v15799_v13 = vpop.f32.mrb[24].mxu0 }
 0xd8e   :  { %v15801_v39 = vpop.f32.mrb[25].mxu0 }
 0xd8f   :  { %18750 = vtanh.f32 %v15801_v39  ;;  %v15803_v59 = vpop.f32.mrb[26].mxu0  ;;  %v22481_v39 = vrot.slane %v16338_v9, %v23007_v55 }
 0xd90   :  { %18752 = vtanh.f32 %v15799_v13  ;;  %v15805_v41 = vpop.f32.mrb[27].mxu0  ;;  %v22478_v13 = vrot.slane %v16438_v30, %v23008_v62 }
 0xd91   :  { %18754 = vtanh.f32 %v15805_v41  ;;  %v22487_v41 = vrot.slane %v16350_v0, %v23007_v55 }
 0xd92   :  { %18756 = vtanh.f32 %v15803_v59  ;;  %v22484_v59 = vrot.slane %v16434_v2, %v23008_v62 }
 0xd94   :  { %v15842_v6 = vpop.f32.mrb[24].mxu1 }
 0xd95   :  { %v15885_v52 = vpop.f32.mrb[28].mxu0  ;;  %v15844_v25 = vpop.f32.mrb[25].mxu1 }
 0xd96   :  { %v15887_v44 = vpop.f32.mrb[29].mxu0  ;;  %v15846_v40 = vpop.f32.mrb[26].mxu1  ;;  %18758 = vtanh.f32 %v15844_v25 }
 0xd97   :  { %v15889_v23 = vpop.f32.mrb[30].mxu0  ;;  %v15848_v60 = vpop.f32.mrb[27].mxu1  ;;  %18760 = vtanh.f32 %v15842_v6  ;;  %v16454_v6 = vrot.slane %v22380_v17, %v23006_v29 }
 0xd98   :  { %v15891_v47 = vpop.f32.mrb[31].mxu0  ;;  %18762 = vtanh.f32 %v15848_v60  ;;  %v22507_v60 = vrot.slane %v16358_v43, %v23007_v55 }
 0xd99   :  { %v22386_v46 = vpop.eup %18750  ;;  %18764 = vtanh.f32 %v15846_v40 }
 0xd9a   :  { %v22394_v11 = vpop.eup %18752  ;;  %16087 = vmatprep.mubr.f32.mxu0 %v22386_v46  ;;  %18766 = vtanh.f32 %v15887_v44 }
 0xd9b   :  { %v22397_v12 = vpop.eup %18754  ;;  %16088 = vmatmul.mubr.f32.vlgmr.msra.gmra.mrb[22].mxu0 %v22394_v11  ;;  %18768 = vtanh.f32 %v15885_v52  ;;  %v16354_v52 = vrot.slane %v22380_v17, %v23007_v55 }
 0xd9c   :  { %16092 = vmatprep.mubr.f32.mxu0 %v22397_v12  ;;  %v15928_v53 = vpop.f32.mrb[28].mxu1  ;;  %16099 = vmatpush1.xpose.msra.mxu0 %v22373_v22  ;;  %v22406_v27 = vpop.eup %18756  ;;  %18770 = vtanh.f32 %v15891_v47  ;;  %v16450_v47 = vrot.slane %v22380_v17, %v23008_v62 }
 0xd9d   :  { %v15930_v3 = vpop.f32.mrb[29].mxu1  ;;  %16173 = vmatprep.subr.mxu0 %v22390_v45  ;;  %18772 = vtanh.f32 %v15889_v23  ;;  %v22504_v23 = vrot.slane %v16442_v54, %v23008_v62 }
 0xd9e   :  { %v15932_v14 = vpop.f32.mrb[30].mxu1  ;;  %18774 = vtanh.f32 %v15930_v3 }
 0xd9f   :  { %16093 = vmatmul.mubr.f32.gmra.mrb[32].mxu0 %v22406_v27  ;;  %v15934_v24 = vpop.f32.mrb[31].mxu1  ;;  %18776 = vtanh.f32 %v15928_v53 }
 0xda0   :  { %v22409_v18 = vpop.eup %18758  ;;  %18778 = vtanh.f32 %v15934_v24 }
 0xda1   :  { %v22415_v8 = vpop.eup %18760  ;;  %16162 = vmatprep.mubr.f32.mxu0 %v22409_v18  ;;  %18780 = vtanh.f32 %v15932_v14 }
 0xda2   :  { %v22420_v10 = vpop.eup %18762 }
 0xda3   :  { %16163 = vmatmul.mubr.f32.vlgmr.msra.gmra.mrb[22].mxu0 %v22415_v8  ;;  %v22424_v20 = vpop.eup %18764 }
 0xda4   :  { %16174 = vmatpush1.xpose.msra.mxu0 %v22384_v34  ;;  %16167 = vmatprep.mubr.f32.mxu0 %v22420_v10  ;;  %v22427_v33 = vpop.eup %18766 }
 0xda5   :  { %17683 = vmatprep.subr.msk.mxu0 %vm23002_vm5, %v22413_v19  ;;  %v22431_v37 = vpop.eup %18768 }
 0xda6   :  { %v22433_v63 = vpop.eup %18770 }
 0xda7   :  { %16168 = vmatmul.mubr.f32.gmra.mrb[32].mxu0 %v22424_v20  ;;  %v22438_v32 = vpop.eup %18772 }
 0xda8   :  { %16237 = vmatprep.mubr.f32.mxu0 %v22427_v33  ;;  %v22440_v31 = vpop.eup %18774 }
 0xda9   :  { %v22445_v21 = vpop.eup %18776 }
 0xdaa   :  { %v22447_v28 = vpop.eup %18778 }
 0xdab   :  { %16238 = vmatmul.mubr.f32.vlgmr.msra.gmra.mrb[22].mxu0 %v22431_v37  ;;  %v22452_v16 = vpop.eup %18780 }
 0xdac   :  { %16242 = vmatprep.mubr.f32.mxu0 %v22433_v63  ;;  %16249 = vmatpush1.xpose.msra.mxu0 %v22404_v49 }
 0xdaf   :  { %16243 = vmatmul.mubr.f32.gmra.mrb[32].mxu0 %v22438_v32 }
 0xdb0   :  { %17684 = vmatprep.mubr.msk.f32.mxu0 %vm23003_vm2, %v22440_v31 }
 0xdb3   :  { %16313 = vmatmul.mubr.f32.vlgmr.msra.gmra.mrb[22].mxu0 %v22445_v21 }
 0xdb4   :  { %17685 = vmatprep.mubr.msk.f32.mxu0 %vm23004_vm13, %v22447_v28 }
 0xdb7   :  { %16318 = vmatmul.mubr.f32.gmra.mrb[32].mxu0 %v22452_v16 }
 0xe86   :  { %v16314_v38 = vpop.f32.mrb[22].mxu0 }
 0xe87   :  { %v16323_v42 = vmul.f32 0.013888889, %v16314_v38  ;;  %v16316_v26 = vpop.f32.mrb[23].mxu0 }
 0xe88   :  { %v16366_v26 = vrot.slane %v22380_v17, %v23009_v5  ;;  %v22542_v5 = vrot.slane %v16450_v47, %v23008_v62 }
 0xe89   :  { %16424 = vperm.xlu1 %18629, %v16323_v42   ;;  %16327 = vperm.xlu0 %18628, %v16323_v42   ;;  %v22524_v42 = vrot.slane %v16454_v6, %v23008_v62 }
 0xe8a   :  { %v16319_v36 = vpop.f32.mrb[32].mxu0 }
 0xe8b   :  { %v16324_v35 = vmul.f32 0.013888889, %v16319_v36  ;;  %v16321_v15 = vpop.f32.mrb[33].mxu0 }
 0xe8c   :  { %v22529_v15 = vrot.slane %v16354_v52, %v23007_v55 }
 0xe8d   :  { %16428 = vperm.xlu1 %18629, %v16324_v35   ;;  %16332 = vperm.xlu0 %18628, %v16324_v35  }
 0xe91   :  { %18630 = vset.pattern.permute.xlu1 %v22854_v50  ;;  %v16346_v50 = vrot.slane %v22366_v58, %v23011_v61  ;;  %v22490_v58 = vrot.slane %v16446_v48, %v23008_v62 }
 0xe93   :  { %v22501_v40 = vrot.slane %v16346_v50, %v23007_v55 }
 0xf08   :  { %v22496_v25 = vpop.permute.xlu1 %16424  ;;  %v22498_v44 = vpop.permute.xlu0 %16327 }
 0xf09   :  { %v16408_v1 = vmul.f32 %v22475_v7, %v22498_v44  ;;  %v16504_v53 = vmul.f32 %v22478_v13, %v22496_v25  ;;  %v16407_v3 = vmul.f32 %v22481_v39, %v22498_v44  ;;  %v16503_v14 = vmul.f32 %v22484_v59, %v22496_v25 }
 0xf0a   :  { %v16410_v24 = vmul.f32 %v22487_v41, %v22498_v44  ;;  %v16506_v38 = vmul.f32 %v22490_v58, %v22496_v25  ;;  %v16409_v9 = vmul.f32 %v22501_v40, %v22498_v44  ;;  %v16505_v2 = vmul.f32 %v22504_v23, %v22496_v25 }
 0xf0b   :  { %v16520_v36 = vadd.f32 %v16504_v53, %v16408_v1  ;;  %v16519_v35 = vadd.f32 %v16503_v14, %v16407_v3  ;;  %v16412_v6 = vmul.f32 %v22507_v60, %v22498_v44 }
 0xf0c   :  { %v22533_v56 = vpop.permute.xlu1 %16428  ;;  %v22535_v29 = vpop.permute.xlu0 %16332  ;;  %v16522_v30 = vadd.f32 %v16506_v38, %v16410_v24  ;;  %v16521_v3 = vadd.f32 %v16505_v2, %v16409_v9  ;;  %v16362_v24 = vrot.slane %v22380_v17, %v23011_v61  ;;  %v22586_v61 = vrot.slane %v16366_v26, %v23007_v55 }
 0xf0d   :  { %v22545_v0 = vsub.f32 %v22386_v46, %v16520_v36  ;;  %v22548_v48 = vsub.f32 %v22394_v11, %v16519_v35  ;;  %v16416_v57 = vmul.f32 %v22475_v7, %v22535_v29  ;;  %v16512_v50 = vmul.f32 %v22478_v13, %v22533_v56 }
 0xf0e   :  { %v16415_v54 = vmul.f32 %v22481_v39, %v22535_v29  ;;  %v16511_v43 = vmul.f32 %v22484_v59, %v22533_v56  ;;  %v16508_v46 = vmul.f32 %v22524_v42, %v22496_v25  ;;  %v16418_v1 = vmul.f32 %v22487_v41, %v22535_v29 }
 0xf0f   :  { %v16552_v11 = vmul.f32 %v22545_v0, %v22545_v0  ;;  %v16551_v52 = vmul.f32 %v22548_v48, %v22548_v48  ;;  %v16528_v47 = vadd.f32 %v16512_v50, %v16416_v57  ;;  %v16514_v14 = vmul.f32 %v22490_v58, %v22533_v56 }
 0xf10   :  { %v16527_v53 = vadd.f32 %v16511_v43, %v16415_v54  ;;  %v22576_v36 = vsub.f32 %v22409_v18, %v16522_v30  ;;  %v16417_v35 = vmul.f32 %v22501_v40, %v22535_v29  ;;  %v16513_v57 = vmul.f32 %v22504_v23, %v22533_v56 }
 0xf11   :  { %16637 = vmatprep.mubr.f32.mxu1 %v16552_v11  ;;  %v22573_v38 = vsub.f32 %v22397_v12, %v16528_v47  ;;  %v16530_v2 = vadd.f32 %v16514_v14, %v16418_v1  ;;  %v16458_v12 = vrot.slane %v22380_v17, %v23012_v51  ;;  %v16524_v30 = vadd.f32 %v16508_v46, %v16412_v6 }
 0xf12   :  { %16638 = vmatmul.mubr.f32.vlgmr.msra.gmra.mrb[22].mxu1 %v16551_v52  ;;  %v22583_v9 = vsub.f32 %v22406_v27, %v16527_v53  ;;  %v16411_v50 = vmul.f32 %v22529_v15, %v22498_v44  ;;  %v16507_v27 = vmul.f32 %v22542_v5, %v22496_v25  ;;  %v22600_v26 = vsub.f32 %v22415_v8, %v16521_v3 }
 0xf13   :  { %v16560_v18 = vmul.f32 %v22573_v38, %v22573_v38  ;;  %16649 = vmatpush1.xpose.msra.mxu1 %v22373_v22  ;;  %v16529_v43 = vadd.f32 %v16513_v57, %v16417_v35  ;;  %v22604_v17 = vrot.slane %v16462_v4, %v23008_v62  ;;  %v16554_v22 = vmul.f32 %v22576_v36, %v22576_v36 }
 0xf14   :  { %v16559_v54 = vmul.f32 %v22583_v9, %v22583_v9  ;;  %16723 = vmatprep.subr.mxu1 %v22390_v45  ;;  %v22609_v51 = vsub.f32 %v22420_v10, %v16530_v2  ;;  %v16420_v6 = vmul.f32 %v22507_v60, %v22535_v29  ;;  %v16516_v8 = vmul.f32 %v22524_v42, %v22533_v56 }
 0xf15   :  { %16642 = vmatprep.mubr.f32.mxu1 %v16560_v18  ;;  %v22616_v45 = vsub.f32 %v22427_v33, %v16524_v30  ;;  %v16523_v4 = vadd.f32 %v16507_v27, %v16411_v50  ;;  %v22619_v46 = vrot.slane %v16362_v24, %v23007_v55  ;;  %v22622_v11 = vrot.slane %v16458_v12, %v23008_v62 }
 0xf16   :  { %16643 = vmatmul.mubr.f32.gmra.mrb[32].mxu1 %v16559_v54  ;;  %v16553_v10 = vmul.f32 %v22600_v26, %v22600_v26  ;;  %v22627_v52 = vsub.f32 %v22424_v20, %v16529_v43  ;;  %v16419_v47 = vmul.f32 %v22529_v15, %v22535_v29  ;;  %v16515_v33 = vmul.f32 %v22542_v5, %v22533_v56 }
 0xf17   :  { %16712 = vmatprep.mubr.f32.mxu1 %v16554_v22  ;;  %v16562_v1 = vmul.f32 %v22609_v51, %v22609_v51  ;;  %v16532_v55 = vadd.f32 %v16516_v8, %v16420_v6  ;;  %v16414_v62 = vmul.f32 %v22586_v61, %v22498_v44  ;;  %v16510_v53 = vmul.f32 %v22604_v17, %v22496_v25 }
 0xf18   :  { %v16556_v20 = vmul.f32 %v22616_v45, %v22616_v45  ;;  %v22643_v3 = vsub.f32 %v22431_v37, %v16523_v4  ;;  %v16561_v14 = vmul.f32 %v22627_v52, %v22627_v52  ;;  %v16531_v24 = vadd.f32 %v16515_v33, %v16419_v47 }
 0xf19   :  { %v16413_v35 = vmul.f32 %v22619_v46, %v22498_v44  ;;  %v16509_v57 = vmul.f32 %v22622_v11, %v22496_v25  ;;  %v16526_v2 = vadd.f32 %v16510_v53, %v16414_v62  ;;  %v16422_v37 = vmul.f32 %v22586_v61, %v22535_v29 }
 0xf1a   :  { %16713 = vmatmul.mubr.f32.vlgmr.msra.gmra.mrb[22].mxu1 %v16553_v10  ;;  %v16518_v12 = vmul.f32 %v22604_v17, %v22533_v56  ;;  %v22663_v44 = vsub.f32 %v22438_v32, %v16531_v24  ;;  %v16517_v25 = vmul.f32 %v22622_v11, %v22533_v56  ;;  %v23016_v62 = vmov 1  }
 0xf1b   :  { %16717 = vmatprep.mubr.f32.mxu1 %v16562_v1  ;;  %16724 = vmatpush1.xpose.msra.mxu1 %v22384_v34  ;;  %v22654_v34 = vsub.f32 %v22433_v63, %v16532_v55  ;;  %v16525_v18 = vadd.f32 %v16509_v57, %v16413_v35  ;;  %v16421_v63 = vmul.f32 %v22619_v46, %v22535_v29 }
 0xf1c   :  { %17686 = vmatprep.subr.msk.mxu1 %vm23013_vm14, %v22413_v19  ;;  %v16555_v19 = vmul.f32 %v22643_v3, %v22643_v3  ;;  %v22672_v50 = vsub.f32 %v22440_v31, %v16526_v2  ;;  %v16534_v27 = vadd.f32 %v16518_v12, %v16422_v37  ;;  %v16563_v32 = vmul.f32 %v22663_v44, %v22663_v44 }
 0xf1d   :  { %v16564_v30 = vmul.f32 %v22654_v34, %v22654_v34  ;;  %v22678_v54 = vsub.f32 %v22445_v21, %v16525_v18  ;;  %v16533_v29 = vadd.f32 %v16517_v25, %v16421_v63 }
 0xf1e   :  { %16718 = vmatmul.mubr.f32.gmra.mrb[32].mxu1 %v16561_v14  ;;  %v16558_v56 = vmul.f32 %v22672_v50, %v22672_v50  ;;  %v22683_v43 = vsub.f32 %v22447_v28, %v16534_v27 }
 0xf1f   :  { %16787 = vmatprep.mubr.f32.mxu1 %v16556_v20  ;;  %v16557_v31 = vmul.f32 %v22678_v54, %v22678_v54 }
 0xf20   :  { %v16566_v21 = vmul.f32 %v22683_v43, %v22683_v43 }
 0xf22   :  { %16788 = vmatmul.mubr.f32.vlgmr.msra.gmra.mrb[22].mxu1 %v16555_v19 }
 0xf23   :  { %16792 = vmatprep.mubr.f32.mxu1 %v16564_v30  ;;  %16799 = vmatpush1.xpose.msra.mxu1 %v22404_v49  ;;  %v22689_v49 = vsub.f32 %v22452_v16, %v16533_v29 }
 0xf25   :  { %v16565_v22 = vmul.f32 %v22689_v49, %v22689_v49 }
 0xf26   :  { %16793 = vmatmul.mubr.f32.gmra.mrb[32].mxu1 %v16563_v32 }
 0xf27   :  { %17687 = vmatprep.mubr.msk.f32.mxu1 %vm23014_vm15, %v16558_v56 }
 0xf2a   :  { %16863 = vmatmul.mubr.f32.vlgmr.msra.gmra.mrb[22].mxu1 %v16557_v31 }
 0xf2b   :  { %17688 = vmatprep.mubr.msk.f32.mxu1 %vm23015_vm0, %v16566_v21 }
 0xf2e   :  { %16868 = vmatmul.mubr.f32.gmra.mrb[32].mxu1 %v16565_v22 }
 0xffd   :  { %v16864_v28 = vpop.f32.mrb[22].mxu1 }
 0xffe   :  { %v16873_v6 = vmul.f32 0.013888889, %v16864_v28  ;;  %v16866_v8 = vpop.f32.mrb[23].mxu1 }
0x1000   :  { %v16875_v4 = vadd.f32 1e-05, %v16873_v6 }
0x1001   :  { %v16869_v10 = vpop.f32.mrb[32].mxu1 }
0x1002   :  { %18782 = vrsqrt.f32 %v16875_v4  ;;  %v16874_v47 = vmul.f32 0.013888889, %v16869_v10  ;;  %v16871_v33 = vpop.f32.mrb[33].mxu1 }
0x1004   :  { %v16876_v16 = vadd.f32 1e-05, %v16874_v47 }
0x1006   :  { %18784 = vrsqrt.f32 %v16876_v16 }
0x100c   :  { %v18783_v1 = vpop.eup %18782 }
0x100d   :  { %16881 = vperm.xlu0 %18628, %v18783_v1  }
0x1010   :  { %v18785_v55 = vpop.eup %18784 }
0x1011   :  { %18631 = vset.pattern.permute.xlu0 %v23016_v62  ;;  %16886 = vperm.xlu1 %18630, %v18785_v55  }
0x1012   :  { %16906 = vperm.xlu0 %18631, %v18783_v1  }
0x1015   :  { %18632 = vset.pattern.permute.xlu1 %v23016_v62 }
0x1016   :  { %16910 = vperm.xlu1 %18632, %v18785_v55  }
0x108c   :  { %v16882_v53 = vpop.permute.xlu0 %16881 }
0x108d   :  { %v16889_v20 = vmul.f32 %v16882_v53, %v22481_v39  ;;  %v16890_v14 = vmul.f32 %v16882_v53, %v22475_v7  ;;  %v16891_v24 = vmul.f32 %v16882_v53, %v22501_v40  ;;  %v16892_v35 = vmul.f32 %v16882_v53, %v22487_v41 }
0x108e   :  { %v16893_v2 = vmul.f32 %v16882_v53, %v22529_v15  ;;  %v16894_v37 = vmul.f32 %v16882_v53, %v22507_v60  ;;  %v16895_v12 = vmul.f32 %v16882_v53, %v22619_v46  ;;  %v16896_v19 = vmul.f32 %v16882_v53, %v22586_v61 }
0x1090   :  { %v16887_v57 = vpop.permute.xlu1 %16886 }
0x1091   :  { %v16907_v18 = vpop.permute.xlu0 %16906  ;;  %v16897_v63 = vmul.f32 %v16887_v57, %v22481_v39  ;;  %v16898_v25 = vmul.f32 %v16887_v57, %v22475_v7  ;;  %v16899_v30 = vmul.f32 %v16887_v57, %v22501_v40  ;;  %v16900_v27 = vmul.f32 %v16887_v57, %v22487_v41 }
0x1092   :  { %v16913_v32 = vmul.f32 %v16907_v18, %v22484_v59  ;;  %v16914_v29 = vmul.f32 %v16907_v18, %v22478_v13  ;;  %v16915_v56 = vmul.f32 %v16907_v18, %v22504_v23  ;;  %v16916_v31 = vmul.f32 %v16907_v18, %v22490_v58 }
0x1093   :  { %v16917_v21 = vmul.f32 %v16907_v18, %v22542_v5  ;;  %v16918_v22 = vmul.f32 %v16907_v18, %v22524_v42  ;;  %v16919_v39 = vmul.f32 %v16907_v18, %v22622_v11  ;;  %v16920_v7 = vmul.f32 %v16907_v18, %v22604_v17 }
0x1094   :  { %v16929_v28 = vadd.f32 %v16913_v32, %v16889_v20  ;;  %v16930_v40 = vadd.f32 %v16914_v29, %v16890_v14  ;;  %v16931_v6 = vadd.f32 %v16915_v56, %v16891_v24  ;;  %v16932_v41 = vadd.f32 %v16916_v31, %v16892_v35 }
0x1095   :  { %v16933_v8 = vadd.f32 %v16917_v21, %v16893_v2  ;;  %v16934_v4 = vadd.f32 %v16918_v22, %v16894_v37  ;;  %v16935_v10 = vadd.f32 %v16919_v39, %v16895_v12  ;;  %v16936_v47 = vadd.f32 %v16920_v7, %v16896_v19  ;;  %v16911_v62 = vpop.permute.xlu1 %16910 }
0x1096   :  { %v16945_v33 = vmul.f32 %v16929_v28, %v22548_v48  ;;  %v16946_v16 = vmul.f32 %v16930_v40, %v22545_v0  ;;  %v16947_v1 = vmul.f32 %v16931_v6, %v22600_v26  ;;  %v16948_v55 = vmul.f32 %v16932_v41, %v22576_v36 }
0x1097   :  { %v16949_v53 = vmul.f32 %v16933_v8, %v22643_v3  ;;  %v16950_v20 = vmul.f32 %v16934_v4, %v22616_v45  ;;  %v16951_v14 = vmul.f32 %v16935_v10, %v22678_v54  ;;  %v16952_v24 = vmul.f32 %v16936_v47, %v22672_v50 }
0x1098   :  { %16961 = vst [vmem:[%s22801_s5] sm:$0xff] %v16945_v33  ;;  %16962 = vst [vmem:[%s22801_s5 + $0x8] sm:$0xff] %v16946_v16  ;;  %v16901_v0 = vmul.f32 %v16887_v57, %v22529_v15  ;;  %v16902_v48 = vmul.f32 %v16887_v57, %v22507_v60  ;;  %v16903_v36 = vmul.f32 %v16887_v57, %v22619_v46 }
0x1099   :  { %16963 = vst [vmem:[%s22801_s5 + $0x10] sm:$0xff] %v16947_v1  ;;  %16964 = vst [vmem:[%s22801_s5 + $0x18] sm:$0xff] %v16948_v55  ;;  %v16904_v26 = vmul.f32 %v16887_v57, %v22586_v61  ;;  %v16921_v60 = vmul.f32 %v16911_v62, %v22484_v59  ;;  %v16922_v15 = vmul.f32 %v16911_v62, %v22478_v13 }
0x109a   :  { %16965 = vst [vmem:[%s22801_s5 + $0x20] sm:$0xff] %v16949_v53  ;;  %16966 = vst [vmem:[%s22801_s5 + $0x28] sm:$0xff] %v16950_v20  ;;  %v16923_v61 = vmul.f32 %v16911_v62, %v22504_v23  ;;  %v16924_v45 = vmul.f32 %v16911_v62, %v22490_v58  ;;  %v16925_v46 = vmul.f32 %v16911_v62, %v22542_v5 }
0x109b   :  { %16967 = vst [vmem:[%s22801_s5 + $0x30] sm:$0xff] %v16951_v14  ;;  %16968 = vst.msk [vmem:[%s22801_s5 + $0x38] sm:$0xff] %vm23017_vm4, %v16952_v24  ;;  %v16926_v3 = vmul.f32 %v16911_v62, %v22524_v42  ;;  %v16927_v50 = vmul.f32 %v16911_v62, %v22622_v11  ;;  %v16928_v54 = vmul.f32 %v16911_v62, %v22604_v17 }
0x109c   :  { %v16937_v35 = vadd.f32 %v16921_v60, %v16897_v63  ;;  %v16938_v57 = vadd.f32 %v16922_v15, %v16898_v25  ;;  %v16939_v2 = vadd.f32 %v16923_v61, %v16899_v30  ;;  %v16940_v37 = vadd.f32 %v16924_v45, %v16900_v27 }
0x109d   :  { %v16941_v12 = vadd.f32 %v16925_v46, %v16901_v0  ;;  %v16942_v59 = vadd.f32 %v16926_v3, %v16902_v48  ;;  %v16943_v19 = vadd.f32 %v16927_v50, %v16903_v36  ;;  %v16944_v13 = vadd.f32 %v16928_v54, %v16904_v26 }
0x109e   :  { %v16953_v23 = vmul.f32 %v16937_v35, %v22583_v9  ;;  %v16954_v58 = vmul.f32 %v16938_v57, %v22573_v38  ;;  %v16955_v5 = vmul.f32 %v16939_v2, %v22627_v52  ;;  %v16956_v42 = vmul.f32 %v16940_v37, %v22609_v51 }
0x109f   :  { %v16957_v11 = vmul.f32 %v16941_v12, %v22663_v44  ;;  %v16958_v17 = vmul.f32 %v16942_v59, %v22654_v34  ;;  %v16959_v18 = vmul.f32 %v16943_v19, %v22689_v49  ;;  %v16960_v63 = vmul.f32 %v16944_v13, %v22683_v43 }
0x10a0   :  { %16969 = vst [vmem:[%s22801_s5 + $0x40] sm:$0xff] %v16953_v23  ;;  %16970 = vst [vmem:[%s22801_s5 + $0x48] sm:$0xff] %v16954_v58 }
0x10a1   :  { %16971 = vst [vmem:[%s22801_s5 + $0x50] sm:$0xff] %v16955_v5  ;;  %16972 = vst [vmem:[%s22801_s5 + $0x58] sm:$0xff] %v16956_v42 }
0x10a2   :  { %16973 = vst [vmem:[%s22801_s5 + $0x60] sm:$0xff] %v16957_v11  ;;  %16974 = vst [vmem:[%s22801_s5 + $0x68] sm:$0xff] %v16958_v17 }
0x10a3   :  { %16975 = vst [vmem:[%s22801_s5 + $0x70] sm:$0xff] %v16959_v18  ;;  %16976 = vst.msk [vmem:[%s22801_s5 + $0x78] sm:$0xff] %vm23018_vm7, %v16960_v63 }

</bundles_post_ra>
